<compile_context>
chip_gen: v5e
topology: v5e:2x2
jax: 0.10.0
libtpu: 0.0.40
codegen_flags: <defaults>
</compile_context>

<pallas_src>
import jax
import jax.numpy as jnp
from jax.experimental import pallas as pl
from jax.experimental.pallas import tpu as pltpu


# ---------------------------------------------------------------------------
# In-kernel building blocks (values already resident in VMEM).
# Internal layout is channel-last (H, W, C): C sits on the lane axis, so the
# reshapes below only touch non-minor dims.
# ---------------------------------------------------------------------------
def _conv3x3_relu(x, w, b):
    """3x3 conv, padding=1, + ReLU.

    x: (H, W, Cin) f32.
    w: (9*Cin, Cout) bf16 with rows ordered (dy, dx, cin)   [im2col path], or
       (9, Cin, Cout) bf16                                  [tiny-Cin path].
    b: (1, Cout) f32.  Returns (H, W, Cout) f32.
    """
    H, W, Cin = x.shape
    Cout = w.shape[-1]

    # Zero padding built in VMEM (no HBM jnp.pad round-trip).
    zc = jnp.zeros((H, 1, Cin), jnp.float32)
    xp = jnp.concatenate([zc, x, zc], axis=1)              # (H, W+2, Cin)
    zr = jnp.zeros((1, W + 2, Cin), jnp.float32)
    xp = jnp.concatenate([zr, xp, zr], axis=0)             # (H+2, W+2, Cin)

    taps = [xp[dy:dy + H, dx:dx + W, :] for dy in range(3) for dx in range(3)]

    if w.ndim == 2:
        # im2col: one MXU matmul with K = 9*Cin, bf16 inputs, f32 accumulate.
        patches = jnp.concatenate(taps, axis=-1)           # (H, W, 9*Cin)
        patches = patches.reshape(H * W, 9 * Cin).astype(jnp.bfloat16)
        y = jnp.dot(patches, w, preferred_element_type=jnp.float32)
    else:
        # Tiny-Cin first layer (Cin=3): 9 small matmuls; each tap weight is a
        # clean leading-dim slice w[k] of shape (Cin, Cout).
        y = jnp.zeros((H * W, Cout), jnp.float32)
        for k, t in enumerate(taps):
            y = y + jnp.dot(t.reshape(H * W, Cin).astype(jnp.bfloat16),
                            w[k],
                            preferred_element_type=jnp.float32)

    y = jnp.maximum(y + b, 0.0)                            # bias + ReLU in f32
    return y.reshape(H, W, Cout)


def _maxpool2(x):
    """2x2 max pool, stride 2.  x: (H, W, C) -> (H//2, W//2, C)."""
    H, W, C = x.shape
    x4 = x.reshape(H // 2, 2, W // 2, 2, C)                # split non-minor dims
    return jnp.maximum(jnp.maximum(x4[:, 0, :, 0, :], x4[:, 0, :, 1, :]),
                       jnp.maximum(x4[:, 1, :, 0, :], x4[:, 1, :, 1, :]))


def _deconv2x2_relu(x, w, b):
    """ConvTranspose2d(kernel=2, stride=2) + ReLU.

    x: (H, W, Cin) f32.  w: (2, 2, Cin, Cout) bf16, where
    w[a, c, ci, co] == torch_weight[ci, co, a, c].  b: (1, Cout) f32.
    Returns (2H, 2W, Cout) f32 with out[2i+a, 2j+c] = x[i, j] @ w[a, c] + b.
    """
    H, W, Cin = x.shape
    Cout = w.shape[-1]
    xm = x.reshape(H * W, Cin).astype(jnp.bfloat16)

    t = [[jnp.dot(xm, w[a, c], preferred_element_type=jnp.float32)
              .reshape(H, W, Cout)
          for c in range(2)] for a in range(2)]

    # Interleave columns then rows (stack/reshape touch non-minor dims only).
    r0 = jnp.stack([t[0][0], t[0][1]], axis=2).reshape(H, 2 * W, Cout)
    r1 = jnp.stack([t[1][0], t[1][1]], axis=2).reshape(H, 2 * W, Cout)
    y = jnp.stack([r0, r1], axis=1).reshape(2 * H, 2 * W, Cout)

    return jnp.maximum(y + b, 0.0)     # single hoisted bias broadcast + ReLU


# ---------------------------------------------------------------------------
# Fused UNet kernel: one grid step == one image, everything stays in VMEM.
# ---------------------------------------------------------------------------
def _unet_kernel(x_ref, ew1, eb1, ew2, eb2, mw1, mb1, mw2, mb2,
                 dw1, db1, dw2, db2, dw3, db3, o_ref):
    h = x_ref[0]                                   # (H, W, 3) f32, NHWC
    # encoder
    h = _conv3x3_relu(h, ew1[...], eb1[...])       # (H,   W,   64)
    h = _conv3x3_relu(h, ew2[...], eb2[...])       # (H,   W,   64)
    h = _maxpool2(h)                               # (H/2, W/2, 64)
    # middle
    h = _conv3x3_relu(h, mw1[...], mb1[...])       # (H/2, W/2, 128)
    h = _conv3x3_relu(h, mw2[...], mb2[...])       # (H/2, W/2, 128)
    h = _maxpool2(h)                               # (H/4, W/4, 128)
    # decoder
    h = _deconv2x2_relu(h, dw1[...], db1[...])     # (H/2, W/2, 64)
    h = _conv3x3_relu(h, dw2[...], db2[...])       # (H/2, W/2, 64)
    h = _deconv2x2_relu(h, dw3[...], db3[...])     # (H,   W,   3)  (ReLU incl.)
    o_ref[0] = h


_PARAM_ORDER = ("ew1", "eb1", "ew2", "eb2", "mw1", "mb1", "mw2", "mb2",
                "dw1", "db1", "dw2", "db2", "dw3", "db3")


def _const_spec(shape):
    nd = len(shape)

    def idx(n):
        return (0,) * nd

    return pl.BlockSpec(shape, idx)


@jax.jit
def unet_forward(x_nchw, kp):
    """x_nchw: (N, 3, H, W) f32 (PyTorch layout).  kp: packed params (pack_params)."""
    N, C, H, W = x_nchw.shape
    assert C == 3 and H % 4 == 0 and W % 4 == 0

    # Tiny (~6 KiB) edge relayout so channels sit on the lane axis in-kernel.
    x_nhwc = jnp.transpose(x_nchw, (0, 2, 3, 1))

    weights = [kp[k] for k in _PARAM_ORDER]
    out_nhwc = pl.pallas_call(
        _unet_kernel,
        out_shape=jax.ShapeDtypeStruct((N, H, W, C), jnp.float32),
        grid=(N,),
        in_specs=([pl.BlockSpec((1, H, W, C), lambda n: (n, 0, 0, 0))]
                  + [_const_spec(wt.shape) for wt in weights]),
        out_specs=pl.BlockSpec((1, H, W, C), lambda n: (n, 0, 0, 0)),
        compiler_params=pltpu.CompilerParams(
            dimension_semantics=("parallel",),     # v7x: one image per TensorCore
            vmem_limit_bytes=32 * 1024 * 1024),
    )(x_nhwc, *weights)

    return jnp.transpose(out_nhwc, (0, 3, 1, 2))   # NHWC -> NCHW (~6 KiB)


# ---------------------------------------------------------------------------
# Parameters: PyTorch layouts + packing into kernel layouts.
# ---------------------------------------------------------------------------
def init_params(key):
    """PyTorch layouts: Conv2d (Cout,Cin,3,3), ConvTranspose2d (Cin,Cout,2,2), bias (C,)."""
    ks = jax.random.split(key, 14)

    def conv_w(k, cin, cout):
        return jax.random.normal(k, (cout, cin, 3, 3), jnp.float32) / jnp.sqrt(9.0 * cin)

    def deconv_w(k, cin, cout):
        return jax.random.normal(k, (cin, cout, 2, 2), jnp.float32) / jnp.sqrt(4.0 * cin)

    def bias(k, c):
        return 0.01 * jax.random.normal(k, (c,), jnp.float32)

    return {
        "ew1": conv_w(ks[0], 3, 64),     "eb1": bias(ks[1], 64),
        "ew2": conv_w(ks[2], 64, 64),    "eb2": bias(ks[3], 64),
        "mw1": conv_w(ks[4], 64, 128),   "mb1": bias(ks[5], 128),
        "mw2": conv_w(ks[6], 128, 128),  "mb2": bias(ks[7], 128),
        "dw1": deconv_w(ks[8], 128, 64), "db1": bias(ks[9], 64),
        "dw2": conv_w(ks[10], 64, 64),   "db2": bias(ks[11], 64),
        "dw3": deconv_w(ks[12], 64, 3),  "db3": bias(ks[13], 3),
    }


def pack_params(p):
    """PyTorch layouts -> kernel layouts (bf16 matmul weights, f32 biases)."""
    def conv_w(w):      # (Cout,Cin,3,3) -> (9*Cin, Cout), rows ordered (dy, dx, cin)
        cout, cin = w.shape[0], w.shape[1]
        return jnp.transpose(w, (2, 3, 1, 0)).reshape(9 * cin, cout).astype(jnp.bfloat16)

    def conv_w_small(w):  # (Cout,Cin,3,3) -> (9, Cin, Cout), tap-major (dy, dx)
        cout, cin = w.shape[0], w.shape[1]
        return jnp.transpose(w, (2, 3, 1, 0)).reshape(9, cin, cout).astype(jnp.bfloat16)

    def deconv_w(w):    # (Cin,Cout,2,2) -> (2, 2, Cin, Cout)
        return jnp.transpose(w, (2, 3, 0, 1)).astype(jnp.bfloat16)

    def vec(b):         # (C,) -> (1, C), kept f32 for the VPU epilogue
        return b.reshape(1, -1).astype(jnp.float32)

    return {
        "ew1": conv_w_small(p["ew1"]),  "eb1": vec(p["eb1"]),
        "ew2": conv_w(p["ew2"]),        "eb2": vec(p["eb2"]),
        "mw1": conv_w(p["mw1"]),        "mb1": vec(p["mb1"]),
        "mw2": conv_w(p["mw2"]),        "mb2": vec(p["mb2"]),
        "dw1": deconv_w(p["dw1"]),      "db1": vec(p["db1"]),
        "dw2": conv_w(p["dw2"]),        "db2": vec(p["db2"]),
        "dw3": deconv_w(p["dw3"]),      "db3": vec(p["db3"]),
    }


if __name__ == "__main__":
    key = jax.random.PRNGKey(0)
    kx, kw = jax.random.split(key)
    x = jax.random.normal(kx, (2, 3, 16, 16), jnp.float32)   # NCHW, like PyTorch
    params = pack_params(init_params(kw))

    out = unet_forward(x, params)
    jax.block_until_ready(out)

    assert out.shape == (2, 3, 16, 16), out.shape
    assert bool(jnp.all(jnp.isfinite(out)))
    print("KERNEL_OK")
</pallas_src>

<mosaic_0001>
module attributes {stable_mosaic.version = 11 : i64} {
  func.func @_unet_kernel(%arg0: i32, %arg1: memref<1x16x16x3xf32, #tpu.memory_space<vmem>>, %arg2: memref<9x3x64xbf16, #tpu.memory_space<vmem>>, %arg3: memref<1x64xf32, #tpu.memory_space<vmem>>, %arg4: memref<576x64xbf16, #tpu.memory_space<vmem>>, %arg5: memref<1x64xf32, #tpu.memory_space<vmem>>, %arg6: memref<576x128xbf16, #tpu.memory_space<vmem>>, %arg7: memref<1x128xf32, #tpu.memory_space<vmem>>, %arg8: memref<1152x128xbf16, #tpu.memory_space<vmem>>, %arg9: memref<1x128xf32, #tpu.memory_space<vmem>>, %arg10: memref<2x2x128x64xbf16, #tpu.memory_space<vmem>>, %arg11: memref<1x64xf32, #tpu.memory_space<vmem>>, %arg12: memref<576x64xbf16, #tpu.memory_space<vmem>>, %arg13: memref<1x64xf32, #tpu.memory_space<vmem>>, %arg14: memref<2x2x64x3xbf16, #tpu.memory_space<vmem>>, %arg15: memref<1x3xf32, #tpu.memory_space<vmem>>, %arg16: memref<1x16x16x3xf32, #tpu.memory_space<vmem>>) attributes {dimension_semantics = [#tpu.dimension_semantics<parallel>], iteration_bounds = array<i64: 2>, scalar_prefetch = 0 : i64, scratch_operands = 0 : i64, tpu.core_type = #tpu.core_type<tc>, window_params = [{transform_indices = @transform_0, window_bounds = array<i64: 1, 16, 16, 3>}, {pipeline_mode = #tpu.pipeline_mode<synchronous>, transform_indices = @transform_1, window_bounds = array<i64: 9, 3, 64>}, {pipeline_mode = #tpu.pipeline_mode<synchronous>, transform_indices = @transform_2, window_bounds = array<i64: 1, 64>}, {pipeline_mode = #tpu.pipeline_mode<synchronous>, transform_indices = @transform_3, window_bounds = array<i64: 576, 64>}, {pipeline_mode = #tpu.pipeline_mode<synchronous>, transform_indices = @transform_4, window_bounds = array<i64: 1, 64>}, {pipeline_mode = #tpu.pipeline_mode<synchronous>, transform_indices = @transform_5, window_bounds = array<i64: 576, 128>}, {pipeline_mode = #tpu.pipeline_mode<synchronous>, transform_indices = @transform_6, window_bounds = array<i64: 1, 128>}, {pipeline_mode = #tpu.pipeline_mode<synchronous>, transform_indices = @transform_7, window_bounds = array<i64: 1152, 128>}, {pipeline_mode = #tpu.pipeline_mode<synchronous>, transform_indices = @transform_8, window_bounds = array<i64: 1, 128>}, {pipeline_mode = #tpu.pipeline_mode<synchronous>, transform_indices = @transform_9, window_bounds = array<i64: 2, 2, 128, 64>}, {pipeline_mode = #tpu.pipeline_mode<synchronous>, transform_indices = @transform_10, window_bounds = array<i64: 1, 64>}, {pipeline_mode = #tpu.pipeline_mode<synchronous>, transform_indices = @transform_11, window_bounds = array<i64: 576, 64>}, {pipeline_mode = #tpu.pipeline_mode<synchronous>, transform_indices = @transform_12, window_bounds = array<i64: 1, 64>}, {pipeline_mode = #tpu.pipeline_mode<synchronous>, transform_indices = @transform_13, window_bounds = array<i64: 2, 2, 64, 3>}, {pipeline_mode = #tpu.pipeline_mode<synchronous>, transform_indices = @transform_14, window_bounds = array<i64: 1, 3>}, {transform_indices = @transform_15, window_bounds = array<i64: 1, 16, 16, 3>}]} {
    %c0 = arith.constant 0 : index
    %c0_0 = arith.constant 0 : index
    %c0_1 = arith.constant 0 : index
    %c0_2 = arith.constant 0 : index
    %0 = vector.load %arg1[%c0, %c0_0, %c0_1, %c0_2] : memref<1x16x16x3xf32, #tpu.memory_space<vmem>>, vector<1x16x16x3xf32>
    %1 = vector.shape_cast %0 : vector<1x16x16x3xf32> to vector<16x16x3xf32>
    %c0_3 = arith.constant 0 : index
    %c0_4 = arith.constant 0 : index
    %c0_5 = arith.constant 0 : index
    %2 = vector.load %arg2[%c0_3, %c0_4, %c0_5] : memref<9x3x64xbf16, #tpu.memory_space<vmem>>, vector<9x3x64xbf16>
    %c0_6 = arith.constant 0 : index
    %c0_7 = arith.constant 0 : index
    %3 = vector.load %arg3[%c0_6, %c0_7] : memref<1x64xf32, #tpu.memory_space<vmem>>, vector<1x64xf32>
    %cst = arith.constant 0.000000e+00 : f32
    %4 = vector.broadcast %cst : f32 to vector<16x1x3xf32>
    %5 = tpu.concatenate %4, %1, %4 in 1 : vector<16x1x3xf32>, vector<16x16x3xf32>, vector<16x1x3xf32> -> vector<16x18x3xf32>
    %cst_8 = arith.constant 0.000000e+00 : f32
    %6 = vector.broadcast %cst_8 : f32 to vector<1x18x3xf32>
    %7 = tpu.concatenate %6, %5, %6 in 0 : vector<1x18x3xf32>, vector<16x18x3xf32>, vector<1x18x3xf32> -> vector<18x18x3xf32>
    %8 = vector.extract_strided_slice %7 {offsets = [0, 0, 0], sizes = [16, 16, 3], strides = [1, 1, 1]} : vector<18x18x3xf32> to vector<16x16x3xf32>
    %9 = vector.extract_strided_slice %7 {offsets = [0, 1, 0], sizes = [16, 16, 3], strides = [1, 1, 1]} : vector<18x18x3xf32> to vector<16x16x3xf32>
    %10 = vector.extract_strided_slice %7 {offsets = [0, 2, 0], sizes = [16, 16, 3], strides = [1, 1, 1]} : vector<18x18x3xf32> to vector<16x16x3xf32>
    %11 = vector.extract_strided_slice %7 {offsets = [1, 0, 0], sizes = [16, 16, 3], strides = [1, 1, 1]} : vector<18x18x3xf32> to vector<16x16x3xf32>
    %12 = vector.extract_strided_slice %7 {offsets = [1, 1, 0], sizes = [16, 16, 3], strides = [1, 1, 1]} : vector<18x18x3xf32> to vector<16x16x3xf32>
    %13 = vector.extract_strided_slice %7 {offsets = [1, 2, 0], sizes = [16, 16, 3], strides = [1, 1, 1]} : vector<18x18x3xf32> to vector<16x16x3xf32>
    %14 = vector.extract_strided_slice %7 {offsets = [2, 0, 0], sizes = [16, 16, 3], strides = [1, 1, 1]} : vector<18x18x3xf32> to vector<16x16x3xf32>
    %15 = vector.extract_strided_slice %7 {offsets = [2, 1, 0], sizes = [16, 16, 3], strides = [1, 1, 1]} : vector<18x18x3xf32> to vector<16x16x3xf32>
    %16 = vector.extract_strided_slice %7 {offsets = [2, 2, 0], sizes = [16, 16, 3], strides = [1, 1, 1]} : vector<18x18x3xf32> to vector<16x16x3xf32>
    %cst_9 = arith.constant 0.000000e+00 : f32
    %17 = vector.broadcast %cst_9 : f32 to vector<256x64xf32>
    %18 = vector.shape_cast %8 : vector<16x16x3xf32> to vector<256x3xf32>
    %19 = arith.truncf %18 : vector<256x3xf32> to vector<256x3xbf16>
    %20 = vector.extract_strided_slice %2 {offsets = [0, 0, 0], sizes = [1, 3, 64], strides = [1, 1, 1]} : vector<9x3x64xbf16> to vector<1x3x64xbf16>
    %21 = vector.shape_cast %20 : vector<1x3x64xbf16> to vector<3x64xbf16>
    %cst_10 = arith.constant dense<0.000000e+00> : vector<256x64xf32>
    %22 = tpu.matmul %19, %21, %cst_10 {dimension_numbers = #tpu.dot_dimension_numbers<[1], [0], [0], [1], [0, 0, 1, 1], [], []>} : vector<256x3xbf16>, vector<3x64xbf16>, vector<256x64xf32> -> vector<256x64xf32>
    %23 = arith.addf %17, %22 : vector<256x64xf32>
    %24 = vector.shape_cast %9 : vector<16x16x3xf32> to vector<256x3xf32>
    %25 = arith.truncf %24 : vector<256x3xf32> to vector<256x3xbf16>
    %26 = vector.extract_strided_slice %2 {offsets = [1, 0, 0], sizes = [1, 3, 64], strides = [1, 1, 1]} : vector<9x3x64xbf16> to vector<1x3x64xbf16>
    %27 = vector.shape_cast %26 : vector<1x3x64xbf16> to vector<3x64xbf16>
    %cst_11 = arith.constant dense<0.000000e+00> : vector<256x64xf32>
    %28 = tpu.matmul %25, %27, %cst_11 {dimension_numbers = #tpu.dot_dimension_numbers<[1], [0], [0], [1], [0, 0, 1, 1], [], []>} : vector<256x3xbf16>, vector<3x64xbf16>, vector<256x64xf32> -> vector<256x64xf32>
    %29 = arith.addf %23, %28 : vector<256x64xf32>
    %30 = vector.shape_cast %10 : vector<16x16x3xf32> to vector<256x3xf32>
    %31 = arith.truncf %30 : vector<256x3xf32> to vector<256x3xbf16>
    %32 = vector.extract_strided_slice %2 {offsets = [2, 0, 0], sizes = [1, 3, 64], strides = [1, 1, 1]} : vector<9x3x64xbf16> to vector<1x3x64xbf16>
    %33 = vector.shape_cast %32 : vector<1x3x64xbf16> to vector<3x64xbf16>
    %cst_12 = arith.constant dense<0.000000e+00> : vector<256x64xf32>
    %34 = tpu.matmul %31, %33, %cst_12 {dimension_numbers = #tpu.dot_dimension_numbers<[1], [0], [0], [1], [0, 0, 1, 1], [], []>} : vector<256x3xbf16>, vector<3x64xbf16>, vector<256x64xf32> -> vector<256x64xf32>
    %35 = arith.addf %29, %34 : vector<256x64xf32>
    %36 = vector.shape_cast %11 : vector<16x16x3xf32> to vector<256x3xf32>
    %37 = arith.truncf %36 : vector<256x3xf32> to vector<256x3xbf16>
    %38 = vector.extract_strided_slice %2 {offsets = [3, 0, 0], sizes = [1, 3, 64], strides = [1, 1, 1]} : vector<9x3x64xbf16> to vector<1x3x64xbf16>
    %39 = vector.shape_cast %38 : vector<1x3x64xbf16> to vector<3x64xbf16>
    %cst_13 = arith.constant dense<0.000000e+00> : vector<256x64xf32>
    %40 = tpu.matmul %37, %39, %cst_13 {dimension_numbers = #tpu.dot_dimension_numbers<[1], [0], [0], [1], [0, 0, 1, 1], [], []>} : vector<256x3xbf16>, vector<3x64xbf16>, vector<256x64xf32> -> vector<256x64xf32>
    %41 = arith.addf %35, %40 : vector<256x64xf32>
    %42 = vector.shape_cast %12 : vector<16x16x3xf32> to vector<256x3xf32>
    %43 = arith.truncf %42 : vector<256x3xf32> to vector<256x3xbf16>
    %44 = vector.extract_strided_slice %2 {offsets = [4, 0, 0], sizes = [1, 3, 64], strides = [1, 1, 1]} : vector<9x3x64xbf16> to vector<1x3x64xbf16>
    %45 = vector.shape_cast %44 : vector<1x3x64xbf16> to vector<3x64xbf16>
    %cst_14 = arith.constant dense<0.000000e+00> : vector<256x64xf32>
    %46 = tpu.matmul %43, %45, %cst_14 {dimension_numbers = #tpu.dot_dimension_numbers<[1], [0], [0], [1], [0, 0, 1, 1], [], []>} : vector<256x3xbf16>, vector<3x64xbf16>, vector<256x64xf32> -> vector<256x64xf32>
    %47 = arith.addf %41, %46 : vector<256x64xf32>
    %48 = vector.shape_cast %13 : vector<16x16x3xf32> to vector<256x3xf32>
    %49 = arith.truncf %48 : vector<256x3xf32> to vector<256x3xbf16>
    %50 = vector.extract_strided_slice %2 {offsets = [5, 0, 0], sizes = [1, 3, 64], strides = [1, 1, 1]} : vector<9x3x64xbf16> to vector<1x3x64xbf16>
    %51 = vector.shape_cast %50 : vector<1x3x64xbf16> to vector<3x64xbf16>
    %cst_15 = arith.constant dense<0.000000e+00> : vector<256x64xf32>
    %52 = tpu.matmul %49, %51, %cst_15 {dimension_numbers = #tpu.dot_dimension_numbers<[1], [0], [0], [1], [0, 0, 1, 1], [], []>} : vector<256x3xbf16>, vector<3x64xbf16>, vector<256x64xf32> -> vector<256x64xf32>
    %53 = arith.addf %47, %52 : vector<256x64xf32>
    %54 = vector.shape_cast %14 : vector<16x16x3xf32> to vector<256x3xf32>
    %55 = arith.truncf %54 : vector<256x3xf32> to vector<256x3xbf16>
    %56 = vector.extract_strided_slice %2 {offsets = [6, 0, 0], sizes = [1, 3, 64], strides = [1, 1, 1]} : vector<9x3x64xbf16> to vector<1x3x64xbf16>
    %57 = vector.shape_cast %56 : vector<1x3x64xbf16> to vector<3x64xbf16>
    %cst_16 = arith.constant dense<0.000000e+00> : vector<256x64xf32>
    %58 = tpu.matmul %55, %57, %cst_16 {dimension_numbers = #tpu.dot_dimension_numbers<[1], [0], [0], [1], [0, 0, 1, 1], [], []>} : vector<256x3xbf16>, vector<3x64xbf16>, vector<256x64xf32> -> vector<256x64xf32>
    %59 = arith.addf %53, %58 : vector<256x64xf32>
    %60 = vector.shape_cast %15 : vector<16x16x3xf32> to vector<256x3xf32>
    %61 = arith.truncf %60 : vector<256x3xf32> to vector<256x3xbf16>
    %62 = vector.extract_strided_slice %2 {offsets = [7, 0, 0], sizes = [1, 3, 64], strides = [1, 1, 1]} : vector<9x3x64xbf16> to vector<1x3x64xbf16>
    %63 = vector.shape_cast %62 : vector<1x3x64xbf16> to vector<3x64xbf16>
    %cst_17 = arith.constant dense<0.000000e+00> : vector<256x64xf32>
    %64 = tpu.matmul %61, %63, %cst_17 {dimension_numbers = #tpu.dot_dimension_numbers<[1], [0], [0], [1], [0, 0, 1, 1], [], []>} : vector<256x3xbf16>, vector<3x64xbf16>, vector<256x64xf32> -> vector<256x64xf32>
    %65 = arith.addf %59, %64 : vector<256x64xf32>
    %66 = vector.shape_cast %16 : vector<16x16x3xf32> to vector<256x3xf32>
    %67 = arith.truncf %66 : vector<256x3xf32> to vector<256x3xbf16>
    %68 = vector.extract_strided_slice %2 {offsets = [8, 0, 0], sizes = [1, 3, 64], strides = [1, 1, 1]} : vector<9x3x64xbf16> to vector<1x3x64xbf16>
    %69 = vector.shape_cast %68 : vector<1x3x64xbf16> to vector<3x64xbf16>
    %cst_18 = arith.constant dense<0.000000e+00> : vector<256x64xf32>
    %70 = tpu.matmul %67, %69, %cst_18 {dimension_numbers = #tpu.dot_dimension_numbers<[1], [0], [0], [1], [0, 0, 1, 1], [], []>} : vector<256x3xbf16>, vector<3x64xbf16>, vector<256x64xf32> -> vector<256x64xf32>
    %71 = arith.addf %65, %70 : vector<256x64xf32>
    %72 = vector.broadcast %3 : vector<1x64xf32> to vector<256x64xf32>
    %73 = arith.addf %71, %72 : vector<256x64xf32>
    %cst_19 = arith.constant 0.000000e+00 : f32
    %74 = vector.broadcast %cst_19 : f32 to vector<256x64xf32>
    %75 = arith.maximumf %73, %74 : vector<256x64xf32>
    %76 = vector.shape_cast %75 : vector<256x64xf32> to vector<16x16x64xf32>
    %c0_20 = arith.constant 0 : index
    %c0_21 = arith.constant 0 : index
    %77 = vector.load %arg4[%c0_20, %c0_21] : memref<576x64xbf16, #tpu.memory_space<vmem>>, vector<576x64xbf16>
    %c0_22 = arith.constant 0 : index
    %c0_23 = arith.constant 0 : index
    %78 = vector.load %arg5[%c0_22, %c0_23] : memref<1x64xf32, #tpu.memory_space<vmem>>, vector<1x64xf32>
    %cst_24 = arith.constant 0.000000e+00 : f32
    %79 = vector.broadcast %cst_24 : f32 to vector<16x1x64xf32>
    %80 = tpu.concatenate %79, %76, %79 in 1 : vector<16x1x64xf32>, vector<16x16x64xf32>, vector<16x1x64xf32> -> vector<16x18x64xf32>
    %cst_25 = arith.constant 0.000000e+00 : f32
    %81 = vector.broadcast %cst_25 : f32 to vector<1x18x64xf32>
    %82 = tpu.concatenate %81, %80, %81 in 0 : vector<1x18x64xf32>, vector<16x18x64xf32>, vector<1x18x64xf32> -> vector<18x18x64xf32>
    %83 = vector.extract_strided_slice %82 {offsets = [0, 0, 0], sizes = [16, 16, 64], strides = [1, 1, 1]} : vector<18x18x64xf32> to vector<16x16x64xf32>
    %84 = vector.extract_strided_slice %82 {offsets = [0, 1, 0], sizes = [16, 16, 64], strides = [1, 1, 1]} : vector<18x18x64xf32> to vector<16x16x64xf32>
    %85 = vector.extract_strided_slice %82 {offsets = [0, 2, 0], sizes = [16, 16, 64], strides = [1, 1, 1]} : vector<18x18x64xf32> to vector<16x16x64xf32>
    %86 = vector.extract_strided_slice %82 {offsets = [1, 0, 0], sizes = [16, 16, 64], strides = [1, 1, 1]} : vector<18x18x64xf32> to vector<16x16x64xf32>
    %87 = vector.extract_strided_slice %82 {offsets = [1, 1, 0], sizes = [16, 16, 64], strides = [1, 1, 1]} : vector<18x18x64xf32> to vector<16x16x64xf32>
    %88 = vector.extract_strided_slice %82 {offsets = [1, 2, 0], sizes = [16, 16, 64], strides = [1, 1, 1]} : vector<18x18x64xf32> to vector<16x16x64xf32>
    %89 = vector.extract_strided_slice %82 {offsets = [2, 0, 0], sizes = [16, 16, 64], strides = [1, 1, 1]} : vector<18x18x64xf32> to vector<16x16x64xf32>
    %90 = vector.extract_strided_slice %82 {offsets = [2, 1, 0], sizes = [16, 16, 64], strides = [1, 1, 1]} : vector<18x18x64xf32> to vector<16x16x64xf32>
    %91 = vector.extract_strided_slice %82 {offsets = [2, 2, 0], sizes = [16, 16, 64], strides = [1, 1, 1]} : vector<18x18x64xf32> to vector<16x16x64xf32>
    %92 = tpu.concatenate %83, %84, %85, %86, %87, %88, %89, %90, %91 in 2 : vector<16x16x64xf32>, vector<16x16x64xf32>, vector<16x16x64xf32>, vector<16x16x64xf32>, vector<16x16x64xf32>, vector<16x16x64xf32>, vector<16x16x64xf32>, vector<16x16x64xf32>, vector<16x16x64xf32> -> vector<16x16x576xf32>
    %93 = vector.shape_cast %92 : vector<16x16x576xf32> to vector<256x576xf32>
    %94 = arith.truncf %93 : vector<256x576xf32> to vector<256x576xbf16>
    %cst_26 = arith.constant dense<0.000000e+00> : vector<256x64xf32>
    %95 = tpu.matmul %94, %77, %cst_26 {dimension_numbers = #tpu.dot_dimension_numbers<[1], [0], [0], [1], [0, 0, 1, 1], [], []>} : vector<256x576xbf16>, vector<576x64xbf16>, vector<256x64xf32> -> vector<256x64xf32>
    %96 = vector.broadcast %78 : vector<1x64xf32> to vector<256x64xf32>
    %97 = arith.addf %95, %96 : vector<256x64xf32>
    %cst_27 = arith.constant 0.000000e+00 : f32
    %98 = vector.broadcast %cst_27 : f32 to vector<256x64xf32>
    %99 = arith.maximumf %97, %98 : vector<256x64xf32>
    %100 = vector.shape_cast %99 : vector<256x64xf32> to vector<16x16x64xf32>
    %101 = vector.shape_cast %100 : vector<16x16x64xf32> to vector<8x2x8x2x64xf32>
    %102 = vector.extract_strided_slice %101 {offsets = [0, 0, 0, 0, 0], sizes = [8, 1, 8, 1, 64], strides = [1, 1, 1, 1, 1]} : vector<8x2x8x2x64xf32> to vector<8x1x8x1x64xf32>
    %103 = vector.shape_cast %102 : vector<8x1x8x1x64xf32> to vector<8x8x64xf32>
    %104 = vector.extract_strided_slice %101 {offsets = [0, 0, 0, 1, 0], sizes = [8, 1, 8, 1, 64], strides = [1, 1, 1, 1, 1]} : vector<8x2x8x2x64xf32> to vector<8x1x8x1x64xf32>
    %105 = vector.shape_cast %104 : vector<8x1x8x1x64xf32> to vector<8x8x64xf32>
    %106 = arith.maximumf %103, %105 : vector<8x8x64xf32>
    %107 = vector.extract_strided_slice %101 {offsets = [0, 1, 0, 0, 0], sizes = [8, 1, 8, 1, 64], strides = [1, 1, 1, 1, 1]} : vector<8x2x8x2x64xf32> to vector<8x1x8x1x64xf32>
    %108 = vector.shape_cast %107 : vector<8x1x8x1x64xf32> to vector<8x8x64xf32>
    %109 = vector.extract_strided_slice %101 {offsets = [0, 1, 0, 1, 0], sizes = [8, 1, 8, 1, 64], strides = [1, 1, 1, 1, 1]} : vector<8x2x8x2x64xf32> to vector<8x1x8x1x64xf32>
    %110 = vector.shape_cast %109 : vector<8x1x8x1x64xf32> to vector<8x8x64xf32>
    %111 = arith.maximumf %108, %110 : vector<8x8x64xf32>
    %112 = arith.maximumf %106, %111 : vector<8x8x64xf32>
    %c0_28 = arith.constant 0 : index
    %c0_29 = arith.constant 0 : index
    %113 = vector.load %arg6[%c0_28, %c0_29] : memref<576x128xbf16, #tpu.memory_space<vmem>>, vector<576x128xbf16>
    %c0_30 = arith.constant 0 : index
    %c0_31 = arith.constant 0 : index
    %114 = vector.load %arg7[%c0_30, %c0_31] : memref<1x128xf32, #tpu.memory_space<vmem>>, vector<1x128xf32>
    %cst_32 = arith.constant 0.000000e+00 : f32
    %115 = vector.broadcast %cst_32 : f32 to vector<8x1x64xf32>
    %116 = tpu.concatenate %115, %112, %115 in 1 : vector<8x1x64xf32>, vector<8x8x64xf32>, vector<8x1x64xf32> -> vector<8x10x64xf32>
    %cst_33 = arith.constant 0.000000e+00 : f32
    %117 = vector.broadcast %cst_33 : f32 to vector<1x10x64xf32>
    %118 = tpu.concatenate %117, %116, %117 in 0 : vector<1x10x64xf32>, vector<8x10x64xf32>, vector<1x10x64xf32> -> vector<10x10x64xf32>
    %119 = vector.extract_strided_slice %118 {offsets = [0, 0, 0], sizes = [8, 8, 64], strides = [1, 1, 1]} : vector<10x10x64xf32> to vector<8x8x64xf32>
    %120 = vector.extract_strided_slice %118 {offsets = [0, 1, 0], sizes = [8, 8, 64], strides = [1, 1, 1]} : vector<10x10x64xf32> to vector<8x8x64xf32>
    %121 = vector.extract_strided_slice %118 {offsets = [0, 2, 0], sizes = [8, 8, 64], strides = [1, 1, 1]} : vector<10x10x64xf32> to vector<8x8x64xf32>
    %122 = vector.extract_strided_slice %118 {offsets = [1, 0, 0], sizes = [8, 8, 64], strides = [1, 1, 1]} : vector<10x10x64xf32> to vector<8x8x64xf32>
    %123 = vector.extract_strided_slice %118 {offsets = [1, 1, 0], sizes = [8, 8, 64], strides = [1, 1, 1]} : vector<10x10x64xf32> to vector<8x8x64xf32>
    %124 = vector.extract_strided_slice %118 {offsets = [1, 2, 0], sizes = [8, 8, 64], strides = [1, 1, 1]} : vector<10x10x64xf32> to vector<8x8x64xf32>
    %125 = vector.extract_strided_slice %118 {offsets = [2, 0, 0], sizes = [8, 8, 64], strides = [1, 1, 1]} : vector<10x10x64xf32> to vector<8x8x64xf32>
    %126 = vector.extract_strided_slice %118 {offsets = [2, 1, 0], sizes = [8, 8, 64], strides = [1, 1, 1]} : vector<10x10x64xf32> to vector<8x8x64xf32>
    %127 = vector.extract_strided_slice %118 {offsets = [2, 2, 0], sizes = [8, 8, 64], strides = [1, 1, 1]} : vector<10x10x64xf32> to vector<8x8x64xf32>
    %128 = tpu.concatenate %119, %120, %121, %122, %123, %124, %125, %126, %127 in 2 : vector<8x8x64xf32>, vector<8x8x64xf32>, vector<8x8x64xf32>, vector<8x8x64xf32>, vector<8x8x64xf32>, vector<8x8x64xf32>, vector<8x8x64xf32>, vector<8x8x64xf32>, vector<8x8x64xf32> -> vector<8x8x576xf32>
    %129 = vector.shape_cast %128 : vector<8x8x576xf32> to vector<64x576xf32>
    %130 = arith.truncf %129 : vector<64x576xf32> to vector<64x576xbf16>
    %cst_34 = arith.constant dense<0.000000e+00> : vector<64x128xf32>
    %131 = tpu.matmul %130, %113, %cst_34 {dimension_numbers = #tpu.dot_dimension_numbers<[1], [0], [0], [1], [0, 0, 1, 1], [], []>} : vector<64x576xbf16>, vector<576x128xbf16>, vector<64x128xf32> -> vector<64x128xf32>
    %132 = vector.broadcast %114 : vector<1x128xf32> to vector<64x128xf32>
    %133 = arith.addf %131, %132 : vector<64x128xf32>
    %cst_35 = arith.constant 0.000000e+00 : f32
    %134 = vector.broadcast %cst_35 : f32 to vector<64x128xf32>
    %135 = arith.maximumf %133, %134 : vector<64x128xf32>
    %136 = vector.shape_cast %135 : vector<64x128xf32> to vector<8x8x128xf32>
    %c0_36 = arith.constant 0 : index
    %c0_37 = arith.constant 0 : index
    %137 = vector.load %arg8[%c0_36, %c0_37] : memref<1152x128xbf16, #tpu.memory_space<vmem>>, vector<1152x128xbf16>
    %c0_38 = arith.constant 0 : index
    %c0_39 = arith.constant 0 : index
    %138 = vector.load %arg9[%c0_38, %c0_39] : memref<1x128xf32, #tpu.memory_space<vmem>>, vector<1x128xf32>
    %cst_40 = arith.constant 0.000000e+00 : f32
    %139 = vector.broadcast %cst_40 : f32 to vector<8x1x128xf32>
    %140 = tpu.concatenate %139, %136, %139 in 1 : vector<8x1x128xf32>, vector<8x8x128xf32>, vector<8x1x128xf32> -> vector<8x10x128xf32>
    %cst_41 = arith.constant 0.000000e+00 : f32
    %141 = vector.broadcast %cst_41 : f32 to vector<1x10x128xf32>
    %142 = tpu.concatenate %141, %140, %141 in 0 : vector<1x10x128xf32>, vector<8x10x128xf32>, vector<1x10x128xf32> -> vector<10x10x128xf32>
    %143 = vector.extract_strided_slice %142 {offsets = [0, 0, 0], sizes = [8, 8, 128], strides = [1, 1, 1]} : vector<10x10x128xf32> to vector<8x8x128xf32>
    %144 = vector.extract_strided_slice %142 {offsets = [0, 1, 0], sizes = [8, 8, 128], strides = [1, 1, 1]} : vector<10x10x128xf32> to vector<8x8x128xf32>
    %145 = vector.extract_strided_slice %142 {offsets = [0, 2, 0], sizes = [8, 8, 128], strides = [1, 1, 1]} : vector<10x10x128xf32> to vector<8x8x128xf32>
    %146 = vector.extract_strided_slice %142 {offsets = [1, 0, 0], sizes = [8, 8, 128], strides = [1, 1, 1]} : vector<10x10x128xf32> to vector<8x8x128xf32>
    %147 = vector.extract_strided_slice %142 {offsets = [1, 1, 0], sizes = [8, 8, 128], strides = [1, 1, 1]} : vector<10x10x128xf32> to vector<8x8x128xf32>
    %148 = vector.extract_strided_slice %142 {offsets = [1, 2, 0], sizes = [8, 8, 128], strides = [1, 1, 1]} : vector<10x10x128xf32> to vector<8x8x128xf32>
    %149 = vector.extract_strided_slice %142 {offsets = [2, 0, 0], sizes = [8, 8, 128], strides = [1, 1, 1]} : vector<10x10x128xf32> to vector<8x8x128xf32>
    %150 = vector.extract_strided_slice %142 {offsets = [2, 1, 0], sizes = [8, 8, 128], strides = [1, 1, 1]} : vector<10x10x128xf32> to vector<8x8x128xf32>
    %151 = vector.extract_strided_slice %142 {offsets = [2, 2, 0], sizes = [8, 8, 128], strides = [1, 1, 1]} : vector<10x10x128xf32> to vector<8x8x128xf32>
    %152 = tpu.concatenate %143, %144, %145, %146, %147, %148, %149, %150, %151 in 2 : vector<8x8x128xf32>, vector<8x8x128xf32>, vector<8x8x128xf32>, vector<8x8x128xf32>, vector<8x8x128xf32>, vector<8x8x128xf32>, vector<8x8x128xf32>, vector<8x8x128xf32>, vector<8x8x128xf32> -> vector<8x8x1152xf32>
    %153 = vector.shape_cast %152 : vector<8x8x1152xf32> to vector<64x1152xf32>
    %154 = arith.truncf %153 : vector<64x1152xf32> to vector<64x1152xbf16>
    %cst_42 = arith.constant dense<0.000000e+00> : vector<64x128xf32>
    %155 = tpu.matmul %154, %137, %cst_42 {dimension_numbers = #tpu.dot_dimension_numbers<[1], [0], [0], [1], [0, 0, 1, 1], [], []>} : vector<64x1152xbf16>, vector<1152x128xbf16>, vector<64x128xf32> -> vector<64x128xf32>
    %156 = vector.broadcast %138 : vector<1x128xf32> to vector<64x128xf32>
    %157 = arith.addf %155, %156 : vector<64x128xf32>
    %cst_43 = arith.constant 0.000000e+00 : f32
    %158 = vector.broadcast %cst_43 : f32 to vector<64x128xf32>
    %159 = arith.maximumf %157, %158 : vector<64x128xf32>
    %160 = vector.shape_cast %159 : vector<64x128xf32> to vector<8x8x128xf32>
    %161 = vector.shape_cast %160 : vector<8x8x128xf32> to vector<4x2x4x2x128xf32>
    %162 = vector.extract_strided_slice %161 {offsets = [0, 0, 0, 0, 0], sizes = [4, 1, 4, 1, 128], strides = [1, 1, 1, 1, 1]} : vector<4x2x4x2x128xf32> to vector<4x1x4x1x128xf32>
    %163 = vector.shape_cast %162 : vector<4x1x4x1x128xf32> to vector<4x4x128xf32>
    %164 = vector.extract_strided_slice %161 {offsets = [0, 0, 0, 1, 0], sizes = [4, 1, 4, 1, 128], strides = [1, 1, 1, 1, 1]} : vector<4x2x4x2x128xf32> to vector<4x1x4x1x128xf32>
    %165 = vector.shape_cast %164 : vector<4x1x4x1x128xf32> to vector<4x4x128xf32>
    %166 = arith.maximumf %163, %165 : vector<4x4x128xf32>
    %167 = vector.extract_strided_slice %161 {offsets = [0, 1, 0, 0, 0], sizes = [4, 1, 4, 1, 128], strides = [1, 1, 1, 1, 1]} : vector<4x2x4x2x128xf32> to vector<4x1x4x1x128xf32>
    %168 = vector.shape_cast %167 : vector<4x1x4x1x128xf32> to vector<4x4x128xf32>
    %169 = vector.extract_strided_slice %161 {offsets = [0, 1, 0, 1, 0], sizes = [4, 1, 4, 1, 128], strides = [1, 1, 1, 1, 1]} : vector<4x2x4x2x128xf32> to vector<4x1x4x1x128xf32>
    %170 = vector.shape_cast %169 : vector<4x1x4x1x128xf32> to vector<4x4x128xf32>
    %171 = arith.maximumf %168, %170 : vector<4x4x128xf32>
    %172 = arith.maximumf %166, %171 : vector<4x4x128xf32>
    %c0_44 = arith.constant 0 : index
    %c0_45 = arith.constant 0 : index
    %c0_46 = arith.constant 0 : index
    %c0_47 = arith.constant 0 : index
    %173 = vector.load %arg10[%c0_44, %c0_45, %c0_46, %c0_47] : memref<2x2x128x64xbf16, #tpu.memory_space<vmem>>, vector<2x2x128x64xbf16>
    %c0_48 = arith.constant 0 : index
    %c0_49 = arith.constant 0 : index
    %174 = vector.load %arg11[%c0_48, %c0_49] : memref<1x64xf32, #tpu.memory_space<vmem>>, vector<1x64xf32>
    %175 = vector.shape_cast %172 : vector<4x4x128xf32> to vector<16x128xf32>
    %176 = arith.truncf %175 : vector<16x128xf32> to vector<16x128xbf16>
    %177 = vector.extract_strided_slice %173 {offsets = [0, 0, 0, 0], sizes = [1, 1, 128, 64], strides = [1, 1, 1, 1]} : vector<2x2x128x64xbf16> to vector<1x1x128x64xbf16>
    %178 = vector.shape_cast %177 : vector<1x1x128x64xbf16> to vector<128x64xbf16>
    %cst_50 = arith.constant dense<0.000000e+00> : vector<16x64xf32>
    %179 = tpu.matmul %176, %178, %cst_50 {dimension_numbers = #tpu.dot_dimension_numbers<[1], [0], [0], [1], [0, 0, 1, 1], [], []>} : vector<16x128xbf16>, vector<128x64xbf16>, vector<16x64xf32> -> vector<16x64xf32>
    %180 = vector.shape_cast %179 : vector<16x64xf32> to vector<4x4x64xf32>
    %181 = vector.extract_strided_slice %173 {offsets = [0, 1, 0, 0], sizes = [1, 1, 128, 64], strides = [1, 1, 1, 1]} : vector<2x2x128x64xbf16> to vector<1x1x128x64xbf16>
    %182 = vector.shape_cast %181 : vector<1x1x128x64xbf16> to vector<128x64xbf16>
    %cst_51 = arith.constant dense<0.000000e+00> : vector<16x64xf32>
    %183 = tpu.matmul %176, %182, %cst_51 {dimension_numbers = #tpu.dot_dimension_numbers<[1], [0], [0], [1], [0, 0, 1, 1], [], []>} : vector<16x128xbf16>, vector<128x64xbf16>, vector<16x64xf32> -> vector<16x64xf32>
    %184 = vector.shape_cast %183 : vector<16x64xf32> to vector<4x4x64xf32>
    %185 = vector.extract_strided_slice %173 {offsets = [1, 0, 0, 0], sizes = [1, 1, 128, 64], strides = [1, 1, 1, 1]} : vector<2x2x128x64xbf16> to vector<1x1x128x64xbf16>
    %186 = vector.shape_cast %185 : vector<1x1x128x64xbf16> to vector<128x64xbf16>
    %cst_52 = arith.constant dense<0.000000e+00> : vector<16x64xf32>
    %187 = tpu.matmul %176, %186, %cst_52 {dimension_numbers = #tpu.dot_dimension_numbers<[1], [0], [0], [1], [0, 0, 1, 1], [], []>} : vector<16x128xbf16>, vector<128x64xbf16>, vector<16x64xf32> -> vector<16x64xf32>
    %188 = vector.shape_cast %187 : vector<16x64xf32> to vector<4x4x64xf32>
    %189 = vector.extract_strided_slice %173 {offsets = [1, 1, 0, 0], sizes = [1, 1, 128, 64], strides = [1, 1, 1, 1]} : vector<2x2x128x64xbf16> to vector<1x1x128x64xbf16>
    %190 = vector.shape_cast %189 : vector<1x1x128x64xbf16> to vector<128x64xbf16>
    %cst_53 = arith.constant dense<0.000000e+00> : vector<16x64xf32>
    %191 = tpu.matmul %176, %190, %cst_53 {dimension_numbers = #tpu.dot_dimension_numbers<[1], [0], [0], [1], [0, 0, 1, 1], [], []>} : vector<16x128xbf16>, vector<128x64xbf16>, vector<16x64xf32> -> vector<16x64xf32>
    %192 = vector.shape_cast %191 : vector<16x64xf32> to vector<4x4x64xf32>
    %193 = vector.shape_cast %180 : vector<4x4x64xf32> to vector<4x4x1x64xf32>
    %194 = vector.shape_cast %184 : vector<4x4x64xf32> to vector<4x4x1x64xf32>
    %195 = tpu.concatenate %193, %194 in 2 : vector<4x4x1x64xf32>, vector<4x4x1x64xf32> -> vector<4x4x2x64xf32>
    %196 = vector.shape_cast %195 : vector<4x4x2x64xf32> to vector<4x8x64xf32>
    %197 = vector.shape_cast %188 : vector<4x4x64xf32> to vector<4x4x1x64xf32>
    %198 = vector.shape_cast %192 : vector<4x4x64xf32> to vector<4x4x1x64xf32>
    %199 = tpu.concatenate %197, %198 in 2 : vector<4x4x1x64xf32>, vector<4x4x1x64xf32> -> vector<4x4x2x64xf32>
    %200 = vector.shape_cast %199 : vector<4x4x2x64xf32> to vector<4x8x64xf32>
    %201 = vector.shape_cast %196 : vector<4x8x64xf32> to vector<4x1x8x64xf32>
    %202 = vector.shape_cast %200 : vector<4x8x64xf32> to vector<4x1x8x64xf32>
    %203 = tpu.concatenate %201, %202 in 1 : vector<4x1x8x64xf32>, vector<4x1x8x64xf32> -> vector<4x2x8x64xf32>
    %204 = vector.shape_cast %203 : vector<4x2x8x64xf32> to vector<8x8x64xf32>
    %205 = vector.shape_cast %174 : vector<1x64xf32> to vector<1x1x64xf32>
    %206 = vector.broadcast %205 : vector<1x1x64xf32> to vector<8x8x64xf32>
    %207 = arith.addf %204, %206 : vector<8x8x64xf32>
    %cst_54 = arith.constant 0.000000e+00 : f32
    %208 = vector.broadcast %cst_54 : f32 to vector<8x8x64xf32>
    %209 = arith.maximumf %207, %208 : vector<8x8x64xf32>
    %c0_55 = arith.constant 0 : index
    %c0_56 = arith.constant 0 : index
    %210 = vector.load %arg12[%c0_55, %c0_56] : memref<576x64xbf16, #tpu.memory_space<vmem>>, vector<576x64xbf16>
    %c0_57 = arith.constant 0 : index
    %c0_58 = arith.constant 0 : index
    %211 = vector.load %arg13[%c0_57, %c0_58] : memref<1x64xf32, #tpu.memory_space<vmem>>, vector<1x64xf32>
    %cst_59 = arith.constant 0.000000e+00 : f32
    %212 = vector.broadcast %cst_59 : f32 to vector<8x1x64xf32>
    %213 = tpu.concatenate %212, %209, %212 in 1 : vector<8x1x64xf32>, vector<8x8x64xf32>, vector<8x1x64xf32> -> vector<8x10x64xf32>
    %cst_60 = arith.constant 0.000000e+00 : f32
    %214 = vector.broadcast %cst_60 : f32 to vector<1x10x64xf32>
    %215 = tpu.concatenate %214, %213, %214 in 0 : vector<1x10x64xf32>, vector<8x10x64xf32>, vector<1x10x64xf32> -> vector<10x10x64xf32>
    %216 = vector.extract_strided_slice %215 {offsets = [0, 0, 0], sizes = [8, 8, 64], strides = [1, 1, 1]} : vector<10x10x64xf32> to vector<8x8x64xf32>
    %217 = vector.extract_strided_slice %215 {offsets = [0, 1, 0], sizes = [8, 8, 64], strides = [1, 1, 1]} : vector<10x10x64xf32> to vector<8x8x64xf32>
    %218 = vector.extract_strided_slice %215 {offsets = [0, 2, 0], sizes = [8, 8, 64], strides = [1, 1, 1]} : vector<10x10x64xf32> to vector<8x8x64xf32>
    %219 = vector.extract_strided_slice %215 {offsets = [1, 0, 0], sizes = [8, 8, 64], strides = [1, 1, 1]} : vector<10x10x64xf32> to vector<8x8x64xf32>
    %220 = vector.extract_strided_slice %215 {offsets = [1, 1, 0], sizes = [8, 8, 64], strides = [1, 1, 1]} : vector<10x10x64xf32> to vector<8x8x64xf32>
    %221 = vector.extract_strided_slice %215 {offsets = [1, 2, 0], sizes = [8, 8, 64], strides = [1, 1, 1]} : vector<10x10x64xf32> to vector<8x8x64xf32>
    %222 = vector.extract_strided_slice %215 {offsets = [2, 0, 0], sizes = [8, 8, 64], strides = [1, 1, 1]} : vector<10x10x64xf32> to vector<8x8x64xf32>
    %223 = vector.extract_strided_slice %215 {offsets = [2, 1, 0], sizes = [8, 8, 64], strides = [1, 1, 1]} : vector<10x10x64xf32> to vector<8x8x64xf32>
    %224 = vector.extract_strided_slice %215 {offsets = [2, 2, 0], sizes = [8, 8, 64], strides = [1, 1, 1]} : vector<10x10x64xf32> to vector<8x8x64xf32>
    %225 = tpu.concatenate %216, %217, %218, %219, %220, %221, %222, %223, %224 in 2 : vector<8x8x64xf32>, vector<8x8x64xf32>, vector<8x8x64xf32>, vector<8x8x64xf32>, vector<8x8x64xf32>, vector<8x8x64xf32>, vector<8x8x64xf32>, vector<8x8x64xf32>, vector<8x8x64xf32> -> vector<8x8x576xf32>
    %226 = vector.shape_cast %225 : vector<8x8x576xf32> to vector<64x576xf32>
    %227 = arith.truncf %226 : vector<64x576xf32> to vector<64x576xbf16>
    %cst_61 = arith.constant dense<0.000000e+00> : vector<64x64xf32>
    %228 = tpu.matmul %227, %210, %cst_61 {dimension_numbers = #tpu.dot_dimension_numbers<[1], [0], [0], [1], [0, 0, 1, 1], [], []>} : vector<64x576xbf16>, vector<576x64xbf16>, vector<64x64xf32> -> vector<64x64xf32>
    %229 = vector.broadcast %211 : vector<1x64xf32> to vector<64x64xf32>
    %230 = arith.addf %228, %229 : vector<64x64xf32>
    %cst_62 = arith.constant 0.000000e+00 : f32
    %231 = vector.broadcast %cst_62 : f32 to vector<64x64xf32>
    %232 = arith.maximumf %230, %231 : vector<64x64xf32>
    %233 = vector.shape_cast %232 : vector<64x64xf32> to vector<8x8x64xf32>
    %c0_63 = arith.constant 0 : index
    %c0_64 = arith.constant 0 : index
    %c0_65 = arith.constant 0 : index
    %c0_66 = arith.constant 0 : index
    %234 = vector.load %arg14[%c0_63, %c0_64, %c0_65, %c0_66] : memref<2x2x64x3xbf16, #tpu.memory_space<vmem>>, vector<2x2x64x3xbf16>
    %c0_67 = arith.constant 0 : index
    %c0_68 = arith.constant 0 : index
    %235 = vector.load %arg15[%c0_67, %c0_68] : memref<1x3xf32, #tpu.memory_space<vmem>>, vector<1x3xf32>
    %236 = vector.shape_cast %233 : vector<8x8x64xf32> to vector<64x64xf32>
    %237 = arith.truncf %236 : vector<64x64xf32> to vector<64x64xbf16>
    %238 = vector.extract_strided_slice %234 {offsets = [0, 0, 0, 0], sizes = [1, 1, 64, 3], strides = [1, 1, 1, 1]} : vector<2x2x64x3xbf16> to vector<1x1x64x3xbf16>
    %239 = vector.shape_cast %238 : vector<1x1x64x3xbf16> to vector<64x3xbf16>
    %cst_69 = arith.constant dense<0.000000e+00> : vector<64x3xf32>
    %240 = tpu.matmul %237, %239, %cst_69 {dimension_numbers = #tpu.dot_dimension_numbers<[1], [0], [0], [1], [0, 0, 1, 1], [], []>} : vector<64x64xbf16>, vector<64x3xbf16>, vector<64x3xf32> -> vector<64x3xf32>
    %241 = vector.shape_cast %240 : vector<64x3xf32> to vector<8x8x3xf32>
    %242 = vector.extract_strided_slice %234 {offsets = [0, 1, 0, 0], sizes = [1, 1, 64, 3], strides = [1, 1, 1, 1]} : vector<2x2x64x3xbf16> to vector<1x1x64x3xbf16>
    %243 = vector.shape_cast %242 : vector<1x1x64x3xbf16> to vector<64x3xbf16>
    %cst_70 = arith.constant dense<0.000000e+00> : vector<64x3xf32>
    %244 = tpu.matmul %237, %243, %cst_70 {dimension_numbers = #tpu.dot_dimension_numbers<[1], [0], [0], [1], [0, 0, 1, 1], [], []>} : vector<64x64xbf16>, vector<64x3xbf16>, vector<64x3xf32> -> vector<64x3xf32>
    %245 = vector.shape_cast %244 : vector<64x3xf32> to vector<8x8x3xf32>
    %246 = vector.extract_strided_slice %234 {offsets = [1, 0, 0, 0], sizes = [1, 1, 64, 3], strides = [1, 1, 1, 1]} : vector<2x2x64x3xbf16> to vector<1x1x64x3xbf16>
    %247 = vector.shape_cast %246 : vector<1x1x64x3xbf16> to vector<64x3xbf16>
    %cst_71 = arith.constant dense<0.000000e+00> : vector<64x3xf32>
    %248 = tpu.matmul %237, %247, %cst_71 {dimension_numbers = #tpu.dot_dimension_numbers<[1], [0], [0], [1], [0, 0, 1, 1], [], []>} : vector<64x64xbf16>, vector<64x3xbf16>, vector<64x3xf32> -> vector<64x3xf32>
    %249 = vector.shape_cast %248 : vector<64x3xf32> to vector<8x8x3xf32>
    %250 = vector.extract_strided_slice %234 {offsets = [1, 1, 0, 0], sizes = [1, 1, 64, 3], strides = [1, 1, 1, 1]} : vector<2x2x64x3xbf16> to vector<1x1x64x3xbf16>
    %251 = vector.shape_cast %250 : vector<1x1x64x3xbf16> to vector<64x3xbf16>
    %cst_72 = arith.constant dense<0.000000e+00> : vector<64x3xf32>
    %252 = tpu.matmul %237, %251, %cst_72 {dimension_numbers = #tpu.dot_dimension_numbers<[1], [0], [0], [1], [0, 0, 1, 1], [], []>} : vector<64x64xbf16>, vector<64x3xbf16>, vector<64x3xf32> -> vector<64x3xf32>
    %253 = vector.shape_cast %252 : vector<64x3xf32> to vector<8x8x3xf32>
    %254 = vector.shape_cast %241 : vector<8x8x3xf32> to vector<8x8x1x3xf32>
    %255 = vector.shape_cast %245 : vector<8x8x3xf32> to vector<8x8x1x3xf32>
    %256 = tpu.concatenate %254, %255 in 2 : vector<8x8x1x3xf32>, vector<8x8x1x3xf32> -> vector<8x8x2x3xf32>
    %257 = vector.shape_cast %256 : vector<8x8x2x3xf32> to vector<8x16x3xf32>
    %258 = vector.shape_cast %249 : vector<8x8x3xf32> to vector<8x8x1x3xf32>
    %259 = vector.shape_cast %253 : vector<8x8x3xf32> to vector<8x8x1x3xf32>
    %260 = tpu.concatenate %258, %259 in 2 : vector<8x8x1x3xf32>, vector<8x8x1x3xf32> -> vector<8x8x2x3xf32>
    %261 = vector.shape_cast %260 : vector<8x8x2x3xf32> to vector<8x16x3xf32>
    %262 = vector.shape_cast %257 : vector<8x16x3xf32> to vector<8x1x16x3xf32>
    %263 = vector.shape_cast %261 : vector<8x16x3xf32> to vector<8x1x16x3xf32>
    %264 = tpu.concatenate %262, %263 in 1 : vector<8x1x16x3xf32>, vector<8x1x16x3xf32> -> vector<8x2x16x3xf32>
    %265 = vector.shape_cast %264 : vector<8x2x16x3xf32> to vector<16x16x3xf32>
    %266 = vector.shape_cast %235 : vector<1x3xf32> to vector<1x1x3xf32>
    %267 = vector.broadcast %266 : vector<1x1x3xf32> to vector<16x16x3xf32>
    %268 = arith.addf %265, %267 : vector<16x16x3xf32>
    %cst_73 = arith.constant 0.000000e+00 : f32
    %269 = vector.broadcast %cst_73 : f32 to vector<16x16x3xf32>
    %270 = arith.maximumf %268, %269 : vector<16x16x3xf32>
    %c0_74 = arith.constant 0 : index
    %c0_75 = arith.constant 0 : index
    %c0_76 = arith.constant 0 : index
    %c0_77 = arith.constant 0 : index
    %271 = vector.load %arg16[%c0_74, %c0_75, %c0_76, %c0_77] : memref<1x16x16x3xf32, #tpu.memory_space<vmem>>, vector<1x16x16x3xf32>
    %272 = vector.shape_cast %271 : vector<1x16x16x3xf32> to vector<16x16x3xf32>
    %273 = vector.shape_cast %270 : vector<16x16x3xf32> to vector<1x16x16x3xf32>
    tpu.vector_store %arg16[%c0_74, %c0_75, %c0_76, %c0_77], %273 {strides = array<i32>} : memref<1x16x16x3xf32, #tpu.memory_space<vmem>>, vector<1x16x16x3xf32>,
    return
  }
  func.func @transform_0(%arg0: i32) -> (i32, i32, i32, i32) {
    %c0_i32 = arith.constant 0 : i32
    %c0_i32_0 = arith.constant 0 : i32
    %c0_i32_1 = arith.constant 0 : i32
    %c0_i32_2 = arith.constant 0 : i32
    return %arg0, %c0_i32, %c0_i32_0, %c0_i32_1 : i32, i32, i32, i32
  }
  func.func @transform_1(%arg0: i32) -> (i32, i32, i32) {
    %c0_i32 = arith.constant 0 : i32
    %c0_i32_0 = arith.constant 0 : i32
    %c0_i32_1 = arith.constant 0 : i32
    %c0_i32_2 = arith.constant 0 : i32
    return %c0_i32, %c0_i32_0, %c0_i32_1 : i32, i32, i32
  }
  func.func @transform_2(%arg0: i32) -> (i32, i32) {
    %c0_i32 = arith.constant 0 : i32
    %c0_i32_0 = arith.constant 0 : i32
    %c0_i32_1 = arith.constant 0 : i32
    return %c0_i32, %c0_i32_0 : i32, i32
  }
  func.func @transform_3(%arg0: i32) -> (i32, i32) {
    %c0_i32 = arith.constant 0 : i32
    %c0_i32_0 = arith.constant 0 : i32
    %c0_i32_1 = arith.constant 0 : i32
    return %c0_i32, %c0_i32_0 : i32, i32
  }
  func.func @transform_4(%arg0: i32) -> (i32, i32) {
    %c0_i32 = arith.constant 0 : i32
    %c0_i32_0 = arith.constant 0 : i32
    %c0_i32_1 = arith.constant 0 : i32
    return %c0_i32, %c0_i32_0 : i32, i32
  }
  func.func @transform_5(%arg0: i32) -> (i32, i32) {
    %c0_i32 = arith.constant 0 : i32
    %c0_i32_0 = arith.constant 0 : i32
    %c0_i32_1 = arith.constant 0 : i32
    return %c0_i32, %c0_i32_0 : i32, i32
  }
  func.func @transform_6(%arg0: i32) -> (i32, i32) {
    %c0_i32 = arith.constant 0 : i32
    %c0_i32_0 = arith.constant 0 : i32
    %c0_i32_1 = arith.constant 0 : i32
    return %c0_i32, %c0_i32_0 : i32, i32
  }
  func.func @transform_7(%arg0: i32) -> (i32, i32) {
    %c0_i32 = arith.constant 0 : i32
    %c0_i32_0 = arith.constant 0 : i32
    %c0_i32_1 = arith.constant 0 : i32
    return %c0_i32, %c0_i32_0 : i32, i32
  }
  func.func @transform_8(%arg0: i32) -> (i32, i32) {
    %c0_i32 = arith.constant 0 : i32
    %c0_i32_0 = arith.constant 0 : i32
    %c0_i32_1 = arith.constant 0 : i32
    return %c0_i32, %c0_i32_0 : i32, i32
  }
  func.func @transform_9(%arg0: i32) -> (i32, i32, i32, i32) {
    %c0_i32 = arith.constant 0 : i32
    %c0_i32_0 = arith.constant 0 : i32
    %c0_i32_1 = arith.constant 0 : i32
    %c0_i32_2 = arith.constant 0 : i32
    %c0_i32_3 = arith.constant 0 : i32
    return %c0_i32, %c0_i32_0, %c0_i32_1, %c0_i32_2 : i32, i32, i32, i32
  }
  func.func @transform_10(%arg0: i32) -> (i32, i32) {
    %c0_i32 = arith.constant 0 : i32
    %c0_i32_0 = arith.constant 0 : i32
    %c0_i32_1 = arith.constant 0 : i32
    return %c0_i32, %c0_i32_0 : i32, i32
  }
  func.func @transform_11(%arg0: i32) -> (i32, i32) {
    %c0_i32 = arith.constant 0 : i32
    %c0_i32_0 = arith.constant 0 : i32
    %c0_i32_1 = arith.constant 0 : i32
    return %c0_i32, %c0_i32_0 : i32, i32
  }
  func.func @transform_12(%arg0: i32) -> (i32, i32) {
    %c0_i32 = arith.constant 0 : i32
    %c0_i32_0 = arith.constant 0 : i32
    %c0_i32_1 = arith.constant 0 : i32
    return %c0_i32, %c0_i32_0 : i32, i32
  }
  func.func @transform_13(%arg0: i32) -> (i32, i32, i32, i32) {
    %c0_i32 = arith.constant 0 : i32
    %c0_i32_0 = arith.constant 0 : i32
    %c0_i32_1 = arith.constant 0 : i32
    %c0_i32_2 = arith.constant 0 : i32
    %c0_i32_3 = arith.constant 0 : i32
    return %c0_i32, %c0_i32_0, %c0_i32_1, %c0_i32_2 : i32, i32, i32, i32
  }
  func.func @transform_14(%arg0: i32) -> (i32, i32) {
    %c0_i32 = arith.constant 0 : i32
    %c0_i32_0 = arith.constant 0 : i32
    %c0_i32_1 = arith.constant 0 : i32
    return %c0_i32, %c0_i32_0 : i32, i32
  }
  func.func @transform_15(%arg0: i32) -> (i32, i32, i32, i32) {
    %c0_i32 = arith.constant 0 : i32
    %c0_i32_0 = arith.constant 0 : i32
    %c0_i32_1 = arith.constant 0 : i32
    %c0_i32_2 = arith.constant 0 : i32
    return %arg0, %c0_i32, %c0_i32_0, %c0_i32_1 : i32, i32, i32, i32
  }
}

</mosaic_0001>

<bundles_post_ra>
// kernel: unet_forward.1
= control target key start
LH: loop header
LB: loop body
LE: loop exit
PB: predicated region body
PF: predicated region fallthrough
CT: control target
= control target key end

     0   :  { %s11997_s18 = smov 0   ;;  %s16621_s0 = inlined_call_operand.vmem [shape: f32[2,16,16,3], index: 0, kind: input, shape index: {}]   ;;  %s16622_s1 = inlined_call_operand.vmem [shape: bf16[9,3,64], index: 1, kind: input, shape index: {}]   ;;  %s16623_s2 = inlined_call_operand.vmem [shape: f32[1,64], index: 2, kind: input, shape index: {}]   ;;  %s16624_s3 = inlined_call_operand.vmem [shape: bf16[576,64], index: 3, kind: input, shape index: {}]   ;;  %s16625_s4 = inlined_call_operand.vmem [shape: f32[1,64], index: 4, kind: input, shape index: {}]   ;;  %s16626_s5 = inlined_call_operand.vmem [shape: bf16[576,128], index: 5, kind: input, shape index: {}]   ;;  %s16627_s6 = inlined_call_operand.vmem [shape: f32[1,128], index: 6, kind: input, shape index: {}]   ;;  %s16628_s7 = inlined_call_operand.vmem [shape: bf16[1152,128], index: 7, kind: input, shape index: {}]   ;;  %s16629_s8 = inlined_call_operand.vmem [shape: f32[1,128], index: 8, kind: input, shape index: {}]   ;;  %s16630_s9 = inlined_call_operand.vmem [shape: bf16[2,2,128,64], index: 9, kind: input, shape index: {}]   ;;  %s16631_s10 = inlined_call_operand.vmem [shape: f32[1,64], index: 10, kind: input, shape index: {}]   ;;  %s16632_s11 = inlined_call_operand.vmem [shape: bf16[576,64], index: 11, kind: input, shape index: {}]   ;;  %s16633_s12 = inlined_call_operand.vmem [shape: f32[1,64], index: 12, kind: input, shape index: {}]   ;;  %s16634_s13 = inlined_call_operand.vmem [shape: bf16[2,2,64,3], index: 13, kind: input, shape index: {}]   ;;  %s16635_s14 = inlined_call_operand.vmem [shape: f32[1,3], index: 14, kind: input, shape index: {}]   ;;  %s16636_s15 = inlined_call_operand.vmem [shape: f32[2,16,16,3], index: 15, kind: output, shape index: {}]  }
   0x1 LB: > { %s9942_s19 = sadd.s32 4294967295, %s11910_s18   ;;  %p9946_p0 = scmp.ge.s32.totalorder %s11910_s18, 1  ;;  %s11910_s18 = sphi %s11997_s18, %s25_s18  }
   0x2   : > { %p437_p1 = scmp.lt.s32.totalorder %s11910_s18, 3 }
   0x4   : > { %p438_p2 = pnand %p9946_p0, %p437_p1 }
   0x6   : > { %441 = sbr.rel (%p438_p2) target bundleno = 2915 (0xb63), region = 80 }
   0xb   : > { %v529_v0 = vld [vmem:[%s16622_s1 + $0x2] sm:$0x3]  ;;  %vm570_vm0 = vcmask 1040384   ;;  %vm920_vm1 = vcmask 1041408   ;;  %v11912_v1 = vmov 65535   ;;  %v16637_v4 = vmov 0.0  }
   0xc   : > { %v921_v2 = vsel %vm570_vm0, 4294967295, %v11912_v1  ;;  %v528_v3 = vld [vmem:[%s16622_s1] sm:$0x3]  ;;  %v12013_v5 = vrot.slane %v16637_v4, 1  ;;  %vm16713_vm2 = vcmask 23552   ;;  %p485_p3 = scmp.lt.s32.totalorder %s9942_s19, 1 }
   0xd   : > { %v12015_v6 = vsel %vm920_vm1, %v921_v2, 0  ;;  %v532_v7 = vld [vmem:[%s16622_s1 + $0x8] sm:$0x3]  ;;  %v530_v11 = vld [vmem:[%s16622_s1 + $0x4] sm:$0x3]  ;;  %v16638_v16 = vmov 0.0|0.0  }
   0xe   : > { %16714 = vst [vmem:[#allocation2_spill] sm:$0xff] %v12013_v5  ;;  %v924_v8 = vand.u32 %v12015_v6, %v529_v0  ;;  %v1064_v9 = vand.u32 %v12015_v6, %v528_v3  ;;  %v1594_v10 = vand.u32 %v12015_v6, %v532_v7  ;;  %v531_v12 = vld [vmem:[%s16622_s1 + $0x6] sm:$0x3]  ;;  %v12031_v13 = vpack.c.bf16 %v12013_v5, %v12013_v5  ;;  %s16932_s19 = smov (!%p485_p3, %s9942_s19), 1  ;;  %s11915_s21 = smov 64  }
   0xf   : > { %v1329_v14 = vand.u32 %v12015_v6, %v530_v11  ;;  %v1457_v15 = vand.u32 %v12015_v6, %v531_v12  ;;  %s11291_s30 = sshll.u32 %s16932_s19, 8  ;;  %vm746_vm3 = vcmask 1046528   ;;  %v12089_v49 = vrot.slane %v16637_v4, 2 }
  0x10   : > { %16715 = vst [vmem:[#allocation3_spill] sm:$0xff] %v12031_v13  ;;  %933 = vmatpush.bf16.msra.mxu0 %v924_v8  ;;  %1073 = vmatpush.bf16.msra.mxu1 %v1064_v9  ;;  %s12043_s20 = scalar_lea.vmem %s16621_s0, %s11291_s30  ;;  %vm1155_vm4 = vcmask 1045504   ;;  %vm3071_vm5 = vcmask 523264   ;;  %vm4977_vm8 = vcmask 1042434   ;;  %vm4979_vm9 = vcmask 1043459   ;;  %s16126_s24 = scalar_lea.vmem %s16636_s15, %s11291_s30 }
  0x11   : > { %11521 = vmatpush.bf16.msra.mxu2 %v924_v8  ;;  %11522 = vmatpush.bf16.msra.mxu3 %v1064_v9  ;;  %v524_v17 = vld [vmem:[%s12043_s20 + $0xe0] sm:$0xff]  ;;  %v525_v18 = vld [vmem:[%s12043_s20 + $0xe8] sm:$0xff]  ;;  %v498_v43 = vld [vmem:[%s12043_s20 + $0x10] sm:$0xff]  ;;  %16717 = vst [vmem:[#allocation5_spill] sm:$0xff] %v12089_v49  ;;  %v12096_v53 = vpack.c.bf16 %v12089_v49, %v12089_v49  ;;  %vm4981_vm10 = vcmask 1044484   ;;  %vm4983_vm11 = vcmask 1045509  }
  0x12   : > { %v496_v19 = vld [vmem:[%s12043_s20] sm:$0xff]  ;;  %v613_v20 = vrot.slane %v524_v17, 7  ;;  %v614_v21 = vrot.slane %v525_v18, 7  ;;  %v497_v22 = vld [vmem:[%s12043_s20 + $0x8] sm:$0xff]  ;;  %v499_v44 = vld [vmem:[%s12043_s20 + $0x18] sm:$0xff]  ;;  %v574_v47 = vrot.slane %v498_v43, 7 }
  0x13   : > { %9951 = vmatmul.msk.bf16.vlgmr.msra.gmra.mxu0 %vm16713_vm2, %v12031_v13  ;;  %1074 = vmatmul.bf16.vlgmr.msra.gmra.mxu1 %v16638_v16  ;;  %v571_v23 = vrot.slane %v496_v19, 7  ;;  %v572_v24 = vrot.slane %v497_v22, 7  ;;  %v575_v48 = vrot.slane %v499_v44, 7  ;;  %16718 = vst [vmem:[#allocation6_spill] sm:$0xff] %v12096_v53  ;;  %v500_v59 = vld [vmem:[%s12043_s20 + $0x20] sm:$0xff]  ;;  %v501_v60 = vld [vmem:[%s12043_s20 + $0x28] sm:$0xff]  ;;  %vm13107_vm6 = vmneg %vm3071_vm5 }
  0x14   : > { %1603 = vmatpush.bf16.msrb.mxu0 %v1594_v10  ;;  %v12053_v25 = vsel %vm570_vm0, %v613_v20, %v614_v21  ;;  %v12056_v26 = vsel %vm570_vm0, 0.0, %v613_v20  ;;  %v12059_v27 = vsel %vm570_vm0, %v614_v21, 0.0  ;;  %v668_v51 = vsel %vm570_vm0, 0.0, %v574_v47  ;;  %v502_v20 = vld [vmem:[%s12043_s20 + $0x30] sm:$0xff]  ;;  %v503_v21 = vld [vmem:[%s12043_s20 + $0x38] sm:$0xff]  ;;  %vm10239_vm7 = vmpackc.low %vm13107_vm6, %vm13107_vm6 }
  0x15   : > { %1338 = vmatpush.bf16.msrb.mxu2 %v1329_v14  ;;  %1466 = vmatpush.bf16.msrb.mxu3 %v1457_v15  ;;  %v667_v28 = vsel %vm570_vm0, 0.0, %v571_v23  ;;  %v819_v29 = vrot.slane %v12056_v26, 1  ;;  %v820_v30 = vrot.slane %v12053_v25, 1  ;;  %v822_v31 = vrot.slane %v12059_v27, 1 }
  0x16   : > { %v12067_v32 = vpack.c.bf16 %v12053_v25, %v12056_v26  ;;  %v573_v33 = vsel %vm570_vm0, %v571_v23, %v572_v24  ;;  %v683_v34 = vsel %vm570_vm0, %v572_v24, 0.0  ;;  %v749_v35 = vrot.slane %v667_v28, 1 }
  0x17   : > { %v821_v36 = vsel %vm746_vm3, %v819_v29, %v820_v30  ;;  %v823_v37 = vsel %vm746_vm3, %v820_v30, %v822_v31  ;;  %v750_v38 = vrot.slane %v573_v33, 1  ;;  %v752_v39 = vrot.slane %v683_v34, 1 }
  0x18   : > { %v12073_v40 = vpack.c.bf16 %v823_v37, %v821_v36  ;;  %9981 = vmatmul.msk.bf16.vlgmr.msra.gmra.mxu3 %vm16713_vm2, %v12067_v32  ;;  %v700_v46 = vpack.c.bf16 %v573_v33, %v667_v28  ;;  %v576_v50 = vsel %vm570_vm0, %v574_v47, %v575_v48  ;;  %v684_v52 = vsel %vm570_vm0, %v575_v48, 0.0  ;;  %v505_v47 = vld [vmem:[%s12043_s20 + $0x48] sm:$0xff] }
  0x19   : > { %v751_v41 = vsel %vm746_vm3, %v749_v35, %v750_v38  ;;  %v753_v42 = vsel %vm746_vm3, %v750_v38, %v752_v39  ;;  %v754_v54 = vrot.slane %v668_v51, 1  ;;  %v755_v55 = vrot.slane %v576_v50, 1 }
  0x1a   : > { %16716 = vst [vmem:[#allocation4_spill] sm:$0xff] %v12073_v40  ;;  %9966 = vmatmul.msk.bf16.vlgmr.msra.gmra.mxu2 %vm16713_vm2, %v12073_v40  ;;  %v12083_v45 = vpack.c.bf16 %v753_v42, %v751_v41  ;;  %v757_v56 = vrot.slane %v684_v52, 1  ;;  %v12107_v62 = vpack.c.bf16 %v576_v50, %v668_v51  ;;  %v1158_v63 = vrot.slane %v667_v28, 2 }
  0x1b   : > { %v756_v57 = vsel %vm746_vm3, %v754_v54, %v755_v55  ;;  %v1159_v0 = vrot.slane %v573_v33, 2  ;;  %v1161_v1 = vrot.slane %v683_v34, 2  ;;  %v577_v2 = vrot.slane %v500_v59, 7 }
  0x1c   : > { %v758_v58 = vsel %vm746_vm3, %v755_v55, %v757_v56  ;;  %v578_v3 = vrot.slane %v501_v60, 7  ;;  %v1163_v24 = vrot.slane %v668_v51, 2  ;;  %v1164_v28 = vrot.slane %v576_v50, 2 }
  0x1d   : > { %v12105_v61 = vpack.c.bf16 %v758_v58, %v756_v57  ;;  %v1160_v7 = vsel %vm1155_vm4, %v1158_v63, %v1159_v0  ;;  %v1162_v8 = vsel %vm1155_vm4, %v1159_v0, %v1161_v1  ;;  %v669_v10 = vsel %vm570_vm0, 0.0, %v577_v2 }
  0x1e   : > { %v579_v9 = vsel %vm570_vm0, %v577_v2, %v578_v3  ;;  %v685_v11 = vsel %vm570_vm0, %v578_v3, 0.0  ;;  %v12118_v12 = vpack.c.bf16 %v1162_v8, %v1160_v7  ;;  %v759_v14 = vrot.slane %v669_v10, 1 }
  0x1f   : > { %v760_v15 = vrot.slane %v579_v9, 1  ;;  %v762_v17 = vrot.slane %v685_v11, 1  ;;  %v12130_v23 = vpack.c.bf16 %v579_v9, %v669_v10  ;;  %v1166_v29 = vrot.slane %v684_v52, 2 }
  0x20   : > { %v580_v30 = vrot.slane %v502_v20, 7  ;;  %v581_v31 = vrot.slane %v503_v21, 7  ;;  %v1165_v33 = vsel %vm1155_vm4, %v1163_v24, %v1164_v28  ;;  %v1168_v51 = vrot.slane %v669_v10, 2  ;;  %v507_v10 = vld [vmem:[%s12043_s20 + $0x58] sm:$0xff] }
  0x21   : > { %v761_v18 = vsel %vm746_vm3, %v759_v14, %v760_v15  ;;  %v763_v19 = vsel %vm746_vm3, %v760_v15, %v762_v17  ;;  %v1167_v34 = vsel %vm1155_vm4, %v1164_v28, %v1166_v29  ;;  %v1169_v52 = vrot.slane %v579_v9, 2  ;;  %v506_v9 = vld [vmem:[%s12043_s20 + $0x50] sm:$0xff] }
  0x22   : > { %v12128_v22 = vpack.c.bf16 %v763_v19, %v761_v18  ;;  %v582_v35 = vsel %vm570_vm0, %v580_v30, %v581_v31  ;;  %v670_v36 = vsel %vm570_vm0, 0.0, %v580_v30  ;;  %v686_v37 = vsel %vm570_vm0, %v581_v31, 0.0 }
  0x23   : > { %9952 = vmatmul.msk.bf16.gmra.mxu0 %vm16713_vm2, %v12083_v45  ;;  %9967 = vmatmul.msk.bf16.gmra.mxu1 %vm16713_vm2, %v700_v46  ;;  %v12141_v38 = vpack.c.bf16 %v1167_v34, %v1165_v33  ;;  %v764_v39 = vrot.slane %v670_v36, 1  ;;  %v765_v41 = vrot.slane %v582_v35, 1  ;;  %v767_v42 = vrot.slane %v686_v37, 1 }
  0x24   : > { %v12153_v50 = vpack.c.bf16 %v582_v35, %v670_v36  ;;  %v1171_v54 = vrot.slane %v685_v11, 2  ;;  %v584_v56 = vrot.slane %v505_v47, 7  ;;  %v1170_v57 = vsel %vm1155_vm4, %v1168_v51, %v1169_v52 }
  0x25   : > { %16719 = vst [vmem:[#allocation7_spill] sm:$0xff] %v12141_v38  ;;  %v766_v43 = vsel %vm746_vm3, %v764_v39, %v765_v41  ;;  %v768_v44 = vsel %vm746_vm3, %v765_v41, %v767_v42  ;;  %v1173_v15 = vrot.slane %v670_v36, 2  ;;  %v1174_v17 = vrot.slane %v582_v35, 2  ;;  %v508_v39 = vld [vmem:[%s12043_s20 + $0x60] sm:$0xff]  ;;  %v509_v41 = vld [vmem:[%s12043_s20 + $0x68] sm:$0xff] }
  0x26   : > { %v12151_v48 = vpack.c.bf16 %v768_v44, %v766_v43  ;;  %v1172_v58 = vsel %vm1155_vm4, %v1169_v52, %v1171_v54  ;;  %v687_v63 = vsel %vm570_vm0, %v584_v56, 0.0  ;;  %v1176_v18 = vrot.slane %v686_v37, 2 }
  0x27   : > { %v12164_v0 = vpack.c.bf16 %v1172_v58, %v1170_v57  ;;  %v772_v3 = vrot.slane %v687_v63, 1  ;;  %v586_v19 = vrot.slane %v506_v9, 7  ;;  %v587_v20 = vrot.slane %v507_v10, 7 }
  0x28   : > { %9998 = vmatmul.msk.bf16.vlgmr.msrb.gmra.mxu3 %vm16713_vm2, %v700_v46  ;;  %v504_v46 = vld [vmem:[%s12043_s20 + $0x40] sm:$0xff]  ;;  %v1175_v21 = vsel %vm1155_vm4, %v1173_v15, %v1174_v17  ;;  %v1177_v24 = vsel %vm1155_vm4, %v1174_v17, %v1176_v18  ;;  %v1181_v47 = vrot.slane %v687_v63, 2  ;;  %v589_v51 = vrot.slane %v508_v39, 7 }
  0x29   : > { %v583_v55 = vrot.slane %v504_v46, 7  ;;  %16720 = vst [vmem:[#allocation8_spill] sm:$0xff] %v12164_v0  ;;  %v588_v28 = vsel %vm570_vm0, %v586_v19, %v587_v20  ;;  %v672_v29 = vsel %vm570_vm0, 0.0, %v586_v19  ;;  %v688_v30 = vsel %vm570_vm0, %v587_v20, 0.0 }
  0x2a   : > { %9982 = vmatmul.msk.bf16.vlgmr.msrb.gmra.mxu2 %vm16713_vm2, %v12096_v53  ;;  %v12187_v31 = vpack.c.bf16 %v1177_v24, %v1175_v21  ;;  %v774_v33 = vrot.slane %v672_v29, 1  ;;  %v775_v34 = vrot.slane %v588_v28, 1  ;;  %v777_v35 = vrot.slane %v688_v30, 1 }
  0x2b   : > { %v585_v59 = vsel %vm570_vm0, %v583_v55, %v584_v56  ;;  %v671_v60 = vsel %vm570_vm0, 0.0, %v583_v55  ;;  %v12199_v43 = vpack.c.bf16 %v588_v28, %v672_v29  ;;  %v590_v52 = vrot.slane %v509_v41, 7  ;;  %v512_v41 = vld [vmem:[%s12043_s20 + $0x80] sm:$0xff] }
  0x2c   : > { %v769_v1 = vrot.slane %v671_v60, 1  ;;  %v770_v2 = vrot.slane %v585_v59, 1  ;;  %v12176_v14 = vpack.c.bf16 %v585_v59, %v671_v60  ;;  %v776_v36 = vsel %vm746_vm3, %v774_v33, %v775_v34 }
  0x2d   : > { %v778_v37 = vsel %vm746_vm3, %v775_v34, %v777_v35  ;;  %v1178_v44 = vrot.slane %v671_v60, 2  ;;  %v1179_v46 = vrot.slane %v585_v59, 2  ;;  %v591_v56 = vsel %vm570_vm0, %v589_v51, %v590_v52 }
  0x2e   : > { %v771_v7 = vsel %vm746_vm3, %v769_v1, %v770_v2  ;;  %v773_v8 = vsel %vm746_vm3, %v770_v2, %v772_v3  ;;  %v12197_v42 = vpack.c.bf16 %v778_v37, %v776_v36  ;;  %v673_v57 = vsel %vm570_vm0, 0.0, %v589_v51 }
  0x2f   : > { %v12174_v11 = vpack.c.bf16 %v773_v8, %v771_v7  ;;  %v1180_v54 = vsel %vm1155_vm4, %v1178_v44, %v1179_v46  ;;  %v1182_v55 = vsel %vm1155_vm4, %v1179_v46, %v1181_v47  ;;  %v689_v58 = vsel %vm570_vm0, %v590_v52, 0.0  ;;  %v510_v7 = vld [vmem:[%s12043_s20 + $0x70] sm:$0xff]  ;;  %v511_v8 = vld [vmem:[%s12043_s20 + $0x78] sm:$0xff]  ;;  %v513_v44 = vld [vmem:[%s12043_s20 + $0x88] sm:$0xff] }
  0x30   : > { %v12210_v59 = vpack.c.bf16 %v1182_v55, %v1180_v54  ;;  %v779_v60 = vrot.slane %v673_v57, 1  ;;  %v780_v63 = vrot.slane %v591_v56, 1  ;;  %v782_v1 = vrot.slane %v689_v58, 1 }
  0x31   : > { %v12222_v10 = vpack.c.bf16 %v591_v56, %v673_v57  ;;  %v1183_v15 = vrot.slane %v672_v29, 2  ;;  %v1184_v17 = vrot.slane %v588_v28, 2  ;;  %v1186_v18 = vrot.slane %v688_v30, 2 }
  0x32   : > { %v781_v2 = vsel %vm746_vm3, %v779_v60, %v780_v63  ;;  %v783_v3 = vsel %vm746_vm3, %v780_v63, %v782_v1  ;;  %v592_v19 = vrot.slane %v510_v7, 7  ;;  %v593_v20 = vrot.slane %v511_v8, 7 }
  0x33   : > { %9953 = vmatmul.msk.bf16.gmra.mxu0 %vm16713_vm2, %v12105_v61  ;;  %9968 = vmatmul.msk.bf16.gmra.mxu1 %vm16713_vm2, %v12107_v62  ;;  %v12220_v9 = vpack.c.bf16 %v783_v3, %v781_v2  ;;  %v1185_v21 = vsel %vm1155_vm4, %v1183_v15, %v1184_v17  ;;  %v1187_v24 = vsel %vm1155_vm4, %v1184_v17, %v1186_v18  ;;  %v1188_v54 = vrot.slane %v673_v57, 2 }
  0x34   : > { %v594_v33 = vsel %vm570_vm0, %v592_v19, %v593_v20  ;;  %v674_v29 = vsel %vm570_vm0, 0.0, %v592_v19  ;;  %v690_v28 = vsel %vm570_vm0, %v593_v20, 0.0  ;;  %v12233_v30 = vpack.c.bf16 %v1187_v24, %v1185_v21 }
  0x35   : > { %v784_v34 = vrot.slane %v674_v29, 1  ;;  %v785_v35 = vrot.slane %v594_v33, 1  ;;  %v787_v36 = vrot.slane %v690_v28, 1  ;;  %v12245_v47 = vpack.c.bf16 %v594_v33, %v674_v29 }
  0x36   : > { %v1189_v55 = vrot.slane %v591_v56, 2  ;;  %v1191_v63 = vrot.slane %v689_v58, 2  ;;  %v595_v1 = vrot.slane %v512_v41, 7  ;;  %v596_v2 = vrot.slane %v513_v44, 7 }
  0x37   : > { %v786_v37 = vsel %vm746_vm3, %v784_v34, %v785_v35  ;;  %v788_v39 = vsel %vm746_vm3, %v785_v35, %v787_v36  ;;  %v514_v36 = vld [vmem:[%s12043_s20 + $0x90] sm:$0xff]  ;;  %vm4985_vm12 = vcmask 1046534   ;;  %vm4987_vm13 = vcmask 1047559  }
  0x38   : > { %9999 = vmatmul.msk.bf16.gmra.mxu3 %vm16713_vm2, %v12107_v62  ;;  %v12243_v46 = vpack.c.bf16 %v788_v39, %v786_v37  ;;  %v1190_v3 = vsel %vm1155_vm4, %v1188_v54, %v1189_v55  ;;  %v1192_v7 = vsel %vm1155_vm4, %v1189_v55, %v1191_v63  ;;  %v12256_v8 = vsel %vm570_vm0, %v595_v1, %v596_v2  ;;  %v515_v37 = vld [vmem:[%s12043_s20 + $0x98] sm:$0xff] }
  0x39   : > { %v12259_v56 = vsel %vm570_vm0, 0.0, %v595_v1  ;;  %v12262_v57 = vsel %vm570_vm0, %v596_v2, 0.0  ;;  %v12264_v17 = vpack.c.bf16 %v1192_v7, %v1190_v3  ;;  %v790_v19 = vrot.slane %v12256_v8, 1 }
  0x3a   : > { %9983 = vmatmul.msk.bf16.gmra.mxu2 %vm16713_vm2, %v12118_v12  ;;  %v789_v18 = vrot.slane %v12259_v56, 1  ;;  %v792_v20 = vrot.slane %v12262_v57, 1  ;;  %v12283_v44 = vpack.c.bf16 %v12256_v8, %v12259_v56  ;;  %v1193_v55 = vrot.slane %v674_v29, 2 }
  0x3b   : > { %v1194_v63 = vrot.slane %v594_v33, 2  ;;  %v1196_v1 = vrot.slane %v690_v28, 2  ;;  %v598_v3 = vrot.slane %v514_v36, 7  ;;  %v599_v7 = vrot.slane %v515_v37, 7 }
  0x3c   : > { %v791_v24 = vsel %vm746_vm3, %v789_v18, %v790_v19  ;;  %v793_v34 = vsel %vm746_vm3, %v790_v19, %v792_v20  ;;  %16721 = vst [vmem:[#allocation9_spill] sm:$0xff] %v12283_v44  ;;  %vm11916_vm14 = vmmov 1  }
  0x3d   : > { %v12279_v41 = vpack.c.bf16 %v793_v34, %v791_v24  ;;  %v12296_v19 = vsel %vm570_vm0, %v598_v3, %v599_v7  ;;  %v12299_v33 = vsel %vm570_vm0, 0.0, %v598_v3  ;;  %v12302_v29 = vsel %vm570_vm0, %v599_v7, 0.0  ;;  %v517_v3 = vld [vmem:[%s12043_s20 + $0xa8] sm:$0xff]  ;;  %vm14511_vm15 = vmpackc.low %vm11916_vm14, %vm13107_vm6 }
  0x3e   : > { %v794_v36 = vrot.slane %v12299_v33, 1  ;;  %v795_v37 = vrot.slane %v12296_v19, 1  ;;  %v602_v16 = vrot.slane %v517_v3, 7  ;;  %v1203_v13 = vrot.slane %v12299_v33, 2  ;;  %vm14860_vm1 = vmpackc.low %vm13107_vm6, %vm11916_vm14 }
  0x43   : > { %9954 = vmatmul.msk.bf16.gmra.mxu0 %vm16713_vm2, %v12128_v22  ;;  %9969 = vmatmul.msk.bf16.gmra.mxu1 %vm16713_vm2, %v12130_v23 }
  0x48   : > { %10000 = vmatmul.msk.bf16.gmra.mxu3 %vm16713_vm2, %v12130_v23 }
  0x4a   : > { %9984 = vmatmul.msk.bf16.gmra.mxu2 %vm16713_vm2, %v12141_v38 }
  0x53   : > { %9955 = vmatmul.msk.bf16.gmra.mxu0 %vm16713_vm2, %v12151_v48  ;;  %9970 = vmatmul.msk.bf16.gmra.mxu1 %vm16713_vm2, %v12153_v50 }
  0x58   : > { %10001 = vmatmul.msk.bf16.gmra.mxu3 %vm16713_vm2, %v12153_v50 }
  0x5a   : > { %9985 = vmatmul.msk.bf16.gmra.mxu2 %vm16713_vm2, %v12164_v0 }
  0x63   : > { %9956 = vmatmul.msk.bf16.gmra.mxu0 %vm16713_vm2, %v12174_v11  ;;  %9971 = vmatmul.msk.bf16.gmra.mxu1 %vm16713_vm2, %v12176_v14 }
  0x68   : > { %10002 = vmatmul.msk.bf16.gmra.mxu3 %vm16713_vm2, %v12176_v14 }
  0x6a   : > { %9986 = vmatmul.msk.bf16.gmra.mxu2 %vm16713_vm2, %v12187_v31 }
  0x73   : > { %9957 = vmatmul.msk.bf16.gmra.mxu0 %vm16713_vm2, %v12197_v42  ;;  %9972 = vmatmul.msk.bf16.gmra.mxu1 %vm16713_vm2, %v12199_v43 }
  0x78   : > { %10003 = vmatmul.msk.bf16.gmra.mxu3 %vm16713_vm2, %v12199_v43 }
  0x7a   : > { %9987 = vmatmul.msk.bf16.gmra.mxu2 %vm16713_vm2, %v12210_v59 }
  0x83   : > { %9958 = vmatmul.msk.bf16.gmra.mxu0 %vm16713_vm2, %v12220_v9  ;;  %9973 = vmatmul.msk.bf16.gmra.mxu1 %vm16713_vm2, %v12222_v10 }
  0x88   : > { %10004 = vmatmul.msk.bf16.gmra.mxu3 %vm16713_vm2, %v12222_v10 }
  0x8a   : > { %9988 = vmatmul.msk.bf16.gmra.mxu2 %vm16713_vm2, %v12233_v30 }
  0x90   : > { %v935_v51 = vpop.f32.mrf.mxu0  ;;  %v1075_v52 = vpop.f32.mrf.mxu1 }
  0x91   : > { %v12247_v60 = vadd.f32 %v1075_v52, %v935_v51 }
  0x93   : > { %9959 = vmatmul.msk.bf16.gmra.mxu0 %vm16713_vm2, %v12243_v46  ;;  %9974 = vmatmul.msk.bf16.gmra.mxu1 %vm16713_vm2, %v12245_v47 }
  0x98   : > { %v937_v58 = vpop.f32.mrf.mxu0  ;;  %v1077_v15 = vpop.f32.mrf.mxu1  ;;  %10005 = vmatmul.msk.bf16.gmra.mxu3 %vm16713_vm2, %v12245_v47 }
  0x99   : > { %v12269_v21 = vadd.f32 %v1077_v15, %v937_v58  ;;  %v1195_v58 = vsel %vm1155_vm4, %v1193_v55, %v1194_v63  ;;  %v1197_v15 = vsel %vm1155_vm4, %v1194_v63, %v1196_v1  ;;  %v516_v1 = vld [vmem:[%s12043_s20 + $0xa0] sm:$0xff] }
  0x9a   : > { %9989 = vmatmul.msk.bf16.gmra.mxu2 %vm16713_vm2, %v12264_v17  ;;  %v12304_v20 = vpack.c.bf16 %v1197_v15, %v1195_v58  ;;  %v12325_v15 = vpack.c.bf16 %v12296_v19, %v12299_v33  ;;  %v601_v4 = vrot.slane %v516_v1, 7 }
  0x9b   : > { %v1150_v35 = vpop.f32.mrf.mxu3 }
  0x9c   : > { %16724 = vst [vmem:[#allocation12_spill] sm:$0xff] %v12325_v15 }
  0x9d   : > { %v1010_v39 = vpop.f32.mrf.mxu2 }
  0x9e   : > { %v12285_v51 = vadd.f32 %v1150_v35, %v1010_v39  ;;  %v797_v39 = vrot.slane %v12302_v29, 1 }
  0xa0   : > { %16722 = vst [vmem:[#allocation10_spill] sm:$0xff] %v12285_v51  ;;  %v940_v52 = vpop.f32.mrf.mxu0  ;;  %v1080_v54 = vpop.f32.mrf.mxu1  ;;  %v798_v55 = vsel %vm746_vm3, %v795_v37, %v797_v39 }
  0xa1   : > { %v12287_v2 = vadd.f32 %v1080_v54, %v940_v52  ;;  %v796_v54 = vsel %vm746_vm3, %v794_v36, %v795_v37  ;;  %v1199_v36 = vrot.slane %v12256_v8, 2  ;;  %v1201_v37 = vrot.slane %v12262_v57, 2 }
  0xa2   : > { %v12321_v58 = vpack.c.bf16 %v798_v55, %v796_v54  ;;  %v12342_v8 = vsel %vm570_vm0, %v601_v4, %v602_v16  ;;  %v12345_v57 = vsel %vm570_vm0, 0.0, %v601_v4 }
  0xa3   : > { %9960 = vmatmul.msk.bf16.gmra.mxu0 %vm16713_vm2, %v12279_v41  ;;  %9975 = vmatmul.msk.bf16.gmra.mxu1 %vm16713_vm2, %v12283_v44  ;;  %v1152_v18 = vpop.f32.mrf.mxu3 }
  0xa5   : > { %v1012_v28 = vpop.f32.mrf.mxu2 }
  0xa6   : > { %v12306_v24 = vadd.f32 %v1152_v18, %v1012_v28 }
  0xa8   : > { %16723 = vst [vmem:[#allocation11_spill] sm:$0xff] %v12306_v24  ;;  %v942_v34 = vpop.f32.mrf.mxu0  ;;  %v1082_v35 = vpop.f32.mrf.mxu1  ;;  %10006 = vmatmul.msk.bf16.gmra.mxu3 %vm16713_vm2, %v12283_v44 }
  0xa9   : > { %v12311_v52 = vadd.f32 %v1082_v35, %v942_v34  ;;  %v1198_v35 = vrot.slane %v12259_v56, 2  ;;  %v1202_v56 = vsel %vm1155_vm4, %v1199_v36, %v1201_v37 }
  0xaa   : > { %9990 = vmatmul.msk.bf16.gmra.mxu2 %vm16713_vm2, %v12304_v20 }
  0xab   : > { %v1468_v63 = vpop.f32.mrf.mxu3 }
  0xad   : > { %v1340_v7 = vpop.f32.mrf.mxu2 }
  0xae   : > { %v1420_v18 = vadd.f32 %v1340_v7, %v12247_v60  ;;  %v1200_v60 = vsel %vm1155_vm4, %v1198_v35, %v1199_v36  ;;  %v800_v35 = vrot.slane %v12342_v8, 1 }
  0xaf   : > { %v12350_v3 = vpack.c.bf16 %v1202_v56, %v1200_v60  ;;  %v518_v56 = vld [vmem:[%s12043_s20 + $0xb0] sm:$0xff] }
  0xb0   : > { %v945_v28 = vpop.f32.mrf.mxu0  ;;  %v1085_v34 = vpop.f32.mrf.mxu1  ;;  %v12333_v54 = vadd.f32 %v1468_v63, %v1420_v18  ;;  %v12348_v63 = vsel %vm570_vm0, %v602_v16, 0.0  ;;  %v604_v5 = vrot.slane %v518_v56, 7 }
  0xb1   : > { %v12331_v39 = vadd.f32 %v1085_v34, %v945_v28  ;;  %16725 = vst [vmem:[#allocation13_spill] sm:$0xff] %v12350_v3  ;;  %v799_v34 = vrot.slane %v12345_v57, 1  ;;  %v802_v36 = vrot.slane %v12348_v63, 1 }
  0xb3   : > { %9961 = vmatmul.msk.bf16.gmra.mxu0 %vm16713_vm2, %v12321_v58  ;;  %9976 = vmatmul.msk.bf16.gmra.mxu1 %vm16713_vm2, %v12325_v15  ;;  %v1470_v55 = vpop.f32.mrf.mxu3  ;;  %v801_v16 = vsel %vm746_vm3, %v799_v34, %v800_v35  ;;  %v1204_v34 = vrot.slane %v12296_v19, 2 }
  0xb5   : > { %v1342_v1 = vpop.f32.mrf.mxu2 }
  0xb6   : > { %v1421_v7 = vadd.f32 %v1342_v1, %v12269_v21  ;;  %v803_v21 = vsel %vm746_vm3, %v800_v35, %v802_v36  ;;  %v519_v1 = vld [vmem:[%s12043_s20 + $0xb8] sm:$0xff]  ;;  %v1206_v35 = vrot.slane %v12302_v29, 2  ;;  %v12392_v29 = vsel %vm570_vm0, 0.0, %v604_v5 }
  0xb7   : > { %v12368_v53 = vpack.c.bf16 %v803_v21, %v801_v16  ;;  %v605_v40 = vrot.slane %v519_v1, 7 }
  0xb8   : > { %v947_v18 = vpop.f32.mrf.mxu0  ;;  %v1087_v28 = vpop.f32.mrf.mxu1  ;;  %v12358_v37 = vadd.f32 %v1470_v55, %v1421_v7  ;;  %10007 = vmatmul.msk.bf16.gmra.mxu3 %vm16713_vm2, %v12325_v15  ;;  %v12372_v55 = vpack.c.bf16 %v12342_v8, %v12345_v57 }
  0xb9   : > { %v12356_v4 = vadd.f32 %v1087_v28, %v947_v18  ;;  %16726 = vst [vmem:[#allocation14_spill] sm:$0xff] %v12368_v53  ;;  %v12389_v19 = vsel %vm570_vm0, %v604_v5, %v605_v40  ;;  %v12395_v21 = vsel %vm570_vm0, %v605_v40, 0.0 }
  0xba   : > { %9991 = vmatmul.msk.bf16.gmra.mxu2 %vm16713_vm2, %v12350_v3  ;;  %16727 = vst [vmem:[#allocation15_spill] sm:$0xff] %v12372_v55 }
  0xbb   : > { %v1473_v60 = vpop.f32.mrf.mxu3 }
  0xbd   : > { %v1345_v49 = vpop.f32.mrf.mxu2 }
  0xbe   : > { %v1422_v7 = vadd.f32 %v1345_v49, %v12287_v2  ;;  %v1205_v49 = vsel %vm1155_vm4, %v1203_v13, %v1204_v34  ;;  %v1207_v2 = vsel %vm1155_vm4, %v1204_v34, %v1206_v35  ;;  %v807_v34 = vrot.slane %v12395_v21, 1 }
  0xbf   : > { %v12397_v56 = vpack.c.bf16 %v1207_v2, %v1205_v49  ;;  %v520_v2 = vld [vmem:[%s12043_s20 + $0xc0] sm:$0xff] }
  0xc0   : > { %v950_v18 = vpop.f32.mrf.mxu0  ;;  %v1090_v28 = vpop.f32.mrf.mxu1  ;;  %v12380_v16 = vadd.f32 %v1473_v60, %v1422_v7 }
  0xc1   : > { %v12378_v36 = vadd.f32 %v1090_v28, %v950_v18  ;;  %16728 = vst [vmem:[#allocation16_spill] sm:$0xff] %v12397_v56  ;;  %v804_v18 = vrot.slane %v12392_v29, 1  ;;  %v805_v28 = vrot.slane %v12389_v19, 1 }
  0xc3   : > { %9962 = vmatmul.msk.bf16.gmra.mxu0 %vm16713_vm2, %v12368_v53  ;;  %9977 = vmatmul.msk.bf16.gmra.mxu1 %vm16713_vm2, %v12372_v55  ;;  %v1475_v33 = vpop.f32.mrf.mxu3  ;;  %v806_v40 = vsel %vm746_vm3, %v804_v18, %v805_v28  ;;  %v1208_v18 = vrot.slane %v12345_v57, 2  ;;  %v607_v53 = vrot.slane %v520_v2, 7 }
  0xc5   : > { %v1347_v60 = vpop.f32.mrf.mxu2 }
  0xc6   : > { %v1423_v1 = vadd.f32 %v1347_v60, %v12311_v52  ;;  %v808_v52 = vsel %vm746_vm3, %v805_v28, %v807_v34  ;;  %v521_v60 = vld [vmem:[%s12043_s20 + $0xc8] sm:$0xff]  ;;  %v1209_v28 = vrot.slane %v12342_v8, 2  ;;  %v12439_v8 = vsel %vm570_vm0, 0.0, %v607_v53 }
  0xc7   : > { %v12415_v24 = vpack.c.bf16 %v808_v52, %v806_v40  ;;  %v608_v51 = vrot.slane %v521_v60, 7 }
  0xc8   : > { %v952_v13 = vpop.f32.mrf.mxu0  ;;  %v1092_v7 = vpop.f32.mrf.mxu1  ;;  %v12405_v35 = vadd.f32 %v1475_v33, %v1423_v1  ;;  %10008 = vmatmul.msk.bf16.gmra.mxu3 %vm16713_vm2, %v12372_v55  ;;  %v12419_v33 = vpack.c.bf16 %v12389_v19, %v12392_v29  ;;  %v1211_v1 = vrot.slane %v12348_v63, 2 }
  0xc9   : > { %v12403_v5 = vadd.f32 %v1092_v7, %v952_v13  ;;  %16729 = vst [vmem:[#allocation17_spill] sm:$0xff] %v12415_v24  ;;  %v12436_v57 = vsel %vm570_vm0, %v607_v53, %v608_v51 }
  0xca   : > { %9992 = vmatmul.msk.bf16.gmra.mxu2 %vm16713_vm2, %v12397_v56  ;;  %16730 = vst [vmem:[#allocation18_spill] sm:$0xff] %v12419_v33 }
  0xcb   : > { %v1478_v49 = vpop.f32.mrf.mxu3 }
  0xcd   : > { %v1350_v15 = vpop.f32.mrf.mxu2 }
  0xce   : > { %v1424_v13 = vadd.f32 %v1350_v15, %v12331_v39  ;;  %v1210_v15 = vsel %vm1155_vm4, %v1208_v18, %v1209_v28  ;;  %v1212_v39 = vsel %vm1155_vm4, %v1209_v28, %v1211_v1  ;;  %v809_v1 = vrot.slane %v12439_v8, 1 }
  0xd0   : > { %v955_v7 = vpop.f32.mrf.mxu0  ;;  %v1095_v55 = vpop.f32.mrf.mxu1  ;;  %v12427_v40 = vadd.f32 %v1478_v49, %v1424_v13  ;;  %v12444_v49 = vpack.c.bf16 %v1212_v39, %v1210_v15 }
  0xd1   : > { %v12425_v34 = vadd.f32 %v1095_v55, %v955_v7  ;;  %v12442_v55 = vsel %vm570_vm0, %v608_v51, 0.0  ;;  %v810_v7 = vrot.slane %v12436_v57, 1  ;;  %v534_v51 = vld [vmem:[%s16622_s1 + $0xc] sm:$0x3] }
  0xd2   : > { %16731 = vst [vmem:[#allocation19_spill] sm:$0xff] %v12427_v40  ;;  %v812_v18 = vrot.slane %v12442_v55, 1 }
  0xd3   : > { %9963 = vmatmul.msk.bf16.gmra.mxu0 %vm16713_vm2, %v12415_v24  ;;  %9978 = vmatmul.msk.bf16.gmra.mxu1 %vm16713_vm2, %v12419_v33  ;;  %v1480_v63 = vpop.f32.mrf.mxu3  ;;  %16732 = vst [vmem:[#allocation20_spill] sm:$0xff] %v12444_v49  ;;  %v811_v15 = vsel %vm746_vm3, %v809_v1, %v810_v7 }
  0xd4   : > { %v813_v39 = vsel %vm746_vm3, %v810_v7, %v812_v18 }
  0xd5   : > { %v1352_v52 = vpop.f32.mrf.mxu2  ;;  %v12470_v24 = vpack.c.bf16 %v813_v39, %v811_v15  ;;  %v533_v15 = vld [vmem:[%s16622_s1 + $0xa] sm:$0x3] }
  0xd6   : > { %v1425_v2 = vadd.f32 %v1352_v52, %v12356_v4  ;;  %v1853_v4 = vand.u32 %v12015_v6, %v534_v51  ;;  %v12474_v51 = vpack.c.bf16 %v12436_v57, %v12439_v8 }
  0xd7   : > { %16734 = vst [vmem:[#allocation22_spill] sm:$0xff] %v12470_v24 }
  0xd8   : > { %v957_v60 = vpop.f32.mrf.mxu0  ;;  %v1097_v13 = vpop.f32.mrf.mxu1  ;;  %v12452_v28 = vadd.f32 %v1480_v63, %v1425_v2  ;;  %10009 = vmatmul.msk.bf16.gmra.mxu3 %vm16713_vm2, %v12419_v33  ;;  %v535_v63 = vld [vmem:[%s16622_s1 + $0xe] sm:$0x3]  ;;  %1862 = vmatpush.bf16.msra.mxu2 %v1853_v4  ;;  %16735 = vst [vmem:[#allocation23_spill] sm:$0xff] %v12474_v51  ;;  %v1214_v4 = vrot.slane %v12389_v19, 2 }
  0xd9   : > { %v12450_v53 = vadd.f32 %v1097_v13, %v957_v60  ;;  %v1977_v2 = vand.u32 %v12015_v6, %v535_v63  ;;  %v522_v60 = vld [vmem:[%s12043_s20 + $0xd0] sm:$0xff]  ;;  %v523_v13 = vld [vmem:[%s12043_s20 + $0xd8] sm:$0xff]  ;;  %v1216_v63 = vrot.slane %v12395_v21, 2 }
  0xda   : > { %16733 = vst [vmem:[#allocation21_spill] sm:$0xff] %v12452_v28  ;;  %9993 = vmatmul.msk.bf16.gmra.mxu2 %vm16713_vm2, %v12444_v49  ;;  %v1213_v28 = vrot.slane %v12392_v29, 2  ;;  %v610_v40 = vrot.slane %v522_v60, 7  ;;  %v611_v44 = vrot.slane %v523_v13, 7 }
  0xdb   : > { %v1483_v52 = vpop.f32.mrf.mxu3  ;;  %1986 = vmatpush.bf16.msra.mxu3 %v1977_v2  ;;  %v1729_v2 = vand.u32 %v12015_v6, %v533_v15  ;;  %v1217_v29 = vsel %vm1155_vm4, %v1214_v4, %v1216_v63 }
  0xdc   : > { %v1215_v19 = vsel %vm1155_vm4, %v1213_v28, %v1214_v4  ;;  %v680_v60 = vsel %vm570_vm0, 0.0, %v610_v40  ;;  %v696_v13 = vsel %vm570_vm0, %v611_v44, 0.0 }
  0xdd   : > { %v1355_v33 = vpop.f32.mrf.mxu2  ;;  %1738 = vmatpush.bf16.msrb.mxu1 %v1729_v2  ;;  %v817_v63 = vrot.slane %v696_v13, 1 }
  0xde   : > { %v1426_v1 = vadd.f32 %v1355_v33, %v12378_v36  ;;  %v536_v36 = vld [vmem:[%s16622_s1 + $0x10] sm:$0x3] }
  0xdf   : > { %v2101_v21 = vand.u32 %v12015_v6, %v536_v36 }
  0xe0   : > { %v960_v7 = vpop.f32.mrf.mxu0  ;;  %v1100_v18 = vpop.f32.mrf.mxu1  ;;  %v12483_v39 = vadd.f32 %v1483_v52, %v1426_v1  ;;  %v612_v52 = vsel %vm570_vm0, %v610_v40, %v611_v44 }
  0xe1   : > { %v1101_v49 = vadd.f32 %v1100_v18, %v960_v7  ;;  %2110 = vmatpush.bf16.msra.mxu0 %v2101_v21  ;;  %v12499_v7 = vpack.c.bf16 %v1217_v29, %v1215_v19  ;;  %v815_v4 = vrot.slane %v612_v52, 1  ;;  %v12512_v29 = vpack.c.bf16 %v612_v52, %v680_v60 }
  0xe3   : > { %9964 = vmatmul.msk.bf16.gmra.mxu0 %vm16713_vm2, %v12470_v24  ;;  %9979 = vmatmul.msk.bf16.gmra.mxu1 %vm16713_vm2, %v12474_v51  ;;  %v1485_v33 = vpop.f32.mrf.mxu3  ;;  %v814_v24 = vrot.slane %v680_v60, 1  ;;  %v818_v40 = vsel %vm746_vm3, %v815_v4, %v817_v63 }
  0xe5   : > { %v1357_v1 = vpop.f32.mrf.mxu2  ;;  %v816_v44 = vsel %vm746_vm3, %v814_v24, %v815_v4 }
  0xe6   : > { %v1427_v18 = vadd.f32 %v1357_v1, %v12403_v5  ;;  %v12510_v19 = vpack.c.bf16 %v818_v40, %v816_v44 }
  0xe8   : > { %v962_v15 = vpop.f32.mrf.mxu0  ;;  %v1102_v28 = vpop.f32.mrf.mxu1  ;;  %v12502_v6 = vadd.f32 %v1485_v33, %v1427_v18  ;;  %10010 = vmatmul.msk.bf16.gmra.mxu3 %vm16713_vm2, %v12474_v51  ;;  %16736 = vst [vmem:[#allocation24_spill] sm:$0xff] %v12510_v19  ;;  %v1221_v51 = vrot.slane %v12442_v55, 2 }
  0xe9   : > { %v1103_v2 = vadd.f32 %v1102_v28, %v962_v15  ;;  %v1218_v15 = vrot.slane %v12439_v8, 2  ;;  %v1219_v28 = vrot.slane %v12436_v57, 2 }
  0xea   : > { %9994 = vmatmul.msk.bf16.gmra.mxu2 %vm16713_vm2, %v12499_v7 }
  0xeb   : > { %v1488_v36 = vpop.f32.mrf.mxu3  ;;  %v1222_v63 = vsel %vm1155_vm4, %v1219_v28, %v1221_v51 }
  0xed   : > { %v1360_v5 = vpop.f32.mrf.mxu2 }
  0xee   : > { %v1428_v21 = vadd.f32 %v1360_v5, %v12425_v34  ;;  %v1220_v34 = vsel %vm1155_vm4, %v1218_v15, %v1219_v28 }
  0xef   : > { %v12527_v5 = vpack.c.bf16 %v1222_v63, %v1220_v34 }
  0xf0   : > { %v965_v33 = vpop.f32.mrf.mxu0  ;;  %v1105_v1 = vpop.f32.mrf.mxu1  ;;  %v12518_v24 = vadd.f32 %v1488_v36, %v1428_v21 }
  0xf1   : > { %v1106_v18 = vadd.f32 %v1105_v1, %v965_v33 }
  0xf3   : > { %9965 = vmatmul.msk.bf16.gmra.mxu0 %vm16713_vm2, %v12510_v19  ;;  %9980 = vmatmul.msk.bf16.gmra.mxu1 %vm16713_vm2, %v12512_v29  ;;  %v1490_v4 = vpop.f32.mrf.mxu3  ;;  %v1226_v19 = vrot.slane %v696_v13, 2 }
  0xf5   : > { %v1362_v44 = vpop.f32.mrf.mxu2 }
  0xf6   : > { %v1429_v8 = vadd.f32 %v1362_v44, %v12450_v53  ;;  %v1223_v53 = vrot.slane %v680_v60, 2  ;;  %v1224_v44 = vrot.slane %v612_v52, 2 }
  0xf8   : > { %v967_v40 = vpop.f32.mrf.mxu0  ;;  %v1107_v57 = vpop.f32.mrf.mxu1  ;;  %v12529_v36 = vadd.f32 %v1490_v4, %v1429_v8  ;;  %10011 = vmatmul.msk.bf16.gmra.mxu3 %vm16713_vm2, %v12512_v29  ;;  %v1225_v63 = vsel %vm1155_vm4, %v1223_v53, %v1224_v44 }
  0xf9   : > { %v1108_v55 = vadd.f32 %v1107_v57, %v967_v40 }
  0xfa   : > { %9995 = vmatmul.msk.bf16.gmra.mxu2 %vm16713_vm2, %v12527_v5 }
  0xfb   : > { %v1493_v21 = vpop.f32.mrf.mxu3 }
  0xfd   : > { %v1365_v33 = vpop.f32.mrf.mxu2 }
  0xfe   : > { %v1430_v1 = vadd.f32 %v1365_v33, %v1101_v49  ;;  %v1227_v49 = vsel %vm1155_vm4, %v1224_v44, %v1226_v19  ;;  %v1231_v44 = vrot.slane %v12059_v27, 2 }
  0xff   : > { %v12543_v13 = vpack.c.bf16 %v1227_v49, %v1225_v63  ;;  %v1228_v63 = vrot.slane %v12056_v26, 2  ;;  %v1229_v49 = vrot.slane %v12053_v25, 2 }
 0x100   : > { %v970_v51 = vpop.f32.mrf.mxu0  ;;  %v1110_v15 = vpop.f32.mrf.mxu1  ;;  %v12535_v34 = vadd.f32 %v1493_v21, %v1430_v1 }
 0x101   : > { %v1111_v28 = vadd.f32 %v1110_v15, %v970_v51  ;;  %v1230_v26 = vsel %vm1155_vm4, %v1228_v63, %v1229_v49  ;;  %v1232_v25 = vsel %vm1155_vm4, %v1229_v49, %v1231_v44 }
 0x103   : > { %10014 = vmatmul.msk.bf16.vlgmr.msrb.gmra.mxu0 %vm16713_vm2, %v12083_v45  ;;  %10030 = vmatmul.msk.bf16.vlgmr.msrb.gmra.mxu1 %vm16713_vm2, %v12118_v12  ;;  %v1495_v4 = vpop.f32.mrf.mxu3  ;;  %v526_v45 = vld [vmem:[%s12043_s20 + $0xf0] sm:$0xff]  ;;  %v12553_v12 = vld [vmem:[%s12043_s20 + $0xf8] sm:$0xff] }
 0x104   : > { %v616_v1 = vrot.slane %v526_v45, 7 }
 0x105   : > { %v1367_v8 = vpop.f32.mrf.mxu2 }
 0x106   : > { %v1431_v40 = vadd.f32 %v1367_v8, %v1103_v2  ;;  %v16663_v2 = vrot.slane %v12553_v12, 7  ;;  %v12571_v27 = vsel %vm570_vm0, 0.0, %v616_v1 }
 0x108   : > { %v972_v60 = vpop.f32.mrf.mxu0  ;;  %v1112_v52 = vpop.f32.mrf.mxu1  ;;  %v12545_v21 = vadd.f32 %v1495_v4, %v1431_v40  ;;  %10012 = vmatmul.msk.bf16.gmra.mxu3 %vm16713_vm2, %v12067_v32 }
 0x109   : > { %v1113_v57 = vadd.f32 %v1112_v52, %v972_v60 }
 0x10a   : > { %9996 = vmatmul.msk.bf16.gmra.mxu2 %vm16713_vm2, %v12543_v13 }
 0x10b   : > { %v1498_v33 = vpop.f32.mrf.mxu3 }
 0x10d   : > { %v1370_v19 = vpop.f32.mrf.mxu2 }
 0x10e   : > { %v1432_v51 = vadd.f32 %v1370_v19, %v1106_v18  ;;  %v12568_v18 = vsel %vm570_vm0, %v616_v1, %v16663_v2 }
 0x10f   : > { %v12577_v60 = vpack.c.bf16 %v12568_v18, %v12571_v27 }
 0x110   : > { %v975_v15 = vpop.f32.mrf.mxu0  ;;  %v1115_v53 = vpop.f32.mrf.mxu1  ;;  %v12559_v8 = vadd.f32 %v1498_v33, %v1432_v51  ;;  %v12579_v51 = vpack.c.bf16 %v1232_v25, %v1230_v26 }
 0x111   : > { %v1116_v4 = vadd.f32 %v1115_v53, %v975_v15 }
 0x113   : > { %10015 = vmatmul.msk.bf16.gmra.mxu0 %vm16713_vm2, %v12105_v61  ;;  %10031 = vmatmul.msk.bf16.gmra.mxu1 %vm16713_vm2, %v12141_v38  ;;  %v1500_v40 = vpop.f32.mrf.mxu3 }
 0x115   : > { %v1372_v52 = vpop.f32.mrf.mxu2 }
 0x116   : > { %v1433_v45 = vadd.f32 %v1372_v52, %v1108_v55 }
 0x118   : > { %v977_v33 = vpop.f32.mrf.mxu0  ;;  %v1117_v19 = vpop.f32.mrf.mxu1  ;;  %v12581_v53 = vadd.f32 %v1500_v40, %v1433_v45  ;;  %10013 = vmatmul.msk.bf16.gmra.mxu3 %vm16713_vm2, %v12577_v60 }
 0x119   : > { %v1118_v15 = vadd.f32 %v1117_v19, %v977_v33 }
 0x11a   : > { %9997 = vmatmul.msk.bf16.gmra.mxu2 %vm16713_vm2, %v12579_v51 }
 0x11b   : > { %v1503_v1 = vpop.f32.mrf.mxu3 }
 0x11d   : > { %v1375_v44 = vpop.f32.mrf.mxu2 }
 0x11e   : > { %v1434_v63 = vadd.f32 %v1375_v44, %v1111_v28 }
 0x120   : > { %v980_v49 = vpop.f32.mrf.mxu0  ;;  %v1120_v2 = vpop.f32.mrf.mxu1  ;;  %v12587_v55 = vadd.f32 %v1503_v1, %v1434_v63 }
 0x121   : > { %v1121_v38 = vadd.f32 %v1120_v2, %v980_v49 }
 0x123   : > { %10016 = vmatmul.msk.bf16.gmra.mxu0 %vm16713_vm2, %v12128_v22  ;;  %10032 = vmatmul.msk.bf16.gmra.mxu1 %vm16713_vm2, %v12164_v0  ;;  %v1505_v40 = vpop.f32.mrf.mxu3 }
 0x125   : > { %v1377_v26 = vpop.f32.mrf.mxu2 }
 0x126   : > { %v1435_v25 = vadd.f32 %v1377_v26, %v1113_v57 }
 0x128   : > { %v982_v52 = vpop.f32.mrf.mxu0  ;;  %v1122_v45 = vpop.f32.mrf.mxu1  ;;  %v12593_v19 = vadd.f32 %v1505_v40, %v1435_v25  ;;  %10061 = vmatmul.msk.bf16.vlgmr.msra.gmra.mxu3 %vm16713_vm2, %v12105_v61 }
 0x129   : > { %v1123_v33 = vadd.f32 %v1122_v45, %v982_v52 }
 0x12a   : > { %10046 = vmatmul.msk.bf16.vlgmr.msra.gmra.mxu2 %vm16713_vm2, %v12107_v62 }
 0x12b   : > { %v1508_v28 = vpop.f32.mrf.mxu3 }
 0x12d   : > { %v1380_v2 = vpop.f32.mrf.mxu2 }
 0x12e   : > { %v1436_v1 = vadd.f32 %v1380_v2, %v1116_v4 }
 0x130   : > { %v985_v44 = vpop.f32.mrf.mxu0  ;;  %v1125_v63 = vpop.f32.mrf.mxu1  ;;  %v12599_v0 = vadd.f32 %v1508_v28, %v1436_v1 }
 0x131   : > { %v1126_v49 = vadd.f32 %v1125_v63, %v985_v44 }
 0x133   : > { %10017 = vmatmul.msk.bf16.gmra.mxu0 %vm16713_vm2, %v12151_v48  ;;  %10033 = vmatmul.msk.bf16.gmra.mxu1 %vm16713_vm2, %v12187_v31  ;;  %v1510_v57 = vpop.f32.mrf.mxu3 }
 0x135   : > { %v1382_v40 = vpop.f32.mrf.mxu2 }
 0x136   : > { %v1437_v61 = vadd.f32 %v1382_v40, %v1118_v15 }
 0x138   : > { %v987_v26 = vpop.f32.mrf.mxu0  ;;  %v1127_v25 = vpop.f32.mrf.mxu1  ;;  %v12605_v52 = vadd.f32 %v1510_v57, %v1437_v61  ;;  %10062 = vmatmul.msk.bf16.gmra.mxu3 %vm16713_vm2, %v12128_v22 }
 0x139   : > { %v1128_v62 = vadd.f32 %v1127_v25, %v987_v26 }
 0x13a   : > { %10047 = vmatmul.msk.bf16.gmra.mxu2 %vm16713_vm2, %v12130_v23 }
 0x13b   : > { %v1513_v4 = vpop.f32.mrf.mxu3 }
 0x13d   : > { %v1385_v45 = vpop.f32.mrf.mxu2 }
 0x13e   : > { %v1438_v28 = vadd.f32 %v1385_v45, %v1121_v38 }
 0x140   : > { %v990_v2 = vpop.f32.mrf.mxu0  ;;  %v1130_v1 = vpop.f32.mrf.mxu1  ;;  %v12611_v63 = vadd.f32 %v1513_v4, %v1438_v28 }
 0x141   : > { %v1131_v44 = vadd.f32 %v1130_v1, %v990_v2 }
 0x143   : > { %10018 = vmatmul.msk.bf16.gmra.mxu0 %vm16713_vm2, %v12174_v11  ;;  %10034 = vmatmul.msk.bf16.gmra.mxu1 %vm16713_vm2, %v12210_v59  ;;  %v1515_v15 = vpop.f32.mrf.mxu3 }
 0x145   : > { %v1387_v57 = vpop.f32.mrf.mxu2 }
 0x146   : > { %v1439_v22 = vadd.f32 %v1387_v57, %v1123_v33 }
 0x148   : > { %v992_v40 = vpop.f32.mrf.mxu0  ;;  %v1132_v61 = vpop.f32.mrf.mxu1  ;;  %v12617_v26 = vadd.f32 %v1515_v15, %v1439_v22  ;;  %10063 = vmatmul.msk.bf16.gmra.mxu3 %vm16713_vm2, %v12151_v48 }
 0x149   : > { %v1133_v23 = vadd.f32 %v1132_v61, %v992_v40 }
 0x14a   : > { %10048 = vmatmul.msk.bf16.gmra.mxu2 %vm16713_vm2, %v12153_v50 }
 0x14b   : > { %v1518_v38 = vpop.f32.mrf.mxu3 }
 0x14d   : > { %v1390_v25 = vpop.f32.mrf.mxu2 }
 0x14e   : > { %v1440_v4 = vadd.f32 %v1390_v25, %v1126_v49 }
 0x150   : > { %v995_v45 = vpop.f32.mrf.mxu0  ;;  %v1135_v28 = vpop.f32.mrf.mxu1  ;;  %v12623_v1 = vadd.f32 %v1518_v38, %v1440_v4 }
 0x151   : > { %v1136_v2 = vadd.f32 %v1135_v28, %v995_v45 }
 0x153   : > { %10019 = vmatmul.msk.bf16.gmra.mxu0 %vm16713_vm2, %v12197_v42  ;;  %10035 = vmatmul.msk.bf16.gmra.mxu1 %vm16713_vm2, %v12233_v30  ;;  %v1520_v33 = vpop.f32.mrf.mxu3 }
 0x155   : > { %v1392_v15 = vpop.f32.mrf.mxu2 }
 0x156   : > { %v1441_v48 = vadd.f32 %v1392_v15, %v1128_v62 }
 0x158   : > { %v997_v57 = vpop.f32.mrf.mxu0  ;;  %v1137_v22 = vpop.f32.mrf.mxu1  ;;  %v12629_v40 = vadd.f32 %v1520_v33, %v1441_v48  ;;  %10064 = vmatmul.msk.bf16.gmra.mxu3 %vm16713_vm2, %v12174_v11 }
 0x159   : > { %v1138_v50 = vadd.f32 %v1137_v22, %v997_v57 }
 0x15a   : > { %10049 = vmatmul.msk.bf16.gmra.mxu2 %vm16713_vm2, %v12176_v14 }
 0x15b   : > { %v1523_v49 = vpop.f32.mrf.mxu3 }
 0x15d   : > { %v1395_v61 = vpop.f32.mrf.mxu2 }
 0x15e   : > { %v1442_v38 = vadd.f32 %v1395_v61, %v1131_v44 }
 0x160   : > { %v1000_v25 = vpop.f32.mrf.mxu0  ;;  %v1140_v4 = vpop.f32.mrf.mxu1  ;;  %v12635_v28 = vadd.f32 %v1523_v49, %v1442_v38 }
 0x161   : > { %v1141_v45 = vadd.f32 %v1140_v4, %v1000_v25 }
 0x163   : > { %10020 = vmatmul.msk.bf16.gmra.mxu0 %vm16713_vm2, %v12220_v9  ;;  %10036 = vmatmul.msk.bf16.gmra.mxu1 %vm16713_vm2, %v12264_v17  ;;  %v1525_v62 = vpop.f32.mrf.mxu3 }
 0x165   : > { %v1397_v33 = vpop.f32.mrf.mxu2 }
 0x166   : > { %v1443_v11 = vadd.f32 %v1397_v33, %v1133_v23 }
 0x168   : > { %v1002_v15 = vpop.f32.mrf.mxu0  ;;  %v1142_v48 = vpop.f32.mrf.mxu1  ;;  %v12641_v57 = vadd.f32 %v1525_v62, %v1443_v11  ;;  %10065 = vmatmul.msk.bf16.gmra.mxu3 %vm16713_vm2, %v12197_v42 }
 0x169   : > { %v1143_v14 = vadd.f32 %v1142_v48, %v1002_v15 }
 0x16a   : > { %10050 = vmatmul.msk.bf16.gmra.mxu2 %vm16713_vm2, %v12199_v43 }
 0x16b   : > { %v1528_v44 = vpop.f32.mrf.mxu3 }
 0x16d   : > { %v1400_v22 = vpop.f32.mrf.mxu2 }
 0x16e   : > { %v1444_v49 = vadd.f32 %v1400_v22, %v1136_v2 }
 0x170   : > { %v1005_v61 = vpop.f32.mrf.mxu0  ;;  %v1145_v38 = vpop.f32.mrf.mxu1  ;;  %v12647_v4 = vadd.f32 %v1528_v44, %v1444_v49 }
 0x171   : > { %v1146_v25 = vadd.f32 %v1145_v38, %v1005_v61 }
 0x173   : > { %10021 = vmatmul.msk.bf16.gmra.mxu0 %vm16713_vm2, %v12243_v46  ;;  %10037 = vmatmul.msk.bf16.gmra.mxu1 %vm16713_vm2, %v12304_v20  ;;  %v1530_v23 = vpop.f32.mrf.mxu3 }
 0x175   : > { %v1402_v62 = vpop.f32.mrf.mxu2 }
 0x176   : > { %v1445_v42 = vadd.f32 %v1402_v62, %v1138_v50 }
 0x178   : > { %v1007_v33 = vpop.f32.mrf.mxu0  ;;  %v1147_v11 = vpop.f32.mrf.mxu1  ;;  %v12653_v15 = vadd.f32 %v1530_v23, %v1445_v42  ;;  %10066 = vmatmul.msk.bf16.gmra.mxu3 %vm16713_vm2, %v12220_v9 }
 0x179   : > { %v1148_v43 = vadd.f32 %v1147_v11, %v1007_v33 }
 0x17a   : > { %10051 = vmatmul.msk.bf16.gmra.mxu2 %vm16713_vm2, %v12222_v10 }
 0x17b   : > { %v1533_v2 = vpop.f32.mrf.mxu3 }
 0x17d   : > { %v1405_v48 = vpop.f32.mrf.mxu2 }
 0x17e   : > { %v1446_v44 = vadd.f32 %v1405_v48, %v1141_v45 }
 0x180   : > { %v1605_v22 = vpop.f32.mrf.mxu0  ;;  %v1740_v49 = vpop.f32.mrf.mxu1  ;;  %v12660_v38 = vadd.f32 %v1533_v2, %v1446_v44 }
 0x181   : > { %v1685_v61 = vadd.f32 %v1605_v22, %v12333_v54 }
 0x183   : > { %v1820_v50 = vadd.f32 %v1740_v49, %v1685_v61  ;;  %10022 = vmatmul.msk.bf16.gmra.mxu0 %vm16713_vm2, %v12279_v41  ;;  %10038 = vmatmul.msk.bf16.gmra.mxu1 %vm16713_vm2, %v12350_v3  ;;  %v1535_v9 = vpop.f32.mrf.mxu3 }
 0x185   : > { %v1407_v23 = vpop.f32.mrf.mxu2 }
 0x186   : > { %v1447_v62 = vadd.f32 %v1407_v23, %v1143_v14 }
 0x188   : > { %v1607_v10 = vpop.f32.mrf.mxu0  ;;  %v1742_v42 = vpop.f32.mrf.mxu1  ;;  %v12667_v33 = vadd.f32 %v1535_v9, %v1447_v62  ;;  %10067 = vmatmul.msk.bf16.gmra.mxu3 %vm16713_vm2, %v12243_v46 }
 0x189   : > { %v1686_v45 = vadd.f32 %v1607_v10, %v12358_v37  ;;  %v16737_v10 = vld [vmem:[#allocation9_spill] sm:$0xff] }
 0x18a   : > { %10052 = vmatmul.msk.bf16.gmra.mxu2 %vm16713_vm2, %v12245_v47 }
 0x18b   : > { %v1821_v54 = vadd.f32 %v1742_v42, %v1686_v45  ;;  %v1538_v11 = vpop.f32.mrf.mxu3 }
 0x18d   : > { %v1410_v2 = vpop.f32.mrf.mxu2 }
 0x18e   : > { %v1448_v48 = vadd.f32 %v1410_v2, %v1146_v25 }
 0x190   : > { %v1610_v44 = vpop.f32.mrf.mxu0  ;;  %v1745_v22 = vpop.f32.mrf.mxu1  ;;  %v12674_v49 = vadd.f32 %v1538_v11, %v1448_v48  ;;  %v16738_v11 = vld [vmem:[#allocation10_spill] sm:$0xff] }
 0x191   : > { %v1687_v14 = vadd.f32 %v1610_v44, %v12380_v16 }
 0x193   : > { %v1822_v61 = vadd.f32 %v1745_v22, %v1687_v14  ;;  %10023 = vmatmul.msk.bf16.gmra.mxu0 %vm16713_vm2, %v12321_v58  ;;  %10039 = vmatmul.msk.bf16.gmra.mxu1 %vm16713_vm2, %v12397_v56  ;;  %v1540_v46 = vpop.f32.mrf.mxu3 }
 0x195   : > { %v1412_v37 = vpop.f32.mrf.mxu2 }
 0x196   : > { %v1449_v9 = vadd.f32 %v1412_v37, %v1148_v43  ;;  %v16739_v43 = vld [vmem:[#allocation19_spill] sm:$0xff]  ;;  %v16741_v37 = vld [vmem:[#allocation20_spill] sm:$0xff] }
 0x198   : > { %v1612_v47 = vpop.f32.mrf.mxu0  ;;  %v1747_v23 = vpop.f32.mrf.mxu1  ;;  %v12681_v62 = vadd.f32 %v1540_v46, %v1449_v9  ;;  %10068 = vmatmul.msk.bf16.gmra.mxu3 %vm16713_vm2, %v12279_v41  ;;  %v16740_v46 = vld [vmem:[#allocation14_spill] sm:$0xff] }
 0x199   : > { %v1688_v25 = vadd.f32 %v1612_v47, %v12405_v35  ;;  %v16742_v47 = vld [vmem:[#allocation11_spill] sm:$0xff] }
 0x19a   : > { %10053 = vmatmul.msk.bf16.gmra.mxu2 %vm16713_vm2, %v16737_v10 }
 0x19b   : > { %v1823_v16 = vadd.f32 %v1747_v23, %v1688_v25  ;;  %v1543_v42 = vpop.f32.mrf.mxu3 }
 0x19d   : > { %v1415_v45 = vpop.f32.mrf.mxu2 }
 0x19e   : > { %v1450_v2 = vadd.f32 %v1415_v45, %v16738_v11  ;;  %v16743_v45 = vld [vmem:[#allocation21_spill] sm:$0xff] }
 0x1a0   : > { %v1615_v48 = vpop.f32.mrf.mxu0  ;;  %v1750_v44 = vpop.f32.mrf.mxu1  ;;  %v12689_v14 = vadd.f32 %v1543_v42, %v1450_v2  ;;  %v16744_v2 = vld [vmem:[#allocation12_spill] sm:$0xff] }
 0x1a1   : > { %v1689_v22 = vadd.f32 %v1615_v48, %v16739_v43 }
 0x1a3   : > { %v1824_v35 = vadd.f32 %v1750_v44, %v1689_v22  ;;  %10024 = vmatmul.msk.bf16.gmra.mxu0 %vm16713_vm2, %v16740_v46  ;;  %10040 = vmatmul.msk.bf16.gmra.mxu1 %vm16713_vm2, %v16741_v37  ;;  %v1545_v41 = vpop.f32.mrf.mxu3 }
 0x1a5   : > { %v1417_v9 = vpop.f32.mrf.mxu2 }
 0x1a6   : > { %v1451_v23 = vadd.f32 %v1417_v9, %v16742_v47 }
 0x1a8   : > { %v1617_v25 = vpop.f32.mrf.mxu0  ;;  %v1752_v10 = vpop.f32.mrf.mxu1  ;;  %v12697_v56 = vadd.f32 %v1545_v41, %v1451_v23  ;;  %10069 = vmatmul.msk.bf16.gmra.mxu3 %vm16713_vm2, %v12321_v58 }
 0x1a9   : > { %v1690_v11 = vadd.f32 %v1617_v25, %v16743_v45  ;;  %v16745_v25 = vld [vmem:[#allocation17_spill] sm:$0xff] }
 0x1aa   : > { %10054 = vmatmul.msk.bf16.gmra.mxu2 %vm16713_vm2, %v16744_v2 }
 0x1ab   : > { %v1825_v42 = vadd.f32 %v1752_v10, %v1690_v11  ;;  %v1988_v48 = vpop.f32.mrf.mxu3 }
 0x1ad   : > { %v1864_v44 = vpop.f32.mrf.mxu2 }
 0x1ae   : > { %v1944_v43 = vadd.f32 %v1864_v44, %v1820_v50 }
 0x1b0   : > { %v1620_v22 = vpop.f32.mrf.mxu0  ;;  %v1755_v37 = vpop.f32.mrf.mxu1  ;;  %v12704_v47 = vadd.f32 %v1988_v48, %v1944_v43 }
 0x1b1   : > { %v1691_v9 = vadd.f32 %v1620_v22, %v12483_v39 }
 0x1b3   : > { %v1826_v3 = vadd.f32 %v1755_v37, %v1691_v9  ;;  %10025 = vmatmul.msk.bf16.gmra.mxu0 %vm16713_vm2, %v16745_v25  ;;  %10041 = vmatmul.msk.bf16.gmra.mxu1 %vm16713_vm2, %v12499_v7  ;;  %v1990_v58 = vpop.f32.mrf.mxu3  ;;  %v16746_v37 = vld [vmem:[#allocation15_spill] sm:$0xff]  ;;  %v16747_v9 = vld [vmem:[#allocation22_spill] sm:$0xff] }
 0x1b5   : > { %v1866_v41 = vpop.f32.mrf.mxu2 }
 0x1b6   : > { %v1945_v23 = vadd.f32 %v1866_v41, %v1821_v54 }
 0x1b8   : > { %v1622_v10 = vpop.f32.mrf.mxu0  ;;  %v1757_v45 = vpop.f32.mrf.mxu1  ;;  %v12711_v11 = vadd.f32 %v1990_v58, %v1945_v23  ;;  %10070 = vmatmul.msk.bf16.gmra.mxu3 %vm16713_vm2, %v16740_v46 }
 0x1b9   : > { %v1692_v50 = vadd.f32 %v1622_v10, %v12502_v6 }
 0x1ba   : > { %10055 = vmatmul.msk.bf16.gmra.mxu2 %vm16713_vm2, %v16746_v37  ;;  %v1717_v37 = vrot.slane %v12571_v27, 2 }
 0x1bb   : > { %v1827_v39 = vadd.f32 %v1757_v45, %v1692_v50  ;;  %v1993_v2 = vpop.f32.mrf.mxu3  ;;  %v1582_v45 = vrot.slane %v12571_v27, 1  ;;  %v1583_v50 = vrot.slane %v12568_v18, 1 }
 0x1bd   : > { %v1869_v48 = vpop.f32.mrf.mxu2 }
 0x1be   : > { %v1946_v44 = vadd.f32 %v1869_v48, %v1822_v61 }
 0x1c0   : > { %v1625_v43 = vpop.f32.mrf.mxu0  ;;  %v12720_v54 = vadd.f32 %v1993_v2, %v1946_v44 }
 0x1c1   : > { %v12718_v22 = vadd.f32 %v1625_v43, %v12518_v24  ;;  %v16748_v24 = vld [vmem:[#allocation18_spill] sm:$0xff] }
 0x1c3   : > { %10026 = vmatmul.msk.bf16.gmra.mxu0 %vm16713_vm2, %v16747_v9  ;;  %10042 = vmatmul.msk.bf16.gmra.mxu1 %vm16713_vm2, %v12527_v5  ;;  %v1995_v6 = vpop.f32.mrf.mxu3 }
 0x1c5   : > { %v1871_v46 = vpop.f32.mrf.mxu2 }
 0x1c6   : > { %v1947_v58 = vadd.f32 %v1871_v46, %v1823_v16  ;;  %v1718_v16 = vrot.slane %v12568_v18, 2 }
 0x1c8   : > { %v1627_v41 = vpop.f32.mrf.mxu0  ;;  %v12729_v61 = vadd.f32 %v1995_v6, %v1947_v58  ;;  %10071 = vmatmul.msk.bf16.gmra.mxu3 %vm16713_vm2, %v16745_v25  ;;  %v1584_v58 = vsel %vm746_vm3, %v1582_v45, %v1583_v50  ;;  %v1719_v18 = vsel %vm1155_vm4, %v1717_v37, %v1718_v16 }
 0x1c9   : > { %v12727_v23 = vadd.f32 %v1627_v41, %v12529_v36  ;;  %v16749_v36 = vrot.slane %v12553_v12, 7 }
 0x1ca   : > { %10056 = vmatmul.msk.bf16.gmra.mxu2 %vm16713_vm2, %v16748_v24  ;;  %v16750_v24 = vld [vmem:[#allocation24_spill] sm:$0xff] }
 0x1cb   : > { %v1998_v10 = vpop.f32.mrf.mxu3  ;;  %v698_v48 = vsel %vm570_vm0, %v16749_v36, 0.0 }
 0x1cc   : > { %v1585_v25 = vrot.slane %v698_v48, 1  ;;  %v1720_v27 = vrot.slane %v698_v48, 2 }
 0x1cd   : > { %v1874_v2 = vpop.f32.mrf.mxu2 }
 0x1ce   : > { %v1948_v44 = vadd.f32 %v1874_v2, %v1824_v35  ;;  %v1586_v41 = vsel %vm746_vm3, %v1583_v50, %v1585_v25  ;;  %v1721_v35 = vsel %vm1155_vm4, %v1718_v16, %v1720_v27 }
 0x1cf   : > { %v1589_v12 = vpack.c.bf16 %v1586_v41, %v1584_v58  ;;  %v12755_v2 = vpack.c.bf16 %v1721_v35, %v1719_v18  ;;  %v16752_v41 = vld [vmem:[#allocation4_spill] sm:$0xff] }
 0x1d0   : > { %v1630_v43 = vpop.f32.mrf.mxu0  ;;  %v12745_v46 = vadd.f32 %v1998_v10, %v1948_v44  ;;  %v16751_v44 = vld [vmem:[#allocation23_spill] sm:$0xff] }
 0x1d1   : > { %v12743_v6 = vadd.f32 %v1630_v43, %v12535_v34 }
 0x1d3   : > { %10027 = vmatmul.msk.bf16.gmra.mxu0 %vm16713_vm2, %v16750_v24  ;;  %10043 = vmatmul.msk.bf16.gmra.mxu1 %vm16713_vm2, %v12543_v13  ;;  %v2000_v34 = vpop.f32.mrf.mxu3 }
 0x1d5   : > { %v1876_v10 = vpop.f32.mrf.mxu2 }
 0x1d6   : > { %v1949_v36 = vadd.f32 %v1876_v10, %v1825_v42 }
 0x1d8   : > { %v1632_v45 = vpop.f32.mrf.mxu0  ;;  %v12760_v48 = vadd.f32 %v2000_v34, %v1949_v36  ;;  %10072 = vmatmul.msk.bf16.gmra.mxu3 %vm16713_vm2, %v16747_v9  ;;  %v16753_v36 = vld [vmem:[#allocation7_spill] sm:$0xff] }
 0x1d9   : > { %v12758_v50 = vadd.f32 %v1632_v45, %v12545_v21  ;;  %v11300_v21 = vld [vmem:[%s16624_s3 + $0x38] sm:$0xff] }
 0x1da   : > { %10057 = vmatmul.msk.bf16.gmra.mxu2 %vm16713_vm2, %v16751_v44  ;;  %3499 = vmatpush.bf16.msra.mxu1 %v11300_v21 }
 0x1db   : > { %v2003_v37 = vpop.f32.mrf.mxu3 }
 0x1dd   : > { %v1879_v43 = vpop.f32.mrf.mxu2 }
 0x1de   : > { %v1950_v16 = vadd.f32 %v1879_v43, %v1826_v3 }
 0x1e0   : > { %v1635_v25 = vpop.f32.mrf.mxu0  ;;  %v12769_v42 = vadd.f32 %v2003_v37, %v1950_v16  ;;  %v16755_v37 = vld [vmem:[#allocation8_spill] sm:$0xff] }
 0x1e1   : > { %v12767_v58 = vadd.f32 %v1635_v25, %v12559_v8  ;;  %v16756_v25 = vld [vmem:[#allocation3_spill] sm:$0xff] }
 0x1e3   : > { %10028 = vmatmul.msk.bf16.gmra.mxu0 %vm16713_vm2, %v16752_v41  ;;  %10044 = vmatmul.msk.bf16.gmra.mxu1 %vm16713_vm2, %v12579_v51  ;;  %v2005_v27 = vpop.f32.mrf.mxu3 }
 0x1e5   : > { %v1881_v9 = vpop.f32.mrf.mxu2 }
 0x1e6   : > { %v1951_v3 = vadd.f32 %v1881_v9, %v1827_v39 }
 0x1e8   : > { %v1637_v18 = vpop.f32.mrf.mxu0  ;;  %v12781_v35 = vadd.f32 %v2005_v27, %v1951_v3  ;;  %10073 = vmatmul.msk.bf16.gmra.mxu3 %vm16713_vm2, %v16750_v24 }
 0x1e9   : > { %v12779_v8 = vadd.f32 %v1637_v18, %v12581_v53 }
 0x1ea   : > { %10058 = vmatmul.msk.bf16.gmra.mxu2 %vm16713_vm2, %v12512_v29 }
 0x1f0   : > { %v1640_v34 = vpop.f32.mrf.mxu0 }
 0x1f1   : > { %v12788_v10 = vadd.f32 %v1640_v34, %v12587_v55  ;;  %v11299_v55 = vld [vmem:[%s16624_s3 + $0x30] sm:$0xff] }
 0x1f2   : > { %3500 = vmatpush.bf16.msra.mxu1 %v11299_v55  ;;  %v16759_v55 = vld [vmem:[#allocation13_spill] sm:$0xff] }
 0x1f3   : > { %10029 = vmatmul.msk.bf16.gmra.mxu0 %vm16713_vm2, %v1589_v12  ;;  %10045 = vmatmul.msk.bf16.gmra.mxu1 %vm16713_vm2, %v12755_v2 }
 0x1f8   : > { %v1642_v39 = vpop.f32.mrf.mxu0  ;;  %10074 = vmatmul.msk.bf16.gmra.mxu3 %vm16713_vm2, %v16752_v41 }
 0x1f9   : > { %v12794_v53 = vadd.f32 %v1642_v39, %v12593_v19  ;;  %v16754_v19 = vld [vmem:[#allocation2_spill] sm:$0xff] }
 0x1fa   : > { %10059 = vmatmul.msk.bf16.gmra.mxu2 %vm16713_vm2, %v12067_v32  ;;  %2629 = vrot.lane.b32.xlu0 %v16754_v19, %s11915_s21 }
 0x200   : > { %v1645_v29 = vpop.f32.mrf.mxu0 }
 0x201   : > { %v12801_v24 = vadd.f32 %v1645_v29, %v12599_v0 }
 0x203   : > { %10077 = vmatmul.msk.bf16.vlgmr.msra.gmra.mxu0 %vm16713_vm2, %v16753_v36 }
 0x208   : > { %v1647_v45 = vpop.f32.mrf.mxu0  ;;  %10075 = vmatmul.msk.bf16.gmra.mxu3 %vm16713_vm2, %v1589_v12 }
 0x209   : > { %v12811_v44 = vadd.f32 %v1647_v45, %v12605_v52  ;;  %v16757_v52 = vmov 0.0|0.0  }
 0x20a   : > { %10060 = vmatmul.msk.bf16.gmra.mxu2 %vm16713_vm2, %v12577_v60  ;;  %v11298_v60 = vld [vmem:[%s16624_s3 + $0x28] sm:$0xff] }
 0x20b   : > { %3501 = vmatpush.bf16.msra.mxu1 %v11298_v60 }
 0x210   : > { %v1650_v32 = vpop.f32.mrf.mxu0 }
 0x211   : > { %v12817_v0 = vadd.f32 %v1650_v32, %v12611_v63 }
 0x213   : > { %10078 = vmatmul.msk.bf16.gmra.mxu0 %vm16713_vm2, %v16755_v37  ;;  %v16761_v37 = vld [vmem:[#allocation16_spill] sm:$0xff] }
 0x218   : > { %v1652_v43 = vpop.f32.mrf.mxu0  ;;  %10076 = vmatmul.msk.bf16.gmra.mxu3 %vm16713_vm2, %v16756_v25 }
 0x219   : > { %v12822_v16 = vadd.f32 %v1652_v43, %v12617_v26 }
 0x21a   : > { %1938 = vmatmul.bf16.gmra.mxu2 %v16757_v52 }
 0x220   : > { %v1655_v12 = vpop.f32.mrf.mxu0 }
 0x221   : > { %v12828_v21 = vadd.f32 %v1655_v12, %v12623_v1  ;;  %v12899_v12 = vpop.f32.mrf.mxu2 }
 0x223   : > { %10079 = vmatmul.msk.bf16.gmra.mxu0 %vm16713_vm2, %v12187_v31  ;;  %v11297_v31 = vld [vmem:[%s16624_s3 + $0x20] sm:$0xff] }
 0x224   : > { %3502 = vmatpush.bf16.msra.mxu1 %v11297_v31 }
 0x228   : > { %v1657_v63 = vpop.f32.mrf.mxu0 }
 0x229   : > { %v12836_v26 = vadd.f32 %v1657_v63, %v12629_v40 }
 0x230   : > { %v1660_v41 = vpop.f32.mrf.mxu0 }
 0x231   : > { %v12839_v9 = vadd.f32 %v1660_v41, %v12635_v28  ;;  %v12902_v41 = vpop.f32.mrf.mxu3 }
 0x233   : > { %10080 = vmatmul.msk.bf16.gmra.mxu0 %vm16713_vm2, %v12210_v59 }
 0x238   : > { %v1662_v1 = vpop.f32.mrf.mxu0 }
 0x239   : > { %v12844_v27 = vadd.f32 %v1662_v1, %v12641_v57 }
 0x240   : > { %v1665_v3 = vpop.f32.mrf.mxu0 }
 0x241   : > { %v12847_v18 = vadd.f32 %v1665_v3, %v12647_v4 }
 0x243   : > { %10081 = vmatmul.msk.bf16.gmra.mxu0 %vm16713_vm2, %v12233_v30  ;;  %v11296_v30 = vld [vmem:[%s16624_s3 + $0x18] sm:$0xff] }
 0x244   : > { %3503 = vmatpush.bf16.msra.mxu1 %v11296_v30 }
 0x248   : > { %v1667_v40 = vpop.f32.mrf.mxu0 }
 0x249   : > { %v12855_v28 = vadd.f32 %v1667_v40, %v12653_v15 }
 0x250   : > { %v1670_v59 = vpop.f32.mrf.mxu0 }
 0x251   : > { %v12858_v57 = vadd.f32 %v1670_v59, %v12660_v38 }
 0x253   : > { %10082 = vmatmul.msk.bf16.gmra.mxu0 %vm16713_vm2, %v12264_v17 }
 0x258   : > { %v1672_v4 = vpop.f32.mrf.mxu0 }
 0x259   : > { %v12863_v34 = vadd.f32 %v1672_v4, %v12667_v33 }
 0x260   : > { %v1675_v39 = vpop.f32.mrf.mxu0 }
 0x261   : > { %v12866_v29 = vadd.f32 %v1675_v39, %v12674_v49 }
 0x263   : > { %10083 = vmatmul.msk.bf16.gmra.mxu0 %vm16713_vm2, %v12304_v20  ;;  %v12887_v20 = vld [vmem:[%s16623_s2] ss:$0 sm:$0xff] }
 0x268   : > { %v1677_v15 = vpop.f32.mrf.mxu0 }
 0x269   : > { %v12874_v38 = vadd.f32 %v1677_v15, %v12681_v62 }
 0x270   : > { %v1680_v17 = vpop.f32.mrf.mxu0 }
 0x271   : > { %v12877_v33 = vadd.f32 %v1680_v17, %v12689_v14  ;;  %v11295_v14 = vld [vmem:[%s16624_s3 + $0x10] sm:$0xff] }
 0x272   : > { %3504 = vmatpush.bf16.msra.mxu1 %v11295_v14 }
 0x273   : > { %16758 = vst [vmem:[#allocation9_spill] sm:$0xff] %v12877_v33  ;;  %10084 = vmatmul.msk.bf16.gmra.mxu0 %vm16713_vm2, %v16759_v55  ;;  %v16762_v55 = vld [vmem:[#allocation20_spill] sm:$0xff] }
 0x278   : > { %v1682_v49 = vpop.f32.mrf.mxu0 }
 0x279   : > { %v12882_v36 = vadd.f32 %v1682_v49, %v12697_v56  ;;  %v12896_v56 = vpop.f32.mrf.mxu1  ;;  %v12922_v49 = vpop.f32.mrf.mxu2 }
 0x27b   : > { %16760 = vst [vmem:[#allocation10_spill] sm:$0xff] %v12882_v36 }
 0x280   : > { %v2112_v45 = vpop.f32.mrf.mxu0 }
 0x281   : > { %v2192_v62 = vadd.f32 %v2112_v45, %v12704_v47  ;;  %v12907_v40 = vpop.f32.mrf.mxu1 }
 0x283   : > { %v2227_v32 = vadd.f32 %v12887_v20, %v2192_v62  ;;  %10085 = vmatmul.msk.bf16.gmra.mxu0 %vm16713_vm2, %v16761_v37 }
 0x285   : > { %v2259_v43 = vmax.f32 %v2227_v32, 0.0  ;;  %v12933_v32 = vpop.f32.mrf.mxu3 }
 0x287   : > { %v2396_v60 = vrot.slane %v2259_v43, 7 }
 0x288   : > { %v2114_v25 = vpop.f32.mrf.mxu0 }
 0x289   : > { %v2193_v52 = vadd.f32 %v2114_v25, %v12711_v11  ;;  %v12905_v1 = vsel %vm570_vm0, 0.0, %v2396_v60  ;;  %v12936_v25 = vpop.f32.mrf.mxu1 }
 0x28a   : > { %v2554_v30 = vrot.slane %v12905_v1, 1 }
 0x28b   : > { %v2228_v47 = vadd.f32 %v12887_v20, %v2193_v52 }
 0x28d   : > { %v2260_v63 = vmax.f32 %v2228_v47, 0.0 }
 0x28f   : > { %v2397_v3 = vrot.slane %v2260_v63, 7  ;;  %v12939_v63 = vpop.f32.mrf.mxu2 }
 0x290   : > { %v2117_v31 = vpop.f32.mrf.mxu0 }
 0x291   : > { %v12910_v59 = vsel %vm570_vm0, %v2396_v60, %v2397_v3  ;;  %v12913_v11 = vsel %vm570_vm0, %v2397_v3, 0.0  ;;  %v2194_v4 = vadd.f32 %v2117_v31, %v12720_v54 }
 0x292   : > { %v2557_v39 = vrot.slane %v12913_v11, 1  ;;  %v2555_v15 = vrot.slane %v12910_v59, 1 }
 0x293   : > { %v2229_v17 = vadd.f32 %v12887_v20, %v2194_v4  ;;  %10086 = vmatmul.msk.bf16.gmra.mxu0 %vm16713_vm2, %v16762_v55 }
 0x294   : > { %v12925_v45 = vsel %vm746_vm3, %v2554_v30, %v2555_v15  ;;  %v12928_v62 = vsel %vm746_vm3, %v2555_v15, %v2557_v39  ;;  %v12951_v15 = vpop.f32.mrf.mxu3 }
 0x295   : > { %16763 = vst [vmem:[#allocation19_spill] sm:$0xff] %v12925_v45  ;;  %v11544_v54 = vpack.i.bf16 %v12928_v62, %v12925_v45  ;;  %v2261_v14 = vmax.f32 %v2229_v17, 0.0 }
 0x296   : > { %16764 = vst [vmem:[#allocation14_spill] sm:$0xff] %v12928_v62 }
 0x297   : > { %11545 = vrot.lane.b32.xlu0 %v11544_v54, %s11915_s21  ;;  %v2399_v52 = vrot.slane %v2261_v14, 7  ;;  %v11294_v14 = vld [vmem:[%s16624_s3 + $0x8] sm:$0xff] }
 0x298   : > { %v2119_v37 = vpop.f32.mrf.mxu0  ;;  %3505 = vmatpush.bf16.msra.mxu1 %v11294_v14 }
 0x299   : > { %v2195_v43 = vadd.f32 %v2119_v37, %v12729_v61  ;;  %v12942_v3 = vsel %vm570_vm0, 0.0, %v2399_v52 }
 0x29a   : > { %v2559_v17 = vrot.slane %v12942_v3, 1 }
 0x29b   : > { %v2230_v60 = vadd.f32 %v12887_v20, %v2195_v43 }
 0x29c   : > { %v12977_v19 = vpop.f32.mrf.mxu3 }
 0x29d   : > { %v2262_v47 = vmax.f32 %v2230_v60, 0.0 }
 0x29f   : > { %v2400_v31 = vrot.slane %v2262_v47, 7 }
 0x2a0   : > { %v2122_v4 = vpop.f32.mrf.mxu0 }
 0x2a1   : > { %v12945_v39 = vsel %vm570_vm0, %v2399_v52, %v2400_v31  ;;  %v12948_v30 = vsel %vm570_vm0, %v2400_v31, 0.0  ;;  %v2196_v61 = vadd.f32 %v2122_v4, %v12745_v46  ;;  %v12968_v52 = vpop.f32.mrf.mxu1  ;;  %v12973_v31 = vpop.f32.mrf.mxu2 }
 0x2a2   : > { %v2560_v55 = vrot.slane %v12945_v39, 1  ;;  %v2562_v54 = vrot.slane %v12948_v30, 1 }
 0x2a3   : > { %v2231_v37 = vadd.f32 %v12887_v20, %v2196_v61  ;;  %10087 = vmatmul.msk.bf16.gmra.mxu0 %vm16713_vm2, %v12499_v7 }
 0x2a4   : > { %v12963_v43 = vsel %vm746_vm3, %v2559_v17, %v2560_v55  ;;  %v12966_v46 = vsel %vm746_vm3, %v2560_v55, %v2562_v54 }
 0x2a5   : > { %16765 = vst [vmem:[#allocation11_spill] sm:$0xff] %v12963_v43  ;;  %v11549_v60 = vpack.i.bf16 %v12966_v46, %v12963_v43  ;;  %v2263_v47 = vmax.f32 %v2231_v37, 0.0 }
 0x2a6   : > { %16766 = vst [vmem:[#allocation21_spill] sm:$0xff] %v12966_v46 }
 0x2a7   : > { %11550 = vrot.lane.b32.xlu1 %v11549_v60, %s11915_s21  ;;  %v2402_v61 = vrot.slane %v2263_v47, 7 }
 0x2a8   : > { %v2124_v4 = vpop.f32.mrf.mxu0 }
 0x2a9   : > { %v2197_v7 = vadd.f32 %v2124_v4, %v12760_v48  ;;  %v12979_v54 = vpop.f32.mrf.mxu1  ;;  %v12982_v14 = vsel %vm570_vm0, 0.0, %v2402_v61  ;;  %v12991_v47 = vpop.f32.mrf.mxu2 }
 0x2ab   : > { %v2232_v17 = vadd.f32 %v12887_v20, %v2197_v7  ;;  %v2564_v7 = vrot.slane %v12982_v14, 1 }
 0x2ad   : > { %v2264_v55 = vmax.f32 %v2232_v17, 0.0 }
 0x2af   : > { %v2403_v46 = vrot.slane %v2264_v55, 7  ;;  %v13007_v55 = vpop.f32.mrf.mxu3 }
 0x2b0   : > { %v2127_v37 = vpop.f32.mrf.mxu0 }
 0x2b1   : > { %v12985_v60 = vsel %vm570_vm0, %v2402_v61, %v2403_v46  ;;  %v12988_v43 = vsel %vm570_vm0, %v2403_v46, 0.0  ;;  %v2198_v48 = vadd.f32 %v2127_v37, %v12769_v42  ;;  %v13017_v36 = vpop.f32.mrf.mxu2 }
 0x2b2   : > { %16767 = vst [vmem:[#allocation12_spill] sm:$0xff] %v12988_v43  ;;  %v2567_v4 = vrot.slane %v12988_v43, 1  ;;  %v2565_v17 = vrot.slane %v12985_v60, 1  ;;  %v13012_v43 = vpop.f32.mrf.mxu1 }
 0x2b3   : > { %v2233_v45 = vadd.f32 %v12887_v20, %v2198_v48  ;;  %10088 = vmatmul.msk.bf16.gmra.mxu0 %vm16713_vm2, %v12527_v5  ;;  %v1828_v48 = vadd.f32 %v12896_v56, %v12718_v22 }
 0x2b4   : > { %v13000_v61 = vsel %vm746_vm3, %v2564_v7, %v2565_v17  ;;  %v13003_v46 = vsel %vm746_vm3, %v2565_v17, %v2567_v4 }
 0x2b5   : > { %16768 = vst [vmem:[#allocation17_spill] sm:$0xff] %v13000_v61  ;;  %v11554_v42 = vpack.i.bf16 %v13003_v46, %v13000_v61  ;;  %v2265_v37 = vmax.f32 %v2233_v45, 0.0  ;;  %v1952_v7 = vadd.f32 %v12899_v12, %v1828_v48 }
 0x2b6   : > { %16769 = vst [vmem:[#allocation15_spill] sm:$0xff] %v13003_v46 }
 0x2b7   : > { %11555 = vrot.lane.b32.xlu1 %v11554_v42, %s11915_s21  ;;  %v2405_v4 = vrot.slane %v2265_v37, 7  ;;  %v2076_v45 = vadd.f32 %v12902_v41, %v1952_v7  ;;  %v13023_v33 = vpop.f32.mrf.mxu3 }
 0x2b8   : > { %v2129_v62 = vpop.f32.mrf.mxu0 }
 0x2b9   : > { %v2199_v5 = vadd.f32 %v2129_v62, %v12781_v35  ;;  %v13021_v42 = vsel %vm570_vm0, 0.0, %v2405_v4  ;;  %v1829_v35 = vadd.f32 %v12907_v40, %v12727_v23 }
 0x2ba   : > { %v2569_v37 = vrot.slane %v13021_v42, 1 }
 0x2bb   : > { %v2234_v17 = vadd.f32 %v12887_v20, %v2199_v5  ;;  %v13039_v5 = vpop.f32.mrf.mxu1  ;;  %v1953_v23 = vadd.f32 %v12922_v49, %v1829_v35 }
 0x2bd   : > { %v2266_v46 = vmax.f32 %v2234_v17, 0.0  ;;  %v13053_v17 = vpop.f32.mrf.mxu2 }
 0x2bf   : > { %v2406_v61 = vrot.slane %v2266_v46, 7  ;;  %v11293_v46 = vld [vmem:[%s16624_s3] sm:$0xff] }
 0x2c0   : > { %v2132_v22 = vpop.f32.mrf.mxu0  ;;  %3506 = vmatpush.bf16.msra.mxu1 %v11293_v46 }
 0x2c1   : > { %v13028_v56 = vsel %vm570_vm0, %v2405_v4, %v2406_v61  ;;  %v13031_v12 = vsel %vm570_vm0, %v2406_v61, 0.0  ;;  %v2200_v62 = vadd.f32 %v2132_v22, %v2076_v45  ;;  %v2077_v45 = vadd.f32 %v12933_v32, %v1953_v23 }
 0x2c2   : > { %v2570_v41 = vrot.slane %v13028_v56, 1  ;;  %v2572_v48 = vrot.slane %v13031_v12, 1 }
 0x2c3   : > { %v2235_v40 = vadd.f32 %v12887_v20, %v2200_v62  ;;  %10089 = vmatmul.msk.bf16.gmra.mxu0 %vm16713_vm2, %v12543_v13  ;;  %v1830_v13 = vadd.f32 %v12936_v25, %v12743_v6  ;;  %v13059_v62 = vpop.f32.mrf.mxu3  ;;  %v13063_v46 = vpop.f32.mrf.mxu1  ;;  %v1831_v25 = vadd.f32 %v12968_v52, %v12758_v50 }
 0x2c4   : > { %v13046_v61 = vsel %vm746_vm3, %v2569_v37, %v2570_v41  ;;  %v13049_v7 = vsel %vm746_vm3, %v2570_v41, %v2572_v48 }
 0x2c5   : > { %16770 = vst [vmem:[#allocation22_spill] sm:$0xff] %v13046_v61  ;;  %v11559_v4 = vpack.i.bf16 %v13049_v7, %v13046_v61  ;;  %v2267_v49 = vmax.f32 %v2235_v40, 0.0  ;;  %v1954_v37 = vadd.f32 %v12939_v63, %v1830_v13 }
 0x2c6   : > { %16771 = vst [vmem:[#allocation18_spill] sm:$0xff] %v13049_v7 }
 0x2c7   : > { %11560 = vrot.lane.b32.xlu2 %v11559_v4, %s11915_s21  ;;  %v2408_v41 = vrot.slane %v2267_v49, 7  ;;  %v2078_v32 = vadd.f32 %v12951_v15, %v1954_v37  ;;  %v13069_v4 = vpop.f32.mrf.mxu2 }
 0x2c8   : > { %v2134_v22 = vpop.f32.mrf.mxu0 }
 0x2c9   : > { %v2201_v35 = vadd.f32 %v2134_v22, %v2077_v45  ;;  %v13067_v23 = vsel %vm570_vm0, 0.0, %v2408_v41 }
 0x2ca   : > { %v2574_v15 = vrot.slane %v13067_v23, 1 }
 0x2cb   : > { %v2236_v48 = vadd.f32 %v12887_v20, %v2201_v35  ;;  %v13086_v50 = vpop.f32.mrf.mxu3 }
 0x2cd   : > { %v2268_v7 = vmax.f32 %v2236_v48, 0.0  ;;  %v13096_v48 = vpop.permute.xlu0 %2629 }
 0x2ce   : > { %16774 = vst [vmem:[#allocation4_spill] sm:$0xff] %v13096_v48 }
 0x2cf   : > { %v2409_v40 = vrot.slane %v2268_v7, 7  ;;  %v1955_v7 = vadd.f32 %v12973_v31, %v1831_v25  ;;  %v13098_v31 = vpop.f32.mrf.mxu1 }
 0x2d0   : > { %v2137_v6 = vpop.f32.mrf.mxu0 }
 0x2d1   : > { %v13074_v63 = vsel %vm570_vm0, %v2408_v41, %v2409_v40  ;;  %v13077_v45 = vsel %vm570_vm0, %v2409_v40, 0.0  ;;  %v2202_v49 = vadd.f32 %v2137_v6, %v2078_v32  ;;  %v2079_v32 = vadd.f32 %v12977_v19, %v1955_v7 }
 0x2d2   : > { %v2577_v22 = vrot.slane %v13077_v45, 1  ;;  %v2575_v13 = vrot.slane %v13074_v63, 1  ;;  %v16776_v6 = vmov 0  ;;  %v1832_v19 = vadd.f32 %v12979_v54, %v12767_v58 }
 0x2d3   : > { %v2237_v35 = vadd.f32 %v12887_v20, %v2202_v49  ;;  %10090 = vmatmul.msk.bf16.gmra.mxu0 %vm16713_vm2, %v12579_v51  ;;  %v13104_v51 = vpack.c.bf16 %v13096_v48, %v13096_v48  ;;  %v16777_v6 = vsel %vm13107_vm6, 4294967295, %v16776_v6  ;;  %vm15003_vm6 = vmneg %vm570_vm0 }
 0x2d4   : > { %v13089_v52 = vsel %vm746_vm3, %v2574_v15, %v2575_v13  ;;  %v13092_v37 = vsel %vm746_vm3, %v2575_v13, %v2577_v22  ;;  %16778 = vst [vmem:[#allocation8_spill] sm:$0xff] %v16777_v6  ;;  %v13122_v22 = vpop.f32.mrf.mxu2  ;;  %v11308_v15 = vld [vmem:[%s16624_s3 + $0x78] sm:$0xff]  ;;  %v1956_v58 = vadd.f32 %v12991_v47, %v1832_v19  ;;  %v1833_v47 = vadd.f32 %v13012_v43, %v12779_v8 }
 0x2d5   : > { %16772 = vst [vmem:[#allocation24_spill] sm:$0xff] %v13089_v52  ;;  %v11564_v41 = vpack.i.bf16 %v13092_v37, %v13089_v52  ;;  %v2269_v40 = vmax.f32 %v2237_v35, 0.0  ;;  %10241 = vmatmul.msk.bf16.vlgmr.msra.gmra.mxu1 %vm10239_vm7, %v13104_v51  ;;  %v11316_v13 = vld [vmem:[%s16624_s3 + $0xb8] sm:$0xff]  ;;  %3588 = vmatpush.bf16.msrb.mxu2 %v11308_v15 }
 0x2d6   : > { %16773 = vst [vmem:[#allocation23_spill] sm:$0xff] %v13092_v37  ;;  %3677 = vmatpush.bf16.msrb.mxu3 %v11316_v13  ;;  %v11328_v8 = vld [vmem:[%s16624_s3 + $0x118] sm:$0xff]  ;;  %v1957_v43 = vadd.f32 %v13017_v36, %v1833_v47 }
 0x2d7   : > { %11565 = vrot.lane.b32.xlu2 %v11564_v41, %s11915_s21  ;;  %16775 = vst [vmem:[#allocation7_spill] sm:$0xff] %v13104_v51  ;;  %v2411_v54 = vrot.slane %v2269_v40, 7  ;;  %v13132_v41 = vpop.f32.mrf.mxu3  ;;  %v11324_v51 = vld [vmem:[%s16624_s3 + $0xf8] sm:$0xff]  ;;  %v13143_v40 = vpop.f32.mrf.mxu1  ;;  %3859 = vmatpush.bf16.msrb.mxu1 %v11328_v8 }
 0x2d8   : > { %v2139_v25 = vpop.f32.mrf.mxu0  ;;  %3766 = vmatpush.bf16.msrb.mxu0 %v11324_v51  ;;  %v11323_v51 = vld [vmem:[%s16624_s3 + $0xf0] sm:$0xff] }
 0x2d9   : > { %v2203_v49 = vadd.f32 %v2139_v25, %v2079_v32  ;;  %v2080_v32 = vadd.f32 %v13007_v55, %v1956_v58  ;;  %v13136_v25 = vsel %vm570_vm0, 0.0, %v2411_v54 }
 0x2da   : > { %v2579_v13 = vrot.slane %v13136_v25, 1 }
 0x2db   : > { %v2238_v7 = vadd.f32 %v12887_v20, %v2203_v49 }
 0x2dc   : > { %3767 = vmatpush.bf16.msrb.mxu0 %v11323_v51 }
 0x2dd   : > { %v2270_v35 = vmax.f32 %v2238_v7, 0.0 }
 0x2df   : > { %v2412_v48 = vrot.slane %v2270_v35, 7  ;;  %v2081_v35 = vadd.f32 %v13023_v33, %v1957_v43 }
 0x2e0   : > { %v2142_v6 = vpop.f32.mrf.mxu0 }
 0x2e1   : > { %v13146_v19 = vsel %vm570_vm0, %v2411_v54, %v2412_v48  ;;  %v13149_v49 = vsel %vm570_vm0, %v2412_v48, 0.0  ;;  %v2204_v55 = vadd.f32 %v2142_v6, %v2080_v32  ;;  %v13161_v48 = vpop.f32.mrf.mxu2  ;;  %v13176_v32 = vpop.f32.mrf.mxu3 }
 0x2e2   : > { %v2582_v15 = vrot.slane %v13149_v49, 1  ;;  %v2580_v58 = vrot.slane %v13146_v19, 1 }
 0x2e3   : > { %v2239_v54 = vadd.f32 %v12887_v20, %v2204_v55  ;;  %10091 = vmatmul.msk.bf16.gmra.mxu0 %vm16713_vm2, %v12755_v2  ;;  %v11322_v55 = vld [vmem:[%s16624_s3 + $0xe8] sm:$0xff] }
 0x2e4   : > { %v13164_v6 = vsel %vm746_vm3, %v2579_v13, %v2580_v58  ;;  %v13167_v7 = vsel %vm746_vm3, %v2580_v58, %v2582_v15  ;;  %v1834_v15 = vadd.f32 %v13039_v5, %v12788_v10  ;;  %3768 = vmatpush.bf16.msrb.mxu0 %v11322_v55  ;;  %v13183_v58 = vpop.f32.mrf.mxu1 }
 0x2e5   : > { %16779 = vst [vmem:[#allocation3_spill] sm:$0xff] %v13164_v6  ;;  %v11569_v36 = vpack.i.bf16 %v13167_v7, %v13164_v6  ;;  %v2271_v2 = vmax.f32 %v2239_v54, 0.0  ;;  %v11321_v54 = vld [vmem:[%s16624_s3 + $0xe0] sm:$0xff] }
 0x2e6   : > { %16780 = vst [vmem:[#allocation13_spill] sm:$0xff] %v13167_v7  ;;  %v1958_v8 = vadd.f32 %v13053_v17, %v1834_v15  ;;  %v11320_v17 = vld [vmem:[%s16624_s3 + $0xd8] sm:$0xff] }
 0x2e7   : > { %11570 = vrot.lane.b32.xlu0 %v11569_v36, %s11915_s21  ;;  %v2414_v33 = vrot.slane %v2271_v2, 7  ;;  %v1835_v2 = vadd.f32 %v13063_v46, %v12794_v53  ;;  %v16781_v46 = vld [vmem:[#allocation6_spill] sm:$0xff] }
 0x2e8   : > { %v2144_v47 = vpop.f32.mrf.mxu0  ;;  %3769 = vmatpush.bf16.msrb.mxu0 %v11321_v54  ;;  %v2082_v7 = vadd.f32 %v13059_v62, %v1958_v8 }
 0x2e9   : > { %v2205_v13 = vadd.f32 %v2144_v47, %v2081_v35  ;;  %v13190_v36 = vpop.f32.mrf.mxu2  ;;  %v13194_v10 = vsel %vm570_vm0, 0.0, %v2414_v33  ;;  %v13207_v62 = vpop.f32.mrf.mxu3  ;;  %v1959_v54 = vadd.f32 %v13069_v4, %v1835_v2 }
 0x2ea   : > { %v2584_v8 = vrot.slane %v13194_v10, 1 }
 0x2eb   : > { %v2240_v43 = vadd.f32 %v12887_v20, %v2205_v13 }
 0x2ec   : > { %3770 = vmatpush.bf16.msrb.mxu0 %v11320_v17 }
 0x2ed   : > { %v2272_v51 = vmax.f32 %v2240_v43, 0.0 }
 0x2ef   : > { %v2415_v5 = vrot.slane %v2272_v51, 7  ;;  %v11319_v51 = vld [vmem:[%s16624_s3 + $0xd0] sm:$0xff] }
 0x2f0   : > { %v2147_v35 = vpop.f32.mrf.mxu0  ;;  %3771 = vmatpush.bf16.msrb.mxu0 %v11319_v51  ;;  %v11307_v51 = vld [vmem:[%s16624_s3 + $0x70] sm:$0xff] }
 0x2f1   : > { %v13202_v47 = vsel %vm570_vm0, %v2414_v33, %v2415_v5  ;;  %v13205_v55 = vsel %vm570_vm0, %v2415_v5, 0.0  ;;  %v2206_v15 = vadd.f32 %v2147_v35, %v2082_v7  ;;  %v13225_v5 = vpop.f32.mrf.mxu1  ;;  %v2083_v35 = vadd.f32 %v13086_v50, %v1959_v54  ;;  %v13231_v2 = vpop.f32.mrf.mxu2  ;;  %v11315_v50 = vld [vmem:[%s16624_s3 + $0xb0] sm:$0xff]  ;;  %3589 = vmatpush.bf16.msrb.mxu2 %v11307_v51 }
 0x2f2   : > { %v2587_v13 = vrot.slane %v13205_v55, 1  ;;  %v2585_v43 = vrot.slane %v13202_v47, 1  ;;  %3678 = vmatpush.bf16.msrb.mxu3 %v11315_v50 }
 0x2f3   : > { %v2241_v53 = vadd.f32 %v12887_v20, %v2206_v15  ;;  %10092 = vmatmul.msk.bf16.gmra.mxu0 %vm16713_vm2, %v16781_v46  ;;  %v13246_v46 = vpop.f32.mrf.mxu3  ;;  %vm10890_vm2 = vmpackc.low %vm11916_vm14, %vm15003_vm6 }
 0x2f4   : > { %v13217_v33 = vsel %vm746_vm3, %v2584_v8, %v2585_v43  ;;  %v13220_v7 = vsel %vm746_vm3, %v2585_v43, %v2587_v13  ;;  %v11318_v13 = vld [vmem:[%s16624_s3 + $0xc8] sm:$0xff]  ;;  %v1836_v8 = vadd.f32 %v13098_v31, %v12801_v24  ;;  %v11317_v24 = vld [vmem:[%s16624_s3 + $0xc0] sm:$0xff] }
 0x2f5   : > { %16782 = vst [vmem:[#allocation16_spill] sm:$0xff] %v13217_v33  ;;  %v11574_v4 = vpack.i.bf16 %v13220_v7, %v13217_v33  ;;  %v2273_v17 = vmax.f32 %v2241_v53, 0.0  ;;  %3772 = vmatpush.bf16.msrb.mxu0 %v11318_v13 }
 0x2f6   : > { %16783 = vst [vmem:[#allocation20_spill] sm:$0xff] %v13220_v7  ;;  %v1960_v54 = vadd.f32 %v13122_v22, %v1836_v8  ;;  %v1837_v8 = vadd.f32 %v13143_v40, %v12811_v44 }
 0x2f7   : > { %11575 = vrot.lane.b32.xlu1 %v11574_v4, %s11915_s21  ;;  %v2417_v53 = vrot.slane %v2273_v17, 7 }
 0x2f8   : > { %v2149_v15 = vpop.f32.mrf.mxu0 }
 0x2f9   : > { %v2207_v43 = vadd.f32 %v2149_v15, %v2083_v35  ;;  %3773 = vmatpush.bf16.msrb.mxu0 %v11317_v24  ;;  %v1790_v35 = vpop.f32.mrf.mxu1  ;;  %v2084_v15 = vadd.f32 %v13132_v41, %v1960_v54  ;;  %v13253_v13 = vsel %vm570_vm0, 0.0, %v2417_v53 }
 0x2fa   : > { %v2589_v41 = vrot.slane %v13253_v13, 1 }
 0x2fb   : > { %v2242_v4 = vadd.f32 %v12887_v20, %v2207_v43 }
 0x2fd   : > { %v2274_v31 = vmax.f32 %v2242_v4, 0.0  ;;  %v1914_v4 = vpop.f32.mrf.mxu2 }
 0x2ff   : > { %v2418_v22 = vrot.slane %v2274_v31, 7  ;;  %v1961_v31 = vadd.f32 %v13161_v48, %v1837_v8  ;;  %v1838_v48 = vadd.f32 %v13183_v58, %v12817_v0 }
 0x300   : > { %v2152_v17 = vpop.f32.mrf.mxu0 }
 0x301   : > { %v13258_v43 = vsel %vm570_vm0, %v2417_v53, %v2418_v22  ;;  %v13261_v51 = vsel %vm570_vm0, %v2418_v22, 0.0  ;;  %v2208_v50 = vadd.f32 %v2152_v17, %v2084_v15  ;;  %v2038_v15 = vpop.f32.mrf.mxu3  ;;  %v2085_v22 = vadd.f32 %v13176_v32, %v1961_v31  ;;  %v1792_v8 = vpop.f32.mrf.mxu1 }
 0x302   : > { %v2592_v24 = vrot.slane %v13261_v51, 1  ;;  %v2590_v54 = vrot.slane %v13258_v43, 1 }
 0x303   : > { %v2243_v7 = vadd.f32 %v12887_v20, %v2208_v50 }
 0x304   : > { %v13269_v44 = vsel %vm746_vm3, %v2589_v41, %v2590_v54  ;;  %v13272_v40 = vsel %vm746_vm3, %v2590_v54, %v2592_v24  ;;  %v1962_v24 = vadd.f32 %v13190_v36, %v1838_v48 }
 0x305   : > { %16784 = vst [vmem:[#allocation25_spill] sm:$0xff] %v13269_v44  ;;  %v11579_v53 = vpack.i.bf16 %v13272_v40, %v13269_v44  ;;  %v2275_v17 = vmax.f32 %v2243_v7, 0.0  ;;  %v1916_v44 = vpop.f32.mrf.mxu2 }
 0x306   : > { %16785 = vst [vmem:[#allocation26_spill] sm:$0xff] %v13272_v40  ;;  %v2086_v0 = vadd.f32 %v13207_v62, %v1962_v24 }
 0x307   : > { %11580 = vrot.lane.b32.xlu2 %v11579_v53, %s11915_s21  ;;  %v2420_v54 = vrot.slane %v2275_v17, 7  ;;  %v1839_v17 = vadd.f32 %v13225_v5, %v12822_v16 }
 0x308   : > { %v2154_v33 = vpop.f32.mrf.mxu0 }
 0x309   : > { %v2209_v50 = vadd.f32 %v2154_v33, %v2085_v22  ;;  %v11546_v41 = vpop.permute.xlu0 %11545  ;;  %v13288_v58 = vsel %vm570_vm0, 0.0, %v2420_v54  ;;  %v2040_v36 = vpop.f32.mrf.mxu3  ;;  %v1963_v24 = vadd.f32 %v13231_v2, %v1839_v17  ;;  %v1840_v2 = vadd.f32 %v1790_v35, %v12828_v21 }
 0x30a   : > { %v11548_v6 = vunpack.i.h.bf16 %v11546_v41  ;;  %v11547_v37 = vunpack.i.l.bf16 %v11546_v41  ;;  %v2594_v62 = vrot.slane %v13288_v58, 1  ;;  %v1795_v41 = vpop.f32.mrf.mxu1 }
 0x30b   : > { %v2244_v40 = vadd.f32 %v12887_v20, %v2209_v50 }
 0x30c   : > { %v3073_v32 = vsel %vm3071_vm5, %v12905_v1, %v11547_v37  ;;  %v3074_v7 = vsel %vm3071_vm5, %v12910_v59, %v11548_v6 }
 0x30d   : > { %v2276_v31 = vmax.f32 %v2244_v40, 0.0  ;;  %v3174_v53 = vpack.c.bf16 %v3074_v7, %v3073_v32  ;;  %v1919_v7 = vpop.f32.mrf.mxu2 }
 0x30f   : > { %v2421_v33 = vrot.slane %v2276_v31, 7  ;;  %3512 = vmatmul.bf16.gmra.mxu1 %v3174_v53  ;;  %v2087_v31 = vadd.f32 %v13246_v46, %v1963_v24  ;;  %v1964_v46 = vadd.f32 %v1914_v4, %v1840_v2  ;;  %v1841_v2 = vadd.f32 %v1792_v8, %v12836_v26 }
 0x310   : > { %v2157_v22 = vpop.f32.mrf.mxu0 }
 0x311   : > { %v13293_v48 = vsel %vm570_vm0, %v2420_v54, %v2421_v33  ;;  %v13296_v37 = vsel %vm570_vm0, %v2421_v33, 0.0  ;;  %v2210_v6 = vadd.f32 %v2157_v22, %v2086_v0  ;;  %v2043_v17 = vpop.f32.mrf.mxu3 }
 0x312   : > { %v2597_v40 = vrot.slane %v13296_v37, 1  ;;  %v2595_v50 = vrot.slane %v13293_v48, 1 }
 0x313   : > { %v2245_v32 = vadd.f32 %v12887_v20, %v2210_v6 }
 0x314   : > { %v13304_v16 = vsel %vm746_vm3, %v2594_v62, %v2595_v50  ;;  %v13307_v5 = vsel %vm746_vm3, %v2595_v50, %v2597_v40  ;;  %v11306_v40 = vld [vmem:[%s16624_s3 + $0x68] sm:$0xff] }
 0x315   : > { %16786 = vst [vmem:[#allocation27_spill] sm:$0xff] %v13304_v16  ;;  %v11584_v54 = vpack.i.bf16 %v13307_v5, %v13304_v16  ;;  %v2277_v53 = vmax.f32 %v2245_v32, 0.0  ;;  %v11314_v50 = vld [vmem:[%s16624_s3 + $0xa8] sm:$0xff]  ;;  %3590 = vmatpush.bf16.msrb.mxu2 %v11306_v40  ;;  %v1921_v16 = vpop.f32.mrf.mxu2 }
 0x316   : > { %16787 = vst [vmem:[#allocation28_spill] sm:$0xff] %v13307_v5  ;;  %3679 = vmatpush.bf16.msrb.mxu3 %v11314_v50  ;;  %v1965_v50 = vadd.f32 %v1916_v44, %v1841_v2 }
 0x317   : > { %11585 = vrot.lane.b32.xlu0 %v11584_v54, %s11915_s21  ;;  %v2423_v32 = vrot.slane %v2277_v53, 7  ;;  %v1797_v54 = vpop.f32.mrf.mxu1 }
 0x318   : > { %v2159_v0 = vpop.f32.mrf.mxu0 }
 0x319   : > { %v2211_v33 = vadd.f32 %v2159_v0, %v2087_v31  ;;  %v11551_v22 = vpop.permute.xlu1 %11550  ;;  %v13326_v4 = vsel %vm570_vm0, 0.0, %v2423_v32 }
 0x31a   : > { %v11553_v6 = vunpack.i.h.bf16 %v11551_v22  ;;  %v11552_v62 = vunpack.i.l.bf16 %v11551_v22  ;;  %v2088_v22 = vadd.f32 %v2038_v15, %v1964_v46  ;;  %v11327_v15 = vld [vmem:[%s16624_s3 + $0x110] sm:$0xff]  ;;  %v2599_v46 = vrot.slane %v13326_v4, 1 }
 0x31b   : > { %v2246_v24 = vadd.f32 %v12887_v20, %v2211_v33  ;;  %3860 = vmatpush.bf16.msrb.mxu1 %v11327_v15 }
 0x31c   : > { %v3075_v21 = vsel %vm3071_vm5, %v12942_v3, %v11552_v62  ;;  %v3076_v35 = vsel %vm3071_vm5, %v12945_v39, %v11553_v6 }
 0x31d   : > { %v2278_v31 = vmax.f32 %v2246_v24, 0.0  ;;  %v3172_v0 = vpack.c.bf16 %v3076_v35, %v3075_v21  ;;  %v2045_v21 = vpop.f32.mrf.mxu3 }
 0x31f   : > { %v2424_v5 = vrot.slane %v2278_v31, 7  ;;  %3517 = vmatmul.bf16.gmra.mxu1 %v3172_v0  ;;  %3774 = vmatmul.bf16.vlgmr.msrb.gmra.mxu0 %v3172_v0  ;;  %v1800_v35 = vpop.f32.mrf.mxu1  ;;  %v2089_v31 = vadd.f32 %v2040_v36, %v1965_v50 }
 0x320   : > { %v2162_v53 = vpop.f32.mrf.mxu0 }
 0x321   : > { %v13330_v33 = vsel %vm570_vm0, %v2423_v32, %v2424_v5  ;;  %v13333_v6 = vsel %vm570_vm0, %v2424_v5, 0.0  ;;  %v2212_v62 = vadd.f32 %v2162_v53, %v2088_v22  ;;  %v1842_v22 = vadd.f32 %v1795_v41, %v12839_v9 }
 0x322   : > { %v2602_v40 = vrot.slane %v13333_v6, 1  ;;  %v2600_v24 = vrot.slane %v13330_v33, 1 }
 0x323   : > { %v2247_v26 = vadd.f32 %v12887_v20, %v2212_v62  ;;  %v1924_v62 = vpop.f32.mrf.mxu2  ;;  %v1966_v52 = vadd.f32 %v1919_v7, %v1842_v22 }
 0x324   : > { %v13343_v8 = vsel %vm746_vm3, %v2599_v46, %v2600_v24  ;;  %v13346_v5 = vsel %vm746_vm3, %v2600_v24, %v2602_v40 }
 0x325   : > { %16788 = vst [vmem:[#allocation29_spill] sm:$0xff] %v13343_v8  ;;  %v11589_v32 = vpack.i.bf16 %v13346_v5, %v13343_v8  ;;  %v2279_v44 = vmax.f32 %v2247_v26, 0.0  ;;  %v2090_v8 = vadd.f32 %v2043_v17, %v1966_v52  ;;  %v11561_v17 = vpop.permute.xlu2 %11560 }
 0x326   : > { %16789 = vst [vmem:[#allocation30_spill] sm:$0xff] %v13346_v5 }
 0x327   : > { %11590 = vrot.lane.b32.xlu1 %v11589_v32, %s11915_s21  ;;  %v2426_v24 = vrot.slane %v2279_v44, 7  ;;  %v2048_v32 = vpop.f32.mrf.mxu3  ;;  %v1802_v44 = vpop.f32.mrf.mxu1 }
 0x328   : > { %v2164_v0 = vpop.f32.mrf.mxu0 }
 0x329   : > { %v2213_v53 = vadd.f32 %v2164_v0, %v2089_v31  ;;  %v11556_v2 = vpop.permute.xlu1 %11555  ;;  %v13358_v41 = vsel %vm570_vm0, 0.0, %v2426_v24  ;;  %v1843_v31 = vadd.f32 %v1797_v54, %v12844_v27 }
 0x32a   : > { %v11558_v15 = vunpack.i.h.bf16 %v11556_v2  ;;  %v11557_v46 = vunpack.i.l.bf16 %v11556_v2 }
 0x32b   : > { %v2248_v40 = vadd.f32 %v12887_v20, %v2213_v53  ;;  %v1967_v52 = vadd.f32 %v1921_v16, %v1843_v31 }
 0x32c   : > { %v3077_v5 = vsel %vm3071_vm5, %v12982_v14, %v11557_v46  ;;  %v3078_v36 = vsel %vm3071_vm5, %v12985_v60, %v11558_v15  ;;  %v2604_v15 = vrot.slane %v13358_v41, 1 }
 0x32d   : > { %v2280_v50 = vmax.f32 %v2248_v40, 0.0  ;;  %v3177_v26 = vpack.c.bf16 %v3078_v36, %v3077_v5  ;;  %v1926_v40 = vpop.f32.mrf.mxu2  ;;  %v11562_v36 = vunpack.i.l.bf16 %v11561_v17  ;;  %v2091_v16 = vadd.f32 %v2045_v21, %v1967_v52  ;;  %v11313_v21 = vld [vmem:[%s16624_s3 + $0xa0] sm:$0xff] }
 0x32e   : > { %3680 = vmatpush.bf16.msrb.mxu3 %v11313_v21 }
 0x32f   : > { %v2427_v9 = vrot.slane %v2280_v50, 7  ;;  %3522 = vmatmul.bf16.gmra.mxu1 %v3177_v26  ;;  %3779 = vmatmul.bf16.gmra.mxu0 %v3177_v26  ;;  %v2050_v26 = vpop.f32.mrf.mxu3  ;;  %v1805_v52 = vpop.f32.mrf.mxu1 }
 0x330   : > { %v2167_v7 = vpop.f32.mrf.mxu0 }
 0x331   : > { %v13362_v0 = vsel %vm570_vm0, %v2426_v24, %v2427_v9  ;;  %v13365_v22 = vsel %vm570_vm0, %v2427_v9, 0.0  ;;  %v2214_v53 = vadd.f32 %v2167_v7, %v2090_v8  ;;  %v11563_v24 = vunpack.i.h.bf16 %v11561_v17  ;;  %v11305_v17 = vld [vmem:[%s16624_s3 + $0x60] sm:$0xff]  ;;  %v11566_v21 = vpop.permute.xlu2 %11565 }
 0x332   : > { %v2607_v5 = vrot.slane %v13365_v22, 1  ;;  %v2605_v46 = vrot.slane %v13362_v0, 1  ;;  %v1844_v7 = vadd.f32 %v1800_v35, %v12847_v18  ;;  %3591 = vmatpush.bf16.msrb.mxu2 %v11305_v17 }
 0x333   : > { %v2249_v2 = vadd.f32 %v12887_v20, %v2214_v53  ;;  %v3079_v53 = vsel %vm3071_vm5, %v13021_v42, %v11562_v36 }
 0x334   : > { %v13372_v27 = vsel %vm746_vm3, %v2604_v15, %v2605_v46  ;;  %v13375_v54 = vsel %vm746_vm3, %v2605_v46, %v2607_v5  ;;  %v3080_v5 = vsel %vm3071_vm5, %v13028_v56, %v11563_v24 }
 0x335   : > { %16790 = vst [vmem:[#allocation31_spill] sm:$0xff] %v13372_v27  ;;  %v11594_v8 = vpack.i.bf16 %v13375_v54, %v13372_v27  ;;  %v2281_v50 = vmax.f32 %v2249_v2, 0.0  ;;  %v1968_v2 = vadd.f32 %v1924_v62, %v1844_v7  ;;  %v3181_v46 = vpack.c.bf16 %v3080_v5, %v3079_v53  ;;  %v1929_v36 = vpop.f32.mrf.mxu2 }
 0x336   : > { %16791 = vst [vmem:[#allocation32_spill] sm:$0xff] %v13375_v54  ;;  %v1845_v54 = vadd.f32 %v1802_v44, %v12855_v28 }
 0x337   : > { %11595 = vrot.lane.b32.xlu2 %v11594_v8, %s11915_s21  ;;  %v2429_v15 = vrot.slane %v2281_v50, 7  ;;  %v2092_v8 = vadd.f32 %v2048_v32, %v1968_v2 }
 0x338   : > { %v2169_v9 = vpop.f32.mrf.mxu0  ;;  %v1969_v17 = vadd.f32 %v1926_v40, %v1845_v54 }
 0x339   : > { %v2215_v31 = vadd.f32 %v2169_v9, %v2091_v16  ;;  %v13393_v24 = vsel %vm570_vm0, 0.0, %v2429_v15 }
 0x33a   : > { %v2609_v32 = vrot.slane %v13393_v24, 1 }
 0x33b   : > { %v2250_v18 = vadd.f32 %v12887_v20, %v2215_v31  ;;  %v2053_v31 = vpop.f32.mrf.mxu3 }
 0x33d   : > { %v2282_v35 = vmax.f32 %v2250_v18, 0.0  ;;  %v1931_v40 = vpop.f32.mrf.mxu2 }
 0x33f   : > { %v2430_v16 = vrot.slane %v2282_v35, 7  ;;  %3527 = vmatmul.bf16.gmra.mxu1 %v3181_v46  ;;  %3784 = vmatmul.bf16.gmra.mxu0 %v3181_v46  ;;  %v11568_v35 = vunpack.i.h.bf16 %v11566_v21  ;;  %v11567_v46 = vunpack.i.l.bf16 %v11566_v21 }
 0x340   : > { %v2172_v9 = vpop.f32.mrf.mxu0 }
 0x341   : > { %v13397_v62 = vsel %vm570_vm0, %v2429_v15, %v2430_v16  ;;  %v13400_v50 = vsel %vm570_vm0, %v2430_v16, 0.0  ;;  %v2216_v7 = vadd.f32 %v2172_v9, %v2092_v8  ;;  %v1807_v15 = vpop.f32.mrf.mxu1  ;;  %v2093_v8 = vadd.f32 %v2050_v26, %v1969_v17 }
 0x342   : > { %v2612_v53 = vrot.slane %v13400_v50, 1  ;;  %v2610_v5 = vrot.slane %v13397_v62, 1  ;;  %v1846_v9 = vadd.f32 %v1805_v52, %v12858_v57 }
 0x343   : > { %v2251_v2 = vadd.f32 %v12887_v20, %v2216_v7  ;;  %v2055_v21 = vpop.f32.mrf.mxu3 }
 0x344   : > { %v13407_v28 = vsel %vm746_vm3, %v2609_v32, %v2610_v5  ;;  %v13410_v44 = vsel %vm746_vm3, %v2610_v5, %v2612_v53  ;;  %v3081_v32 = vsel %vm3071_vm5, %v13067_v23, %v11567_v46  ;;  %v3082_v53 = vsel %vm3071_vm5, %v13074_v63, %v11568_v35 }
 0x345   : > { %16792 = vst [vmem:[#allocation33_spill] sm:$0xff] %v13407_v28  ;;  %v11599_v18 = vpack.i.bf16 %v13410_v44, %v13407_v28  ;;  %v2283_v16 = vmax.f32 %v2251_v2, 0.0  ;;  %v1970_v5 = vadd.f32 %v1929_v36, %v1846_v9  ;;  %v3185_v17 = vpack.c.bf16 %v3082_v53, %v3081_v32 }
 0x346   : > { %16793 = vst [vmem:[#allocation34_spill] sm:$0xff] %v13410_v44  ;;  %v1847_v46 = vadd.f32 %v1807_v15, %v12863_v34 }
 0x347   : > { %11600 = vrot.lane.b32.xlu0 %v11599_v18, %s11915_s21  ;;  %v2432_v27 = vrot.slane %v2283_v16, 7  ;;  %v2094_v18 = vadd.f32 %v2053_v31, %v1970_v5 }
 0x348   : > { %v2174_v54 = vpop.f32.mrf.mxu0  ;;  %v1971_v9 = vadd.f32 %v1931_v40, %v1847_v46  ;;  %v11312_v46 = vld [vmem:[%s16624_s3 + $0x98] sm:$0xff] }
 0x349   : > { %v2217_v7 = vadd.f32 %v2174_v54, %v2093_v8  ;;  %v1810_v2 = vpop.f32.mrf.mxu1  ;;  %v13422_v28 = vsel %vm570_vm0, 0.0, %v2432_v27  ;;  %3681 = vmatpush.bf16.msrb.mxu3 %v11312_v46 }
 0x34a   : > { %v2614_v31 = vrot.slane %v13422_v28, 1  ;;  %v2095_v53 = vadd.f32 %v2055_v21, %v1971_v9 }
 0x34b   : > { %v2252_v44 = vadd.f32 %v12887_v20, %v2217_v7  ;;  %v2058_v15 = vpop.f32.mrf.mxu3 }
 0x34d   : > { %v2284_v26 = vmax.f32 %v2252_v44, 0.0  ;;  %v1934_v44 = vpop.f32.mrf.mxu2 }
 0x34f   : > { %v2433_v57 = vrot.slane %v2284_v26, 7  ;;  %3532 = vmatmul.bf16.gmra.mxu1 %v3185_v17  ;;  %3789 = vmatmul.bf16.gmra.mxu0 %v3185_v17  ;;  %v1848_v17 = vadd.f32 %v1810_v2, %v12866_v29 }
 0x350   : > { %v2177_v52 = vpop.f32.mrf.mxu0 }
 0x351   : > { %v13426_v35 = vsel %vm570_vm0, %v2432_v27, %v2433_v57  ;;  %v13429_v36 = vsel %vm570_vm0, %v2433_v57, 0.0  ;;  %v2218_v8 = vadd.f32 %v2177_v52, %v2094_v18  ;;  %v1812_v40 = vpop.f32.mrf.mxu1  ;;  %v11304_v52 = vld [vmem:[%s16624_s3 + $0x58] sm:$0xff]  ;;  %v1972_v21 = vadd.f32 %v1934_v44, %v1848_v17 }
 0x352   : > { %v2617_v16 = vrot.slane %v13429_v36, 1  ;;  %v2615_v54 = vrot.slane %v13426_v35, 1  ;;  %3592 = vmatpush.bf16.msrb.mxu2 %v11304_v52  ;;  %v2728_v44 = vrot.slane %v12945_v39, 2  ;;  %v1849_v46 = vadd.f32 %v1812_v40, %v12874_v38 }
 0x353   : > { %v2253_v7 = vadd.f32 %v12887_v20, %v2218_v8 }
 0x354   : > { %v13436_v32 = vsel %vm746_vm3, %v2614_v31, %v2615_v54  ;;  %v13439_v34 = vsel %vm746_vm3, %v2615_v54, %v2617_v16 }
 0x355   : > { %16794 = vst [vmem:[#allocation35_spill] sm:$0xff] %v13436_v32  ;;  %v11604_v27 = vpack.i.bf16 %v13439_v34, %v13436_v32  ;;  %v2285_v5 = vmax.f32 %v2253_v7, 0.0  ;;  %v1936_v54 = vpop.f32.mrf.mxu2 }
 0x356   : > { %16795 = vst [vmem:[#allocation36_spill] sm:$0xff] %v13439_v34  ;;  %v1973_v40 = vadd.f32 %v1936_v54, %v1849_v46 }
 0x357   : > { %11605 = vrot.lane.b32.xlu1 %v11604_v27, %s11915_s21  ;;  %v2435_v29 = vrot.slane %v2285_v5, 7  ;;  %v11619_v27 = vpack.i.bf16 %v12910_v59, %v12905_v1  ;;  %v2727_v5 = vrot.slane %v12942_v3, 2 }
 0x358   : > { %v2179_v26 = vpop.f32.mrf.mxu0 }
 0x359   : > { %v2219_v18 = vadd.f32 %v2179_v26, %v2095_v53  ;;  %v11571_v57 = vpop.permute.xlu0 %11570  ;;  %v2730_v26 = vrot.slane %v12948_v30, 2  ;;  %v1815_v38 = vpop.f32.mrf.mxu1 }
 0x35a   : > { %v11573_v8 = vunpack.i.h.bf16 %v11571_v57  ;;  %v11572_v16 = vunpack.i.l.bf16 %v11571_v57  ;;  %v13463_v57 = vsel %vm570_vm0, 0.0, %v2435_v29 }
 0x35b   : > { %v2254_v31 = vadd.f32 %v12887_v20, %v2219_v18  ;;  %v2096_v20 = vadd.f32 %v2058_v15, %v1972_v21  ;;  %v2060_v18 = vpop.f32.mrf.mxu3  ;;  %v13474_v21 = vsel %vm1155_vm4, %v2727_v5, %v2728_v44  ;;  %v2725_v5 = vrot.slane %v12913_v11, 2 }
 0x35c   : > { %v3083_v2 = vsel %vm3071_vm5, %v13136_v25, %v11572_v16  ;;  %v3084_v9 = vsel %vm3071_vm5, %v13146_v19, %v11573_v8 }
 0x35d   : > { %v2286_v7 = vmax.f32 %v2254_v31, 0.0  ;;  %v3189_v53 = vpack.c.bf16 %v3084_v9, %v3083_v2  ;;  %v13477_v31 = vsel %vm1155_vm4, %v2728_v44, %v2730_v26  ;;  %v11326_v2 = vld [vmem:[%s16624_s3 + $0x108] sm:$0xff]  ;;  %v1939_v44 = vpop.f32.mrf.mxu2 }
 0x35e   : > { %3861 = vmatpush.bf16.msrb.mxu1 %v11326_v2  ;;  %v11634_v54 = vpack.i.bf16 %v13477_v31, %v13474_v21  ;;  %v16798_v2 = vld [vmem:[#allocation9_spill] sm:$0xff] }
 0x35f   : > { %v2436_v17 = vrot.slane %v2286_v7, 7  ;;  %11620 = vrot.lane.b32.xlu1 %v11619_v27, %s11915_s21  ;;  %3537 = vmatmul.bf16.gmra.mxu1 %v3189_v53  ;;  %v2619_v7 = vrot.slane %v13463_v57, 1 }
 0x360   : > { %3794 = vmatmul.bf16.gmra.mxu0 %v3189_v53  ;;  %v2182_v52 = vpop.f32.mrf.mxu0 }
 0x361   : > { %v13467_v8 = vsel %vm570_vm0, %v2435_v29, %v2436_v17  ;;  %v13470_v30 = vsel %vm570_vm0, %v2436_v17, 0.0  ;;  %v2220_v15 = vadd.f32 %v2182_v52, %v2096_v20  ;;  %v13485_v29 = vld [vmem:[%s16623_s2] ss:$0 sm:$0xff]  ;;  %v2723_v17 = vrot.slane %v12910_v59, 2 }
 0x362   : > { %v2622_v16 = vrot.slane %v13470_v30, 1  ;;  %v2620_v27 = vrot.slane %v13467_v8, 1  ;;  %v2097_v52 = vadd.f32 %v2060_v18, %v1973_v40 }
 0x363   : > { %v2255_v9 = vadd.f32 %v13485_v29, %v2220_v15  ;;  %v2063_v32 = vpop.f32.mrf.mxu3 }
 0x364   : > { %v13491_v53 = vsel %vm746_vm3, %v2619_v7, %v2620_v27  ;;  %v13494_v26 = vsel %vm746_vm3, %v2620_v27, %v2622_v16  ;;  %v2722_v16 = vrot.slane %v12905_v1, 2  ;;  %v1850_v7 = vadd.f32 %v1815_v38, %v16798_v2 }
 0x365   : > { %16796 = vst [vmem:[#allocation37_spill] sm:$0xff] %v13491_v53  ;;  %v11609_v20 = vpack.i.bf16 %v13494_v26, %v13491_v53  ;;  %v2287_v46 = vmax.f32 %v2255_v9, 0.0  ;;  %v13511_v9 = vsel %vm1155_vm4, %v2723_v17, %v2725_v5 }
 0x366   : > { %16797 = vst [vmem:[#allocation38_spill] sm:$0xff] %v13494_v26  ;;  %v13507_v59 = vsel %vm1155_vm4, %v2722_v16, %v2723_v17  ;;  %v1974_v11 = vadd.f32 %v1939_v44, %v1850_v7  ;;  %v2743_v44 = vrot.slane %v13074_v63, 2  ;;  %v16799_v16 = vld [vmem:[#allocation10_spill] sm:$0xff]  ;;  %v1941_v7 = vpop.f32.mrf.mxu2 }
 0x367   : > { %11635 = vrot.lane.b32.xlu1 %v11634_v54, %s11915_s21  ;;  %11610 = vrot.lane.b32.xlu2 %v11609_v20, %s11915_s21  ;;  %v2438_v18 = vrot.slane %v2287_v46, 7  ;;  %v1817_v54 = vpop.f32.mrf.mxu1  ;;  %v2745_v46 = vrot.slane %v13077_v45, 2  ;;  %v11624_v17 = vpack.i.bf16 %v13511_v9, %v13507_v59 }
 0x368   : > { %v2184_v15 = vpop.f32.mrf.mxu0  ;;  %v2098_v5 = vadd.f32 %v2063_v32, %v1974_v11  ;;  %v1851_v2 = vadd.f32 %v1817_v54, %v16799_v16 }
 0x369   : > { %v2221_v27 = vadd.f32 %v2184_v15, %v2097_v52  ;;  %v11576_v34 = vpop.permute.xlu1 %11575  ;;  %v2742_v15 = vrot.slane %v13067_v23, 2 }
 0x36a   : > { %v11578_v61 = vunpack.i.h.bf16 %v11576_v34  ;;  %v11577_v26 = vunpack.i.l.bf16 %v11576_v34  ;;  %v11649_v34 = vpack.i.bf16 %v13028_v56, %v13021_v42 }
 0x36b   : > { %v2256_v40 = vadd.f32 %v13485_v29, %v2221_v27 }
 0x36c   : > { %v3085_v1 = vsel %vm3071_vm5, %v13194_v10, %v11577_v26  ;;  %v3086_v38 = vsel %vm3071_vm5, %v13202_v47, %v11578_v61  ;;  %v13525_v26 = vsel %vm570_vm0, 0.0, %v2438_v18 }
 0x36d   : > { %v2288_v20 = vmax.f32 %v2256_v40, 0.0  ;;  %v3193_v52 = vpack.c.bf16 %v3086_v38, %v3085_v1  ;;  %v13537_v40 = vsel %vm1155_vm4, %v2742_v15, %v2743_v44  ;;  %v2624_v38 = vrot.slane %v13525_v26, 1 }
 0x36f   : > { %v2439_v61 = vrot.slane %v2288_v20, 7  ;;  %11650 = vrot.lane.b32.xlu1 %v11649_v34, %s11915_s21  ;;  %3542 = vmatmul.bf16.gmra.mxu1 %v3193_v52  ;;  %v13543_v20 = vsel %vm1155_vm4, %v2743_v44, %v2745_v46  ;;  %v1975_v34 = vadd.f32 %v1941_v7, %v1851_v2  ;;  %v11311_v46 = vld [vmem:[%s16624_s3 + $0x90] sm:$0xff]  ;;  %v11639_v2 = vpack.i.bf16 %v12985_v60, %v12982_v14  ;;  %v13570_v53 = vpop.f32.mrf.mxu1 }
 0x370   : > { %11625 = vrot.lane.b32.xlu2 %v11624_v17, %s11915_s21  ;;  %3799 = vmatmul.bf16.gmra.mxu0 %v3193_v52  ;;  %v2187_v45 = vpop.f32.mrf.mxu0  ;;  %v2065_v52 = vpop.f32.mrf.mxu3  ;;  %v11664_v44 = vpack.i.bf16 %v13543_v20, %v13537_v40  ;;  %v2738_v7 = vrot.slane %v13028_v56, 2 }
 0x371   : > { %v13531_v27 = vsel %vm570_vm0, %v2438_v18, %v2439_v61  ;;  %v13534_v32 = vsel %vm570_vm0, %v2439_v61, 0.0  ;;  %v2222_v11 = vadd.f32 %v2187_v45, %v2098_v5  ;;  %v11303_v18 = vld [vmem:[%s16624_s3 + $0x50] sm:$0xff]  ;;  %v11581_v17 = vpop.permute.xlu2 %11580  ;;  %v2099_v45 = vadd.f32 %v2065_v52, %v1975_v34  ;;  %3682 = vmatpush.bf16.msrb.mxu3 %v11311_v46 }
 0x372   : > { %v2627_v1 = vrot.slane %v13534_v32, 1  ;;  %v2625_v54 = vrot.slane %v13531_v27, 1  ;;  %3593 = vmatpush.bf16.msrb.mxu2 %v11303_v18  ;;  %v11679_v46 = vpack.i.bf16 %v13202_v47, %v13194_v10 }
 0x373   : > { %v2257_v5 = vadd.f32 %v13485_v29, %v2222_v11  ;;  %v2740_v11 = vrot.slane %v13031_v12, 2 }
 0x374   : > { %v13550_v15 = vsel %vm746_vm3, %v2624_v38, %v2625_v54  ;;  %v13553_v61 = vsel %vm746_vm3, %v2625_v54, %v2627_v1  ;;  %v11583_v1 = vunpack.i.h.bf16 %v11581_v17  ;;  %v11582_v38 = vunpack.i.l.bf16 %v11581_v17 }
 0x375   : > { %16800 = vst [vmem:[#allocation9_spill] sm:$0xff] %v13550_v15  ;;  %v11614_v16 = vpack.i.bf16 %v13553_v61, %v13550_v15  ;;  %v2737_v54 = vrot.slane %v13021_v42, 2  ;;  %v2289_v18 = vmax.f32 %v2257_v5, 0.0  ;;  %v13577_v34 = vsel %vm1155_vm4, %v2738_v7, %v2740_v11 }
 0x376   : > { %16801 = vst [vmem:[#allocation10_spill] sm:$0xff] %v13553_v61  ;;  %v3087_v52 = vsel %vm3071_vm5, %v13253_v13, %v11582_v38  ;;  %v3088_v42 = vsel %vm3071_vm5, %v13258_v43, %v11583_v1  ;;  %v11629_v5 = vpack.i.bf16 %v12945_v39, %v12942_v3  ;;  %v2732_v11 = vrot.slane %v12982_v14, 2 }
 0x377   : > { %11615 = vrot.lane.b32.xlu0 %v11614_v16, %s11915_s21  ;;  %11665 = vrot.lane.b32.xlu1 %v11664_v44, %s11915_s21  ;;  %v13573_v56 = vsel %vm1155_vm4, %v2737_v54, %v2738_v7  ;;  %v2441_v17 = vrot.slane %v2289_v18, 7  ;;  %v3197_v7 = vpack.c.bf16 %v3088_v42, %v3087_v52  ;;  %v2757_v3 = vrot.slane %v13253_v13, 2 }
 0x378   : > { %11640 = vrot.lane.b32.xlu2 %v11639_v2, %s11915_s21  ;;  %v2189_v61 = vpop.f32.mrf.mxu0  ;;  %v11654_v2 = vpack.i.bf16 %v13577_v34, %v13573_v56 }
 0x379   : > { %v2223_v15 = vadd.f32 %v2189_v61, %v2099_v45  ;;  %v16802_v61 = vld [vmem:[#allocation12_spill] sm:$0xff]  ;;  %v2758_v45 = vrot.slane %v13258_v43, 2  ;;  %v13598_v39 = vsel %vm570_vm0, 0.0, %v2441_v17 }
 0x37a   : > { %v2735_v16 = vrot.slane %v16802_v61, 2  ;;  %v2962_v52 = vrot.slane %v13598_v39, 2 }
 0x37b   : > { %v2258_v12 = vadd.f32 %v13485_v29, %v2223_v15  ;;  %v2733_v29 = vrot.slane %v12985_v60, 2  ;;  %v2760_v15 = vrot.slane %v13261_v51, 2  ;;  %v13615_v18 = vsel %vm1155_vm4, %v2757_v3, %v2758_v45 }
 0x37d   : > { %v2290_v44 = vmax.f32 %v2258_v12, 0.0  ;;  %v13608_v14 = vsel %vm1155_vm4, %v2732_v11, %v2733_v29  ;;  %v13612_v54 = vsel %vm1155_vm4, %v2733_v29, %v2735_v16  ;;  %v13618_v12 = vsel %vm1155_vm4, %v2758_v45, %v2760_v15 }
 0x37e   : > { %v11694_v61 = vpack.i.bf16 %v13618_v12, %v13615_v18  ;;  %v2755_v15 = vrot.slane %v13205_v55, 2 }
 0x37f   : > { %v2442_v1 = vrot.slane %v2290_v44, 7  ;;  %11630 = vrot.lane.b32.xlu0 %v11629_v5, %s11915_s21  ;;  %11680 = vrot.lane.b32.xlu1 %v11679_v46, %s11915_s21  ;;  %v11644_v5 = vpack.i.bf16 %v13612_v54, %v13608_v14  ;;  %v11669_v46 = vpack.i.bf16 %v13146_v19, %v13136_v25 }
 0x380   : > { %11655 = vrot.lane.b32.xlu2 %v11654_v2, %s11915_s21  ;;  %3547 = vmatmul.bf16.gmra.mxu1 %v3197_v7  ;;  %v2753_v2 = vrot.slane %v13202_v47, 2 }
 0x381   : > { %v13602_v60 = vsel %vm570_vm0, %v2441_v17, %v2442_v1  ;;  %v13605_v51 = vsel %vm570_vm0, %v2442_v1, 0.0  ;;  %3804 = vmatmul.bf16.gmra.mxu0 %v3197_v7  ;;  %v13622_v17 = vpop.f32.mrf.mxu1  ;;  %v2752_v7 = vrot.slane %v13194_v10, 2  ;;  %v11659_v10 = vpack.i.bf16 %v13074_v63, %v13067_v23  ;;  %v11302_v63 = vld [vmem:[%s16624_s3 + $0x48] sm:$0xff] }
 0x382   : > { %v2965_v38 = vrot.slane %v13605_v51, 2  ;;  %v2963_v42 = vrot.slane %v13602_v60, 2  ;;  %v2772_v23 = vrot.slane %v13358_v41, 2  ;;  %3594 = vmatpush.bf16.msrb.mxu2 %v11302_v63  ;;  %v11689_v63 = vpack.i.bf16 %v13258_v43, %v13253_v13 }
 0x383   : > { %v13645_v3 = vsel %vm1155_vm4, %v2752_v7, %v2753_v2  ;;  %v2773_v7 = vrot.slane %v13362_v0, 2 }
 0x384   : > { %v13629_v16 = vsel %vm1155_vm4, %v2962_v52, %v2963_v42  ;;  %v13632_v44 = vsel %vm1155_vm4, %v2963_v42, %v2965_v38  ;;  %v13648_v38 = vsel %vm1155_vm4, %v2753_v2, %v2755_v15  ;;  %v2750_v42 = vrot.slane %v13149_v49, 2 }
 0x385   : > { %16803 = vst [vmem:[#allocation12_spill] sm:$0xff] %v13629_v16  ;;  %v11684_v15 = vpack.i.bf16 %v13648_v38, %v13645_v3  ;;  %v2748_v2 = vrot.slane %v13146_v19, 2  ;;  %v2747_v49 = vrot.slane %v13136_v25, 2 }
 0x386   : > { %16804 = vst [vmem:[#allocation39_spill] sm:$0xff] %v13632_v44 }
 0x387   : > { %11645 = vrot.lane.b32.xlu0 %v11644_v5, %s11915_s21  ;;  %11695 = vrot.lane.b32.xlu1 %v11694_v61, %s11915_s21  ;;  %v11709_v5 = vpack.i.bf16 %v13330_v33, %v13326_v4  ;;  %v13675_v19 = vsel %vm1155_vm4, %v2747_v49, %v2748_v2 }
 0x388   : > { %11670 = vrot.lane.b32.xlu2 %v11669_v46, %s11915_s21  ;;  %v2775_v46 = vrot.slane %v13365_v22, 2  ;;  %v13678_v22 = vsel %vm1155_vm4, %v2748_v2, %v2750_v42  ;;  %v11699_v42 = vpack.i.bf16 %v13293_v48, %v13288_v58 }
 0x389   : > { %v11586_v45 = vpop.permute.xlu0 %11585 }
 0x38a   : > { %v11588_v11 = vunpack.i.h.bf16 %v11586_v45  ;;  %v11587_v1 = vunpack.i.l.bf16 %v11586_v45  ;;  %v13681_v45 = vsel %vm1155_vm4, %v2772_v23, %v2773_v7  ;;  %v13684_v25 = vsel %vm1155_vm4, %v2773_v7, %v2775_v46 }
 0x38c   : > { %v13650_v55 = vpop.f32.mrf.mxu1  ;;  %v3089_v52 = vsel %vm3071_vm5, %v13288_v58, %v11587_v1  ;;  %v3090_v47 = vsel %vm3071_vm5, %v13293_v48, %v11588_v11  ;;  %v11674_v1 = vpack.i.bf16 %v13678_v22, %v13675_v19 }
 0x38d   : > { %v3201_v61 = vpack.c.bf16 %v3090_v47, %v3089_v52  ;;  %v11724_v52 = vpack.i.bf16 %v13684_v25, %v13681_v45  ;;  %v11310_v47 = vld [vmem:[%s16624_s3 + $0x88] sm:$0xff] }
 0x38e   : > { %3683 = vmatpush.bf16.msrb.mxu3 %v11310_v47 }
 0x38f   : > { %11660 = vrot.lane.b32.xlu0 %v11659_v10, %s11915_s21  ;;  %11710 = vrot.lane.b32.xlu1 %v11709_v5, %s11915_s21  ;;  %v2770_v10 = vrot.slane %v13333_v6, 2  ;;  %v2768_v5 = vrot.slane %v13330_v33, 2  ;;  %v2765_v6 = vrot.slane %v13296_v37, 2  ;;  %v11325_v37 = vld [vmem:[%s16624_s3 + $0x100] sm:$0xff] }
 0x390   : > { %11685 = vrot.lane.b32.xlu2 %v11684_v15, %s11915_s21  ;;  %3552 = vmatmul.bf16.gmra.mxu1 %v3201_v61 }
 0x391   : > { %3809 = vmatmul.bf16.gmra.mxu0 %v3201_v61  ;;  %v2767_v61 = vrot.slane %v13326_v4, 2  ;;  %v13707_v49 = vsel %vm1155_vm4, %v2768_v5, %v2770_v10  ;;  %v2790_v10 = vrot.slane %v13470_v30, 2  ;;  %3862 = vmatpush.bf16.msrb.mxu1 %v11325_v37 }
 0x393   : > { %v13704_v7 = vsel %vm1155_vm4, %v2767_v61, %v2768_v5  ;;  %v2788_v5 = vrot.slane %v13467_v8, 2 }
 0x394   : > { %v13686_v11 = vpop.f32.mrf.mxu1  ;;  %v11714_v13 = vpack.i.bf16 %v13707_v49, %v13704_v7 }
 0x397   : > { %11675 = vrot.lane.b32.xlu0 %v11674_v1, %s11915_s21  ;;  %11725 = vrot.lane.b32.xlu1 %v11724_v52, %s11915_s21  ;;  %v11739_v1 = vpack.i.bf16 %v13426_v35, %v13422_v28 }
 0x398   : > { %11700 = vrot.lane.b32.xlu2 %v11699_v42, %s11915_s21  ;;  %v2763_v42 = vrot.slane %v13293_v48, 2  ;;  %v2787_v48 = vrot.slane %v13463_v57, 2 }
 0x399   : > { %v11591_v46 = vpop.permute.xlu1 %11590 }
 0x39a   : > { %v11593_v15 = vunpack.i.h.bf16 %v11591_v46  ;;  %v11592_v2 = vunpack.i.l.bf16 %v11591_v46  ;;  %v13737_v30 = vsel %vm1155_vm4, %v2763_v42, %v2765_v6  ;;  %v13740_v61 = vsel %vm1155_vm4, %v2787_v48, %v2788_v5 }
 0x39b   : > { %v13743_v46 = vsel %vm1155_vm4, %v2788_v5, %v2790_v10  ;;  %v11729_v6 = vpack.i.bf16 %v13397_v62, %v13393_v24  ;;  %v2783_v10 = vrot.slane %v13426_v35, 2 }
 0x39c   : > { %v13710_v23 = vpop.f32.mrf.mxu1  ;;  %v3091_v52 = vsel %vm3071_vm5, %v13326_v4, %v11592_v2  ;;  %v3092_v47 = vsel %vm3071_vm5, %v13330_v33, %v11593_v15  ;;  %v2762_v4 = vrot.slane %v13288_v58, 2  ;;  %v11596_v58 = vpop.permute.xlu2 %11595 }
 0x39d   : > { %v3205_v43 = vpack.c.bf16 %v3092_v47, %v3091_v52  ;;  %v2926_v52 = vrot.slane %v13602_v60, 1  ;;  %v2785_v47 = vrot.slane %v13429_v36, 2  ;;  %v11597_v37 = vunpack.i.l.bf16 %v11596_v58 }
 0x39e   : > { %v13734_v33 = vsel %vm1155_vm4, %v2762_v4, %v2763_v42  ;;  %v11598_v42 = vunpack.i.h.bf16 %v11596_v58 }
 0x39f   : > { %11690 = vrot.lane.b32.xlu0 %v11689_v63, %s11915_s21  ;;  %11740 = vrot.lane.b32.xlu1 %v11739_v1, %s11915_s21  ;;  %v11704_v2 = vpack.i.bf16 %v13737_v30, %v13734_v33  ;;  %v11754_v63 = vpack.i.bf16 %v13743_v46, %v13740_v61  ;;  %v2928_v1 = vrot.slane %v13605_v51, 1  ;;  %v2782_v51 = vrot.slane %v13422_v28, 2 }
 0x3a0   : > { %11715 = vrot.lane.b32.xlu2 %v11714_v13, %s11915_s21  ;;  %3557 = vmatmul.bf16.gmra.mxu1 %v3205_v43  ;;  %v2925_v13 = vrot.slane %v13598_v39, 1  ;;  %v13772_v4 = vsel %vm1155_vm4, %v2783_v10, %v2785_v47  ;;  %v3093_v48 = vsel %vm3071_vm5, %v13358_v41, %v11597_v37  ;;  %v3094_v58 = vsel %vm3071_vm5, %v13362_v0, %v11598_v42 }
 0x3a1   : > { %3814 = vmatmul.bf16.gmra.mxu0 %v3205_v43  ;;  %v13766_v5 = vsel %vm746_vm3, %v2926_v52, %v2928_v1  ;;  %v13769_v36 = vsel %vm1155_vm4, %v2782_v51, %v2783_v10  ;;  %v11719_v1 = vpack.i.bf16 %v13362_v0, %v13358_v41  ;;  %v3209_v37 = vpack.c.bf16 %v3094_v58, %v3093_v48 }
 0x3a2   : > { %v13763_v43 = vsel %vm746_vm3, %v2925_v13, %v2926_v52  ;;  %16806 = vst [vmem:[#allocation41_spill] sm:$0xff] %v13766_v5  ;;  %v2780_v52 = vrot.slane %v13400_v50, 2  ;;  %v11744_v47 = vpack.i.bf16 %v13772_v4, %v13769_v36  ;;  %v2778_v42 = vrot.slane %v13397_v62, 2  ;;  %v11301_v13 = vld [vmem:[%s16624_s3 + $0x40] sm:$0xff] }
 0x3a3   : > { %16805 = vst [vmem:[#allocation40_spill] sm:$0xff] %v13763_v43  ;;  %v2777_v10 = vrot.slane %v13393_v24, 2  ;;  %v11759_v48 = vpack.i.bf16 %v13531_v27, %v13525_v26  ;;  %3595 = vmatpush.bf16.msrb.mxu2 %v11301_v13  ;;  %v11774_v13 = vpack.i.bf16 %v13602_v60, %v13598_v39 }
 0x3a4   : > { %v13745_v15 = vpop.f32.mrf.mxu1  ;;  %v13799_v0 = vsel %vm1155_vm4, %v2778_v42, %v2780_v52 }
 0x3a5   : > { %v13796_v41 = vsel %vm1155_vm4, %v2777_v10, %v2778_v42  ;;  %v2795_v10 = vrot.slane %v13534_v32, 2 }
 0x3a6   : > { %v11734_v51 = vpack.i.bf16 %v13799_v0, %v13796_v41 }
 0x3a7   : > { %11705 = vrot.lane.b32.xlu0 %v11704_v2, %s11915_s21  ;;  %11755 = vrot.lane.b32.xlu1 %v11754_v63, %s11915_s21  ;;  %v11309_v63 = vld [vmem:[%s16624_s3 + $0x80] sm:$0xff] }
 0x3a8   : > { %11730 = vrot.lane.b32.xlu2 %v11729_v6, %s11915_s21  ;;  %v11769_v6 = vpack.i.bf16 %v13766_v5, %v13763_v43  ;;  %3684 = vmatpush.bf16.msrb.mxu3 %v11309_v63 }
 0x3ac   : > { %v13778_v2 = vpop.f32.mrf.mxu1 }
 0x3af   : > { %11720 = vrot.lane.b32.xlu0 %v11719_v1, %s11915_s21  ;;  %11770 = vrot.lane.b32.xlu1 %v11769_v6, %s11915_s21 }
 0x3b0   : > { %11745 = vrot.lane.b32.xlu2 %v11744_v47, %s11915_s21  ;;  %3562 = vmatmul.bf16.gmra.mxu1 %v3209_v37 }
 0x3b1   : > { %3819 = vmatmul.bf16.gmra.mxu0 %v3209_v37  ;;  %v11749_v37 = vpack.i.bf16 %v13467_v8, %v13463_v57 }
 0x3b4   : > { %v13801_v50 = vpop.f32.mrf.mxu1 }
 0x3b7   : > { %11735 = vrot.lane.b32.xlu0 %v11734_v51, %s11915_s21  ;;  %v2793_v51 = vrot.slane %v13531_v27, 2 }
 0x3b8   : > { %11760 = vrot.lane.b32.xlu2 %v11759_v48, %s11915_s21  ;;  %v2792_v48 = vrot.slane %v13525_v26, 2 }
 0x3b9   : > { %v11601_v58 = vpop.permute.xlu0 %11600 }
 0x3ba   : > { %v11603_v63 = vunpack.i.h.bf16 %v11601_v58  ;;  %v11602_v1 = vunpack.i.l.bf16 %v11601_v58  ;;  %v13831_v58 = vsel %vm1155_vm4, %v2793_v51, %v2795_v10 }
 0x3bb   : > { %16808 = vst [vmem:[#allocation43_spill] sm:$0xff] %v13831_v58 }
 0x3bc   : > { %v13812_v6 = vpop.f32.mrf.mxu1  ;;  %v3095_v52 = vsel %vm3071_vm5, %v13393_v24, %v11602_v1  ;;  %v3096_v47 = vsel %vm3071_vm5, %v13397_v62, %v11603_v63  ;;  %v13828_v62 = vsel %vm1155_vm4, %v2792_v48, %v2793_v51  ;;  %v16809_v51 = vld [vmem:[#allocation14_spill] sm:$0xff] }
 0x3bd   : > { %v3213_v42 = vpack.c.bf16 %v3096_v47, %v3095_v52  ;;  %16807 = vst [vmem:[#allocation42_spill] sm:$0xff] %v13828_v62  ;;  %v11764_v63 = vpack.i.bf16 %v13831_v58, %v13828_v62  ;;  %v16810_v58 = vld [vmem:[#allocation19_spill] sm:$0xff]  ;;  %v11779_v62 = vpack.i.bf16 %v13632_v44, %v13629_v16 }
 0x3bf   : > { %11750 = vrot.lane.b32.xlu0 %v11749_v37, %s11915_s21 }
 0x3c0   : > { %11775 = vrot.lane.b32.xlu2 %v11774_v13, %s11915_s21  ;;  %3567 = vmatmul.bf16.gmra.mxu1 %v3213_v42 }
 0x3c1   : > { %3824 = vmatmul.bf16.gmra.mxu0 %v3213_v42  ;;  %v11611_v24 = vpop.permute.xlu2 %11610 }
 0x3c4   : > { %v13833_v32 = vpop.f32.mrf.mxu1 }
 0x3c7   : > { %11765 = vrot.lane.b32.xlu0 %v11764_v63, %s11915_s21 }
 0x3c9   : > { %v11606_v1 = vpop.permute.xlu1 %11605 }
 0x3ca   : > { %v11626_v52 = vpop.permute.xlu2 %11625  ;;  %v11608_v47 = vunpack.i.h.bf16 %v11606_v1  ;;  %v11607_v37 = vunpack.i.l.bf16 %v11606_v1 }
 0x3cb   : > { %v11628_v13 = vunpack.i.h.bf16 %v11626_v52  ;;  %v11627_v42 = vunpack.i.l.bf16 %v11626_v52  ;;  %v13851_v52 = vpop.f32.mrf.mxu0 }
 0x3cc   : > { %v13838_v29 = vpop.f32.mrf.mxu1  ;;  %v3097_v48 = vsel %vm3071_vm5, %v13422_v28, %v11607_v37  ;;  %v3098_v10 = vsel %vm3071_vm5, %v13426_v35, %v11608_v47  ;;  %v16811_v37 = vld [vmem:[#allocation5_spill] sm:$0xff] }
 0x3cd   : > { %v3136_v5 = vsel %vm3071_vm5, %v16809_v51, %v11628_v13  ;;  %v3135_v63 = vsel %vm3071_vm5, %v16810_v58, %v11627_v42  ;;  %v3217_v1 = vpack.c.bf16 %v3098_v10, %v3097_v48  ;;  %v11612_v10 = vunpack.i.l.bf16 %v11611_v24 }
 0x3ce   : > { %v3171_v43 = vpack.c.bf16 %v3136_v5, %v3135_v63  ;;  %v11613_v5 = vunpack.i.h.bf16 %v11611_v24 }
 0x3cf   : > { %11780 = vrot.lane.b32.xlu0 %v11779_v62, %s11915_s21  ;;  %v3099_v63 = vsel %vm3071_vm5, %v13463_v57, %v11612_v10 }
 0x3d0   : > { %3685 = vmatmul.bf16.vlgmr.msrb.gmra.mxu3 %v3171_v43  ;;  %3572 = vmatmul.bf16.gmra.mxu1 %v3217_v1 }
 0x3d1   : > { %3829 = vmatmul.bf16.gmra.mxu0 %v3217_v1  ;;  %v11621_v28 = vpop.permute.xlu1 %11620  ;;  %v3100_v1 = vsel %vm3071_vm5, %v13467_v8, %v11613_v5 }
 0x3d2   : > { %v11623_v35 = vunpack.i.h.bf16 %v11621_v28  ;;  %v11622_v47 = vunpack.i.l.bf16 %v11621_v28 }
 0x3d3   : > { %v13863_v28 = vpop.f32.mrf.mxu0 }
 0x3d4   : > { %v3104_v13 = vsel %vm3071_vm5, %v16811_v37, %v11623_v35  ;;  %v3103_v58 = vsel %vm3071_vm5, %v16811_v37, %v11622_v47  ;;  %v13857_v42 = vpop.f32.mrf.mxu1  ;;  %v16813_v47 = vld [vmem:[#allocation11_spill] sm:$0xff] }
 0x3d5   : > { %v3170_v48 = vpack.c.bf16 %v3104_v13, %v3103_v58  ;;  %v16814_v13 = vld [vmem:[#allocation21_spill] sm:$0xff] }
 0x3d7   : > { %3596 = vmatmul.bf16.vlgmr.msrb.gmra.mxu2 %v3170_v48  ;;  %v3221_v48 = vpack.c.bf16 %v3100_v1, %v3099_v63 }
 0x3d9   : > { %v11636_v43 = vpop.permute.xlu1 %11635 }
 0x3da   : > { %v11638_v62 = vunpack.i.h.bf16 %v11636_v43  ;;  %v11637_v51 = vunpack.i.l.bf16 %v11636_v43 }
 0x3db   : > { %v13873_v10 = vpop.f32.mrf.mxu0 }
 0x3dc   : > { %v13865_v35 = vpop.f32.mrf.mxu1  ;;  %v3137_v37 = vsel %vm3071_vm5, %v16813_v47, %v11637_v51  ;;  %v3138_v24 = vsel %vm3071_vm5, %v16814_v13, %v11638_v62 }
 0x3dd   : > { %16812 = vst [vmem:[#allocation14_spill] sm:$0xff] %v13865_v35  ;;  %v3176_v58 = vpack.c.bf16 %v3138_v24, %v3137_v37 }
 0x3e0   : > { %3577 = vmatmul.bf16.gmra.mxu1 %v3221_v48  ;;  %3690 = vmatmul.bf16.gmra.mxu3 %v3176_v58 }
 0x3e1   : > { %3834 = vmatmul.bf16.gmra.mxu0 %v3221_v48  ;;  %v11651_v43 = vpop.permute.xlu1 %11650 }
 0x3e3   : > { %v13883_v63 = vpop.f32.mrf.mxu0 }
 0x3e4   : > { %v13871_v57 = vpop.f32.mrf.mxu1 }
 0x3e5   : > { %16815 = vst [vmem:[#allocation19_spill] sm:$0xff] %v13871_v57 }
 0x3e9   : > { %v11616_v8 = vpop.permute.xlu0 %11615  ;;  %v13875_v5 = vpop.permute.xlu1 %11665 }
 0x3ea   : > { %v11618_v16 = vunpack.i.h.bf16 %v11616_v8  ;;  %v11617_v44 = vunpack.i.l.bf16 %v11616_v8 }
 0x3ec   : > { %v13877_v35 = vpop.f32.mrf.mxu1  ;;  %v3101_v62 = vsel %vm3071_vm5, %v13525_v26, %v11617_v44  ;;  %v3102_v37 = vsel %vm3071_vm5, %v13531_v27, %v11618_v16  ;;  %v11641_v27 = vpop.permute.xlu2 %11640 }
 0x3ed   : > { %16816 = vst [vmem:[#allocation11_spill] sm:$0xff] %v13877_v35  ;;  %v3225_v51 = vpack.c.bf16 %v3102_v37, %v3101_v62 }
 0x3f0   : > { %3582 = vmatmul.bf16.gmra.mxu1 %v3225_v51 }
 0x3f1   : > { %3839 = vmatmul.bf16.gmra.mxu0 %v3225_v51  ;;  %v11631_v1 = vpop.permute.xlu0 %11630  ;;  %v13885_v47 = vpop.permute.xlu1 %11680  ;;  %v16818_v51 = vld [vmem:[#allocation17_spill] sm:$0xff] }
 0x3f2   : > { %v11633_v13 = vunpack.i.h.bf16 %v11631_v1  ;;  %v11632_v24 = vunpack.i.l.bf16 %v11631_v1  ;;  %v16819_v1 = vld [vmem:[#allocation15_spill] sm:$0xff] }
 0x3f4   : > { %v13887_v58 = vpop.f32.mrf.mxu1  ;;  %v3105_v48 = vsel %vm3071_vm5, %v13507_v59, %v11632_v24  ;;  %v3106_v26 = vsel %vm3071_vm5, %v13511_v9, %v11633_v13  ;;  %v3173_v9 = vpack.c.bf16 %v13477_v31, %v13474_v21  ;;  %v11643_v13 = vunpack.i.h.bf16 %v11641_v27 }
 0x3f5   : > { %16817 = vst [vmem:[#allocation21_spill] sm:$0xff] %v13887_v58  ;;  %v3175_v44 = vpack.c.bf16 %v3106_v26, %v3105_v48  ;;  %v11642_v24 = vunpack.i.l.bf16 %v11641_v27  ;;  %v16822_v27 = vld [vmem:[#allocation22_spill] sm:$0xff] }
 0x3f7   : > { %3601 = vmatmul.bf16.gmra.mxu2 %v3175_v44  ;;  %v3107_v26 = vsel %vm3071_vm5, %v13474_v21, %v11642_v24  ;;  %v3108_v44 = vsel %vm3071_vm5, %v13477_v31, %v11643_v13  ;;  %v11653_v24 = vunpack.i.h.bf16 %v11651_v43  ;;  %v11652_v31 = vunpack.i.l.bf16 %v11651_v43 }
 0x3f8   : > { %v3178_v13 = vpack.c.bf16 %v13612_v54, %v13608_v14  ;;  %v11667_v43 = vunpack.i.l.bf16 %v13875_v5 }
 0x3f9   : > { %v11646_v16 = vpop.permute.xlu0 %11645  ;;  %v13893_v8 = vpop.permute.xlu1 %11695 }
 0x3fa   : > { %v11648_v62 = vunpack.i.h.bf16 %v11646_v16  ;;  %v11647_v37 = vunpack.i.l.bf16 %v11646_v16  ;;  %v11656_v16 = vpop.permute.xlu2 %11655 }
 0x3fc   : > { %v3139_v35 = vsel %vm3071_vm5, %v16818_v51, %v11647_v37  ;;  %v3140_v58 = vsel %vm3071_vm5, %v16819_v1, %v11648_v62  ;;  %v11657_v37 = vunpack.i.l.bf16 %v11656_v16 }
 0x3fd   : > { %v13899_v57 = vpop.f32.mrf.mxu1  ;;  %v3180_v59 = vpack.c.bf16 %v3140_v58, %v3139_v35  ;;  %v3179_v35 = vpack.c.bf16 %v3108_v44, %v3107_v26  ;;  %v11658_v58 = vunpack.i.h.bf16 %v11656_v16  ;;  %v3109_v44 = vsel %vm3071_vm5, %v13608_v14, %v11652_v31  ;;  %v16827_v14 = vld [vmem:[#allocation23_spill] sm:$0xff] }
 0x3fe   : > { %16820 = vst [vmem:[#allocation17_spill] sm:$0xff] %v13899_v57  ;;  %v3141_v1 = vsel %vm3071_vm5, %v16822_v27, %v11657_v37  ;;  %v3110_v16 = vsel %vm3071_vm5, %v13612_v54, %v11653_v24  ;;  %v11668_v37 = vunpack.i.h.bf16 %v13875_v5  ;;  %v13933_v27 = vpop.f32.mrf.mxu0  ;;  %v3182_v5 = vpack.c.bf16 %v13577_v34, %v13573_v56 }
 0x3ff   : > { %3695 = vmatmul.bf16.gmra.mxu3 %v3180_v59  ;;  %v16823_v59 = vld [vmem:[#allocation18_spill] sm:$0xff] }
 0x400   : > { %10247 = vmatmul.msk.bf16.vlgmr.msrb.gmra.mxu1 %vm3071_vm5, %v3173_v9  ;;  %v3142_v9 = vsel %vm3071_vm5, %v16823_v59, %v11658_v58  ;;  %v3183_v58 = vpack.c.bf16 %v3110_v16, %v3109_v44  ;;  %v3144_v31 = vsel %vm3071_vm5, %v16827_v14, %v11668_v37 }
 0x401   : > { %v13904_v48 = vpop.permute.xlu1 %11710  ;;  %v3184_v21 = vpack.c.bf16 %v3142_v9, %v3141_v1  ;;  %v11661_v1 = vpop.permute.xlu0 %11660  ;;  %v16826_v9 = vld [vmem:[#allocation24_spill] sm:$0xff] }
 0x402   : > { %v11662_v44 = vunpack.i.l.bf16 %v11661_v1 }
 0x405   : > { %v13910_v62 = vpop.f32.mrf.mxu1 }
 0x406   : > { %16821 = vst [vmem:[#allocation15_spill] sm:$0xff] %v13910_v62 }
 0x407   : > { %3606 = vmatmul.bf16.gmra.mxu2 %v3179_v35 }
 0x409   : > { %v13912_v51 = vpop.permute.xlu1 %11725 }
 0x40d   : > { %v13918_v57 = vpop.f32.mrf.mxu1 }
 0x40e   : > { %16824 = vst [vmem:[#allocation22_spill] sm:$0xff] %v13918_v57 }
 0x40f   : > { %3700 = vmatmul.bf16.gmra.mxu3 %v3184_v21  ;;  %v3143_v21 = vsel %vm3071_vm5, %v16826_v9, %v11667_v43  ;;  %v3111_v43 = vsel %vm3071_vm5, %v13573_v56, %v11662_v44  ;;  %v13950_v9 = vpop.f32.mrf.mxu0  ;;  %v11671_v56 = vpop.permute.xlu2 %11670  ;;  %v16829_v44 = vld [vmem:[#allocation3_spill] sm:$0xff] }
 0x410   : > { %10248 = vmatmul.msk.bf16.gmra.mxu1 %vm3071_vm5, %v3178_v13  ;;  %v3188_v24 = vpack.c.bf16 %v3144_v31, %v3143_v21  ;;  %v11663_v13 = vunpack.i.h.bf16 %v11661_v1  ;;  %v11676_v21 = vpop.permute.xlu0 %11675 }
 0x411   : > { %v13923_v26 = vpop.permute.xlu1 %11740 }
 0x412   : > { %v3112_v37 = vsel %vm3071_vm5, %v13577_v34, %v11663_v13  ;;  %v16830_v13 = vld [vmem:[#allocation13_spill] sm:$0xff] }
 0x415   : > { %v13929_v35 = vpop.f32.mrf.mxu1 }
 0x416   : > { %16825 = vst [vmem:[#allocation18_spill] sm:$0xff] %v13929_v35 }
 0x417   : > { %3611 = vmatmul.bf16.gmra.mxu2 %v3183_v58  ;;  %v13962_v62 = vpop.f32.mrf.mxu0 }
 0x419   : > { %v13935_v59 = vpop.permute.xlu1 %11755 }
 0x41d   : > { %v13941_v54 = vpop.f32.mrf.mxu1 }
 0x41e   : > { %16828 = vst [vmem:[#allocation24_spill] sm:$0xff] %v13941_v54  ;;  %v11677_v54 = vunpack.i.l.bf16 %v11676_v21 }
 0x41f   : > { %3705 = vmatmul.bf16.gmra.mxu3 %v3188_v24  ;;  %v3187_v24 = vpack.c.bf16 %v3112_v37, %v3111_v43  ;;  %v3186_v43 = vpack.c.bf16 %v13543_v20, %v13537_v40 }
 0x420   : > { %10249 = vmatmul.msk.bf16.gmra.mxu1 %vm3071_vm5, %v3182_v5  ;;  %v3145_v34 = vsel %vm3071_vm5, %v16829_v44, %v11677_v54 }
 0x421   : > { %v11771_v16 = vpop.permute.xlu1 %11770 }
 0x422   : > { %v11773_v58 = vunpack.i.h.bf16 %v11771_v16  ;;  %v11772_v35 = vunpack.i.l.bf16 %v11771_v16  ;;  %v11678_v16 = vunpack.i.h.bf16 %v11676_v21  ;;  %v11686_v21 = vpop.permute.xlu2 %11685 }
 0x424   : > { %v3167_v1 = vsel %vm3071_vm5, %v13598_v39, %v11772_v35  ;;  %v3168_v14 = vsel %vm3071_vm5, %v13602_v60, %v11773_v58  ;;  %v3146_v57 = vsel %vm3071_vm5, %v16830_v13, %v11678_v16  ;;  %v11673_v35 = vunpack.i.h.bf16 %v11671_v56  ;;  %v16832_v16 = vld [vmem:[#allocation7_spill] sm:$0xff] }
 0x425   : > { %v13956_v31 = vpop.f32.mrf.mxu1  ;;  %v3229_v5 = vpack.c.bf16 %v3168_v14, %v3167_v1  ;;  %v3192_v60 = vpack.c.bf16 %v3146_v57, %v3145_v34  ;;  %v11672_v58 = vunpack.i.l.bf16 %v11671_v56  ;;  %v11687_v57 = vunpack.i.l.bf16 %v11686_v21 }
 0x426   : > { %v3114_v54 = vsel %vm3071_vm5, %v13543_v20, %v11673_v35  ;;  %v16835_v20 = vld [vmem:[#allocation20_spill] sm:$0xff]  ;;  %v11683_v35 = vunpack.i.h.bf16 %v13885_v47 }
 0x427   : > { %3616 = vmatmul.bf16.gmra.mxu2 %v3187_v24  ;;  %3844 = vmatmul.bf16.gmra.mxu0 %v3229_v5  ;;  %v3113_v37 = vsel %vm3071_vm5, %v13537_v40, %v11672_v58  ;;  %v11688_v24 = vunpack.i.h.bf16 %v11686_v21  ;;  %v13975_v5 = vpop.f32.mrf.mxu0  ;;  %v16834_v40 = vld [vmem:[#allocation16_spill] sm:$0xff]  ;;  %v11682_v58 = vunpack.i.l.bf16 %v13885_v47  ;;  %v11691_v47 = vpop.permute.xlu0 %11690 }
 0x428   : > { %v3191_v14 = vpack.c.bf16 %v3114_v54, %v3113_v37  ;;  %v3147_v44 = vsel %vm3071_vm5, %v16834_v40, %v11687_v57  ;;  %v3116_v54 = vsel %vm3071_vm5, %v13678_v22, %v11683_v35  ;;  %v11697_v57 = vunpack.i.l.bf16 %v13893_v8 }
 0x429   : > { %v3148_v34 = vsel %vm3071_vm5, %v16835_v20, %v11688_v24  ;;  %v3115_v37 = vsel %vm3071_vm5, %v13675_v19, %v11682_v58  ;;  %v11698_v24 = vunpack.i.h.bf16 %v13893_v8  ;;  %v3194_v35 = vpack.c.bf16 %v13648_v38, %v13645_v3 }
 0x42d   : > { %v13964_v39 = vpop.f32.mrf.mxu1 }
 0x42f   : > { %3710 = vmatmul.bf16.gmra.mxu3 %v3192_v60  ;;  %v3196_v60 = vpack.c.bf16 %v3148_v34, %v3147_v44  ;;  %v16839_v44 = vld [vmem:[#allocation26_spill] sm:$0xff] }
 0x430   : > { %10250 = vmatmul.msk.bf16.gmra.mxu1 %vm3071_vm5, %v3186_v43  ;;  %v3190_v43 = vpack.c.bf16 %v13678_v22, %v13675_v19  ;;  %v3150_v20 = vsel %vm3071_vm5, %v16839_v44, %v11698_v24  ;;  %v11692_v22 = vunpack.i.l.bf16 %v11691_v47 }
 0x432   : > { %v3117_v8 = vsel %vm3071_vm5, %v13645_v3, %v11692_v22 }
 0x435   : > { %v13973_v1 = vpop.f32.mrf.mxu1 }
 0x436   : > { %16831 = vst [vmem:[#allocation23_spill] sm:$0xff] %v13973_v1 }
 0x437   : > { %3621 = vmatmul.bf16.gmra.mxu2 %v3191_v14  ;;  %10246 = vmatmul.msk.bf16.gmra.mxu0 %vm10239_vm7, %v16832_v16  ;;  %v3195_v14 = vpack.c.bf16 %v3116_v54, %v3115_v37  ;;  %v16838_v16 = vld [vmem:[#allocation25_spill] sm:$0xff]  ;;  %vm10836_vm7 = vmpackc.low %vm15003_vm6, %vm11916_vm14 }
 0x438   : > { %v3149_v40 = vsel %vm3071_vm5, %v16838_v16, %v11697_v57  ;;  %v11701_v57 = vpop.permute.xlu2 %11700 }
 0x439   : > { %v3200_v19 = vpack.c.bf16 %v3150_v20, %v3149_v40  ;;  %v16843_v40 = vld [vmem:[#allocation28_spill] sm:$0xff]  ;;  %v11703_v22 = vunpack.i.h.bf16 %v11701_v57 }
 0x43d   : > { %v13987_v13 = vpop.f32.mrf.mxu1 }
 0x43e   : > { %16836 = vst [vmem:[#allocation3_spill] sm:$0xff] %v13987_v13 }
 0x43f   : > { %3715 = vmatmul.bf16.gmra.mxu3 %v3196_v60  ;;  %v11693_v60 = vunpack.i.h.bf16 %v11691_v47  ;;  %v16842_v47 = vld [vmem:[#allocation27_spill] sm:$0xff] }
 0x440   : > { %10251 = vmatmul.msk.bf16.gmra.mxu1 %vm3071_vm5, %v3190_v43  ;;  %v11706_v43 = vpop.permute.xlu0 %11705 }
 0x441   : > { %v3118_v58 = vsel %vm3071_vm5, %v13648_v38, %v11693_v60  ;;  %v11707_v24 = vunpack.i.l.bf16 %v11706_v43  ;;  %v11702_v38 = vunpack.i.l.bf16 %v11701_v57  ;;  %v3198_v60 = vpack.c.bf16 %v13618_v12, %v13615_v18 }
 0x442   : > { %v3199_v54 = vpack.c.bf16 %v3118_v58, %v3117_v8  ;;  %v3120_v8 = vsel %vm3071_vm5, %v13618_v12, %v11703_v22  ;;  %v11716_v58 = vpop.permute.xlu2 %11715  ;;  %v11713_v12 = vunpack.i.h.bf16 %v13904_v48  ;;  %v11712_v22 = vunpack.i.l.bf16 %v13904_v48 }
 0x443   : > { %v3151_v16 = vsel %vm3071_vm5, %v16842_v47, %v11707_v24  ;;  %v11717_v24 = vunpack.i.l.bf16 %v11716_v58 }
 0x445   : > { %v13998_v21 = vpop.f32.mrf.mxu1 }
 0x446   : > { %16837 = vst [vmem:[#allocation13_spill] sm:$0xff] %v13998_v21 }
 0x447   : > { %3626 = vmatmul.bf16.gmra.mxu2 %v3195_v14  ;;  %v11708_v14 = vunpack.i.h.bf16 %v11706_v43 }
 0x449   : > { %v3152_v44 = vsel %vm3071_vm5, %v16843_v40, %v11708_v14  ;;  %v11718_v14 = vunpack.i.h.bf16 %v11716_v58  ;;  %v3121_v58 = vsel %vm3071_vm5, %v13734_v33, %v11712_v22 }
 0x44a   : > { %v3204_v3 = vpack.c.bf16 %v3152_v44, %v3151_v16  ;;  %v16846_v16 = vld [vmem:[#allocation29_spill] sm:$0xff]  ;;  %v16847_v44 = vld [vmem:[#allocation30_spill] sm:$0xff] }
 0x44b   : > { %v3153_v40 = vsel %vm3071_vm5, %v16846_v16, %v11717_v24  ;;  %v11728_v16 = vunpack.i.h.bf16 %v13912_v51 }
 0x44d   : > { %v14006_v34 = vpop.f32.mrf.mxu1 }
 0x44e   : > { %16840 = vst [vmem:[#allocation7_spill] sm:$0xff] %v14006_v34 }
 0x44f   : > { %3720 = vmatmul.bf16.gmra.mxu3 %v3200_v19 }
 0x450   : > { %10252 = vmatmul.msk.bf16.gmra.mxu1 %vm3071_vm5, %v3194_v35  ;;  %v3119_v35 = vsel %vm3071_vm5, %v13615_v18, %v11702_v38  ;;  %v3202_v38 = vpack.c.bf16 %v13737_v30, %v13734_v33  ;;  %v11721_v33 = vpop.permute.xlu0 %11720 }
 0x453   : > { %v3686_v20 = vpop.f32.mrf.mxu3 }
 0x455   : > { %v14015_v37 = vpop.f32.mrf.mxu1 }
 0x456   : > { %16841 = vst [vmem:[#allocation8_spill] sm:$0xff] %v14015_v37 }
 0x457   : > { %3631 = vmatmul.bf16.gmra.mxu2 %v3199_v54  ;;  %v3203_v54 = vpack.c.bf16 %v3120_v8, %v3119_v35 }
 0x45a   : > { %v3597_v57 = vpop.f32.mrf.mxu2 }
 0x45b   : > { %v3688_v47 = vpop.f32.mrf.mxu3 }
 0x45d   : > { %v14021_v19 = vpop.f32.mrf.mxu1 }
 0x45e   : > { %16844 = vst [vmem:[#allocation16_spill] sm:$0xff] %v14021_v19  ;;  %v11722_v19 = vunpack.i.l.bf16 %v11721_v33 }
 0x45f   : > { %3725 = vmatmul.bf16.gmra.mxu3 %v3204_v3  ;;  %v3154_v3 = vsel %vm3071_vm5, %v16847_v44, %v11718_v14  ;;  %v14050_v14 = vld [vmem:[%s16625_s4] ss:$0 sm:$0xff] }
 0x460   : > { %10253 = vmatmul.msk.bf16.gmra.mxu1 %vm3071_vm5, %v3198_v60  ;;  %v3208_v18 = vpack.c.bf16 %v3154_v3, %v3153_v40  ;;  %v11727_v40 = vunpack.i.l.bf16 %v13912_v51  ;;  %v3509_v44 = vadd.f32 %v14050_v14, %v13570_v53  ;;  %v11723_v51 = vunpack.i.h.bf16 %v11721_v33 }
 0x461   : > { %v3206_v53 = vpack.c.bf16 %v13707_v49, %v13704_v7 }
 0x462   : > { %v3599_v8 = vpop.f32.mrf.mxu2  ;;  %v3598_v3 = vadd.f32 %v3597_v57, %v3509_v44  ;;  %v3511_v57 = vadd.f32 %v14050_v14, %v13622_v17  ;;  %v3124_v44 = vsel %vm3071_vm5, %v13707_v49, %v11723_v51  ;;  %v3516_v49 = vadd.f32 %v14050_v14, %v13686_v11  ;;  %v16853_v51 = vld [vmem:[#allocation34_spill] sm:$0xff] }
 0x463   : > { %v3691_v35 = vpop.f32.mrf.mxu3 }
 0x464   : > { %v3600_v33 = vadd.f32 %v3599_v8, %v3511_v57  ;;  %v16852_v8 = vld [vmem:[#allocation33_spill] sm:$0xff] }
 0x465   : > { %v14030_v43 = vpop.f32.mrf.mxu1 }
 0x466   : > { %16845 = vst [vmem:[#allocation20_spill] sm:$0xff] %v14030_v43  ;;  %v3689_v37 = vadd.f32 %v3688_v47, %v3600_v33  ;;  %v16855_v33 = vld [vmem:[#allocation36_spill] sm:$0xff] }
 0x467   : > { %3636 = vmatmul.bf16.gmra.mxu2 %v3203_v54  ;;  %v3122_v54 = vsel %vm3071_vm5, %v13737_v30, %v11713_v12  ;;  %v16850_v12 = vld [vmem:[#allocation31_spill] sm:$0xff] }
 0x468   : > { %v3207_v24 = vpack.c.bf16 %v3122_v54, %v3121_v58  ;;  %v3155_v22 = vsel %vm3071_vm5, %v16850_v12, %v11727_v40  ;;  %v11731_v58 = vpop.permute.xlu2 %11730  ;;  %v3687_v54 = vadd.f32 %v3686_v20, %v3598_v3 }
 0x46d   : > { %v14036_v60 = vpop.f32.mrf.mxu1 }
 0x46e   : > { %16848 = vst [vmem:[#allocation25_spill] sm:$0xff] %v14036_v60 }
 0x46f   : > { %3730 = vmatmul.bf16.gmra.mxu3 %v3208_v18  ;;  %v14058_v18 = vpop.f32.mrf.mxu3 }
 0x470   : > { %10254 = vmatmul.msk.bf16.gmra.mxu1 %vm3071_vm5, %v3202_v38  ;;  %v16851_v38 = vld [vmem:[#allocation32_spill] sm:$0xff] }
 0x475   : > { %v14052_v48 = vpop.f32.mrf.mxu1 }
 0x476   : > { %16849 = vst [vmem:[#allocation26_spill] sm:$0xff] %v14052_v48  ;;  %v3156_v48 = vsel %vm3071_vm5, %v16851_v38, %v11728_v16  ;;  %v3514_v16 = vadd.f32 %v14050_v14, %v13650_v55  ;;  %v11733_v55 = vunpack.i.h.bf16 %v11731_v58 }
 0x477   : > { %3641 = vmatmul.bf16.gmra.mxu2 %v3207_v24  ;;  %v3212_v43 = vpack.c.bf16 %v3156_v48, %v3155_v22  ;;  %v3776_v24 = vadd.f32 %v13851_v52, %v3687_v54  ;;  %v3123_v48 = vsel %vm3071_vm5, %v13704_v7, %v11722_v19  ;;  %v11746_v22 = vpop.permute.xlu2 %11745  ;;  %v11732_v52 = vunpack.i.l.bf16 %v11731_v58 }
 0x478   : > { %v3211_v38 = vpack.c.bf16 %v3124_v44, %v3123_v48  ;;  %v11748_v21 = vunpack.i.h.bf16 %v11746_v22  ;;  %v11747_v13 = vunpack.i.l.bf16 %v11746_v22  ;;  %v3126_v11 = vsel %vm3071_vm5, %v13684_v25, %v11733_v55  ;;  %v16854_v44 = vld [vmem:[#allocation35_spill] sm:$0xff] }
 0x479   : > { %v3125_v47 = vsel %vm3071_vm5, %v13681_v45, %v11732_v52 }
 0x47a   : > { %v3602_v30 = vpop.f32.mrf.mxu2 }
 0x47b   : > { %v3603_v12 = vadd.f32 %v3602_v30, %v3514_v16  ;;  %v11742_v16 = vunpack.i.l.bf16 %v13923_v26 }
 0x47d   : > { %v3864_v60 = vpop.f32.mrf.mxu1  ;;  %v3692_v7 = vadd.f32 %v3691_v35, %v3603_v12  ;;  %v3778_v35 = vadd.f32 %v13863_v28, %v3689_v37  ;;  %v3519_v37 = vadd.f32 %v14050_v14, %v13710_v23 }
 0x47e   : > { %v3865_v3 = vadd.f32 %v3864_v60, %v3776_v24 }
 0x47f   : > { %3735 = vmatmul.bf16.gmra.mxu3 %v3212_v43  ;;  %v11736_v43 = vpop.permute.xlu0 %11735  ;;  %v3781_v48 = vadd.f32 %v13873_v10, %v3692_v7  ;;  %v3210_v10 = vpack.c.bf16 %v13684_v25, %v13681_v45 }
 0x480   : > { %10255 = vmatmul.msk.bf16.gmra.mxu1 %vm3071_vm5, %v3206_v53  ;;  %v11738_v54 = vunpack.i.h.bf16 %v11736_v43  ;;  %v11737_v53 = vunpack.i.l.bf16 %v11736_v43  ;;  %v3944_v34 = vmax.f32 %v3865_v3, 0.0  ;;  %v14097_v43 = vsel %vm3071_vm5, %v16854_v44, %v11747_v13 }
 0x481   : > { %v14101_v3 = vsel %vm3071_vm5, %v16855_v33, %v11748_v21  ;;  %v11743_v21 = vunpack.i.h.bf16 %v13923_v26  ;;  %v14124_v26 = vsel %vm3071_vm5, %v13796_v41, %v11742_v16 }
 0x482   : > { %v3604_v40 = vpop.f32.mrf.mxu2  ;;  %v14072_v20 = vpop.f32.mrf.mxu3  ;;  %v3157_v30 = vsel %vm3071_vm5, %v16852_v8, %v11737_v53  ;;  %v3158_v57 = vsel %vm3071_vm5, %v16853_v51, %v11738_v54  ;;  %v4008_v58 = vrot.slane %v3944_v34, 2  ;;  %v4009_v24 = vrot.slane %v3944_v34, 4 }
 0x483   : > { %v4010_v12 = vrot.slane %v3944_v34, 6  ;;  %v3605_v22 = vadd.f32 %v3604_v40, %v3516_v49  ;;  %v3216_v28 = vpack.c.bf16 %v3158_v57, %v3157_v30  ;;  %v14109_v53 = vpop.f32.mrf.mxu0  ;;  %v10263_v55 = vrot.slane %v3944_v34, 9 }
 0x484   : > { %v10264_v7 = vrot.slane %v4008_v58, 9  ;;  %v10265_v40 = vrot.slane %v4009_v24, 9  ;;  %v3215_v49 = vpack.c.bf16 %v3126_v11, %v3125_v47 }
 0x485   : > { %v3866_v17 = vpop.f32.mrf.mxu1  ;;  %v10266_v25 = vrot.slane %v4010_v12, 9  ;;  %v3694_v8 = vadd.f32 %v14058_v18, %v3605_v22  ;;  %v4392_v47 = vmax.f32 %v3944_v34, %v10263_v55  ;;  %v14132_v18 = vsel %vm3071_vm5, %v13799_v0, %v11743_v21 }
 0x486   : > { %v4393_v11 = vmax.f32 %v4008_v58, %v10264_v7  ;;  %v4394_v33 = vmax.f32 %v4009_v24, %v10265_v40 }
 0x487   : > { %3646 = vmatmul.bf16.gmra.mxu2 %v3211_v38  ;;  %v3867_v38 = vadd.f32 %v3866_v17, %v3778_v35  ;;  %v14114_v17 = vadd.f32 %v14050_v14, %v13745_v15  ;;  %v3783_v13 = vadd.f32 %v13883_v63, %v3694_v8 }
 0x489   : > { %v14120_v30 = vmax.f32 %v3867_v38, 0.0 }
 0x48a   : > { %v14080_v19 = vpop.f32.mrf.mxu2  ;;  %v14082_v60 = vpop.f32.mrf.mxu3 }
 0x48b   : > { %v10267_v55 = vrot.slane %v14120_v30, 9  ;;  %v4013_v7 = vrot.slane %v14120_v30, 6 }
 0x48d   : > { %v3869_v52 = vpop.f32.mrf.mxu1 }
 0x48e   : > { %v3870_v54 = vadd.f32 %v3869_v52, %v3781_v48 }
 0x48f   : > { %3740 = vmatmul.bf16.gmra.mxu3 %v3216_v28  ;;  %v4395_v28 = vmax.f32 %v4010_v12, %v10266_v25  ;;  %v3608_v12 = vadd.f32 %v14080_v19, %v3519_v37 }
 0x490   : > { %v3946_v23 = vmax.f32 %v3870_v54, 0.0  ;;  %10256 = vmatmul.msk.bf16.gmra.mxu1 %vm3071_vm5, %v3210_v10  ;;  %v4011_v54 = vrot.slane %v14120_v30, 2  ;;  %v4012_v10 = vrot.slane %v14120_v30, 4 }
 0x491   : > { %v3697_v37 = vadd.f32 %v14072_v20, %v3608_v12 }
 0x492   : > { %v4014_v51 = vrot.slane %v3946_v23, 2  ;;  %v4015_v57 = vrot.slane %v3946_v23, 4  ;;  %v4016_v15 = vrot.slane %v3946_v23, 6  ;;  %v10327_v35 = vrot.slane %v3946_v23, 9  ;;  %v14126_v48 = vpop.f32.mrf.mxu2  ;;  %v14128_v44 = vpop.f32.mrf.mxu3 }
 0x493   : > { %v10268_v63 = vrot.slane %v4011_v54, 9 }
 0x494   : > { %v10328_v22 = vrot.slane %v4014_v51, 9  ;;  %v10329_v38 = vrot.slane %v4015_v57, 9  ;;  %v10330_v52 = vrot.slane %v4016_v15, 9  ;;  %v4648_v16 = vmax.f32 %v3946_v23, %v10327_v35  ;;  %v14140_v35 = vpop.f32.mrf.mxu0 }
 0x495   : > { %v3871_v45 = vpop.f32.mrf.mxu1 }
 0x496   : > { %v4649_v1 = vmax.f32 %v4014_v51, %v10328_v22  ;;  %v4650_v34 = vmax.f32 %v4015_v57, %v10329_v38  ;;  %v4651_v58 = vmax.f32 %v4016_v15, %v10330_v52  ;;  %v4712_v24 = vmax.f32 %v4392_v47, %v4648_v16 }
 0x497   : > { %v3872_v21 = vadd.f32 %v3871_v45, %v3783_v13  ;;  %3651 = vmatmul.bf16.gmra.mxu2 %v3215_v49  ;;  %v10269_v51 = vrot.slane %v4012_v10, 9  ;;  %v4396_v49 = vmax.f32 %v14120_v30, %v10267_v55  ;;  %v10270_v38 = vrot.slane %v4013_v7, 9 }
 0x498   : > { %v4713_v40 = vmax.f32 %v4393_v11, %v4649_v1  ;;  %v4714_v23 = vmax.f32 %v4394_v33, %v4650_v34  ;;  %v4715_v25 = vmax.f32 %v4395_v28, %v4651_v58  ;;  %v4913_v57 = vperm.slane %v4712_v24, 0  ;;  %v11336_v24 = vld [vmem:[%s16626_s5 + $0x38] sm:$0xff] }
 0x499   : > { %v3947_v8 = vmax.f32 %v3872_v21, 0.0  ;;  %v4397_v21 = vmax.f32 %v4011_v54, %v10268_v63  ;;  %v4398_v30 = vmax.f32 %v4012_v10, %v10269_v51  ;;  %v4399_v54 = vmax.f32 %v4013_v7, %v10270_v38  ;;  %5487 = vmatpush.bf16.msra.mxu2 %v11336_v24 }
 0x49a   : > { %v4914_v15 = vperm.slane %v4713_v40, 0  ;;  %v4915_v47 = vperm.slane %v4714_v23, 0  ;;  %v3612_v22 = vpop.f32.mrf.mxu2  ;;  %v14142_v13 = vpop.f32.mrf.mxu3  ;;  %v4916_v52 = vperm.slane %v4715_v25, 0  ;;  %v16856_v25 = vpack.c.bf16 %v14101_v3, %v14097_v43 }
 0x49b   : > { %v4017_v45 = vrot.slane %v3947_v8, 2  ;;  %v4018_v19 = vrot.slane %v3947_v8, 4  ;;  %v10331_v1 = vrot.slane %v3947_v8, 9  ;;  %v4019_v33 = vrot.slane %v3947_v8, 6  ;;  %v11751_v23 = vpop.permute.xlu0 %11750 }
 0x49c   : > { %v4978_v11 = vsel %vm4977_vm8, %v4914_v15, %v4913_v57  ;;  %v3786_v15 = vadd.f32 %v13933_v27, %v3697_v37  ;;  %v3610_v63 = vadd.f32 %v14126_v48, %v14114_v17  ;;  %v3524_v43 = vadd.f32 %v14050_v14, %v13778_v2 }
 0x49d   : > { %v10332_v16 = vrot.slane %v4017_v45, 9  ;;  %v10333_v28 = vrot.slane %v4018_v19, 9  ;;  %v4652_v34 = vmax.f32 %v3947_v8, %v10331_v1  ;;  %v3874_v58 = vpop.f32.mrf.mxu1  ;;  %v10334_v55 = vrot.slane %v4019_v33, 9 }
 0x49e   : > { %v4980_v40 = vsel %vm4979_vm9, %v4915_v47, %v4978_v11  ;;  %v16857_v1 = vpack.c.bf16 %v13799_v0, %v13796_v41  ;;  %v3875_v3 = vadd.f32 %v3874_v58, %v3786_v15  ;;  %v14166_v41 = vpop.f32.mrf.mxu0  ;;  %v11758_v0 = vunpack.i.h.bf16 %v13935_v59  ;;  %v16859_v58 = vld [vmem:[#allocation38_spill] sm:$0xff] }
 0x49f   : > { %v4653_v20 = vmax.f32 %v4017_v45, %v10332_v16  ;;  %v4654_v12 = vmax.f32 %v4018_v19, %v10333_v28  ;;  %v4716_v57 = vmax.f32 %v4396_v49, %v4652_v34  ;;  %3745 = vmatmul.bf16.gmra.mxu3 %v16856_v25  ;;  %v4982_v8 = vsel %vm4981_vm10, %v4916_v52, %v4980_v40  ;;  %v16858_v34 = vld [vmem:[#allocation37_spill] sm:$0xff] }
 0x4a0   : > { %10257 = vmatmul.msk.bf16.gmra.mxu1 %vm3071_vm5, %v16857_v1  ;;  %v4655_v10 = vmax.f32 %v4019_v33, %v10334_v55  ;;  %v11757_v7 = vunpack.i.l.bf16 %v13935_v59  ;;  %v3613_v17 = vadd.f32 %v3612_v22, %v3524_v43  ;;  %v3219_v48 = vpack.c.bf16 %v14132_v18, %v14124_v26 }
 0x4a1   : > { %v4917_v51 = vperm.slane %v4716_v57, 0  ;;  %v4717_v47 = vmax.f32 %v4397_v21, %v4653_v20  ;;  %v4718_v49 = vmax.f32 %v4398_v30, %v4654_v12  ;;  %v3699_v2 = vadd.f32 %v14082_v60, %v3610_v63 }
 0x4a2   : > { %v3614_v45 = vpop.f32.mrf.mxu2  ;;  %v14164_v27 = vpop.f32.mrf.mxu3  ;;  %v4719_v19 = vmax.f32 %v4399_v54, %v4655_v10  ;;  %v3948_v16 = vmax.f32 %v3875_v3, 0.0  ;;  %v11753_v28 = vunpack.i.h.bf16 %v11751_v23  ;;  %v3161_v22 = vsel %vm3071_vm5, %v16858_v34, %v11757_v7 }
 0x4a3   : > { %v4918_v37 = vperm.slane %v4717_v47, 0  ;;  %v4919_v11 = vperm.slane %v4718_v49, 0  ;;  %v4984_v52 = vsel %vm4983_vm11, %v4917_v51, %v4982_v8  ;;  %v3162_v26 = vsel %vm3071_vm5, %v16859_v58, %v11758_v0  ;;  %v11766_v30 = vpop.permute.xlu0 %11765 }
 0x4a4   : > { %v4920_v38 = vperm.slane %v4719_v19, 0  ;;  %v11752_v18 = vunpack.i.l.bf16 %v11751_v23  ;;  %v3702_v24 = vadd.f32 %v14128_v44, %v3613_v17  ;;  %v3788_v55 = vadd.f32 %v13950_v9, %v3699_v2 }
 0x4a5   : > { %v3876_v33 = vpop.f32.mrf.mxu1  ;;  %v4986_v59 = vsel %vm4985_vm12, %v4918_v37, %v4984_v52  ;;  %v3526_v20 = vadd.f32 %v14050_v14, %v13801_v50  ;;  %v4020_v12 = vrot.slane %v3948_v16, 2  ;;  %v4021_v57 = vrot.slane %v3948_v16, 4  ;;  %v16860_v52 = vld [vmem:[#allocation9_spill] sm:$0xff] }
 0x4a6   : > { %v4988_v60 = vsel %vm4987_vm13, %v4919_v11, %v4986_v59  ;;  %v14182_v21 = vsel %vm570_vm0, %v4920_v38, 0.0  ;;  %v3224_v44 = vpack.c.bf16 %v3162_v26, %v3161_v22  ;;  %v4022_v8 = vrot.slane %v3948_v16, 6  ;;  %v14199_v51 = vpop.f32.mrf.mxu0  ;;  %v16861_v59 = vld [vmem:[#allocation10_spill] sm:$0xff] }
 0x4a7   : > { %3656 = vmatmul.bf16.gmra.mxu2 %v3219_v48  ;;  %v14186_v40 = vsel %vm570_vm0, 0.0, %v4988_v60  ;;  %v3877_v15 = vadd.f32 %v3876_v33, %v3788_v55  ;;  %v5078_v54 = vrot.slane %v14182_v21, 1  ;;  %v11768_v10 = vunpack.i.h.bf16 %v11766_v30 }
 0x4a8   : > { %v5077_v1 = vrot.slane %v14186_v40, 1  ;;  %v3791_v9 = vadd.f32 %v13962_v62, %v3702_v24  ;;  %v3129_v63 = vsel %vm3071_vm5, %v13769_v36, %v11752_v18  ;;  %v3130_v50 = vsel %vm3071_vm5, %v13772_v4, %v11753_v28 }
 0x4a9   : > { %v11767_v47 = vunpack.i.l.bf16 %v11766_v30  ;;  %v10271_v49 = vrot.slane %v3948_v16, 9  ;;  %v3615_v43 = vadd.f32 %v3614_v45, %v3526_v20  ;;  %v3218_v62 = vpack.c.bf16 %v13772_v4, %v13769_v36  ;;  %v14233_v30 = vpop.permute.xlu2 %11760 }
 0x4aa   : > { %v3617_v25 = vpop.f32.mrf.mxu2  ;;  %v14190_v23 = vpop.f32.mrf.mxu3  ;;  %v14202_v3 = vsel %vm746_vm3, %v5077_v1, %v5078_v54  ;;  %v3222_v19 = vpack.c.bf16 %v13743_v46, %v13740_v61  ;;  %v10272_v37 = vrot.slane %v4020_v12, 9  ;;  %v10273_v17 = vrot.slane %v4021_v57, 9 }
 0x4ab   : > { %5098 = vrot.lane.b32.xlu1 %v14202_v3, %s11915_s21  ;;  %v10274_v48 = vrot.slane %v4022_v8, 9  ;;  %v14210_v11 = vmax.f32 %v3877_v15, 0.0  ;;  %v3529_v45 = vadd.f32 %v14050_v14, %v13812_v6  ;;  %v14216_v2 = vadd.f32 %v14050_v14, %v13833_v32 }
 0x4ac   : > { %v3223_v36 = vpack.c.bf16 %v3130_v50, %v3129_v63  ;;  %v4400_v4 = vmax.f32 %v3948_v16, %v10271_v49  ;;  %v3704_v38 = vadd.f32 %v14142_v13, %v3615_v43  ;;  %v14222_v28 = vsel %vm3071_vm5, %v16860_v52, %v11767_v47 }
 0x4ad   : > { %v3879_v0 = vpop.f32.mrf.mxu1  ;;  %v14226_v34 = vsel %vm3071_vm5, %v16861_v59, %v11768_v10  ;;  %v4401_v24 = vmax.f32 %v4020_v12, %v10272_v37  ;;  %v4402_v16 = vmax.f32 %v4021_v57, %v10273_v17  ;;  %v4403_v60 = vmax.f32 %v4022_v8, %v10274_v48 }
 0x4ae   : > { %v3880_v7 = vadd.f32 %v3879_v0, %v3791_v9  ;;  %v4023_v13 = vrot.slane %v14210_v11, 2  ;;  %v4024_v1 = vrot.slane %v14210_v11, 4  ;;  %v4025_v54 = vrot.slane %v14210_v11, 6  ;;  %v14239_v47 = vpop.f32.mrf.mxu0 }
 0x4af   : > { %3750 = vmatmul.bf16.gmra.mxu3 %v3224_v44  ;;  %v10275_v10 = vrot.slane %v14210_v11, 9  ;;  %v3793_v9 = vadd.f32 %v13975_v5, %v3704_v38  ;;  %v11763_v49 = vunpack.i.h.bf16 %v14233_v30  ;;  %v11762_v43 = vunpack.i.l.bf16 %v14233_v30 }
 0x4b0   : > { %v3950_v33 = vmax.f32 %v3880_v7, 0.0  ;;  %10258 = vmatmul.msk.bf16.gmra.mxu1 %vm3071_vm5, %v3218_v62  ;;  %v3618_v0 = vadd.f32 %v3617_v25, %v3529_v45  ;;  %v10276_v62 = vrot.slane %v4023_v13, 9  ;;  %v10278_v5 = vrot.slane %v4025_v54, 9 }
 0x4b1   : > { %v3228_v52 = vpack.c.bf16 %v14226_v34, %v14222_v28 }
 0x4b2   : > { %v4026_v6 = vrot.slane %v3950_v33, 2  ;;  %v4027_v22 = vrot.slane %v3950_v33, 4  ;;  %v4028_v58 = vrot.slane %v3950_v33, 6  ;;  %v10335_v32 = vrot.slane %v3950_v33, 9  ;;  %v14228_v26 = vpop.f32.mrf.mxu2  ;;  %v14230_v18 = vpop.f32.mrf.mxu3 }
 0x4b4   : > { %v10336_v55 = vrot.slane %v4026_v6, 9  ;;  %v10337_v20 = vrot.slane %v4027_v22, 9  ;;  %v10338_v44 = vrot.slane %v4028_v58, 9  ;;  %v4656_v15 = vmax.f32 %v3950_v33, %v10335_v32 }
 0x4b5   : > { %v3881_v63 = vpop.f32.mrf.mxu1  ;;  %v10277_v33 = vrot.slane %v4024_v1, 9 }
 0x4b6   : > { %v4657_v12 = vmax.f32 %v4026_v6, %v10336_v55  ;;  %v4658_v57 = vmax.f32 %v4027_v22, %v10337_v20  ;;  %v4659_v8 = vmax.f32 %v4028_v58, %v10338_v44  ;;  %v4720_v50 = vmax.f32 %v4400_v4, %v4656_v15  ;;  %v11335_v15 = vld [vmem:[%s16626_s5 + $0x30] sm:$0xff] }
 0x4b7   : > { %v3882_v7 = vadd.f32 %v3881_v63, %v3793_v9  ;;  %3661 = vmatmul.bf16.gmra.mxu2 %v3223_v36  ;;  %v4404_v4 = vmax.f32 %v14210_v11, %v10275_v10  ;;  %v4406_v10 = vmax.f32 %v4024_v1, %v10277_v33  ;;  %v14254_v63 = vmax.f32 %v4025_v54, %v10278_v5  ;;  %v14264_v1 = vpop.f32.mrf.mxu0  ;;  %v11781_v5 = vpop.permute.xlu0 %11780 }
 0x4b8   : > { %v4721_v37 = vmax.f32 %v4401_v24, %v4657_v12  ;;  %v4722_v17 = vmax.f32 %v4402_v16, %v4658_v57  ;;  %v4723_v48 = vmax.f32 %v4403_v60, %v4659_v8  ;;  %v4921_v59 = vperm.slane %v4720_v50, 0  ;;  %5488 = vmatpush.bf16.msra.mxu2 %v11335_v15 }
 0x4b9   : > { %v3951_v38 = vmax.f32 %v3882_v7, 0.0  ;;  %v4405_v16 = vmax.f32 %v4023_v13, %v10276_v62  ;;  %v3707_v60 = vadd.f32 %v14164_v27, %v3618_v0  ;;  %v3620_v54 = vadd.f32 %v14228_v26, %v14216_v2 }
 0x4ba   : > { %v4922_v6 = vperm.slane %v4721_v37, 0  ;;  %v4923_v22 = vperm.slane %v4722_v17, 0  ;;  %v3622_v58 = vpop.f32.mrf.mxu2  ;;  %v14246_v32 = vpop.f32.mrf.mxu3  ;;  %v4924_v30 = vperm.slane %v4723_v48, 0  ;;  %v3534_v37 = vadd.f32 %v14050_v14, %v13838_v29 }
 0x4bb   : > { %v4029_v25 = vrot.slane %v3951_v38, 2  ;;  %v4030_v45 = vrot.slane %v3951_v38, 4  ;;  %v4031_v36 = vrot.slane %v3951_v38, 6  ;;  %v10339_v24 = vrot.slane %v3951_v38, 9 }
 0x4bc   : > { %v4989_v55 = vsel %vm4977_vm8, %v4922_v6, %v4921_v59  ;;  %v3796_v50 = vadd.f32 %v14109_v53, %v3707_v60  ;;  %v3132_v33 = vsel %vm3071_vm5, %v13743_v46, %v11763_v49 }
 0x4bd   : > { %v4990_v28 = vsel %vm4979_vm9, %v4923_v22, %v4989_v55  ;;  %v10340_v34 = vrot.slane %v4029_v25, 9  ;;  %v10341_v11 = vrot.slane %v4030_v45, 9  ;;  %v10342_v20 = vrot.slane %v4031_v36, 9  ;;  %v3884_v44 = vpop.f32.mrf.mxu1 }
 0x4be   : > { %v4660_v9 = vmax.f32 %v3951_v38, %v10339_v24  ;;  %v4991_v13 = vsel %vm4981_vm10, %v4924_v30, %v4990_v28  ;;  %v3885_v26 = vadd.f32 %v3884_v44, %v3796_v50  ;;  %v3623_v38 = vadd.f32 %v3622_v58, %v3534_v37  ;;  %v16862_v30 = vld [vmem:[#allocation40_spill] sm:$0xff]  ;;  %v16863_v28 = vld [vmem:[#allocation41_spill] sm:$0xff] }
 0x4bf   : > { %v4661_v27 = vmax.f32 %v4029_v25, %v10340_v34  ;;  %v4662_v12 = vmax.f32 %v4030_v45, %v10341_v11  ;;  %3755 = vmatmul.bf16.gmra.mxu3 %v3228_v52  ;;  %v14257_v57 = vmax.f32 %v4031_v36, %v10342_v20  ;;  %v11783_v22 = vunpack.i.h.bf16 %v11781_v5  ;;  %v11776_v45 = vpop.permute.xlu2 %11775 }
 0x4c0   : > { %v4724_v8 = vmax.f32 %v4404_v4, %v4660_v9  ;;  %10259 = vmatmul.msk.bf16.gmra.mxu1 %vm3071_vm5, %v3222_v19  ;;  %v3131_v19 = vsel %vm3071_vm5, %v13740_v61, %v11762_v43  ;;  %v3709_v4 = vadd.f32 %v14190_v23, %v3620_v54  ;;  %v11782_v25 = vunpack.i.l.bf16 %v11781_v5 }
 0x4c1   : > { %v4725_v0 = vmax.f32 %v4405_v16, %v4661_v27  ;;  %v4726_v7 = vmax.f32 %v4406_v10, %v4662_v12  ;;  %v4727_v62 = vmax.f32 %v14254_v63, %v14257_v57  ;;  %v3227_v6 = vpack.c.bf16 %v3132_v33, %v3131_v19  ;;  %v16864_v12 = vld [vmem:[#allocation42_spill] sm:$0xff] }
 0x4c2   : > { %v4925_v17 = vperm.slane %v4724_v8, 0  ;;  %v3624_v53 = vpop.f32.mrf.mxu2  ;;  %v14272_v48 = vpop.f32.mrf.mxu3  ;;  %v3952_v36 = vmax.f32 %v3885_v26, 0.0  ;;  %v3712_v46 = vadd.f32 %v14230_v18, %v3623_v38  ;;  %v3536_v43 = vadd.f32 %v14050_v14, %v13857_v42  ;;  %v16865_v8 = vld [vmem:[#allocation43_spill] sm:$0xff] }
 0x4c3   : > { %v4926_v2 = vperm.slane %v4725_v0, 0  ;;  %v4927_v52 = vperm.slane %v4726_v7, 0  ;;  %v3798_v23 = vadd.f32 %v14140_v35, %v3709_v4  ;;  %v11778_v58 = vunpack.i.h.bf16 %v11776_v45  ;;  %v14294_v18 = vpop.f32.mrf.mxu0 }
 0x4c4   : > { %v4992_v29 = vsel %vm4983_vm11, %v4925_v17, %v4991_v13  ;;  %v11777_v24 = vunpack.i.l.bf16 %v11776_v45  ;;  %v3165_v55 = vsel %vm3071_vm5, %v16862_v30, %v11782_v25  ;;  %v3166_v34 = vsel %vm3071_vm5, %v16863_v28, %v11783_v22 }
 0x4c5   : > { %v3886_v59 = vpop.f32.mrf.mxu1  ;;  %v4993_v61 = vsel %vm4985_vm12, %v4926_v2, %v4992_v29  ;;  %v4032_v11 = vrot.slane %v3952_v36, 2  ;;  %v4033_v20 = vrot.slane %v3952_v36, 4  ;;  %v4034_v44 = vrot.slane %v3952_v36, 6 }
 0x4c6   : > { %v14283_v49 = vsel %vm4987_vm13, %v4927_v52, %v4993_v61  ;;  %v3887_v15 = vadd.f32 %v3886_v59, %v3798_v23  ;;  %v3801_v42 = vadd.f32 %v14166_v41, %v3712_v46  ;;  %v10279_v35 = vrot.slane %v3952_v36, 9 }
 0x4c7   : > { %3666 = vmatmul.bf16.gmra.mxu2 %v3227_v6  ;;  %v3625_v10 = vadd.f32 %v3624_v53, %v3536_v43  ;;  %v3232_v13 = vpack.c.bf16 %v3166_v34, %v3165_v55  ;;  %v3226_v50 = vpack.c.bf16 %v16865_v8, %v16864_v12  ;;  %v3133_v54 = vsel %vm3071_vm5, %v16864_v12, %v11777_v24  ;;  %v16866_v53 = vld [vmem:[#allocation14_spill] sm:$0xff] }
 0x4c8   : > { %v3134_v0 = vsel %vm3071_vm5, %v16865_v8, %v11778_v58  ;;  %v10280_v7 = vrot.slane %v4032_v11, 9  ;;  %v10281_v37 = vrot.slane %v4033_v20, 9  ;;  %v10282_v17 = vrot.slane %v4034_v44, 9 }
 0x4c9   : > { %v14303_v19 = vmax.f32 %v3887_v15, 0.0  ;;  %v3539_v33 = vadd.f32 %v14050_v14, %v16866_v53  ;;  %v4408_v5 = vmax.f32 %v3952_v36, %v10279_v35  ;;  %v3714_v2 = vadd.f32 %v14246_v32, %v3625_v10 }
 0x4ca   : > { %v3627_v16 = vpop.f32.mrf.mxu2  ;;  %v14288_v60 = vpop.f32.mrf.mxu3  ;;  %v3231_v26 = vpack.c.bf16 %v3134_v0, %v3133_v54  ;;  %v4409_v22 = vmax.f32 %v4032_v11, %v10280_v7  ;;  %v4410_v25 = vmax.f32 %v4033_v20, %v10281_v37  ;;  %v4411_v45 = vmax.f32 %v4034_v44, %v10282_v17 }
 0x4cb   : > { %v4035_v61 = vrot.slane %v14303_v19, 2  ;;  %v14314_v58 = vpop.f32.mrf.mxu0  ;;  %v4036_v32 = vrot.slane %v14303_v19, 4  ;;  %v4037_v24 = vrot.slane %v14303_v19, 6  ;;  %v10283_v30 = vrot.slane %v14303_v19, 9 }
 0x4cc   : > { %v3803_v55 = vadd.f32 %v14199_v51, %v3714_v2  ;;  %v3628_v15 = vadd.f32 %v3627_v16, %v3539_v33 }
 0x4cd   : > { %v3889_v9 = vpop.f32.mrf.mxu1  ;;  %v10284_v35 = vrot.slane %v4035_v61, 9  ;;  %v10286_v12 = vrot.slane %v4037_v24, 9 }
 0x4ce   : > { %v3890_v27 = vadd.f32 %v3889_v9, %v3801_v42 }
 0x4cf   : > { %3760 = vmatmul.bf16.gmra.mxu3 %v3232_v13  ;;  %v4413_v33 = vmax.f32 %v4035_v61, %v10284_v35  ;;  %v16871_v35 = vld [vmem:[#allocation11_spill] sm:$0xff] }
 0x4d0   : > { %v3954_v41 = vmax.f32 %v3890_v27, 0.0  ;;  %10260 = vmatmul.msk.bf16.gmra.mxu1 %vm3071_vm5, %v3226_v50  ;;  %v10285_v27 = vrot.slane %v4036_v32, 9  ;;  %v4412_v50 = vmax.f32 %v14303_v19, %v10283_v30 }
 0x4d2   : > { %v4038_v38 = vrot.slane %v3954_v41, 2  ;;  %v4039_v52 = vrot.slane %v3954_v41, 4  ;;  %v4040_v4 = vrot.slane %v3954_v41, 6  ;;  %v10343_v59 = vrot.slane %v3954_v41, 9  ;;  %v14309_v6 = vpop.f32.mrf.mxu2  ;;  %v14311_v29 = vpop.f32.mrf.mxu3 }
 0x4d4   : > { %v10344_v46 = vrot.slane %v4038_v38, 9  ;;  %v10345_v43 = vrot.slane %v4039_v52, 9  ;;  %v10346_v23 = vrot.slane %v4040_v4, 9  ;;  %v4664_v36 = vmax.f32 %v3954_v41, %v10343_v59 }
 0x4d5   : > { %v3891_v28 = vpop.f32.mrf.mxu1 }
 0x4d6   : > { %v4665_v34 = vmax.f32 %v4038_v38, %v10344_v46  ;;  %v4666_v11 = vmax.f32 %v4039_v52, %v10345_v43  ;;  %v4667_v20 = vmax.f32 %v4040_v4, %v10346_v23  ;;  %v4728_v44 = vmax.f32 %v4408_v5, %v4664_v36  ;;  %v14333_v43 = vpop.f32.mrf.mxu0 }
 0x4d7   : > { %v3892_v42 = vadd.f32 %v3891_v28, %v3803_v55  ;;  %3671 = vmatmul.bf16.gmra.mxu2 %v3231_v26  ;;  %v3717_v5 = vadd.f32 %v14272_v48, %v3628_v15  ;;  %v4415_v48 = vmax.f32 %v4037_v24, %v10286_v12  ;;  %v16867_v55 = vld [vmem:[#allocation19_spill] sm:$0xff] }
 0x4d8   : > { %v4729_v10 = vmax.f32 %v4409_v22, %v4665_v34  ;;  %v4730_v9 = vmax.f32 %v4410_v25, %v4666_v11  ;;  %v4731_v13 = vmax.f32 %v4411_v45, %v4667_v20  ;;  %v4929_v54 = vperm.slane %v4728_v44, 0  ;;  %v11344_v22 = vld [vmem:[%s16626_s5 + $0x78] sm:$0xff]  ;;  %v11334_v25 = vld [vmem:[%s16626_s5 + $0x28] sm:$0xff]  ;;  %v16868_v20 = vld [vmem:[#allocation39_spill] sm:$0xff] }
 0x4d9   : > { %v3955_v8 = vmax.f32 %v3892_v42, 0.0  ;;  %v4414_v45 = vmax.f32 %v4036_v32, %v10285_v27  ;;  %5516 = vmatpush.bf16.msra.mxu3 %v11344_v22  ;;  %5489 = vmatpush.bf16.msra.mxu2 %v11334_v25  ;;  %v3541_v28 = vadd.f32 %v14050_v14, %v16867_v55  ;;  %v3806_v11 = vadd.f32 %v14239_v47, %v3717_v5  ;;  %v16869_v44 = vld [vmem:[#allocation12_spill] sm:$0xff] }
 0x4da   : > { %v4930_v0 = vperm.slane %v4729_v10, 0  ;;  %v4931_v51 = vperm.slane %v4730_v9, 0  ;;  %v3632_v7 = vpop.f32.mrf.mxu2  ;;  %v14321_v37 = vpop.f32.mrf.mxu3  ;;  %v4932_v2 = vperm.slane %v4731_v13, 0  ;;  %v16870_v32 = vpack.c.bf16 %v16868_v20, %v16869_v44 }
 0x4db   : > { %v4041_v17 = vrot.slane %v3955_v8, 2  ;;  %v4042_v41 = vrot.slane %v3955_v8, 4  ;;  %v4043_v16 = vrot.slane %v3955_v8, 6  ;;  %v10347_v53 = vrot.slane %v3955_v8, 9 }
 0x4dc   : > { %v4995_v26 = vsel %vm4977_vm8, %v4930_v0, %v4929_v54  ;;  %v3544_v10 = vadd.f32 %v14050_v14, %v16871_v35  ;;  %v3630_v9 = vadd.f32 %v14309_v6, %v3541_v28  ;;  %v4928_v47 = vperm.slane %v4727_v62, 0 }
 0x4dd   : > { %v4996_v38 = vsel %vm4979_vm9, %v4931_v51, %v4995_v26  ;;  %v10348_v52 = vrot.slane %v4041_v17, 9  ;;  %v10349_v19 = vrot.slane %v4042_v41, 9  ;;  %v10350_v4 = vrot.slane %v4043_v16, 9  ;;  %v3894_v59 = vpop.f32.mrf.mxu1 }
 0x4de   : > { %v4668_v61 = vmax.f32 %v3955_v8, %v10347_v53  ;;  %v4997_v46 = vsel %vm4981_vm10, %v4932_v2, %v4996_v38  ;;  %v3895_v27 = vadd.f32 %v3894_v59, %v3806_v11  ;;  %v3633_v54 = vadd.f32 %v3632_v7, %v3544_v10  ;;  %v14365_v7 = vpop.f32.mrf.mxu0  ;;  %v16872_v2 = vld [vmem:[#allocation21_spill] sm:$0xff] }
 0x4df   : > { %v4669_v23 = vmax.f32 %v4041_v17, %v10348_v52  ;;  %v4670_v36 = vmax.f32 %v4042_v41, %v10349_v19  ;;  %v4671_v30 = vmax.f32 %v4043_v16, %v10350_v4  ;;  %v3719_v16 = vadd.f32 %v14288_v60, %v3630_v9 }
 0x4e0   : > { %v4732_v34 = vmax.f32 %v4412_v50, %v4668_v61  ;;  %10261 = vmatmul.msk.bf16.gmra.mxu1 %vm3071_vm5, %v16870_v32  ;;  %v3956_v53 = vmax.f32 %v3895_v27, 0.0  ;;  %v14354_v6 = vsel %vm570_vm0, 0.0, %v14283_v49  ;;  %v14358_v5 = vsel %vm570_vm0, %v4928_v47, 0.0  ;;  %v16873_v32 = vld [vmem:[#allocation6_spill] sm:$0xff] }
 0x4e1   : > { %v4733_v24 = vmax.f32 %v4413_v33, %v4669_v23  ;;  %v4734_v15 = vmax.f32 %v4414_v45, %v4670_v36  ;;  %v4735_v42 = vmax.f32 %v4415_v48, %v4671_v30  ;;  %v3722_v63 = vadd.f32 %v14311_v29, %v3633_v54 }
 0x4e2   : > { %v4933_v13 = vperm.slane %v4732_v34, 0  ;;  %v3634_v12 = vpop.f32.mrf.mxu2  ;;  %v14345_v8 = vpop.f32.mrf.mxu3  ;;  %v5080_v49 = vrot.slane %v14354_v6, 1  ;;  %v3546_v26 = vadd.f32 %v14050_v14, %v16872_v2  ;;  %v4044_v38 = vrot.slane %v3956_v53, 2 }
 0x4e3   : > { %v4934_v50 = vperm.slane %v4733_v24, 0  ;;  %v4935_v0 = vperm.slane %v4734_v15, 0  ;;  %v4936_v51 = vperm.slane %v4735_v42, 0  ;;  %v3808_v52 = vadd.f32 %v14264_v1, %v3719_v16  ;;  %v16874_v24 = vld [vmem:[#allocation17_spill] sm:$0xff] }
 0x4e4   : > { %v4998_v41 = vsel %vm4983_vm11, %v4933_v13, %v4997_v46  ;;  %v5081_v4 = vrot.slane %v14358_v5, 1  ;;  %v4045_v59 = vrot.slane %v3956_v53, 4  ;;  %v4046_v22 = vrot.slane %v3956_v53, 6 }
 0x4e5   : > { %v3896_v17 = vpop.f32.mrf.mxu1  ;;  %v4999_v33 = vsel %vm4985_vm12, %v4934_v50, %v4998_v41  ;;  %v14363_v62 = vsel %vm570_vm0, %v4936_v51, 0.0  ;;  %v3811_v61 = vadd.f32 %v14294_v18, %v3722_v63  ;;  %v3635_v48 = vadd.f32 %v3634_v12, %v3546_v26  ;;  %v11333_v18 = vld [vmem:[%s16626_s5 + $0x20] sm:$0xff] }
 0x4e6   : > { %v5000_v57 = vsel %vm4987_vm13, %v4935_v0, %v4999_v33  ;;  %v5084_v45 = vrot.slane %v14363_v62, 1  ;;  %v3897_v46 = vadd.f32 %v3896_v17, %v3808_v52  ;;  %v14381_v23 = vsel %vm746_vm3, %v5080_v49, %v5081_v4  ;;  %5490 = vmatpush.bf16.msra.mxu2 %v11333_v18  ;;  %v14408_v17 = vpop.f32.mrf.mxu0 }
 0x4e7   : > { %v14368_v60 = vsel %vm570_vm0, 0.0, %v5000_v57  ;;  %v10287_v28 = vrot.slane %v3956_v53, 9  ;;  %v10288_v34 = vrot.slane %v4044_v38, 9  ;;  %v10289_v11 = vrot.slane %v4045_v59, 9 }
 0x4e8   : > { %v5083_v25 = vrot.slane %v14368_v60, 1  ;;  %v10290_v20 = vrot.slane %v4046_v22, 9  ;;  %v3549_v15 = vadd.f32 %v14050_v14, %v16874_v24  ;;  %v3724_v42 = vadd.f32 %v14321_v37, %v3635_v48  ;;  %v11332_v37 = vld [vmem:[%s16626_s5 + $0x18] sm:$0xff] }
 0x4e9   : > { %v14397_v35 = vmax.f32 %v3897_v46, 0.0  ;;  %v11799_v10 = vpack.i.bf16 %v14354_v6, %v14186_v40  ;;  %v4416_v54 = vmax.f32 %v3956_v53, %v10287_v28  ;;  %v4417_v0 = vmax.f32 %v4044_v38, %v10288_v34 }
 0x4ea   : > { %v3637_v19 = vpop.f32.mrf.mxu2  ;;  %v14374_v29 = vpop.f32.mrf.mxu3  ;;  %v14384_v1 = vsel %vm746_vm3, %v5083_v25, %v5084_v45  ;;  %v4418_v51 = vmax.f32 %v4045_v59, %v10289_v11  ;;  %v4419_v14 = vmax.f32 %v4046_v22, %v10290_v20  ;;  %v3813_v53 = vadd.f32 %v14314_v58, %v3724_v42  ;;  %5491 = vmatpush.bf16.msra.mxu2 %v11332_v37  ;;  %v11331_v45 = vld [vmem:[%s16626_s5 + $0x10] sm:$0xff] }
 0x4eb   : > { %v11784_v30 = vpack.i.bf16 %v14384_v1, %v14381_v23  ;;  %v4047_v57 = vrot.slane %v14397_v35, 2  ;;  %v4048_v49 = vrot.slane %v14397_v35, 4  ;;  %v4049_v2 = vrot.slane %v14397_v35, 6  ;;  %v11343_v37 = vld [vmem:[%s16626_s5 + $0x70] sm:$0xff] }
 0x4ec   : > { %v10291_v22 = vrot.slane %v14397_v35, 9  ;;  %5517 = vmatpush.bf16.msra.mxu3 %v11343_v37 }
 0x4ed   : > { %v3899_v36 = vpop.f32.mrf.mxu1  ;;  %11785 = vrot.lane.b32.xlu2 %v11784_v30, %s11915_s21  ;;  %v10292_v58 = vrot.slane %v4047_v57, 9  ;;  %v10293_v30 = vrot.slane %v4048_v49, 9  ;;  %v10294_v28 = vrot.slane %v4049_v2, 9 }
 0x4ee   : > { %v3900_v55 = vadd.f32 %v3899_v36, %v3811_v61  ;;  %v3638_v61 = vadd.f32 %v3637_v19, %v3549_v15  ;;  %5492 = vmatpush.bf16.msra.mxu2 %v11331_v45  ;;  %v11330_v15 = vld [vmem:[%s16626_s5 + $0x8] sm:$0xff] }
 0x4f0   : > { %v3958_v44 = vmax.f32 %v3900_v55, 0.0  ;;  %10262 = vmatmul.msk.bf16.gmra.mxu1 %vm3071_vm5, %v16873_v32 }
 0x4f2   : > { %v4050_v9 = vrot.slane %v3958_v44, 2  ;;  %v4051_v13 = vrot.slane %v3958_v44, 4  ;;  %v4052_v27 = vrot.slane %v3958_v44, 6  ;;  %v10351_v12 = vrot.slane %v3958_v44, 9  ;;  %v14401_v50 = vpop.f32.mrf.mxu2  ;;  %v14403_v47 = vpop.f32.mrf.mxu3  ;;  %5493 = vmatpush.bf16.msra.mxu2 %v11330_v15 }
 0x4f4   : > { %v10352_v41 = vrot.slane %v4050_v9, 9  ;;  %v10353_v16 = vrot.slane %v4051_v13, 9  ;;  %v10354_v33 = vrot.slane %v4052_v27, 9  ;;  %v4672_v63 = vmax.f32 %v3958_v44, %v10351_v12 }
 0x4f5   : > { %v3901_v26 = vpop.f32.mrf.mxu1  ;;  %11800 = vrot.lane.b32.xlu2 %v11799_v10, %s11915_s21  ;;  %v4420_v10 = vmax.f32 %v14397_v35, %v10291_v22  ;;  %v4422_v35 = vmax.f32 %v4048_v49, %v10293_v30 }
 0x4f6   : > { %v4673_v38 = vmax.f32 %v4050_v9, %v10352_v41  ;;  %v4674_v52 = vmax.f32 %v4051_v13, %v10353_v16  ;;  %v4675_v4 = vmax.f32 %v4052_v27, %v10354_v33  ;;  %v4736_v59 = vmax.f32 %v4416_v54, %v4672_v63  ;;  %v14431_v41 = vpop.f32.mrf.mxu0 }
 0x4f7   : > { %v3902_v25 = vadd.f32 %v3901_v26, %v3813_v53  ;;  %v3727_v9 = vadd.f32 %v14345_v8, %v3638_v61  ;;  %v4421_v16 = vmax.f32 %v4047_v57, %v10292_v58  ;;  %v4423_v26 = vmax.f32 %v4049_v2, %v10294_v28  ;;  %v16876_v61 = vld [vmem:[#allocation22_spill] sm:$0xff] }
 0x4f8   : > { %v4737_v48 = vmax.f32 %v4417_v0, %v4673_v38  ;;  %v4738_v46 = vmax.f32 %v4418_v51, %v4674_v52  ;;  %v4739_v36 = vmax.f32 %v4419_v14, %v4675_v4  ;;  %v4937_v34 = vperm.slane %v4736_v59, 0  ;;  %v11329_v52 = vld [vmem:[%s16626_s5] sm:$0xff]  ;;  %v16875_v59 = vld [vmem:[#allocation15_spill] sm:$0xff] }
 0x4f9   : > { %v3959_v55 = vmax.f32 %v3902_v25, 0.0  ;;  %v14440_v4 = vld [vmem:[%s16625_s4] ss:$0 sm:$0xff]  ;;  %v3816_v22 = vadd.f32 %v14333_v43, %v3727_v9  ;;  %5494 = vmatpush.bf16.msra.mxu2 %v11329_v52 }
 0x4fa   : > { %v4938_v11 = vperm.slane %v4737_v48, 0  ;;  %v4939_v20 = vperm.slane %v4738_v46, 0  ;;  %v3642_v18 = vpop.f32.mrf.mxu2  ;;  %v14419_v44 = vpop.f32.mrf.mxu3  ;;  %v4940_v13 = vperm.slane %v4739_v36, 0  ;;  %v3551_v57 = vadd.f32 %v14440_v4, %v16875_v59 }
 0x4fb   : > { %v4053_v32 = vrot.slane %v3959_v55, 2  ;;  %v4054_v24 = vrot.slane %v3959_v55, 4  ;;  %v4055_v42 = vrot.slane %v3959_v55, 6  ;;  %v10355_v19 = vrot.slane %v3959_v55, 9 }
 0x4fc   : > { %v5001_v27 = vsel %vm4977_vm8, %v4938_v11, %v4937_v34  ;;  %v3554_v48 = vadd.f32 %v14440_v4, %v16876_v61  ;;  %v3640_v46 = vadd.f32 %v14401_v50, %v3551_v57 }
 0x4fd   : > { %v5002_v12 = vsel %vm4979_vm9, %v4939_v20, %v5001_v27  ;;  %v10356_v54 = vrot.slane %v4053_v32, 9  ;;  %v10357_v0 = vrot.slane %v4054_v24, 9  ;;  %v10358_v51 = vrot.slane %v4055_v42, 9  ;;  %v3904_v14 = vpop.f32.mrf.mxu1  ;;  %v16877_v27 = vld [vmem:[#allocation18_spill] sm:$0xff] }
 0x4fe   : > { %v4676_v33 = vmax.f32 %v3959_v55, %v10355_v19  ;;  %v5003_v8 = vsel %vm4981_vm10, %v4940_v13, %v5002_v12  ;;  %v3905_v58 = vadd.f32 %v3904_v14, %v3816_v22  ;;  %v3643_v11 = vadd.f32 %v3642_v18, %v3554_v48  ;;  %v14453_v15 = vpop.f32.mrf.mxu0  ;;  %v16878_v22 = vld [vmem:[#allocation24_spill] sm:$0xff] }
 0x4ff   : > { %v4677_v63 = vmax.f32 %v4053_v32, %v10356_v54  ;;  %v4678_v53 = vmax.f32 %v4054_v24, %v10357_v0  ;;  %v4679_v38 = vmax.f32 %v4055_v42, %v10358_v51  ;;  %v3729_v24 = vadd.f32 %v14374_v29, %v3640_v46 }
 0x500   : > { %v4740_v49 = vmax.f32 %v4420_v10, %v4676_v33  ;;  %v3960_v42 = vmax.f32 %v3905_v58, 0.0  ;;  %v3732_v50 = vadd.f32 %v14403_v47, %v3643_v11  ;;  %v5125_v13 = vrot.slane %v14368_v60, 2 }
 0x501   : > { %v4741_v25 = vmax.f32 %v4421_v16, %v4677_v63  ;;  %v4742_v45 = vmax.f32 %v4422_v35, %v4678_v53  ;;  %v4743_v2 = vmax.f32 %v4423_v26, %v4679_v38  ;;  %v3556_v29 = vadd.f32 %v14440_v4, %v16877_v27 }
 0x502   : > { %v4941_v36 = vperm.slane %v4740_v49, 0  ;;  %v3644_v30 = vpop.f32.mrf.mxu2  ;;  %v14448_v55 = vpop.f32.mrf.mxu3  ;;  %v4056_v12 = vrot.slane %v3960_v42, 2  ;;  %v3818_v54 = vadd.f32 %v14365_v7, %v3729_v24  ;;  %v5126_v51 = vrot.slane %v14363_v62, 2 }
 0x503   : > { %v4942_v28 = vperm.slane %v4741_v25, 0  ;;  %v4943_v34 = vperm.slane %v4742_v45, 0  ;;  %v4944_v20 = vperm.slane %v4743_v2, 0  ;;  %v4057_v47 = vrot.slane %v3960_v42, 4 }
 0x504   : > { %v5004_v43 = vsel %vm4983_vm11, %v4941_v36, %v5003_v8  ;;  %v4058_v14 = vrot.slane %v3960_v42, 6  ;;  %v3821_v33 = vadd.f32 %v14408_v17, %v3732_v50  ;;  %v3645_v8 = vadd.f32 %v3644_v30, %v3556_v29 }
 0x505   : > { %v3906_v32 = vpop.f32.mrf.mxu1  ;;  %v5005_v19 = vsel %vm4985_vm12, %v4942_v28, %v5004_v43  ;;  %v14458_v9 = vsel %vm570_vm0, %v4944_v20, 0.0  ;;  %v14474_v53 = vsel %vm1155_vm4, %v5125_v13, %v5126_v51  ;;  %v10295_v52 = vrot.slane %v3960_v42, 9 }
 0x506   : > { %v5006_v10 = vsel %vm4987_vm13, %v4943_v34, %v5005_v19  ;;  %v5129_v16 = vrot.slane %v14458_v9, 2  ;;  %v3907_v63 = vadd.f32 %v3906_v32, %v3818_v54  ;;  %v10296_v59 = vrot.slane %v4056_v12, 9  ;;  %v14485_v61 = vpop.f32.mrf.mxu0 }
 0x507   : > { %v14461_v18 = vsel %vm570_vm0, 0.0, %v5006_v10  ;;  %v10297_v57 = vrot.slane %v4057_v47, 9  ;;  %v10298_v49 = vrot.slane %v4058_v14, 9  ;;  %v3559_v25 = vadd.f32 %v14440_v4, %v16878_v22 }
 0x508   : > { %v5128_v37 = vrot.slane %v14461_v18, 2  ;;  %v3734_v45 = vadd.f32 %v14419_v44, %v3645_v8  ;;  %v3961_v2 = vmax.f32 %v3907_v63, 0.0  ;;  %v4424_v28 = vmax.f32 %v3960_v42, %v10295_v52 }
 0x509   : > { %v4425_v34 = vmax.f32 %v4056_v12, %v10296_v59  ;;  %v4426_v11 = vmax.f32 %v4057_v47, %v10297_v57  ;;  %v4427_v20 = vmax.f32 %v4058_v14, %v10298_v49  ;;  %v11342_v49 = vld [vmem:[%s16626_s5 + $0x68] sm:$0xff] }
 0x50a   : > { %v3647_v0 = vpop.f32.mrf.mxu2  ;;  %v14470_v35 = vpop.f32.mrf.mxu3  ;;  %v14477_v7 = vsel %vm1155_vm4, %v5128_v37, %v5129_v16  ;;  %v4059_v50 = vrot.slane %v3961_v2, 2  ;;  %v4060_v10 = vrot.slane %v3961_v2, 4  ;;  %v4061_v44 = vrot.slane %v3961_v2, 6  ;;  %5518 = vmatpush.bf16.msra.mxu3 %v11342_v49  ;;  %v11341_v49 = vld [vmem:[%s16626_s5 + $0x60] sm:$0xff] }
 0x50b   : > { %v11814_v62 = vpack.i.bf16 %v14477_v7, %v14474_v53  ;;  %v3823_v13 = vadd.f32 %v14431_v41, %v3734_v45  ;;  %v10299_v42 = vrot.slane %v3961_v2, 9  ;;  %v3648_v47 = vadd.f32 %v3647_v0, %v3559_v25 }
 0x50c   : > { %v10300_v63 = vrot.slane %v4059_v50, 9 }
 0x50d   : > { %v3909_v26 = vpop.f32.mrf.mxu1  ;;  %11815 = vrot.lane.b32.xlu2 %v11814_v62, %s11915_s21  ;;  %v4428_v25 = vmax.f32 %v3961_v2, %v10299_v42 }
 0x50e   : > { %v3910_v38 = vadd.f32 %v3909_v26, %v3821_v33  ;;  %v10301_v26 = vrot.slane %v4060_v10, 9  ;;  %v14495_v0 = vpop.f32.mrf.mxu0  ;;  %5519 = vmatpush.bf16.msra.mxu3 %v11341_v49 }
 0x510   : > { %v3962_v17 = vmax.f32 %v3910_v38, 0.0  ;;  %v10302_v38 = vrot.slane %v4061_v44, 9 }
 0x512   : > { %v4062_v48 = vrot.slane %v3962_v17, 2  ;;  %v4063_v46 = vrot.slane %v3962_v17, 4  ;;  %v4064_v36 = vrot.slane %v3962_v17, 6  ;;  %v10359_v58 = vrot.slane %v3962_v17, 9  ;;  %v14487_v30 = vpop.f32.mrf.mxu2  ;;  %v14490_v16 = vpop.f32.mrf.mxu3 }
 0x513   : > { %v4431_v2 = vmax.f32 %v4061_v44, %v10302_v38  ;;  %v3564_v44 = vadd.f32 %v14440_v4, %v13964_v39 }
 0x514   : > { %v10360_v32 = vrot.slane %v4062_v48, 9  ;;  %v10361_v43 = vrot.slane %v4063_v46, 9  ;;  %v10362_v24 = vrot.slane %v4064_v36, 9  ;;  %v4680_v19 = vmax.f32 %v3962_v17, %v10359_v58 }
 0x515   : > { %v3911_v27 = vpop.f32.mrf.mxu1 }
 0x516   : > { %v4681_v29 = vmax.f32 %v4062_v48, %v10360_v32  ;;  %v4682_v54 = vmax.f32 %v4063_v46, %v10361_v43  ;;  %v4683_v51 = vmax.f32 %v4064_v36, %v10362_v24  ;;  %v4744_v37 = vmax.f32 %v4424_v28, %v4680_v19 }
 0x517   : > { %v3912_v12 = vadd.f32 %v3911_v27, %v3823_v13  ;;  %v3737_v46 = vadd.f32 %v14448_v55, %v3648_v47  ;;  %v4429_v43 = vmax.f32 %v4059_v50, %v10300_v63  ;;  %v4430_v24 = vmax.f32 %v4060_v10, %v10301_v26  ;;  %v11487_v10 = vld [vmem:[%s16632_s11 + $0x90] sm:$0xff] }
 0x518   : > { %v4745_v14 = vmax.f32 %v4425_v34, %v4681_v29  ;;  %v4746_v33 = vmax.f32 %v4426_v11, %v4682_v54  ;;  %v4747_v8 = vmax.f32 %v4427_v20, %v4683_v51  ;;  %v4945_v52 = vperm.slane %v4744_v37, 0 }
 0x519   : > { %v3963_v62 = vmax.f32 %v3912_v12, 0.0  ;;  %v3561_v55 = vadd.f32 %v14440_v4, %v13956_v31  ;;  %v3826_v12 = vadd.f32 %v14453_v15, %v3737_v46 }
 0x51a   : > { %v4946_v59 = vperm.slane %v4745_v14, 0  ;;  %v4947_v41 = vperm.slane %v4746_v33, 0  ;;  %v3652_v57 = vpop.f32.mrf.mxu2  ;;  %v4948_v36 = vperm.slane %v4747_v8, 0  ;;  %v14503_v37 = vpop.f32.mrf.mxu3  ;;  %v16881_v8 = vld [vmem:[#allocation4_spill] sm:$0xff] }
 0x51b   : > { %v4065_v17 = vrot.slane %v3963_v62, 2  ;;  %v4066_v22 = vrot.slane %v3963_v62, 4  ;;  %v4067_v45 = vrot.slane %v3963_v62, 6  ;;  %v10363_v48 = vrot.slane %v3963_v62, 9 }
 0x51c   : > { %v5007_v58 = vsel %vm4977_vm8, %v4946_v59, %v4945_v52  ;;  %v3650_v33 = vadd.f32 %v14487_v30, %v3561_v55  ;;  %v3653_v52 = vadd.f32 %v3652_v57, %v3564_v44  ;;  %v14525_v30 = vpop.f32.mrf.mxu0 }
 0x51d   : > { %v5008_v28 = vsel %vm4979_vm9, %v4947_v41, %v5007_v58  ;;  %v10364_v34 = vrot.slane %v4065_v17, 9  ;;  %v10365_v11 = vrot.slane %v4066_v22, 9  ;;  %v10366_v20 = vrot.slane %v4067_v45, 9  ;;  %v3914_v32 = vpop.f32.mrf.mxu1  ;;  %v5099_v42 = vpop.permute.xlu1 %5098 }
 0x51e   : > { %v4684_v19 = vmax.f32 %v3963_v62, %v10363_v48  ;;  %v5009_v13 = vsel %vm4981_vm10, %v4948_v36, %v5008_v28  ;;  %v5215_v50 = vsel %vm3071_vm5, %v14186_v40, %v5099_v42  ;;  %v3915_v38 = vadd.f32 %v3914_v32, %v3826_v12 }
 0x51f   : > { %v4685_v27 = vmax.f32 %v4065_v17, %v10364_v34  ;;  %v4686_v29 = vmax.f32 %v4066_v22, %v10365_v11  ;;  %v4687_v54 = vmax.f32 %v4067_v45, %v10366_v20  ;;  %v10537_v63 = vpack.c.bf16 %v5215_v50, %v16881_v8  ;;  %v16882_v11 = vld [vmem:[#allocation23_spill] sm:$0xff] }
 0x520   : > { %v4748_v51 = vmax.f32 %v4428_v25, %v4684_v19  ;;  %v3739_v22 = vadd.f32 %v14470_v35, %v3650_v33  ;;  %v3964_v57 = vmax.f32 %v3915_v38, 0.0  ;;  %v3742_v46 = vadd.f32 %v14490_v16, %v3653_v52  ;;  %v11340_v35 = vld [vmem:[%s16626_s5 + $0x58] sm:$0xff] }
 0x521   : > { %v4749_v47 = vmax.f32 %v4429_v43, %v4685_v27  ;;  %v4750_v14 = vmax.f32 %v4430_v24, %v4686_v29  ;;  %v4751_v31 = vmax.f32 %v4431_v2, %v4687_v54  ;;  %10538 = vmatmul.msk.bf16.vlgmr.msra.gmra.mxu2 %vm14511_vm15, %v10537_v63  ;;  %v5086_v58 = vrot.slane %v14461_v18, 1  ;;  %5520 = vmatpush.bf16.msra.mxu3 %v11340_v35 }
 0x522   : > { %v4949_v15 = vperm.slane %v4748_v51, 0  ;;  %v3654_v26 = vpop.f32.mrf.mxu2  ;;  %v3566_v20 = vadd.f32 %v14440_v4, %v16882_v11  ;;  %v14545_v32 = vpop.f32.mrf.mxu3  ;;  %v3828_v16 = vadd.f32 %v14485_v61, %v3739_v22  ;;  %v5087_v24 = vrot.slane %v14458_v9, 1  ;;  %v11339_v9 = vld [vmem:[%s16626_s5 + $0x50] sm:$0xff] }
 0x523   : > { %v4950_v62 = vperm.slane %v4749_v47, 0  ;;  %v4951_v59 = vperm.slane %v4750_v14, 0  ;;  %v4952_v41 = vperm.slane %v4751_v31, 0  ;;  %v5122_v19 = vrot.slane %v14354_v6, 2 }
 0x524   : > { %v5010_v39 = vsel %vm4983_vm11, %v4949_v15, %v5009_v13  ;;  %v4068_v13 = vrot.slane %v3964_v57, 2  ;;  %v4069_v27 = vrot.slane %v3964_v57, 4  ;;  %v4070_v29 = vrot.slane %v3964_v57, 6  ;;  %v14569_v15 = vpop.f32.mrf.mxu0 }
 0x525   : > { %v3916_v17 = vpop.f32.mrf.mxu1  ;;  %v5011_v45 = vsel %vm4985_vm12, %v4950_v62, %v5010_v39  ;;  %v14531_v25 = vsel %vm570_vm0, %v4952_v41, 0.0  ;;  %v14554_v54 = vsel %vm746_vm3, %v5086_v58, %v5087_v24  ;;  %v3831_v55 = vadd.f32 %v14495_v0, %v3742_v46  ;;  %5521 = vmatpush.bf16.msra.mxu3 %v11339_v9  ;;  %v16883_v62 = vld [vmem:[#allocation3_spill] sm:$0xff] }
 0x526   : > { %v5012_v48 = vsel %vm4987_vm13, %v4951_v59, %v5011_v45  ;;  %v5090_v34 = vrot.slane %v14531_v25, 1  ;;  %v5119_v51 = vrot.slane %v14186_v40, 2  ;;  %v5123_v61 = vrot.slane %v14358_v5, 2 }
 0x527   : > { %v14535_v36 = vsel %vm570_vm0, 0.0, %v5012_v48  ;;  %v3655_v42 = vadd.f32 %v3654_v26, %v3566_v20  ;;  %v3917_v12 = vadd.f32 %v3916_v17, %v3828_v16  ;;  %v5120_v50 = vrot.slane %v14182_v21, 2  ;;  %v11338_v21 = vld [vmem:[%s16626_s5 + $0x48] sm:$0xff]  ;;  %v11337_v16 = vld [vmem:[%s16626_s5 + $0x40] sm:$0xff] }
 0x528   : > { %v5089_v28 = vrot.slane %v14535_v36, 1  ;;  %v14566_v44 = vsel %vm1155_vm4, %v5122_v19, %v5123_v61  ;;  %v10303_v40 = vrot.slane %v3964_v57, 9  ;;  %v10304_v0 = vrot.slane %v4068_v13, 9 }
 0x529   : > { %v10305_v5 = vrot.slane %v4069_v27, 9  ;;  %v10306_v33 = vrot.slane %v4070_v29, 9  ;;  %v14572_v26 = vsel %vm1155_vm4, %v5119_v51, %v5120_v50  ;;  %v3569_v38 = vadd.f32 %v14440_v4, %v16883_v62  ;;  %5522 = vmatpush.bf16.msra.mxu3 %v11338_v21 }
 0x52a   : > { %v3657_v43 = vpop.f32.mrf.mxu2  ;;  %v14551_v2 = vsel %vm746_vm3, %v5089_v28, %v5090_v34  ;;  %v3744_v52 = vadd.f32 %v14503_v37, %v3655_v42  ;;  %v14580_v59 = vmax.f32 %v3917_v12, 0.0  ;;  %v11804_v41 = vpack.i.bf16 %v14566_v44, %v14572_v26  ;;  %v14584_v28 = vpop.f32.mrf.mxu3 }
 0x52b   : > { %v11789_v47 = vpack.i.bf16 %v14551_v2, %v14554_v54  ;;  %v4432_v48 = vmax.f32 %v3964_v57, %v10303_v40  ;;  %v4433_v46 = vmax.f32 %v4068_v13, %v10304_v0  ;;  %v4434_v58 = vmax.f32 %v4069_v27, %v10305_v5 }
 0x52c   : > { %v4435_v35 = vmax.f32 %v4070_v29, %v10306_v33  ;;  %v4071_v24 = vrot.slane %v14580_v59, 2  ;;  %v4072_v19 = vrot.slane %v14580_v59, 4  ;;  %v3833_v57 = vadd.f32 %v14525_v30, %v3744_v52  ;;  %v3837_v5 = vpop.f32.mrf.mxu0 }
 0x52d   : > { %v3919_v14 = vpop.f32.mrf.mxu1  ;;  %11790 = vrot.lane.b32.xlu0 %v11789_v47, %s11915_s21  ;;  %5523 = vmatpush.bf16.msra.mxu3 %v11337_v16  ;;  %v4073_v9 = vrot.slane %v14580_v59, 6  ;;  %v10307_v12 = vrot.slane %v14580_v59, 9 }
 0x52e   : > { %v3920_v31 = vadd.f32 %v3919_v14, %v3831_v55  ;;  %v3658_v55 = vadd.f32 %v3657_v43, %v3569_v38  ;;  %v10308_v30 = vrot.slane %v4071_v24, 9  ;;  %v10309_v40 = vrot.slane %v4072_v19, 9 }
 0x530   : > { %v3966_v63 = vmax.f32 %v3920_v31, 0.0  ;;  %v16884_v31 = vld [vmem:[#allocation13_spill] sm:$0xff]  ;;  %v3747_v33 = vadd.f32 %v14545_v32, %v3658_v55  ;;  %v4437_v32 = vmax.f32 %v4071_v24, %v10308_v30  ;;  %v4438_v55 = vmax.f32 %v4072_v19, %v10309_v40 }
 0x531   : > { %v3571_v43 = vadd.f32 %v14440_v4, %v16884_v31 }
 0x532   : > { %v4074_v49 = vrot.slane %v3966_v63, 2  ;;  %v4075_v17 = vrot.slane %v3966_v63, 4  ;;  %v4076_v39 = vrot.slane %v3966_v63, 6  ;;  %v10367_v22 = vrot.slane %v3966_v63, 9  ;;  %v3659_v45 = vpop.f32.mrf.mxu2 }
 0x533   : > { %v3836_v16 = vadd.f32 %v14569_v15, %v3747_v33 }
 0x534   : > { %v10368_v34 = vrot.slane %v4074_v49, 9  ;;  %v10369_v11 = vrot.slane %v4075_v17, 9  ;;  %v10370_v37 = vrot.slane %v4076_v39, 9  ;;  %v4688_v20 = vmax.f32 %v3966_v63, %v10367_v22 }
 0x535   : > { %v3921_v13 = vpop.f32.mrf.mxu1  ;;  %11805 = vrot.lane.b32.xlu0 %v11804_v41, %s11915_s21  ;;  %v4436_v22 = vmax.f32 %v14580_v59, %v10307_v12 }
 0x536   : > { %v4689_v27 = vmax.f32 %v4074_v49, %v10368_v34  ;;  %v4690_v29 = vmax.f32 %v4075_v17, %v10369_v11  ;;  %v4691_v51 = vmax.f32 %v4076_v39, %v10370_v37  ;;  %v4752_v61 = vmax.f32 %v4432_v48, %v4688_v20  ;;  %v3751_v20 = vpop.f32.mrf.mxu3 }
 0x537   : > { %v3922_v42 = vadd.f32 %v3921_v13, %v3833_v57  ;;  %v10310_v39 = vrot.slane %v4073_v9, 9 }
 0x538   : > { %v4753_v47 = vmax.f32 %v4433_v46, %v4689_v27  ;;  %v4754_v14 = vmax.f32 %v4434_v58, %v4690_v29  ;;  %v4755_v50 = vmax.f32 %v4435_v35, %v4691_v51  ;;  %v4953_v63 = vperm.slane %v4752_v61, 0 }
 0x539   : > { %v3967_v0 = vmax.f32 %v3922_v42, 0.0  ;;  %v3660_v51 = vadd.f32 %v3659_v45, %v3571_v43  ;;  %v14608_v40 = vmax.f32 %v4073_v9, %v10310_v39 }
 0x53a   : > { %v4954_v21 = vperm.slane %v4753_v47, 0  ;;  %v4955_v62 = vperm.slane %v4754_v14, 0  ;;  %v3662_v38 = vpop.f32.mrf.mxu2  ;;  %v4956_v48 = vperm.slane %v4755_v50, 0  ;;  %v16885_v50 = vld [vmem:[#allocation7_spill] sm:$0xff] }
 0x53b   : > { %v4077_v52 = vrot.slane %v3967_v0, 2  ;;  %v4078_v41 = vrot.slane %v3967_v0, 4  ;;  %v4079_v49 = vrot.slane %v3967_v0, 6  ;;  %v10371_v17 = vrot.slane %v3967_v0, 9 }
 0x53c   : > { %v5013_v46 = vsel %vm4977_vm8, %v4954_v21, %v4953_v63  ;;  %v3574_v24 = vadd.f32 %v14440_v4, %v16885_v50  ;;  %v3749_v45 = vadd.f32 %v14584_v28, %v3660_v51 }
 0x53d   : > { %v10372_v58 = vrot.slane %v4077_v52, 9  ;;  %v10373_v35 = vrot.slane %v4078_v41, 9  ;;  %v10374_v34 = vrot.slane %v4079_v49, 9  ;;  %v4692_v11 = vmax.f32 %v3967_v0, %v10371_v17  ;;  %v3924_v37 = vpop.f32.mrf.mxu1  ;;  %v3840_v0 = vpop.f32.mrf.mxu0 }
 0x53e   : > { %v5014_v57 = vsel %vm4979_vm9, %v4955_v62, %v5013_v46  ;;  %v3925_v61 = vadd.f32 %v3924_v37, %v3836_v16  ;;  %v3663_v33 = vadd.f32 %v3662_v38, %v3574_v24  ;;  %v3838_v28 = vadd.f32 %v3837_v5, %v3749_v45 }
 0x53f   : > { %v4693_v13 = vmax.f32 %v4077_v52, %v10372_v58  ;;  %v4756_v27 = vmax.f32 %v4436_v22, %v4692_v11  ;;  %v4694_v29 = vmax.f32 %v4078_v41, %v10373_v35  ;;  %v5015_v59 = vsel %vm4981_vm10, %v4956_v48, %v5014_v57  ;;  %v16886_v41 = vld [vmem:[#allocation8_spill] sm:$0xff]  ;;  %v3753_v22 = vpop.f32.mrf.mxu3 }
 0x540   : > { %v14603_v14 = vmax.f32 %v4079_v49, %v10374_v34  ;;  %v3968_v63 = vmax.f32 %v3925_v61, 0.0  ;;  %v3576_v49 = vadd.f32 %v14440_v4, %v16886_v41  ;;  %v3752_v17 = vadd.f32 %v3751_v20, %v3663_v33 }
 0x541   : > { %v4957_v42 = vperm.slane %v4756_v27, 0  ;;  %v4757_v12 = vmax.f32 %v4437_v32, %v4693_v13  ;;  %v4758_v47 = vmax.f32 %v4438_v55, %v4694_v29 }
 0x542   : > { %v3664_v31 = vpop.f32.mrf.mxu2  ;;  %v4759_v62 = vmax.f32 %v14608_v40, %v14603_v14  ;;  %v4080_v9 = vrot.slane %v3968_v63, 2  ;;  %v4081_v38 = vrot.slane %v3968_v63, 4  ;;  %v4082_v48 = vrot.slane %v3968_v63, 6 }
 0x543   : > { %v4958_v15 = vperm.slane %v4757_v12, 0  ;;  %v4959_v19 = vperm.slane %v4758_v47, 0  ;;  %v5016_v30 = vsel %vm4983_vm11, %v4957_v42, %v5015_v59  ;;  %v3665_v35 = vadd.f32 %v3664_v31, %v3576_v49  ;;  %v16887_v47 = vld [vmem:[#allocation16_spill] sm:$0xff] }
 0x544   : > { %v10311_v32 = vrot.slane %v3968_v63, 9  ;;  %v10312_v20 = vrot.slane %v4080_v9, 9  ;;  %v3841_v55 = vadd.f32 %v3840_v0, %v3752_v17  ;;  %v10313_v57 = vrot.slane %v4081_v38, 9 }
 0x545   : > { %v3926_v43 = vpop.f32.mrf.mxu1  ;;  %v5017_v21 = vsel %vm4985_vm12, %v4958_v15, %v5016_v30  ;;  %v10314_v13 = vrot.slane %v4082_v48, 9  ;;  %v3842_v59 = vpop.f32.mrf.mxu0  ;;  %v3754_v42 = vadd.f32 %v3753_v22, %v3665_v35  ;;  %v3579_v50 = vadd.f32 %v14440_v4, %v16887_v47 }
 0x546   : > { %v5018_v52 = vsel %vm4987_vm13, %v4959_v19, %v5017_v21  ;;  %v3927_v34 = vadd.f32 %v3926_v43, %v3838_v28  ;;  %v4440_v31 = vmax.f32 %v3968_v63, %v10311_v32  ;;  %v4441_v15 = vmax.f32 %v4080_v9, %v10312_v20 }
 0x547   : > { %v14618_v39 = vsel %vm570_vm0, 0.0, %v5018_v52  ;;  %v11786_v58 = vpop.permute.xlu2 %11785  ;;  %v4443_v19 = vmax.f32 %v4082_v48, %v10314_v13  ;;  %v3756_v30 = vpop.f32.mrf.mxu3  ;;  %v3843_v17 = vadd.f32 %v3842_v59, %v3754_v42  ;;  %v16888_v48 = vld [vmem:[#allocation5_spill] sm:$0xff] }
 0x548   : > { %v11819_v46 = vpack.i.bf16 %v14618_v39, %v14535_v36  ;;  %v11788_v11 = vunpack.i.h.bf16 %v11786_v58  ;;  %v11787_v37 = vunpack.i.l.bf16 %v11786_v58  ;;  %v14629_v12 = vmax.f32 %v3927_v34, 0.0 }
 0x54a   : > { %11820 = vrot.lane.b32.xlu0 %v11819_v46, %s11915_s21  ;;  %v3667_v16 = vpop.f32.mrf.mxu2  ;;  %v5216_v27 = vsel %vm3071_vm5, %v14354_v6, %v11787_v37  ;;  %v5217_v5 = vsel %vm3071_vm5, %v14368_v60, %v11788_v11  ;;  %v4442_v6 = vmax.f32 %v4081_v38, %v10313_v57  ;;  %v4083_v52 = vrot.slane %v14629_v12, 2 }
 0x54b   : > { %v14627_v51 = vpack.c.bf16 %v5217_v5, %v5216_v27  ;;  %v4084_v63 = vrot.slane %v14629_v12, 4  ;;  %v4085_v9 = vrot.slane %v14629_v12, 6  ;;  %v10315_v13 = vrot.slane %v14629_v12, 9 }
 0x54c   : > { %v10316_v47 = vrot.slane %v4083_v52, 9 }
 0x54d   : > { %v3929_v29 = vpop.f32.mrf.mxu1  ;;  %5500 = vmatmul.bf16.gmra.mxu2 %v14627_v51  ;;  %v3845_v11 = vpop.f32.mrf.mxu0 }
 0x54e   : > { %v3930_v61 = vadd.f32 %v3929_v29, %v3841_v55  ;;  %v3668_v29 = vadd.f32 %v3667_v16, %v3579_v50 }
 0x54f   : > { %v11801_v21 = vpop.permute.xlu2 %11800 }
 0x550   : > { %v3970_v24 = vmax.f32 %v3930_v61, 0.0  ;;  %v11803_v41 = vunpack.i.h.bf16 %v11801_v21  ;;  %v11802_v49 = vunpack.i.l.bf16 %v11801_v21 }
 0x552   : > { %v4086_v0 = vrot.slane %v3970_v24, 2  ;;  %v4087_v33 = vrot.slane %v3970_v24, 4  ;;  %v4088_v45 = vrot.slane %v3970_v24, 6  ;;  %v10375_v43 = vrot.slane %v3970_v24, 9  ;;  %v3669_v57 = vpop.f32.mrf.mxu2 }
 0x553   : > { %v5223_v38 = vsel %vm3071_vm5, %v14572_v26, %v11803_v41  ;;  %v5222_v35 = vsel %vm3071_vm5, %v16888_v48, %v11802_v49  ;;  %v10317_v26 = vrot.slane %v4084_v63, 9 }
 0x554   : > { %v10376_v22 = vrot.slane %v4086_v0, 9  ;;  %v10377_v28 = vrot.slane %v4087_v33, 9  ;;  %v10378_v46 = vrot.slane %v4088_v45, 9  ;;  %v4696_v58 = vmax.f32 %v3970_v24, %v10375_v43 }
 0x555   : > { %v3931_v34 = vpop.f32.mrf.mxu1  ;;  %v5240_v27 = vpack.c.bf16 %v5223_v38, %v5222_v35  ;;  %v10318_v43 = vrot.slane %v4085_v9, 9  ;;  %v4445_v38 = vmax.f32 %v4083_v52, %v10316_v47  ;;  %v4446_v35 = vmax.f32 %v4084_v63, %v10317_v26 }
 0x556   : > { %v4697_v37 = vmax.f32 %v4086_v0, %v10376_v22  ;;  %v4698_v32 = vmax.f32 %v4087_v33, %v10377_v28  ;;  %v4699_v20 = vmax.f32 %v4088_v45, %v10378_v46  ;;  %v4760_v55 = vmax.f32 %v4440_v31, %v4696_v58 }
 0x557   : > { %v3932_v5 = vadd.f32 %v3931_v34, %v3843_v17  ;;  %5524 = vmatmul.bf16.vlgmr.msra.gmra.mxu3 %v5240_v27  ;;  %v4444_v22 = vmax.f32 %v14629_v12, %v10315_v13  ;;  %v3757_v28 = vadd.f32 %v3756_v30, %v3668_v29  ;;  %v3758_v17 = vpop.f32.mrf.mxu3  ;;  %v16889_v30 = vld [vmem:[#allocation20_spill] sm:$0xff]  ;;  %v3847_v27 = vpop.f32.mrf.mxu0  ;;  %v4960_v47 = vperm.slane %v4759_v62, 0 }
 0x558   : > { %v4761_v59 = vmax.f32 %v4441_v15, %v4697_v37  ;;  %v4762_v61 = vmax.f32 %v4442_v6, %v4698_v32  ;;  %v4763_v42 = vmax.f32 %v4443_v19, %v4699_v20  ;;  %v4961_v21 = vperm.slane %v4760_v55, 0 }
 0x559   : > { %v3971_v24 = vmax.f32 %v3932_v5, 0.0  ;;  %v4447_v55 = vmax.f32 %v4085_v9, %v10318_v43  ;;  %v3581_v13 = vadd.f32 %v14440_v4, %v16889_v30  ;;  %v5092_v62 = vrot.slane %v14618_v39, 1 }
 0x55a   : > { %v4962_v41 = vperm.slane %v4761_v59, 0  ;;  %v4963_v0 = vperm.slane %v4762_v61, 0  ;;  %v4964_v16 = vperm.slane %v4763_v42, 0  ;;  %v3672_v29 = vpop.f32.mrf.mxu2  ;;  %v3846_v42 = vadd.f32 %v3845_v11, %v3757_v28 }
 0x55b   : > { %v4089_v33 = vrot.slane %v3971_v24, 2  ;;  %v4090_v45 = vrot.slane %v3971_v24, 4  ;;  %v4091_v31 = vrot.slane %v3971_v24, 6  ;;  %v10379_v49 = vrot.slane %v3971_v24, 9 }
 0x55c   : > { %v5019_v50 = vsel %vm4977_vm8, %v4962_v41, %v4961_v21  ;;  %v16890_v41 = vld [vmem:[#allocation25_spill] sm:$0xff]  ;;  %v3670_v9 = vadd.f32 %v3669_v57, %v3581_v13  ;;  %v5060_v11 = vsel %vm570_vm0, %v4960_v47, 0.0  ;;  %v5132_v47 = vrot.slane %v14531_v25, 2 }
 0x55d   : > { %v5020_v15 = vsel %vm4979_vm9, %v4963_v0, %v5019_v50  ;;  %v10380_v6 = vrot.slane %v4089_v33, 9  ;;  %v10381_v19 = vrot.slane %v4090_v45, 9  ;;  %v10382_v46 = vrot.slane %v4091_v31, 9  ;;  %v3934_v58 = vpop.f32.mrf.mxu1 }
 0x55e   : > { %v4700_v34 = vmax.f32 %v3971_v24, %v10379_v49  ;;  %v5021_v37 = vsel %vm4981_vm10, %v4964_v16, %v5020_v15  ;;  %v3584_v52 = vadd.f32 %v14440_v4, %v16890_v41  ;;  %v3935_v24 = vadd.f32 %v3934_v58, %v3846_v42  ;;  %v16891_v58 = vld [vmem:[#allocation26_spill] sm:$0xff] }
 0x55f   : > { %v4701_v32 = vmax.f32 %v4089_v33, %v10380_v6  ;;  %v4702_v20 = vmax.f32 %v4090_v45, %v10381_v19  ;;  %v4703_v12 = vmax.f32 %v4091_v31, %v10382_v46  ;;  %v3761_v49 = vpop.f32.mrf.mxu3  ;;  %v3850_v15 = vpop.f32.mrf.mxu0  ;;  %v5093_v19 = vrot.slane %v5060_v11, 1 }
 0x560   : > { %v4764_v5 = vmax.f32 %v4444_v22, %v4700_v34  ;;  %v3673_v43 = vadd.f32 %v3672_v29, %v3584_v52  ;;  %v3759_v22 = vadd.f32 %v3758_v17, %v3670_v9  ;;  %v3972_v28 = vmax.f32 %v3935_v24, 0.0 }
 0x561   : > { %v4765_v59 = vmax.f32 %v4445_v38, %v4701_v32  ;;  %v4766_v61 = vmax.f32 %v4446_v35, %v4702_v20  ;;  %v4767_v21 = vmax.f32 %v4447_v55, %v4703_v12  ;;  %v3586_v38 = vadd.f32 %v14440_v4, %v16891_v58 }
 0x562   : > { %v4965_v63 = vperm.slane %v4764_v5, 0  ;;  %v3762_v14 = vadd.f32 %v3761_v49, %v3673_v43  ;;  %v3674_v6 = vpop.f32.mrf.mxu2  ;;  %v4092_v35 = vrot.slane %v3972_v28, 2  ;;  %v4093_v34 = vrot.slane %v3972_v28, 4 }
 0x563   : > { %v4966_v26 = vperm.slane %v4765_v59, 0  ;;  %v4967_v0 = vperm.slane %v4766_v61, 0  ;;  %v4968_v33 = vperm.slane %v4767_v21, 0  ;;  %v14669_v32 = vsel %vm746_vm3, %v5092_v62, %v5093_v19 }
 0x564   : > { %v5022_v31 = vsel %vm4983_vm11, %v4965_v63, %v5021_v37  ;;  %v3848_v37 = vadd.f32 %v3847_v27, %v3759_v22  ;;  %v3851_v55 = vadd.f32 %v3850_v15, %v3762_v14  ;;  %v4094_v12 = vrot.slane %v3972_v28, 6 }
 0x565   : > { %v3936_v45 = vpop.f32.mrf.mxu1  ;;  %v5023_v16 = vsel %vm4985_vm12, %v4966_v26, %v5022_v31  ;;  %v14657_v50 = vsel %vm570_vm0, %v4968_v33, 0.0  ;;  %v3675_v30 = vadd.f32 %v3674_v6, %v3586_v38  ;;  %v10319_v61 = vrot.slane %v3972_v28, 9 }
 0x566   : > { %v5024_v40 = vsel %vm4987_vm13, %v4967_v0, %v5023_v16  ;;  %v5096_v17 = vrot.slane %v14657_v50, 1  ;;  %v3937_v13 = vadd.f32 %v3936_v45, %v3848_v37  ;;  %v10320_v4 = vrot.slane %v4092_v35, 9 }
 0x567   : > { %v14662_v57 = vsel %vm570_vm0, 0.0, %v5024_v40  ;;  %v10321_v42 = vrot.slane %v4093_v34, 9  ;;  %v5134_v27 = vrot.slane %v14618_v39, 2  ;;  %v3763_v21 = vpop.f32.mrf.mxu3  ;;  %v11809_v52 = vpack.i.bf16 %v14461_v18, %v14368_v60  ;;  %v3852_v40 = vpop.f32.mrf.mxu0 }
 0x568   : > { %v5095_v46 = vrot.slane %v14662_v57, 1  ;;  %v5131_v63 = vrot.slane %v14535_v36, 2  ;;  %v10322_v9 = vrot.slane %v4094_v12, 9  ;;  %v3764_v26 = vadd.f32 %v3763_v21, %v3675_v30 }
 0x569   : > { %v3973_v24 = vmax.f32 %v3937_v13, 0.0  ;;  %v5135_v43 = vrot.slane %v5060_v11, 2  ;;  %v4448_v49 = vmax.f32 %v3972_v28, %v10319_v61  ;;  %v4449_v22 = vmax.f32 %v4092_v35, %v10320_v4 }
 0x56a   : > { %v14672_v20 = vsel %vm746_vm3, %v5095_v46, %v5096_v17  ;;  %v4450_v16 = vmax.f32 %v4093_v34, %v10321_v42  ;;  %v4451_v25 = vmax.f32 %v4094_v12, %v10322_v9  ;;  %v3853_v17 = vadd.f32 %v3852_v40, %v3764_v26 }
 0x56b   : > { %v11794_v5 = vpack.i.bf16 %v14672_v20, %v14669_v32  ;;  %v14683_v14 = vsel %vm1155_vm4, %v5134_v27, %v5135_v43  ;;  %v4095_v19 = vrot.slane %v3973_v24, 2  ;;  %v4096_v46 = vrot.slane %v3973_v24, 4 }
 0x56c   : > { %v10323_v28 = vrot.slane %v3973_v24, 9  ;;  %v14687_v34 = vsel %vm1155_vm4, %v5131_v63, %v5132_v47 }
 0x56d   : > { %v3939_v29 = vpop.f32.mrf.mxu1  ;;  %11795 = vrot.lane.b32.xlu1 %v11794_v5, %s11915_s21  ;;  %v10324_v12 = vrot.slane %v4095_v19, 9  ;;  %v11824_v61 = vpack.i.bf16 %v14683_v14, %v14687_v34  ;;  %v10325_v4 = vrot.slane %v4096_v46, 9 }
 0x56e   : > { %v3940_v59 = vadd.f32 %v3939_v29, %v3851_v55  ;;  %v4097_v29 = vrot.slane %v3973_v24, 6  ;;  %v4452_v43 = vmax.f32 %v3973_v24, %v10323_v28 }
 0x570   : > { %v3974_v41 = vmax.f32 %v3940_v59, 0.0 }
 0x572   : > { %v4098_v0 = vrot.slane %v3974_v41, 2  ;;  %v4099_v33 = vrot.slane %v3974_v41, 4  ;;  %v4100_v45 = vrot.slane %v3974_v41, 6  ;;  %v10383_v31 = vrot.slane %v3974_v41, 9 }
 0x574   : > { %v10384_v60 = vrot.slane %v4098_v0, 9  ;;  %v10385_v62 = vrot.slane %v4099_v33, 9  ;;  %v10386_v15 = vrot.slane %v4100_v45, 9  ;;  %v4704_v6 = vmax.f32 %v3974_v41, %v10383_v31 }
 0x575   : > { %v3941_v11 = vpop.f32.mrf.mxu1  ;;  %11810 = vrot.lane.b32.xlu1 %v11809_v52, %s11915_s21 }
 0x576   : > { %v4705_v58 = vmax.f32 %v4098_v0, %v10384_v60  ;;  %v4706_v38 = vmax.f32 %v4099_v33, %v10385_v62  ;;  %v4707_v37 = vmax.f32 %v4100_v45, %v10386_v15  ;;  %v4768_v55 = vmax.f32 %v4448_v49, %v4704_v6 }
 0x577   : > { %v3942_v35 = vadd.f32 %v3941_v11, %v3853_v17  ;;  %v10326_v0 = vrot.slane %v4097_v29, 9  ;;  %v4454_v15 = vmax.f32 %v4096_v46, %v10325_v4  ;;  %v5137_v46 = vrot.slane %v14662_v57, 2 }
 0x578   : > { %v4769_v30 = vmax.f32 %v4449_v22, %v4705_v58  ;;  %v4770_v13 = vmax.f32 %v4450_v16, %v4706_v38  ;;  %v4771_v5 = vmax.f32 %v4451_v25, %v4707_v37  ;;  %v4969_v42 = vperm.slane %v4768_v55, 0 }
 0x579   : > { %v3975_v59 = vmax.f32 %v3942_v35, 0.0  ;;  %v4453_v22 = vmax.f32 %v4095_v19, %v10324_v12  ;;  %v4455_v24 = vmax.f32 %v4097_v29, %v10326_v0  ;;  %v5138_v12 = vrot.slane %v14657_v50, 2 }
 0x57a   : > { %v4970_v27 = vperm.slane %v4769_v30, 0  ;;  %v4971_v21 = vperm.slane %v4770_v13, 0  ;;  %v4972_v63 = vperm.slane %v4771_v5, 0 }
 0x57b   : > { %v4101_v41 = vrot.slane %v3975_v59, 2  ;;  %v4102_v9 = vrot.slane %v3975_v59, 4  ;;  %v10387_v52 = vrot.slane %v3975_v59, 9  ;;  %v4103_v26 = vrot.slane %v3975_v59, 6 }
 0x57c   : > { %v5025_v47 = vsel %vm4977_vm8, %v4970_v27, %v4969_v42 }
 0x57d   : > { %v10388_v33 = vrot.slane %v4101_v41, 9  ;;  %v10389_v45 = vrot.slane %v4102_v9, 9  ;;  %v4708_v31 = vmax.f32 %v3975_v59, %v10387_v52  ;;  %v5026_v49 = vsel %vm4979_vm9, %v4971_v21, %v5025_v47  ;;  %11825 = vrot.lane.b32.xlu1 %v11824_v61, %s11915_s21  ;;  %v11351_v52 = vld [vmem:[%s16626_s5 + $0xb0] sm:$0xff] }
 0x57e   : > { %v5027_v16 = vsel %vm4981_vm10, %v4972_v63, %v5026_v49  ;;  %v10390_v40 = vrot.slane %v4103_v26, 9  ;;  %v14713_v21 = vsel %vm1155_vm4, %v5137_v46, %v5138_v12  ;;  %v11348_v49 = vld [vmem:[%s16626_s5 + $0x98] sm:$0xff] }
 0x57f   : > { %v4709_v60 = vmax.f32 %v4101_v41, %v10388_v33  ;;  %v4772_v62 = vmax.f32 %v4452_v43, %v4708_v31  ;;  %v4710_v6 = vmax.f32 %v4102_v9, %v10389_v45  ;;  %v11352_v9 = vld [vmem:[%s16626_s5 + $0xb8] sm:$0xff]  ;;  %v11349_v45 = vld [vmem:[%s16626_s5 + $0xa0] sm:$0xff] }
 0x580   : > { %v4711_v25 = vmax.f32 %v4103_v26, %v10390_v40  ;;  %5545 = vmatpush.bf16.msrb.mxu2 %v11352_v9  ;;  %v11350_v26 = vld [vmem:[%s16626_s5 + $0xa8] sm:$0xff]  ;;  %v11360_v40 = vld [vmem:[%s16626_s5 + $0xf8] sm:$0xff] }
 0x581   : > { %v4973_v17 = vperm.slane %v4772_v62, 0  ;;  %v4773_v11 = vmax.f32 %v4453_v22, %v4709_v60  ;;  %v4774_v58 = vmax.f32 %v4454_v15, %v4710_v6  ;;  %v11396_v22 = vld [vmem:[%s16628_s7 + $0xf8] sm:$0xff]  ;;  %5574 = vmatpush.bf16.msrb.mxu3 %v11360_v40  ;;  %v11359_v62 = vld [vmem:[%s16626_s5 + $0xf0] sm:$0xff]  ;;  %v11358_v15 = vld [vmem:[%s16626_s5 + $0xe8] sm:$0xff] }
 0x582   : > { %v4775_v38 = vmax.f32 %v4455_v24, %v4711_v25  ;;  %11523 = vmatpush.bf16.msra.mxu1 %v11396_v22  ;;  %6454 = vmatpush.bf16.msra.mxu0 %v11396_v22  ;;  %v11364_v60 = vld [vmem:[%s16626_s5 + $0x118] sm:$0xff] }
 0x583   : > { %v4974_v37 = vperm.slane %v4773_v11, 0  ;;  %v4975_v55 = vperm.slane %v4774_v58, 0  ;;  %v5028_v28 = vsel %vm4983_vm11, %v4973_v17, %v5027_v16  ;;  %v11345_v16 = vld [vmem:[%s16626_s5 + $0x80] sm:$0xff]  ;;  %v11356_v12 = vld [vmem:[%s16626_s5 + $0xd8] sm:$0xff] }
 0x584   : > { %v4976_v19 = vperm.slane %v4775_v38, 0  ;;  %5546 = vmatpush.bf16.msrb.mxu2 %v11351_v52  ;;  %v11363_v38 = vld [vmem:[%s16626_s5 + $0x110] sm:$0xff] }
 0x585   : > { %v5029_v35 = vsel %vm4985_vm12, %v4974_v37, %v5028_v28  ;;  %5575 = vmatpush.bf16.msrb.mxu3 %v11359_v62  ;;  %v11357_v37 = vld [vmem:[%s16626_s5 + $0xe0] sm:$0xff] }
 0x586   : > { %v5030_v30 = vsel %vm4987_vm13, %v4975_v55, %v5029_v35  ;;  %v5062_v13 = vsel %vm570_vm0, %v4976_v19, 0.0  ;;  %v11395_v55 = vld [vmem:[%s16628_s7 + $0xf0] sm:$0xff] }
 0x587   : > { %v14701_v5 = vsel %vm570_vm0, 0.0, %v5030_v30  ;;  %v5174_v29 = vrot.slane %v5062_v13, 1  ;;  %v5185_v4 = vrot.slane %v5062_v13, 2  ;;  %11524 = vmatpush.bf16.msra.mxu1 %v11395_v55  ;;  %6455 = vmatpush.bf16.msra.mxu0 %v11395_v55 }
 0x588   : > { %v11829_v59 = vpack.i.bf16 %v14701_v5, %v14662_v57  ;;  %v5173_v61 = vrot.slane %v14701_v5, 1  ;;  %v5184_v42 = vrot.slane %v14701_v5, 2  ;;  %5547 = vmatpush.bf16.msrb.mxu2 %v11350_v26  ;;  %v11362_v26 = vld [vmem:[%s16626_s5 + $0x108] sm:$0xff] }
 0x589   : > { %5576 = vmatpush.bf16.msrb.mxu3 %v11358_v15 }
 0x58a   : > { %11830 = vrot.lane.b32.xlu2 %v11829_v59, %s11915_s21  ;;  %v14710_v27 = vsel %vm746_vm3, %v5173_v61, %v5174_v29  ;;  %v14716_v41 = vsel %vm1155_vm4, %v5184_v42, %v5185_v4  ;;  %v11355_v59 = vld [vmem:[%s16626_s5 + $0xd0] sm:$0xff] }
 0x58b   : > { %5211 = vrot.lane.b32.xlu1 %v14710_v27, %s11915_s21  ;;  %v11834_v50 = vpack.i.bf16 %v14716_v41, %v14713_v21 }
 0x58c   : > { %5548 = vmatpush.bf16.msrb.mxu2 %v11349_v45 }
 0x58d   : > { %11835 = vrot.lane.b32.xlu0 %v11834_v50, %s11915_s21  ;;  %5577 = vmatpush.bf16.msrb.mxu3 %v11357_v37 }
 0x590   : > { %5549 = vmatpush.bf16.msrb.mxu2 %v11348_v49 }
 0x591   : > { %5578 = vmatpush.bf16.msrb.mxu3 %v11356_v12 }
 0x595   : > { %5579 = vmatpush.bf16.msrb.mxu3 %v11355_v59  ;;  %v11391_v59 = vld [vmem:[%s16628_s7 + $0xd0] sm:$0xff] }
 0x59f   : > { %v11791_v43 = vpop.permute.xlu0 %11790 }
 0x5a0   : > { %v11793_v63 = vunpack.i.h.bf16 %v11791_v43  ;;  %v11792_v47 = vunpack.i.l.bf16 %v11791_v43  ;;  %v11354_v43 = vld [vmem:[%s16626_s5 + $0xc8] sm:$0xff] }
 0x5a1   : > { %5580 = vmatpush.bf16.msrb.mxu3 %v11354_v43  ;;  %v11368_v43 = vld [vmem:[%s16628_s7 + $0x18] sm:$0xff] }
 0x5a2   : > { %v5218_v0 = vsel %vm3071_vm5, %v14461_v18, %v11792_v47  ;;  %v5219_v33 = vsel %vm3071_vm5, %v14535_v36, %v11793_v63  ;;  %v11347_v18 = vld [vmem:[%s16626_s5 + $0x90] sm:$0xff]  ;;  %v11346_v36 = vld [vmem:[%s16626_s5 + $0x88] sm:$0xff]  ;;  %v11816_v47 = vpop.permute.xlu2 %11815 }
 0x5a3   : > { %v14739_v31 = vpack.c.bf16 %v5219_v33, %v5218_v0  ;;  %5550 = vmatpush.bf16.msrb.mxu2 %v11347_v18  ;;  %v11818_v33 = vunpack.i.h.bf16 %v11816_v47  ;;  %v11817_v45 = vunpack.i.l.bf16 %v11816_v47  ;;  %v11367_v47 = vld [vmem:[%s16628_s7 + $0x10] sm:$0xff] }
 0x5a5   : > { %5505 = vmatmul.bf16.gmra.mxu2 %v14739_v31  ;;  %v5232_v49 = vsel %vm3071_vm5, %v14384_v1, %v11817_v45  ;;  %v5233_v18 = vsel %vm3071_vm5, %v14554_v54, %v11818_v33  ;;  %v11394_v54 = vld [vmem:[%s16628_s7 + $0xe8] sm:$0xff] }
 0x5a6   : > { %v5245_v22 = vpack.c.bf16 %v5233_v18, %v5232_v49  ;;  %11525 = vmatpush.bf16.msra.mxu1 %v11394_v54  ;;  %6456 = vmatpush.bf16.msra.mxu0 %v11394_v54  ;;  %v11390_v33 = vld [vmem:[%s16628_s7 + $0xc8] sm:$0xff] }
 0x5a7   : > { %5551 = vmatpush.bf16.msrb.mxu2 %v11346_v36  ;;  %v11806_v19 = vpop.permute.xlu0 %11805  ;;  %v11378_v45 = vld [vmem:[%s16628_s7 + $0x68] sm:$0xff] }
 0x5a8   : > { %v11808_v46 = vunpack.i.h.bf16 %v11806_v19  ;;  %v11807_v29 = vunpack.i.l.bf16 %v11806_v19  ;;  %v11366_v18 = vld [vmem:[%s16628_s7 + $0x8] sm:$0xff] }
 0x5a9   : > { %v11374_v54 = vld [vmem:[%s16628_s7 + $0x48] sm:$0xff] }
 0x5aa   : > { %v5230_v61 = vsel %vm3071_vm5, %v14202_v3, %v11807_v29  ;;  %v5231_v4 = vsel %vm3071_vm5, %v14381_v23, %v11808_v46  ;;  %v11353_v3 = vld [vmem:[%s16626_s5 + $0xc0] sm:$0xff]  ;;  %v11372_v46 = vld [vmem:[%s16628_s7 + $0x38] sm:$0xff]  ;;  %v5255_v29 = vpack.c.bf16 %v16888_v48, %v14716_v41 }
 0x5ab   : > { %5552 = vmatpush.bf16.msrb.mxu2 %v11345_v16  ;;  %v5241_v50 = vpack.c.bf16 %v5231_v4, %v5230_v61  ;;  %5581 = vmatpush.bf16.msrb.mxu3 %v11353_v3  ;;  %v11370_v4 = vld [vmem:[%s16628_s7 + $0x28] sm:$0xff]  ;;  %v11380_v3 = vld [vmem:[%s16628_s7 + $0x78] sm:$0xff] }
 0x5af   : > { %5607 = vmatpush.bf16.msra.mxu2 %v11364_v60  ;;  %v11361_v60 = vld [vmem:[%s16626_s5 + $0x100] sm:$0xff]  ;;  %6367 = vmatpush.bf16.msra.mxu3 %v11372_v46 }
 0x5b3   : > { %5608 = vmatpush.bf16.msra.mxu2 %v11363_v38 }
 0x5b7   : > { %5609 = vmatpush.bf16.msra.mxu2 %v11362_v26 }
 0x5bb   : > { %5610 = vmatpush.bf16.msra.mxu2 %v11361_v60 }
 0x5bc   : > { %v11821_v42 = vpop.permute.xlu0 %11820 }
 0x5bd   : > { %v11823_v9 = vunpack.i.h.bf16 %v11821_v42  ;;  %v11822_v52 = vunpack.i.l.bf16 %v11821_v42 }
 0x5bf   : > { %v5226_v23 = vsel %vm3071_vm5, %v14477_v7, %v11822_v52  ;;  %v5227_v63 = vsel %vm3071_vm5, %v14687_v34, %v11823_v9  ;;  %v11369_v9 = vld [vmem:[%s16628_s7 + $0x20] sm:$0xff] }
 0x5c0   : > { %v5248_v0 = vpack.c.bf16 %v5227_v63, %v5226_v23 }
 0x5da   : > { %v14874_v56 = vpop.f32.mrf.mxu3 }
 0x5df   : > { %v11796_v6 = vpop.permute.xlu1 %11795 }
 0x5e0   : > { %v11798_v24 = vunpack.i.h.bf16 %v11796_v6  ;;  %v11797_v25 = vunpack.i.l.bf16 %v11796_v6 }
 0x5e2   : > { %v5220_v17 = vsel %vm3071_vm5, %v14618_v39, %v11797_v25  ;;  %v5221_v11 = vsel %vm3071_vm5, %v14662_v57, %v11798_v24  ;;  %v14884_v12 = vpop.f32.mrf.mxu3 }
 0x5e3   : > { %v14773_v58 = vpack.c.bf16 %v5221_v11, %v5220_v17 }
 0x5e4   : > { %v11831_v36 = vpop.permute.xlu2 %11830 }
 0x5e5   : > { %5510 = vmatmul.bf16.gmra.mxu2 %v14773_v58  ;;  %v11833_v16 = vunpack.i.h.bf16 %v11831_v36  ;;  %v11832_v40 = vunpack.i.l.bf16 %v11831_v36  ;;  %v11377_v36 = vld [vmem:[%s16628_s7 + $0x60] sm:$0xff] }
 0x5e7   : > { %v11811_v39 = vpop.permute.xlu1 %11810  ;;  %v5228_v62 = vsel %vm3071_vm5, %v14683_v14, %v11832_v40  ;;  %v5229_v15 = vsel %vm3071_vm5, %v14713_v21, %v11833_v16  ;;  %v11376_v16 = vld [vmem:[%s16628_s7 + $0x58] sm:$0xff] }
 0x5e8   : > { %v11813_v57 = vunpack.i.h.bf16 %v11811_v39  ;;  %v11812_v28 = vunpack.i.l.bf16 %v11811_v39  ;;  %v5252_v6 = vpack.c.bf16 %v5229_v15, %v5228_v62  ;;  %v11375_v62 = vld [vmem:[%s16628_s7 + $0x50] sm:$0xff] }
 0x5ea   : > { %v5224_v35 = vsel %vm3071_vm5, %v14566_v44, %v11812_v28  ;;  %v5225_v30 = vsel %vm3071_vm5, %v14474_v53, %v11813_v57 }
 0x5eb   : > { %v5244_v13 = vpack.c.bf16 %v5225_v30, %v5224_v35 }
 0x5ed   : > { %5529 = vmatmul.bf16.gmra.mxu3 %v5244_v13 }
 0x5ef   : > { %v11826_v1 = vpop.permute.xlu1 %11825 }
 0x5f0   : > { %v11828_v24 = vunpack.i.h.bf16 %v11826_v1  ;;  %v11827_v25 = vunpack.i.l.bf16 %v11826_v1  ;;  %v11365_v1 = vld [vmem:[%s16628_s7] sm:$0xff] }
 0x5f2   : > { %v5234_v17 = vsel %vm3071_vm5, %v14551_v2, %v11827_v25  ;;  %v5235_v11 = vsel %vm3071_vm5, %v14669_v32, %v11828_v24  ;;  %v11393_v2 = vld [vmem:[%s16628_s7 + $0xe0] sm:$0xff]  ;;  %v14839_v32 = vpop.f32.mrf.mxu2  ;;  %v11388_v24 = vld [vmem:[%s16628_s7 + $0xb8] sm:$0xff] }
 0x5f3   : > { %v5249_v38 = vpack.c.bf16 %v5235_v11, %v5234_v17  ;;  %11526 = vmatpush.bf16.msra.mxu1 %v11393_v2  ;;  %6457 = vmatpush.bf16.msra.mxu0 %v11393_v2  ;;  %v11373_v25 = vld [vmem:[%s16628_s7 + $0x40] sm:$0xff] }
 0x5f4   : > { %v11389_v11 = vld [vmem:[%s16628_s7 + $0xc0] sm:$0xff] }
 0x5f5   : > { %5553 = vmatmul.bf16.vlgmr.msrb.gmra.mxu2 %v5241_v50 }
 0x5f6   : > { %6396 = vmatpush.bf16.msrb.mxu2 %v11380_v3  ;;  %v11385_v3 = vld [vmem:[%s16628_s7 + $0xa0] sm:$0xff] }
 0x5fd   : > { %5534 = vmatmul.bf16.gmra.mxu3 %v5248_v0  ;;  %v5212_v30 = vpop.permute.xlu1 %5211  ;;  %v11379_v0 = vld [vmem:[%s16628_s7 + $0x70] sm:$0xff] }
 0x5fe   : > { %6397 = vmatpush.bf16.msrb.mxu2 %v11379_v0 }
 0x5ff   : > { %v11836_v37 = vpop.permute.xlu0 %11835 }
 0x600   : > { %v11838_v55 = vunpack.i.h.bf16 %v11836_v37  ;;  %v11837_v39 = vunpack.i.l.bf16 %v11836_v37  ;;  %v11387_v37 = vld [vmem:[%s16628_s7 + $0xb0] sm:$0xff] }
 0x602   : > { %v5236_v57 = vsel %vm3071_vm5, %v14672_v20, %v11837_v39  ;;  %v5237_v28 = vsel %vm3071_vm5, %v14710_v27, %v11838_v55  ;;  %v14844_v20 = vpop.f32.mrf.mxu2  ;;  %v5247_v27 = vpack.c.bf16 %v14687_v34, %v14477_v7  ;;  %6398 = vmatpush.bf16.msrb.mxu2 %v11378_v45  ;;  %v11428_v55 = vld [vmem:[%s16628_s7 + $0x1f8] sm:$0xff] }
 0x603   : > { %v5253_v19 = vpack.c.bf16 %v5237_v28, %v5236_v57 }
 0x605   : > { %5558 = vmatmul.bf16.gmra.mxu2 %v5245_v22 }
 0x606   : > { %6399 = vmatpush.bf16.msrb.mxu2 %v11377_v36  ;;  %v11423_v36 = vld [vmem:[%s16628_s7 + $0x1d0] sm:$0xff] }
 0x60a   : > { %v14849_v35 = vpop.f32.mrf.mxu2  ;;  %6400 = vmatpush.bf16.msrb.mxu2 %v11376_v16 }
 0x60d   : > { %5539 = vmatmul.bf16.gmra.mxu3 %v5252_v6 }
 0x60e   : > { %6401 = vmatpush.bf16.msrb.mxu2 %v11375_v62 }
 0x612   : > { %v14867_v34 = vpop.f32.mrf.mxu2  ;;  %6402 = vmatpush.bf16.msrb.mxu2 %v11374_v54  ;;  %v16897_v54 = vld [vmem:[#allocation2_spill] sm:$0xff] }
 0x615   : > { %5563 = vmatmul.bf16.gmra.mxu2 %v5249_v38  ;;  %v14974_v38 = vld [vmem:[%s16627_s6] ss:$0 sm:$0xff] }
 0x616   : > { %6403 = vmatpush.bf16.msrb.mxu2 %v11373_v25  ;;  %v5497_v28 = vadd.f32 %v14974_v38, %v14839_v32  ;;  %v5502_v45 = vadd.f32 %v14974_v38, %v14849_v35 }
 0x618   : > { %v5526_v2 = vadd.f32 %v14874_v56, %v5497_v28 }
 0x61d   : > { %5582 = vmatmul.bf16.vlgmr.msrb.gmra.mxu3 %v14627_v51  ;;  %v5243_v51 = vpack.c.bf16 %v14474_v53, %v14566_v44  ;;  %v11392_v53 = vld [vmem:[%s16628_s7 + $0xd8] sm:$0xff] }
 0x61e   : > { %11527 = vmatpush.bf16.msra.mxu1 %v11392_v53  ;;  %6458 = vmatpush.bf16.msra.mxu0 %v11392_v53  ;;  %v5499_v53 = vadd.f32 %v14974_v38, %v14844_v20 }
 0x620   : > { %v5528_v46 = vadd.f32 %v14884_v12, %v5499_v53 }
 0x622   : > { %11528 = vmatpush.bf16.msra.mxu1 %v11391_v59  ;;  %6459 = vmatpush.bf16.msra.mxu0 %v11391_v59 }
 0x625   : > { %5568 = vmatmul.bf16.gmra.mxu2 %v5253_v19  ;;  %v11427_v19 = vld [vmem:[%s16628_s7 + $0x1f0] sm:$0xff] }
 0x626   : > { %11529 = vmatpush.bf16.msra.mxu1 %v11390_v33  ;;  %6460 = vmatpush.bf16.msra.mxu0 %v11390_v33 }
 0x62a   : > { %6461 = vmatpush.bf16.msra.mxu0 %v11389_v11  ;;  %11530 = vmatpush.bf16.msra.mxu1 %v11389_v11 }
 0x62d   : > { %5587 = vmatmul.bf16.gmra.mxu3 %v14739_v31  ;;  %v5238_v31 = vsel %vm3071_vm5, %v14701_v5, %v5212_v30  ;;  %v5251_v5 = vpack.c.bf16 %v14713_v21, %v14683_v14  ;;  %v11371_v21 = vld [vmem:[%s16628_s7 + $0x30] sm:$0xff]  ;;  %v11426_v30 = vld [vmem:[%s16628_s7 + $0x1e8] sm:$0xff] }
 0x62e   : > { %v10541_v7 = vpack.c.bf16 %v16881_v8, %v5238_v31  ;;  %6368 = vmatpush.bf16.msra.mxu3 %v11371_v21  ;;  %6570 = vmatpush.bf16.msrb.mxu0 %v11428_v55 }
 0x632   : > { %6369 = vmatpush.bf16.msra.mxu3 %v11370_v4  ;;  %6571 = vmatpush.bf16.msrb.mxu0 %v11427_v19  ;;  %v5504_v19 = vadd.f32 %v14974_v38, %v14867_v34 }
 0x635   : > { %10543 = vmatmul.msk.bf16.vlgmr.msra.gmra.mxu2 %vm3071_vm5, %v5243_v51 }
 0x636   : > { %6370 = vmatpush.bf16.msra.mxu3 %v11369_v9  ;;  %6572 = vmatpush.bf16.msrb.mxu0 %v11426_v30  ;;  %v16896_v9 = vmov 0.0  }
 0x63a   : > { %6371 = vmatpush.bf16.msra.mxu3 %v11368_v43 }
 0x63d   : > { %5592 = vmatmul.bf16.gmra.mxu3 %v14773_v58  ;;  %v14872_v58 = vpop.f32.mrf.mxu2 }
 0x63e   : > { %6372 = vmatpush.bf16.msra.mxu3 %v11367_v47 }
 0x642   : > { %6373 = vmatpush.bf16.msra.mxu3 %v11366_v18 }
 0x645   : > { %10544 = vmatmul.msk.bf16.gmra.mxu2 %vm3071_vm5, %v5247_v27  ;;  %v14876_v13 = vpop.f32.mrf.mxu2  ;;  %v11386_v27 = vld [vmem:[%s16628_s7 + $0xa8] sm:$0xff] }
 0x646   : > { %6374 = vmatpush.bf16.msra.mxu3 %v11365_v1 }
 0x64a   : > { %6425 = vmatpush.bf16.msrb.mxu3 %v11388_v24 }
 0x64d   : > { %10542 = vmatmul.msk.bf16.gmra.mxu3 %vm14860_vm1, %v10541_v7 }
 0x64e   : > { %6426 = vmatpush.bf16.msrb.mxu3 %v11387_v37 }
 0x652   : > { %6427 = vmatpush.bf16.msrb.mxu3 %v11386_v27 }
 0x655   : > { %10545 = vmatmul.msk.bf16.gmra.mxu2 %vm3071_vm5, %v5251_v5  ;;  %v11425_v5 = vld [vmem:[%s16628_s7 + $0x1e0] sm:$0xff] }
 0x656   : > { %6573 = vmatpush.bf16.msrb.mxu0 %v11425_v5  ;;  %6428 = vmatpush.bf16.msrb.mxu3 %v11385_v3 }
 0x665   : > { %10546 = vmatmul.msk.bf16.gmra.mxu2 %vm3071_vm5, %v5255_v29 }
 0x668   : > { %v14886_v14 = vpop.f32.mrf.mxu2 }
 0x670   : > { %v14894_v61 = vpop.f32.mrf.mxu2  ;;  %v14896_v41 = vpop.f32.mrf.mxu3 }
 0x671   : > { %v5531_v62 = vadd.f32 %v14896_v41, %v5502_v45  ;;  %v11384_v41 = vld [vmem:[%s16628_s7 + $0x98] sm:$0xff] }
 0x672   : > { %6429 = vmatpush.bf16.msrb.mxu3 %v11384_v41 }
 0x678   : > { %v14901_v42 = vpop.f32.mrf.mxu3  ;;  %v5554_v50 = vpop.f32.mrf.mxu2 }
 0x679   : > { %v5555_v51 = vadd.f32 %v5554_v50, %v5526_v2  ;;  %v5533_v27 = vadd.f32 %v14901_v42, %v5504_v19  ;;  %v11408_v19 = vld [vmem:[%s16628_s7 + $0x158] sm:$0xff] }
 0x680   : > { %v14906_v52 = vpop.f32.mrf.mxu3  ;;  %v14908_v26 = vpop.f32.mrf.mxu2 }
 0x681   : > { %v5557_v59 = vadd.f32 %v14908_v26, %v5528_v46  ;;  %v11424_v26 = vld [vmem:[%s16628_s7 + $0x1d8] sm:$0xff] }
 0x682   : > { %6574 = vmatpush.bf16.msrb.mxu0 %v11424_v26  ;;  %v5507_v26 = vadd.f32 %v14974_v38, %v14872_v58  ;;  %v11410_v58 = vld [vmem:[%s16628_s7 + $0x168] sm:$0xff] }
 0x686   : > { %6575 = vmatpush.bf16.msrb.mxu0 %v11423_v36 }
 0x688   : > { %v14916_v23 = vpop.f32.mrf.mxu3  ;;  %v14918_v63 = vpop.f32.mrf.mxu2 }
 0x689   : > { %v5560_v35 = vadd.f32 %v14918_v63, %v5531_v62  ;;  %v11422_v63 = vld [vmem:[%s16628_s7 + $0x1c8] sm:$0xff] }
 0x68a   : > { %6576 = vmatpush.bf16.msrb.mxu0 %v11422_v63  ;;  %v5509_v63 = vadd.f32 %v14974_v38, %v14876_v13 }
 0x690   : > { %v14932_v49 = vpop.f32.mrf.mxu2  ;;  %v14940_v22 = vpop.f32.mrf.mxu3 }
 0x691   : > { %v5562_v34 = vadd.f32 %v14932_v49, %v5533_v27  ;;  %v11383_v49 = vld [vmem:[%s16628_s7 + $0x90] sm:$0xff] }
 0x692   : > { %6430 = vmatpush.bf16.msrb.mxu3 %v11383_v49 }
 0x698   : > { %v14945_v40 = vpop.f32.mrf.mxu2  ;;  %v14947_v60 = vpop.f32.mrf.mxu3 }
 0x6a0   : > { %v14952_v15 = vpop.f32.mrf.mxu2  ;;  %v5583_v6 = vpop.f32.mrf.mxu3 }
 0x6a1   : > { %v5584_v31 = vadd.f32 %v5583_v6, %v5555_v51  ;;  %v11421_v51 = vld [vmem:[%s16628_s7 + $0x1c0] sm:$0xff] }
 0x6a2   : > { %6577 = vmatpush.bf16.msrb.mxu0 %v11421_v51 }
 0x6a8   : > { %v14966_v17 = vpop.f32.mrf.mxu2  ;;  %v5585_v39 = vpop.f32.mrf.mxu3 }
 0x6a9   : > { %v5586_v20 = vadd.f32 %v5585_v39, %v5557_v59  ;;  %v11412_v39 = vld [vmem:[%s16628_s7 + $0x178] sm:$0xff] }
 0x6aa   : > { %6512 = vmatpush.bf16.msra.mxu2 %v11412_v39 }
 0x6b0   : > { %v14982_v57 = vpop.f32.mrf.mxu2  ;;  %v5588_v56 = vpop.f32.mrf.mxu3 }
 0x6b1   : > { %v5589_v37 = vadd.f32 %v5588_v56, %v5560_v35  ;;  %v11402_v35 = vld [vmem:[%s16628_s7 + $0x128] sm:$0xff] }
 0x6b8   : > { %v5612_v32 = vpop.f32.mrf.mxu2  ;;  %v5590_v24 = vpop.f32.mrf.mxu3 }
 0x6b9   : > { %v5613_v7 = vadd.f32 %v5612_v32, %v5584_v31  ;;  %v5591_v46 = vadd.f32 %v5590_v24, %v5562_v34  ;;  %v11382_v24 = vld [vmem:[%s16628_s7 + $0x88] sm:$0xff] }
 0x6ba   : > { %6431 = vmatpush.bf16.msrb.mxu3 %v11382_v24 }
 0x6bb   : > { %v5632_v29 = vmax.f32 %v5613_v7, 0.0 }
 0x6bd   : > { %v5793_v4 = vrot.slane %v5632_v29, 7 }
 0x6bf   : > { %v15012_v50 = vsel %vm570_vm0, 0.0, %v5793_v4  ;;  %v15015_v12 = vsel %vm570_vm0, %v5793_v4, 0.0  ;;  %v10837_v43 = vpack.c.bf16 %v5793_v4, %v16896_v9 }
 0x6c0   : > { %v5839_v47 = vrot.slane %v15012_v50, 1  ;;  %v5840_v0 = vrot.slane %v15015_v12, 1  ;;  %v5614_v33 = vpop.f32.mrf.mxu2  ;;  %v5593_v7 = vpop.f32.mrf.mxu3 }
 0x6c1   : > { %v5615_v18 = vadd.f32 %v5614_v33, %v5586_v20  ;;  %10838 = vmatmul.msk.bf16.vlgmr.msra.gmra.mxu3 %vm10836_vm7, %v10837_v43  ;;  %vm15041_vm7 = vmpackc.low %vm15003_vm6, %vm15003_vm6  ;;  %v11411_v20 = vld [vmem:[%s16628_s7 + $0x170] sm:$0xff] }
 0x6c2   : > { %v15032_v16 = vsel %vm746_vm3, %v5839_v47, %v5840_v0  ;;  %v11403_v0 = vld [vmem:[%s16628_s7 + $0x130] sm:$0xff]  ;;  %6513 = vmatpush.bf16.msra.mxu2 %v11411_v20 }
 0x6c3   : > { %v5633_v1 = vmax.f32 %v5615_v18, 0.0  ;;  %v5906_v6 = vpack.c.bf16 %v15032_v16, %v16897_v54  ;;  %v5536_v18 = vadd.f32 %v14906_v52, %v5507_v26  ;;  %v11409_v52 = vld [vmem:[%s16628_s7 + $0x160] sm:$0xff]  ;;  %v11399_v26 = vld [vmem:[%s16628_s7 + $0x110] sm:$0xff] }
 0x6c5   : > { %v5794_v25 = vrot.slane %v5633_v1, 7  ;;  %6404 = vmatmul.bf16.vlgmr.msrb.gmra.mxu2 %v5906_v6  ;;  %v5565_v1 = vadd.f32 %v14945_v40, %v5536_v18  ;;  %v11381_v40 = vld [vmem:[%s16628_s7 + $0x80] sm:$0xff]  ;;  %v11406_v18 = vld [vmem:[%s16628_s7 + $0x148] sm:$0xff] }
 0x6c6   : > { %6514 = vmatpush.bf16.msra.mxu2 %v11410_v58  ;;  %6432 = vmatpush.bf16.msrb.mxu3 %v11381_v40 }
 0x6c7   : > { %v10857_v55 = vpack.c.bf16 %v5794_v25, %v5793_v4  ;;  %v15063_v31 = vsel %vm570_vm0, 0.0, %v5794_v25  ;;  %v15066_v32 = vsel %vm570_vm0, %v5794_v25, 0.0  ;;  %v11404_v4 = vld [vmem:[%s16628_s7 + $0x138] sm:$0xff] }
 0x6c8   : > { %v5617_v28 = vpop.f32.mrf.mxu2  ;;  %v5842_v5 = vrot.slane %v15063_v31, 1  ;;  %v5843_v56 = vrot.slane %v15066_v32, 1  ;;  %6483 = vmatpush.bf16.msrb.mxu1 %v11404_v4 }
 0x6c9   : > { %v5618_v2 = vadd.f32 %v5617_v28, %v5589_v37  ;;  %10858 = vmatmul.msk.bf16.vlgmr.msra.gmra.mxu0 %vm15041_vm7, %v10857_v55  ;;  %v5595_v55 = vpop.f32.mrf.mxu3  ;;  %v11401_v28 = vld [vmem:[%s16628_s7 + $0x120] sm:$0xff] }
 0x6ca   : > { %v15099_v33 = vsel %vm746_vm3, %v5842_v5, %v5843_v56  ;;  %6515 = vmatpush.bf16.msra.mxu2 %v11409_v52  ;;  %v11407_v5 = vld [vmem:[%s16628_s7 + $0x150] sm:$0xff]  ;;  %v11398_v52 = vld [vmem:[%s16628_s7 + $0x108] sm:$0xff] }
 0x6cb   : > { %v5634_v30 = vmax.f32 %v5618_v2, 0.0  ;;  %v5538_v2 = vadd.f32 %v14916_v23, %v5509_v63  ;;  %v11397_v63 = vld [vmem:[%s16628_s7 + $0x100] sm:$0xff] }
 0x6cc   : > { %6484 = vmatpush.bf16.msrb.mxu1 %v11403_v0 }
 0x6cd   : > { %v5795_v53 = vrot.slane %v5634_v30, 7  ;;  %v5567_v30 = vadd.f32 %v14952_v15, %v5538_v2 }
 0x6ce   : > { %6516 = vmatpush.bf16.msra.mxu2 %v11408_v19 }
 0x6cf   : > { %v15072_v29 = vsel %vm570_vm0, 0.0, %v5795_v53  ;;  %v15075_v42 = vsel %vm570_vm0, %v5795_v53, 0.0  ;;  %v15077_v59 = vpack.c.bf16 %v5795_v53, %v5794_v25  ;;  %v5594_v25 = vadd.f32 %v5593_v7, %v5565_v1 }
 0x6d0   : > { %v5619_v9 = vpop.f32.mrf.mxu2  ;;  %v5845_v43 = vrot.slane %v15072_v29, 1  ;;  %v5846_v3 = vrot.slane %v15075_v42, 1  ;;  %6485 = vmatpush.bf16.msrb.mxu1 %v11402_v35  ;;  %v5596_v56 = vadd.f32 %v5595_v55, %v5567_v30  ;;  %v5514_v55 = vadd.f32 %v14974_v38, %v14894_v61 }
 0x6d1   : > { %v5620_v47 = vadd.f32 %v5619_v9, %v5591_v46  ;;  %10843 = vmatmul.msk.bf16.gmra.mxu3 %vm15041_vm7, %v15077_v59  ;;  %v5598_v0 = vpop.f32.mrf.mxu3 }
 0x6d2   : > { %v15102_v45 = vsel %vm746_vm3, %v5845_v43, %v5846_v3  ;;  %v5512_v43 = vadd.f32 %v14974_v38, %v14886_v14  ;;  %6517 = vmatpush.bf16.msra.mxu2 %v11407_v5 }
 0x6d3   : > { %v5635_v36 = vmax.f32 %v5620_v47, 0.0  ;;  %v15110_v62 = vpack.c.bf16 %v15102_v45, %v15099_v33  ;;  %v11420_v47 = vld [vmem:[%s16628_s7 + $0x1b8] sm:$0xff] }
 0x6d4   : > { %6486 = vmatpush.bf16.msrb.mxu1 %v11401_v28  ;;  %6541 = vmatpush.bf16.msra.mxu3 %v11420_v47 }
 0x6d5   : > { %v5796_v6 = vrot.slane %v5635_v36, 7  ;;  %6409 = vmatmul.bf16.gmra.mxu2 %v15110_v62  ;;  %v5541_v36 = vadd.f32 %v14940_v22, %v5512_v43 }
 0x6d6   : > { %6518 = vmatpush.bf16.msra.mxu2 %v11406_v18 }
 0x6d7   : > { %v10862_v37 = vpack.c.bf16 %v5796_v6, %v5795_v53  ;;  %v15138_v27 = vsel %vm570_vm0, 0.0, %v5796_v6  ;;  %v15141_v13 = vsel %vm570_vm0, %v5796_v6, 0.0  ;;  %v11400_v53 = vld [vmem:[%s16628_s7 + $0x118] sm:$0xff]  ;;  %v5570_v24 = vadd.f32 %v14966_v17, %v5541_v36  ;;  %v11419_v17 = vld [vmem:[%s16628_s7 + $0x1b0] sm:$0xff] }
 0x6d8   : > { %v5622_v41 = vpop.f32.mrf.mxu2  ;;  %v5848_v7 = vrot.slane %v15138_v27, 1  ;;  %v5849_v23 = vrot.slane %v15141_v13, 1  ;;  %6487 = vmatpush.bf16.msrb.mxu1 %v11400_v53  ;;  %6542 = vmatpush.bf16.msra.mxu3 %v11419_v17  ;;  %v5867_v36 = vrot.slane %v15012_v50, 2  ;;  %v5871_v50 = vrot.slane %v15066_v32, 2  ;;  %v11432_v17 = vld [vmem:[%s16628_s7 + $0x218] sm:$0xff] }
 0x6d9   : > { %v5623_v39 = vadd.f32 %v5622_v41, %v5594_v25  ;;  %10863 = vmatmul.msk.bf16.gmra.mxu0 %vm15041_vm7, %v10862_v37  ;;  %v11405_v25 = vld [vmem:[%s16628_s7 + $0x140] sm:$0xff]  ;;  %v5599_v22 = vadd.f32 %v5598_v0, %v5570_v24  ;;  %v5600_v19 = vpop.f32.mrf.mxu3  ;;  %v5873_v32 = vrot.slane %v15072_v29, 2  ;;  %v5877_v29 = vrot.slane %v15141_v13, 2 }
 0x6da   : > { %v15174_v58 = vsel %vm746_vm3, %v5848_v7, %v5849_v23  ;;  %6519 = vmatpush.bf16.msra.mxu2 %v11405_v25  ;;  %v11417_v24 = vld [vmem:[%s16628_s7 + $0x1a0] sm:$0xff] }
 0x6db   : > { %v5636_v51 = vmax.f32 %v5623_v39, 0.0  ;;  %v5543_v39 = vadd.f32 %v14947_v60, %v5514_v55  ;;  %v5874_v55 = vrot.slane %v15075_v42, 2 }
 0x6dc   : > { %6488 = vmatpush.bf16.msrb.mxu1 %v11399_v26 }
 0x6dd   : > { %v5797_v34 = vrot.slane %v5636_v51, 7  ;;  %v5572_v2 = vadd.f32 %v14982_v57, %v5543_v39 }
 0x6df   : > { %v15153_v46 = vsel %vm570_vm0, 0.0, %v5797_v34  ;;  %v15156_v15 = vsel %vm570_vm0, %v5797_v34, 0.0  ;;  %v15158_v49 = vpack.c.bf16 %v5797_v34, %v5796_v6 }
 0x6e0   : > { %v5624_v4 = vpop.f32.mrf.mxu2  ;;  %v5851_v20 = vrot.slane %v15153_v46, 1  ;;  %v5852_v9 = vrot.slane %v15156_v15, 1  ;;  %6489 = vmatpush.bf16.msrb.mxu1 %v11398_v52  ;;  %v5870_v52 = vrot.slane %v15063_v31, 2  ;;  %v5909_v31 = vpack.c.bf16 %v15099_v33, %v15032_v16 }
 0x6e1   : > { %v5625_v3 = vadd.f32 %v5624_v4, %v5596_v56  ;;  %10848 = vmatmul.msk.bf16.gmra.mxu3 %vm15041_vm7, %v15158_v49  ;;  %v5876_v16 = vrot.slane %v15138_v27, 2  ;;  %v11431_v27 = vld [vmem:[%s16628_s7 + $0x210] sm:$0xff] }
 0x6e2   : > { %v15177_v14 = vsel %vm746_vm3, %v5851_v20, %v5852_v9  ;;  %v11418_v20 = vld [vmem:[%s16628_s7 + $0x1a8] sm:$0xff]  ;;  %v11435_v9 = vld [vmem:[%s16628_s7 + $0x230] sm:$0xff] }
 0x6e3   : > { %v5637_v1 = vmax.f32 %v5625_v3, 0.0  ;;  %v5918_v6 = vpack.c.bf16 %v15177_v14, %v15174_v58  ;;  %6543 = vmatpush.bf16.msra.mxu3 %v11418_v20 }
 0x6e4   : > { %6490 = vmatpush.bf16.msrb.mxu1 %v11397_v63  ;;  %v5875_v63 = vsel %vm1155_vm4, %v5873_v32, %v5874_v55 }
 0x6e5   : > { %v5798_v35 = vrot.slane %v5637_v1, 7  ;;  %6414 = vmatmul.bf16.gmra.mxu2 %v5918_v6  ;;  %v5868_v1 = vrot.slane %v15015_v12, 2 }
 0x6e7   : > { %v10867_v37 = vpack.c.bf16 %v5798_v35, %v5797_v34  ;;  %v15205_v61 = vsel %vm570_vm0, 0.0, %v5798_v35  ;;  %v15208_v38 = vsel %vm570_vm0, %v5798_v35, 0.0  ;;  %v5601_v34 = vadd.f32 %v5600_v19, %v5572_v2  ;;  %6544 = vmatpush.bf16.msra.mxu3 %v11417_v24  ;;  %v11414_v2 = vld [vmem:[%s16628_s7 + $0x188] sm:$0xff] }
 0x6e8   : > { %v5627_v40 = vpop.f32.mrf.mxu2  ;;  %v5854_v30 = vrot.slane %v15205_v61, 1  ;;  %v5855_v60 = vrot.slane %v15208_v38, 1  ;;  %v5869_v12 = vsel %vm1155_vm4, %v5867_v36, %v5868_v1 }
 0x6e9   : > { %v5628_v41 = vadd.f32 %v5627_v40, %v5599_v22  ;;  %10868 = vmatmul.msk.bf16.vlgmr.msra.gmra.mxu1 %vm15041_vm7, %v10867_v37  ;;  %6578 = vmatmul.bf16.vlgmr.msrb.gmra.mxu0 %v15110_v62  ;;  %v11436_v62 = vld [vmem:[%s16628_s7 + $0x238] sm:$0xff]  ;;  %v5907_v25 = vpack.c.bf16 %v5869_v12, %v16888_v48  ;;  %v11433_v37 = vld [vmem:[%s16628_s7 + $0x220] sm:$0xff] }
 0x6ea   : > { %6599 = vmatpush.bf16.msra.mxu1 %v11436_v62  ;;  %v15236_v43 = vsel %vm746_vm3, %v5854_v30, %v5855_v60  ;;  %v11416_v22 = vld [vmem:[%s16628_s7 + $0x198] sm:$0xff]  ;;  %v5915_v30 = vpack.c.bf16 %v15174_v58, %v15102_v45 }
 0x6eb   : > { %v5638_v28 = vmax.f32 %v5628_v41, 0.0  ;;  %6545 = vmatpush.bf16.msra.mxu3 %v11416_v22  ;;  %v11415_v41 = vld [vmem:[%s16628_s7 + $0x190] sm:$0xff] }
 0x6ed   : > { %v5799_v51 = vrot.slane %v5638_v28, 7  ;;  %v5878_v28 = vsel %vm1155_vm4, %v5876_v16, %v5877_v29 }
 0x6ee   : > { %6600 = vmatpush.bf16.msra.mxu1 %v11435_v9  ;;  %v5916_v13 = vpack.c.bf16 %v5878_v28, %v5875_v63  ;;  %v5921_v9 = vpack.c.bf16 %v15236_v43, %v15177_v14  ;;  %v15323_v14 = vld [vmem:[%s16629_s8] ss:$0 sm:$0xff] }
 0x6ef   : > { %v15217_v53 = vsel %vm570_vm0, 0.0, %v5799_v51  ;;  %v15220_v7 = vsel %vm570_vm0, %v5799_v51, 0.0  ;;  %v15222_v23 = vpack.c.bf16 %v5799_v51, %v5798_v35  ;;  %v11434_v35 = vld [vmem:[%s16628_s7 + $0x228] sm:$0xff]  ;;  %6546 = vmatpush.bf16.msra.mxu3 %v11415_v41 }
 0x6f0   : > { %v5629_v5 = vpop.f32.mrf.mxu2  ;;  %v5857_v56 = vrot.slane %v15217_v53, 1  ;;  %v5858_v57 = vrot.slane %v15220_v7, 1 }
 0x6f1   : > { %v5630_v4 = vadd.f32 %v5629_v5, %v5601_v34  ;;  %10853 = vmatmul.msk.bf16.gmra.mxu3 %vm15041_vm7, %v15222_v23  ;;  %v5879_v34 = vrot.slane %v15153_v46, 2  ;;  %v5880_v5 = vrot.slane %v15156_v15, 2  ;;  %v5883_v46 = vrot.slane %v15208_v38, 2 }
 0x6f2   : > { %v15239_v3 = vsel %vm746_vm3, %v5857_v56, %v5858_v57  ;;  %6601 = vmatpush.bf16.msra.mxu1 %v11434_v35  ;;  %v11413_v56 = vld [vmem:[%s16628_s7 + $0x180] sm:$0xff]  ;;  %v11430_v57 = vld [vmem:[%s16628_s7 + $0x208] sm:$0xff] }
 0x6f3   : > { %v5639_v26 = vmax.f32 %v5630_v4, 0.0  ;;  %v5924_v47 = vpack.c.bf16 %v15239_v3, %v15236_v43  ;;  %6547 = vmatpush.bf16.msra.mxu3 %v11414_v2  ;;  %v5881_v45 = vsel %vm1155_vm4, %v5879_v34, %v5880_v5  ;;  %v11429_v4 = vld [vmem:[%s16628_s7 + $0x200] sm:$0xff] }
 0x6f4   : > { %v5919_v58 = vpack.c.bf16 %v5881_v45, %v5878_v28 }
 0x6f5   : > { %v15243_v0 = vrot.slane %v5639_v26, 7  ;;  %6419 = vmatmul.bf16.gmra.mxu2 %v5924_v47  ;;  %v5885_v26 = vrot.slane %v15217_v53, 2 }
 0x6f6   : > { %6602 = vmatpush.bf16.msra.mxu1 %v11433_v37 }
 0x6f7   : > { %v10872_v18 = vpack.c.bf16 %v15243_v0, %v5799_v51  ;;  %v5816_v42 = vsel %vm570_vm0, 0.0, %v15243_v0  ;;  %v5824_v33 = vsel %vm570_vm0, %v15243_v0, 0.0  ;;  %6548 = vmatpush.bf16.msra.mxu3 %v11413_v56 }
 0x6f8   : > { %v5897_v62 = vrot.slane %v5816_v42, 1  ;;  %v5898_v19 = vrot.slane %v5824_v33, 1 }
 0x6f9   : > { %10873 = vmatmul.msk.bf16.gmra.mxu1 %vm15041_vm7, %v10872_v18  ;;  %6583 = vmatmul.bf16.gmra.mxu0 %v5918_v6  ;;  %v5872_v6 = vsel %vm1155_vm4, %v5870_v52, %v5871_v50  ;;  %v5902_v18 = vrot.slane %v5824_v33, 2 }
 0x6fa   : > { %v5910_v40 = vpack.c.bf16 %v5872_v6, %v5869_v12  ;;  %6603 = vmatpush.bf16.msra.mxu1 %v11432_v17  ;;  %v5913_v39 = vpack.c.bf16 %v5875_v63, %v5872_v6  ;;  %v5899_v51 = vsel %vm746_vm3, %v5897_v62, %v5898_v19  ;;  %v10891_v63 = vpack.c.bf16 0.0, %v15243_v0 }
 0x6fb   : > { %v5930_v60 = vpack.c.bf16 %v16897_v54, %v5899_v51  ;;  %v5882_v54 = vrot.slane %v15205_v61, 2  ;;  %v5886_v61 = vrot.slane %v15220_v7, 2  ;;  %v5927_v35 = vpack.c.bf16 %v5899_v51, %v15239_v3 }
 0x6fd   : > { %v5884_v15 = vsel %vm1155_vm4, %v5882_v54, %v5883_v46  ;;  %v5887_v38 = vsel %vm1155_vm4, %v5885_v26, %v5886_v61 }
 0x6fe   : > { %6604 = vmatpush.bf16.msra.mxu1 %v11431_v27  ;;  %v5922_v20 = vpack.c.bf16 %v5884_v15, %v5881_v45  ;;  %v5925_v36 = vpack.c.bf16 %v5887_v38, %v5884_v15 }
 0x701   : > { %6433 = vmatmul.bf16.vlgmr.msrb.gmra.mxu3 %v5907_v25 }
 0x702   : > { %6605 = vmatpush.bf16.msra.mxu1 %v11430_v57 }
 0x705   : > { %6520 = vmatmul.bf16.vlgmr.msra.gmra.mxu2 %v5910_v40 }
 0x706   : > { %6606 = vmatpush.bf16.msra.mxu1 %v11429_v4 }
 0x709   : > { %6491 = vmatmul.bf16.vlgmr.msrb.gmra.mxu1 %v5909_v31  ;;  %6588 = vmatmul.bf16.gmra.mxu0 %v5924_v47  ;;  %v5901_v47 = vrot.slane %v5816_v42, 2 }
 0x70b   : > { %v5903_v1 = vsel %vm1155_vm4, %v5901_v47, %v5902_v18 }
 0x70c   : > { %v5928_v24 = vpack.c.bf16 %v5903_v1, %v5887_v38  ;;  %v5931_v42 = vpack.c.bf16 %v16888_v48, %v5903_v1 }
 0x711   : > { %6438 = vmatmul.bf16.gmra.mxu3 %v5913_v39 }
 0x715   : > { %6525 = vmatmul.bf16.gmra.mxu2 %v5916_v13 }
 0x719   : > { %6496 = vmatmul.bf16.gmra.mxu1 %v5915_v30  ;;  %6593 = vmatmul.bf16.gmra.mxu0 %v5930_v60 }
 0x721   : > { %6443 = vmatmul.bf16.gmra.mxu3 %v5919_v58 }
 0x725   : > { %6530 = vmatmul.bf16.gmra.mxu2 %v5922_v20 }
 0x729   : > { %6501 = vmatmul.bf16.gmra.mxu1 %v5921_v9 }
 0x731   : > { %6448 = vmatmul.bf16.gmra.mxu3 %v5925_v36 }
 0x735   : > { %6535 = vmatmul.bf16.gmra.mxu2 %v5928_v24 }
 0x739   : > { %6506 = vmatmul.bf16.gmra.mxu1 %v5927_v35 }
 0x741   : > { %10878 = vmatmul.msk.bf16.vlgmr.msra.gmra.mxu3 %vm15041_vm7, %v15077_v59 }
 0x744   : > { %v6376_v53 = vpop.f32.mrf.mxu3 }
 0x745   : > { %v6377_v7 = vadd.f32 %v15323_v14, %v6376_v53 }
 0x746   : > { %v6463_v21 = vpop.f32.mrf.mxu0 }
 0x748   : > { %v6405_v43 = vpop.f32.mrf.mxu2 }
 0x749   : > { %v6406_v52 = vadd.f32 %v6405_v43, %v6377_v7  ;;  %6607 = vmatmul.bf16.vlgmr.msra.gmra.mxu1 %v5913_v39 }
 0x74c   : > { %v15326_v50 = vpop.f32.mrf.mxu3 }
 0x74e   : > { %v6465_v51 = vpop.f32.mrf.mxu0 }
 0x750   : > { %v15328_v12 = vpop.f32.mrf.mxu2 }
 0x751   : > { %10883 = vmatmul.msk.bf16.gmra.mxu3 %vm15041_vm7, %v15158_v49 }
 0x754   : > { %v6381_v59 = vpop.f32.mrf.mxu3 }
 0x755   : > { %v6382_v3 = vadd.f32 %v15323_v14, %v6381_v59 }
 0x756   : > { %v6468_v56 = vpop.f32.mrf.mxu0 }
 0x758   : > { %v6410_v25 = vpop.f32.mrf.mxu2 }
 0x759   : > { %v6411_v6 = vadd.f32 %v6410_v25, %v6382_v3  ;;  %6612 = vmatmul.bf16.gmra.mxu1 %v5919_v58 }
 0x75c   : > { %v15334_v22 = vpop.f32.mrf.mxu3 }
 0x75e   : > { %v6470_v18 = vpop.f32.mrf.mxu0 }
 0x760   : > { %v15336_v37 = vpop.f32.mrf.mxu2 }
 0x761   : > { %10888 = vmatmul.msk.bf16.gmra.mxu3 %vm15041_vm7, %v15222_v23 }
 0x764   : > { %v6386_v40 = vpop.f32.mrf.mxu3 }
 0x765   : > { %v6387_v32 = vadd.f32 %v15323_v14, %v6386_v40 }
 0x766   : > { %v6473_v31 = vpop.f32.mrf.mxu1  ;;  %v6579_v43 = vpop.f32.mrf.mxu0 }
 0x768   : > { %v6415_v55 = vpop.f32.mrf.mxu2 }
 0x769   : > { %v6416_v49 = vadd.f32 %v6415_v55, %v6387_v32  ;;  %6617 = vmatmul.bf16.gmra.mxu1 %v5925_v36 }
 0x76c   : > { %v15342_v41 = vpop.f32.mrf.mxu3 }
 0x76e   : > { %v15344_v17 = vpop.f32.mrf.mxu1  ;;  %v6581_v32 = vpop.f32.mrf.mxu0 }
 0x770   : > { %v15350_v16 = vpop.f32.mrf.mxu2 }
 0x771   : > { %10892 = vmatmul.msk.bf16.gmra.mxu3 %vm10890_vm2, %v10891_v63  ;;  %vm6950_vm2 = vcmask 1041409  }
 0x774   : > { %v6391_v11 = vpop.f32.mrf.mxu3 }
 0x775   : > { %v6392_v29 = vadd.f32 %v15323_v14, %v6391_v11  ;;  %v11452_v11 = vld [vmem:[%s16630_s9 + $0x78] sm:$0xff] }
 0x776   : > { %v6478_v23 = vpop.f32.mrf.mxu1  ;;  %7090 = vmatpush.bf16.msrb.mxu3 %v11452_v11 }
 0x778   : > { %v6420_v33 = vpop.f32.mrf.mxu2 }
 0x779   : > { %v6421_v39 = vadd.f32 %v6420_v33, %v6392_v29  ;;  %6622 = vmatmul.bf16.gmra.mxu1 %v5931_v42 }
 0x77c   : > { %v15354_v28 = vpop.f32.mrf.mxu3 }
 0x77e   : > { %v15356_v62 = vpop.f32.mrf.mxu1 }
 0x780   : > { %v15362_v61 = vpop.f32.mrf.mxu2 }
 0x784   : > { %v6434_v19 = vpop.f32.mrf.mxu3 }
 0x785   : > { %v6435_v2 = vadd.f32 %v6434_v19, %v6406_v52  ;;  %v6379_v52 = vadd.f32 %v15323_v14, %v15326_v50  ;;  %v11444_v50 = vld [vmem:[%s16630_s9 + $0x38] sm:$0xff]  ;;  %v6384_v19 = vadd.f32 %v15323_v14, %v15334_v22  ;;  %v11451_v22 = vld [vmem:[%s16630_s9 + $0x70] sm:$0xff] }
 0x786   : > { %v6492_v0 = vpop.f32.mrf.mxu1  ;;  %7028 = vmatpush.bf16.msrb.mxu2 %v11444_v50  ;;  %7091 = vmatpush.bf16.msrb.mxu3 %v11451_v22 }
 0x787   : > { %v6464_v27 = vadd.f32 %v6463_v21, %v6435_v2  ;;  %v6408_v3 = vadd.f32 %v15328_v12, %v6379_v52  ;;  %v6584_v2 = vpop.f32.mrf.mxu0 }
 0x788   : > { %v6521_v24 = vpop.f32.mrf.mxu2 }
 0x789   : > { %v6493_v13 = vadd.f32 %v6492_v0, %v6464_v27 }
 0x78c   : > { %v6436_v30 = vpop.f32.mrf.mxu3 }
 0x78e   : > { %v6494_v60 = vpop.f32.mrf.mxu1 }
 0x790   : > { %v6523_v40 = vpop.f32.mrf.mxu2 }
 0x794   : > { %v6439_v34 = vpop.f32.mrf.mxu3 }
 0x795   : > { %v6440_v5 = vadd.f32 %v6439_v34, %v6411_v6  ;;  %v6437_v6 = vadd.f32 %v6436_v30, %v6408_v3 }
 0x796   : > { %v6497_v57 = vpop.f32.mrf.mxu1 }
 0x797   : > { %v6469_v45 = vadd.f32 %v6468_v56, %v6440_v5  ;;  %v6466_v55 = vadd.f32 %v6465_v51, %v6437_v6  ;;  %v6413_v51 = vadd.f32 %v15336_v37, %v6384_v19 }
 0x798   : > { %v6526_v42 = vpop.f32.mrf.mxu2 }
 0x799   : > { %v6498_v54 = vadd.f32 %v6497_v57, %v6469_v45  ;;  %v6495_v12 = vadd.f32 %v6494_v60, %v6466_v55 }
 0x79b   : > { %v6527_v60 = vadd.f32 %v6526_v42, %v6498_v54 }
 0x79c   : > { %v6441_v46 = vpop.f32.mrf.mxu3 }
 0x79d   : > { %v6442_v34 = vadd.f32 %v6441_v46, %v6413_v51 }
 0x79e   : > { %v15358_v58 = vpop.f32.mrf.mxu1 }
 0x7a0   : > { %v6528_v57 = vpop.f32.mrf.mxu2 }
 0x7a4   : > { %v6444_v15 = vpop.f32.mrf.mxu3 }
 0x7a5   : > { %v6445_v4 = vadd.f32 %v6444_v15, %v6416_v49 }
 0x7a6   : > { %v6502_v20 = vpop.f32.mrf.mxu1 }
 0x7a7   : > { %v6474_v9 = vadd.f32 %v6473_v31, %v6445_v4  ;;  %v6522_v31 = vadd.f32 %v6521_v24, %v6493_v13  ;;  %v11443_v4 = vld [vmem:[%s16630_s9 + $0x30] sm:$0xff] }
 0x7a8   : > { %7029 = vmatpush.bf16.msrb.mxu2 %v11443_v4 }
 0x7a9   : > { %v15360_v26 = vadd.f32 %v6502_v20, %v6474_v9  ;;  %v6471_v20 = vadd.f32 %v6470_v18, %v6442_v34  ;;  %v6586_v18 = vpop.f32.mrf.mxu0 }
 0x7ac   : > { %v15364_v38 = vpop.f32.mrf.mxu3 }
 0x7ae   : > { %v15366_v47 = vpop.f32.mrf.mxu1 }
 0x7b1   : > { %v6589_v4 = vpop.f32.mrf.mxu0 }
 0x7b4   : > { %v6449_v36 = vpop.f32.mrf.mxu3 }
 0x7b5   : > { %v6450_v1 = vadd.f32 %v6449_v36, %v6421_v39  ;;  %v6524_v39 = vadd.f32 %v6523_v40, %v6495_v12  ;;  %v6389_v40 = vadd.f32 %v15323_v14, %v15342_v41 }
 0x7b6   : > { %v6507_v35 = vpop.f32.mrf.mxu1 }
 0x7b7   : > { %v6479_v53 = vadd.f32 %v6478_v23, %v6450_v1  ;;  %v6418_v12 = vadd.f32 %v15350_v16, %v6389_v40 }
 0x7b9   : > { %v15368_v7 = vadd.f32 %v6507_v35, %v6479_v53  ;;  %v11450_v35 = vld [vmem:[%s16630_s9 + $0x68] sm:$0xff]  ;;  %v6447_v51 = vadd.f32 %v15364_v38, %v6418_v12  ;;  %v11440_v38 = vld [vmem:[%s16630_s9 + $0x18] sm:$0xff] }
 0x7ba   : > { %7092 = vmatpush.bf16.msrb.mxu3 %v11450_v35 }
 0x7bc   : > { %v15372_v59 = vpop.f32.mrf.mxu3 }
 0x7be   : > { %v15375_v25 = vpop.f32.mrf.mxu1 }
 0x7c4   : > { %v6550_v49 = vpop.f32.mrf.mxu3 }
 0x7c5   : > { %v6551_v63 = vadd.f32 %v6550_v49, %v6522_v31  ;;  %v6500_v49 = vadd.f32 %v15358_v58, %v6471_v20  ;;  %v11449_v58 = vld [vmem:[%s16630_s9 + $0x60] sm:$0xff]  ;;  %v6476_v20 = vadd.f32 %v15344_v17, %v6447_v51  ;;  %v11439_v17 = vld [vmem:[%s16630_s9 + $0x10] sm:$0xff] }
 0x7c6   : > { %v6608_v23 = vpop.f32.mrf.mxu1  ;;  %7093 = vmatpush.bf16.msrb.mxu3 %v11449_v58 }
 0x7c7   : > { %v6580_v29 = vadd.f32 %v6579_v43, %v6551_v63  ;;  %v11442_v43 = vld [vmem:[%s16630_s9 + $0x28] sm:$0xff] }
 0x7c8   : > { %7030 = vmatpush.bf16.msrb.mxu2 %v11442_v43 }
 0x7c9   : > { %v6609_v33 = vadd.f32 %v6608_v23, %v6580_v29 }
 0x7cb   : > { %v15385_v0 = vmax.f32 %v6609_v33, 0.0 }
 0x7cc   : > { %v6552_v21 = vpop.f32.mrf.mxu3 }
 0x7cd   : > { %v6553_v27 = vadd.f32 %v6552_v21, %v6524_v39  ;;  %v6644_v5 = vrot.slane %v15385_v0, 2  ;;  %v6645_v37 = vrot.slane %v15385_v0, 4  ;;  %v6646_v52 = vrot.slane %v15385_v0, 6 }
 0x7ce   : > { %v6610_v13 = vpop.f32.mrf.mxu1  ;;  %v10893_v23 = vrot.slane %v15385_v0, 9 }
 0x7cf   : > { %v6582_v30 = vadd.f32 %v6581_v32, %v6553_v27  ;;  %v10894_v46 = vrot.slane %v6644_v5, 9  ;;  %v10895_v31 = vrot.slane %v6645_v37, 9  ;;  %v10896_v42 = vrot.slane %v6646_v52, 9 }
 0x7d0   : > { %v6529_v27 = vadd.f32 %v6528_v57, %v6500_v49  ;;  %v6740_v34 = vmax.f32 %v15385_v0, %v10893_v23  ;;  %v11448_v57 = vld [vmem:[%s16630_s9 + $0x58] sm:$0xff] }
 0x7d1   : > { %v6611_v56 = vadd.f32 %v6610_v13, %v6582_v30  ;;  %v6741_v63 = vmax.f32 %v6644_v5, %v10894_v46  ;;  %v6742_v21 = vmax.f32 %v6645_v37, %v10895_v31  ;;  %v6531_v13 = vpop.f32.mrf.mxu2  ;;  %7094 = vmatpush.bf16.msrb.mxu3 %v11448_v57 }
 0x7d2   : > { %v6532_v0 = vadd.f32 %v6531_v13, %v15360_v26  ;;  %v11447_v26 = vld [vmem:[%s16630_s9 + $0x50] sm:$0xff] }
 0x7d3   : > { %v6629_v45 = vmax.f32 %v6611_v56, 0.0 }
 0x7d4   : > { %v6555_v15 = vpop.f32.mrf.mxu3 }
 0x7d5   : > { %v6556_v9 = vadd.f32 %v6555_v15, %v6527_v60  ;;  %v6647_v36 = vrot.slane %v6629_v45, 2  ;;  %v6648_v1 = vrot.slane %v6629_v45, 4  ;;  %v6649_v24 = vrot.slane %v6629_v45, 6  ;;  %7095 = vmatpush.bf16.msrb.mxu3 %v11447_v26 }
 0x7d6   : > { %v6613_v54 = vpop.f32.mrf.mxu1  ;;  %v10909_v32 = vrot.slane %v6629_v45, 9  ;;  %v6743_v60 = vmax.f32 %v6646_v52, %v10896_v42 }
 0x7d7   : > { %v6585_v53 = vadd.f32 %v6584_v2, %v6556_v9  ;;  %v10910_v3 = vrot.slane %v6647_v36, 9  ;;  %v10911_v6 = vrot.slane %v6648_v1, 9  ;;  %v10912_v11 = vrot.slane %v6649_v24, 9  ;;  %v11441_v2 = vld [vmem:[%s16630_s9 + $0x20] sm:$0xff] }
 0x7d8   : > { %v6804_v41 = vmax.f32 %v6629_v45, %v10909_v32  ;;  %7031 = vmatpush.bf16.msrb.mxu2 %v11441_v2 }
 0x7d9   : > { %v6614_v55 = vadd.f32 %v6613_v54, %v6585_v53  ;;  %v6805_v50 = vmax.f32 %v6647_v36, %v10910_v3  ;;  %v6806_v29 = vmax.f32 %v6648_v1, %v10911_v6  ;;  %v6807_v16 = vmax.f32 %v6649_v24, %v10912_v11  ;;  %v6533_v11 = vpop.f32.mrf.mxu2 }
 0x7da   : > { %v6820_v15 = vmax.f32 %v6740_v34, %v6804_v41  ;;  %v11446_v41 = vld [vmem:[%s16630_s9 + $0x48] sm:$0xff] }
 0x7db   : > { %v6821_v33 = vmax.f32 %v6741_v63, %v6805_v50  ;;  %v15408_v19 = vmax.f32 %v6614_v55, 0.0  ;;  %v6822_v5 = vmax.f32 %v6742_v21, %v6806_v29  ;;  %v6823_v37 = vmax.f32 %v6743_v60, %v6807_v16  ;;  %v11438_v21 = vld [vmem:[%s16630_s9 + $0x8] sm:$0xff]  ;;  %7096 = vmatpush.bf16.msrb.mxu3 %v11446_v41 }
 0x7dc   : > { %v6557_v39 = vpop.f32.mrf.mxu3  ;;  %7032 = vmatpush.bf16.msrb.mxu2 %v11440_v38  ;;  %v6901_v53 = vpack.c.bf16 %v6820_v15, %v6820_v15  ;;  %v11437_v38 = vld [vmem:[%s16630_s9] sm:$0xff] }
 0x7dd   : > { %v6902_v56 = vpack.c.bf16 %v6821_v33, %v6821_v33  ;;  %v6558_v45 = vadd.f32 %v6557_v39, %v6529_v27  ;;  %v6650_v22 = vrot.slane %v15408_v19, 2  ;;  %v6903_v46 = vpack.c.bf16 %v6822_v5, %v6822_v5 }
 0x7de   : > { %v6615_v30 = vpop.f32.mrf.mxu1  ;;  %v6651_v1 = vrot.slane %v15408_v19, 4  ;;  %v6652_v24 = vrot.slane %v15408_v19, 6  ;;  %v10897_v43 = vrot.slane %v15408_v19, 9  ;;  %v6904_v6 = vpack.c.bf16 %v6823_v37, %v6823_v37 }
 0x7df   : > { %v6587_v9 = vadd.f32 %v6586_v18, %v6558_v45  ;;  %v6934_v36 = vunpack.c.l.b16 %v6902_v56  ;;  %v10898_v52 = vrot.slane %v6650_v22, 9  ;;  %v6505_v18 = vadd.f32 %v15366_v47, %v6476_v20 }
 0x7e0   : > { %v6935_v32 = vunpack.c.l.b16 %v6903_v46  ;;  %v10899_v49 = vrot.slane %v6651_v1, 9  ;;  %v10900_v63 = vrot.slane %v6652_v24, 9  ;;  %7033 = vmatpush.bf16.msrb.mxu2 %v11439_v17  ;;  %v6933_v42 = vunpack.c.l.b16 %v6901_v53  ;;  %v11460_v46 = vld [vmem:[%s16630_s9 + $0xb8] sm:$0xff] }
 0x7e1   : > { %v6616_v54 = vadd.f32 %v6615_v30, %v6587_v9  ;;  %v6949_v55 = vrot.slane %v6934_v36, 7  ;;  %v6744_v33 = vmax.f32 %v15408_v19, %v10897_v43  ;;  %v6745_v39 = vmax.f32 %v6650_v22, %v10898_v52  ;;  %v6591_v19 = vpop.f32.mrf.mxu0  ;;  %v11468_v36 = vld [vmem:[%s16630_s9 + $0xf8] sm:$0xff] }
 0x7e2   : > { %v6952_v16 = vrot.slane %v6935_v32, 6  ;;  %v6746_v30 = vmax.f32 %v6651_v1, %v10899_v49  ;;  %v6747_v34 = vmax.f32 %v6652_v24, %v10900_v63  ;;  %v6936_v22 = vunpack.c.l.b16 %v6904_v6  ;;  %v11459_v32 = vld [vmem:[%s16630_s9 + $0xb0] sm:$0xff] }
 0x7e3   : > { %v6631_v40 = vmax.f32 %v6616_v54, 0.0  ;;  %v6951_v51 = vsel %vm6950_vm2, %v6949_v55, %v6933_v42  ;;  %v6394_v1 = vadd.f32 %v15323_v14, %v15354_v28  ;;  %v6534_v24 = vadd.f32 %v6533_v11, %v6505_v18  ;;  %v11467_v55 = vld [vmem:[%s16630_s9 + $0xf0] sm:$0xff] }
 0x7e4   : > { %v6560_v35 = vpop.f32.mrf.mxu3  ;;  %7034 = vmatpush.bf16.msrb.mxu2 %v11438_v21  ;;  %v6953_v54 = vsel %vm4977_vm8, %v6952_v16, %v6951_v51  ;;  %v6954_v26 = vrot.slane %v6936_v22, 5 }
 0x7e5   : > { %v6561_v3 = vadd.f32 %v6560_v35, %v6532_v0  ;;  %v6653_v50 = vrot.slane %v6631_v40, 2  ;;  %v6654_v23 = vrot.slane %v6631_v40, 4  ;;  %v6655_v29 = vrot.slane %v6631_v40, 6 }
 0x7e6   : > { %v6618_v31 = vpop.f32.mrf.mxu1  ;;  %v10913_v12 = vrot.slane %v6631_v40, 9  ;;  %v6423_v17 = vadd.f32 %v15362_v61, %v6394_v1  ;;  %v6955_v11 = vsel %vm4979_vm9, %v6954_v26, %v6953_v54  ;;  %v11456_v1 = vld [vmem:[%s16630_s9 + $0x98] sm:$0xff] }
 0x7e7   : > { %v6590_v47 = vadd.f32 %v6589_v4, %v6561_v3  ;;  %v10914_v58 = vrot.slane %v6653_v50, 9  ;;  %v10915_v2 = vrot.slane %v6654_v23, 9  ;;  %v10916_v27 = vrot.slane %v6655_v29, 9  ;;  %v11445_v4 = vld [vmem:[%s16630_s9 + $0x40] sm:$0xff] }
 0x7e8   : > { %v6808_v13 = vmax.f32 %v6631_v40, %v10913_v12  ;;  %7035 = vmatpush.bf16.msrb.mxu2 %v11437_v38  ;;  %7097 = vmatpush.bf16.msrb.mxu3 %v11445_v4 }
 0x7e9   : > { %v6809_v5 = vmax.f32 %v6653_v50, %v10914_v58  ;;  %v6810_v56 = vmax.f32 %v6654_v23, %v10915_v2  ;;  %v6811_v60 = vmax.f32 %v6655_v29, %v10916_v27  ;;  %v6619_v57 = vadd.f32 %v6618_v31, %v6590_v47  ;;  %v6536_v31 = vpop.f32.mrf.mxu2  ;;  %v6594_v21 = vpop.f32.mrf.mxu0 }
 0x7ea   : > { %v6824_v45 = vmax.f32 %v6744_v33, %v6808_v13  ;;  %v6537_v63 = vadd.f32 %v6536_v31, %v15368_v7  ;;  %v6452_v50 = vadd.f32 %v15372_v59, %v6423_v17  ;;  %v11458_v7 = vld [vmem:[%s16630_s9 + $0xa8] sm:$0xff]  ;;  %v11463_v31 = vld [vmem:[%s16630_s9 + $0xd0] sm:$0xff] }
 0x7eb   : > { %v6825_v0 = vmax.f32 %v6745_v39, %v6809_v5  ;;  %v6826_v20 = vmax.f32 %v6746_v30, %v6810_v56  ;;  %v6827_v37 = vmax.f32 %v6747_v34, %v6811_v60  ;;  %v15461_v6 = vmax.f32 %v6619_v57, 0.0  ;;  %v11466_v59 = vld [vmem:[%s16630_s9 + $0xe8] sm:$0xff]  ;;  %v11457_v30 = vld [vmem:[%s16630_s9 + $0xa0] sm:$0xff] }
 0x7ec   : > { %v6562_v15 = vpop.f32.mrf.mxu3  ;;  %v6905_v9 = vpack.c.bf16 %v6824_v45, %v6824_v45  ;;  %7152 = vmatpush.bf16.msra.mxu2 %v11460_v46  ;;  %7214 = vmatpush.bf16.msra.mxu3 %v11468_v36  ;;  %v6481_v16 = vadd.f32 %v15356_v62, %v6452_v50  ;;  %v11465_v34 = vld [vmem:[%s16630_s9 + $0xe0] sm:$0xff] }
 0x7ed   : > { %v6906_v35 = vpack.c.bf16 %v6825_v0, %v6825_v0  ;;  %v6907_v53 = vpack.c.bf16 %v6826_v20, %v6826_v20  ;;  %v6908_v43 = vpack.c.bf16 %v6827_v37, %v6827_v37  ;;  %v6563_v40 = vadd.f32 %v6562_v15, %v6534_v24  ;;  %v11464_v24 = vld [vmem:[%s16630_s9 + $0xd8] sm:$0xff] }
 0x7ee   : > { %v6937_v52 = vunpack.c.l.b16 %v6905_v9  ;;  %v6620_v3 = vpop.f32.mrf.mxu1  ;;  %v6656_v33 = vrot.slane %v15461_v6, 2  ;;  %v6657_v41 = vrot.slane %v15461_v6, 4  ;;  %v6510_v0 = vadd.f32 %v15375_v25, %v6481_v16 }
 0x7ef   : > { %v6938_v14 = vunpack.c.l.b16 %v6906_v35  ;;  %v6939_v28 = vunpack.c.l.b16 %v6907_v53  ;;  %v6940_v49 = vunpack.c.l.b16 %v6908_v43  ;;  %v6592_v61 = vadd.f32 %v6591_v19, %v6563_v40  ;;  %v11455_v40 = vld [vmem:[%s16630_s9 + $0x90] sm:$0xff] }
 0x7f0   : > { %v6956_v18 = vrot.slane %v6937_v52, 4  ;;  %7153 = vmatpush.bf16.msra.mxu2 %v11459_v32  ;;  %7215 = vmatpush.bf16.msra.mxu3 %v11467_v55  ;;  %v10902_v5 = vrot.slane %v6656_v33, 9  ;;  %v10903_v45 = vrot.slane %v6657_v41, 9  ;;  %v6658_v20 = vrot.slane %v15461_v6, 6 }
 0x7f1   : > { %v6958_v23 = vrot.slane %v6938_v14, 3  ;;  %v6960_v29 = vrot.slane %v6939_v28, 2  ;;  %v6621_v39 = vadd.f32 %v6620_v3, %v6592_v61  ;;  %v6962_v2 = vrot.slane %v6940_v49, 1  ;;  %v6538_v35 = vpop.f32.mrf.mxu2  ;;  %v6596_v55 = vpop.f32.mrf.mxu0 }
 0x7f2   : > { %v6957_v42 = vsel %vm4981_vm10, %v6956_v18, %v6955_v11  ;;  %v10901_v37 = vrot.slane %v15461_v6, 9  ;;  %v6749_v9 = vmax.f32 %v6656_v33, %v10902_v5  ;;  %v6750_v54 = vmax.f32 %v6657_v41, %v10903_v45 }
 0x7f3   : > { %v6959_v58 = vsel %vm4983_vm11, %v6958_v23, %v6957_v42  ;;  %v6633_v27 = vmax.f32 %v6621_v39, 0.0  ;;  %v6539_v17 = vadd.f32 %v6538_v35, %v6510_v0  ;;  %v10904_v26 = vrot.slane %v6658_v20, 9  ;;  %v11454_v23 = vld [vmem:[%s16630_s9 + $0x88] sm:$0xff] }
 0x7f4   : > { %v6565_v12 = vpop.f32.mrf.mxu3  ;;  %v6961_v51 = vsel %vm4985_vm12, %v6960_v29, %v6959_v58  ;;  %7154 = vmatpush.bf16.msra.mxu2 %v11458_v7  ;;  %7216 = vmatpush.bf16.msra.mxu3 %v11466_v59  ;;  %v6748_v14 = vmax.f32 %v15461_v6, %v10901_v37  ;;  %v11462_v29 = vld [vmem:[%s16630_s9 + $0xc8] sm:$0xff] }
 0x7f5   : > { %v6566_v47 = vadd.f32 %v6565_v12, %v6537_v63  ;;  %v15491_v19 = vsel %vm4987_vm13, %v6962_v2, %v6961_v51  ;;  %v6659_v56 = vrot.slane %v6633_v27, 2  ;;  %v6660_v60 = vrot.slane %v6633_v27, 4  ;;  %v11453_v2 = vld [vmem:[%s16630_s9 + $0x80] sm:$0xff] }
 0x7f6   : > { %v6661_v15 = vrot.slane %v6633_v27, 6  ;;  %v6623_v22 = vpop.f32.mrf.mxu1  ;;  %v10917_v62 = vrot.slane %v6633_v27, 9  ;;  %v6751_v11 = vmax.f32 %v6658_v20, %v10904_v26 }
 0x7f7   : > { %v6595_v13 = vadd.f32 %v6594_v21, %v6566_v47  ;;  %v10918_v57 = vrot.slane %v6659_v56, 9  ;;  %v10919_v38 = vrot.slane %v6660_v60, 9 }
 0x7f8   : > { %7155 = vmatpush.bf16.msra.mxu2 %v11457_v30  ;;  %7217 = vmatpush.bf16.msra.mxu3 %v11465_v34  ;;  %v10920_v25 = vrot.slane %v6661_v15, 9  ;;  %v6812_v53 = vmax.f32 %v6633_v27, %v10917_v62  ;;  %v11461_v27 = vld [vmem:[%s16630_s9 + $0xc0] sm:$0xff] }
 0x7f9   : > { %v6624_v4 = vadd.f32 %v6623_v22, %v6595_v13  ;;  %v6813_v46 = vmax.f32 %v6659_v56, %v10918_v57  ;;  %v6814_v36 = vmax.f32 %v6660_v60, %v10919_v38 }
 0x7fa   : > { %v6815_v49 = vmax.f32 %v6661_v15, %v10920_v25  ;;  %v6828_v63 = vmax.f32 %v6748_v14, %v6812_v53 }
 0x7fb   : > { %v6829_v43 = vmax.f32 %v6749_v9, %v6813_v46  ;;  %v6634_v52 = vmax.f32 %v6624_v4, 0.0  ;;  %v6830_v28 = vmax.f32 %v6750_v54, %v6814_v36 }
 0x7fc   : > { %v6567_v3 = vpop.f32.mrf.mxu3  ;;  %7156 = vmatpush.bf16.msra.mxu2 %v11456_v1  ;;  %7218 = vmatpush.bf16.msra.mxu3 %v11464_v24  ;;  %v6831_v21 = vmax.f32 %v6751_v11, %v6815_v49  ;;  %v6909_v41 = vpack.c.bf16 %v6828_v63, %v6828_v63 }
 0x7fd   : > { %v6910_v18 = vpack.c.bf16 %v6829_v43, %v6829_v43  ;;  %v6568_v32 = vadd.f32 %v6567_v3, %v6539_v17  ;;  %v6662_v61 = vrot.slane %v6634_v52, 2  ;;  %v6911_v6 = vpack.c.bf16 %v6830_v28, %v6830_v28 }
 0x7fe   : > { %v6663_v42 = vrot.slane %v6634_v52, 4  ;;  %v6664_v33 = vrot.slane %v6634_v52, 6  ;;  %v6625_v39 = vpop.f32.mrf.mxu1  ;;  %v10905_v7 = vrot.slane %v6634_v52, 9  ;;  %v6912_v45 = vpack.c.bf16 %v6831_v21, %v6831_v21 }
 0x7ff   : > { %v6597_v50 = vadd.f32 %v6596_v55, %v6568_v32  ;;  %v6942_v12 = vunpack.c.l.b16 %v6910_v18  ;;  %v10906_v59 = vrot.slane %v6662_v61, 9  ;;  %v6943_v13 = vunpack.c.l.b16 %v6911_v6 }
 0x800   : > { %7157 = vmatpush.bf16.msra.mxu2 %v11455_v40  ;;  %7219 = vmatpush.bf16.msra.mxu3 %v11463_v31  ;;  %v10907_v16 = vrot.slane %v6663_v42, 9  ;;  %v10908_v30 = vrot.slane %v6664_v33, 9  ;;  %v6941_v15 = vunpack.c.l.b16 %v6909_v41  ;;  %v6752_v22 = vmax.f32 %v6634_v52, %v10905_v7 }
 0x801   : > { %v6626_v47 = vadd.f32 %v6625_v39, %v6597_v50  ;;  %v6964_v51 = vrot.slane %v6942_v12, 7  ;;  %v6753_v62 = vmax.f32 %v6662_v61, %v10906_v59  ;;  %v6966_v37 = vrot.slane %v6943_v13, 6 }
 0x802   : > { %v6754_v9 = vmax.f32 %v6663_v42, %v10907_v16  ;;  %v6755_v46 = vmax.f32 %v6664_v33, %v10908_v30  ;;  %v6944_v35 = vunpack.c.l.b16 %v6912_v45  ;;  %v15532_v42 = vld [vmem:[%s16631_s10] ss:$0 sm:$0xff] }
 0x803   : > { %v6635_v58 = vmax.f32 %v6626_v47, 0.0  ;;  %v6965_v20 = vsel %vm6950_vm2, %v6964_v51, %v6941_v15  ;;  %v15535_v47 = vrot.slane %v15532_v42, 2  ;;  %v15538_v7 = vrot.slane %v15532_v42, 4 }
 0x804   : > { %7158 = vmatpush.bf16.msra.mxu2 %v11454_v23  ;;  %7220 = vmatpush.bf16.msra.mxu3 %v11462_v29  ;;  %v6967_v3 = vsel %vm4977_vm8, %v6966_v37, %v6965_v20  ;;  %v6968_v14 = vrot.slane %v6944_v35, 5 }
 0x805   : > { %v6665_v34 = vrot.slane %v6635_v58, 2  ;;  %v6666_v5 = vrot.slane %v6635_v58, 4  ;;  %v6667_v56 = vrot.slane %v6635_v58, 6  ;;  %v10921_v60 = vrot.slane %v6635_v58, 9 }
 0x806   : > { %v6969_v49 = vsel %vm4979_vm9, %v6968_v14, %v6967_v3 }
 0x807   : > { %v10922_v57 = vrot.slane %v6665_v34, 9  ;;  %v10923_v38 = vrot.slane %v6666_v5, 9  ;;  %v10924_v4 = vrot.slane %v6667_v56, 9  ;;  %v6816_v0 = vmax.f32 %v6635_v58, %v10921_v60 }
 0x808   : > { %7159 = vmatpush.bf16.msra.mxu2 %v11453_v2  ;;  %7221 = vmatpush.bf16.msra.mxu3 %v11461_v27 }
 0x809   : > { %v6817_v36 = vmax.f32 %v6665_v34, %v10922_v57  ;;  %v6818_v1 = vmax.f32 %v6666_v5, %v10923_v38  ;;  %v6819_v24 = vmax.f32 %v6667_v56, %v10924_v4  ;;  %v6832_v54 = vmax.f32 %v6752_v22, %v6816_v0 }
 0x80b   : > { %v6833_v25 = vmax.f32 %v6753_v62, %v6817_v36  ;;  %v6834_v53 = vmax.f32 %v6754_v9, %v6818_v1  ;;  %v6835_v43 = vmax.f32 %v6755_v46, %v6819_v24  ;;  %v6913_v52 = vpack.c.bf16 %v6832_v54, %v6832_v54 }
 0x80d   : > { %v6914_v17 = vpack.c.bf16 %v6833_v25, %v6833_v25  ;;  %v6915_v26 = vpack.c.bf16 %v6834_v53, %v6834_v53  ;;  %v6916_v40 = vpack.c.bf16 %v6835_v43, %v6835_v43  ;;  %v6945_v31 = vunpack.c.l.b16 %v6913_v52 }
 0x80f   : > { %v6946_v28 = vunpack.c.l.b16 %v6914_v17  ;;  %v6947_v18 = vunpack.c.l.b16 %v6915_v26  ;;  %v6970_v32 = vrot.slane %v6945_v31, 4  ;;  %v6948_v55 = vunpack.c.l.b16 %v6916_v40 }
 0x811   : > { %v6972_v63 = vrot.slane %v6946_v28, 3  ;;  %v6974_v61 = vrot.slane %v6947_v18, 2  ;;  %v6971_v11 = vsel %vm4981_vm10, %v6970_v32, %v6969_v49  ;;  %v6976_v23 = vrot.slane %v6948_v55, 1 }
 0x813   : > { %v6973_v50 = vsel %vm4983_vm11, %v6972_v63, %v6971_v11 }
 0x814   : > { %v6975_v29 = vsel %vm4985_vm12, %v6974_v61, %v6973_v50 }
 0x815   : > { %v6977_v6 = vsel %vm4987_vm13, %v6976_v23, %v6975_v29 }
 0x816   : > { %v6978_v12 = vpack.c.b16 %v6977_v6, %v15491_v19  ;;  %v15541_v19 = vrot.slane %v15532_v42, 6 }
 0x818   : > { %7036 = vmatmul.bf16.vlgmr.msrb.gmra.mxu2 %v6978_v12  ;;  %7098 = vmatmul.bf16.vlgmr.msrb.gmra.mxu3 %v6978_v12 }
 0x828   : > { %7160 = vmatmul.bf16.vlgmr.msra.gmra.mxu2 %v6978_v12  ;;  %7222 = vmatmul.bf16.vlgmr.msra.gmra.mxu3 %v6978_v12 }
 0x89b   : > { %v7037_v33 = vpop.f32.mrf.mxu2  ;;  %v7099_v39 = vpop.f32.mrf.mxu3 }
 0x89c   : > { %v7230_v21 = vrot.slane %v7037_v33, 1  ;;  %v7260_v41 = vrot.slane %v7099_v39, 1  ;;  %v7231_v59 = vrot.slane %v7037_v33, 2  ;;  %v7232_v58 = vrot.slane %v7037_v33, 3 }
 0x89d   : > { %v7261_v2 = vrot.slane %v7099_v39, 2  ;;  %v7262_v27 = vrot.slane %v7099_v39, 3  ;;  %v7263_v13 = vrot.slane %v7099_v39, 4  ;;  %v7264_v51 = vrot.slane %v7099_v39, 5 }
 0x89e   : > { %v7274_v16 = vperm.slane %v7099_v39, 0  ;;  %v7275_v30 = vperm.slane %v7260_v41, 0  ;;  %v7265_v34 = vrot.slane %v7099_v39, 6  ;;  %v7266_v5 = vrot.slane %v7099_v39, 7 }
 0x89f   : > { %v7276_v56 = vperm.slane %v7261_v2, 0  ;;  %v7277_v60 = vperm.slane %v7262_v27, 0  ;;  %v7278_v57 = vperm.slane %v7263_v13, 0  ;;  %v7279_v38 = vperm.slane %v7264_v51, 0 }
 0x8a0   : > { %v7306_v45 = vsel %vm570_vm0, %v7037_v33, %v7274_v16  ;;  %v7307_v15 = vsel %vm570_vm0, %v7230_v21, %v7275_v30  ;;  %v7280_v20 = vperm.slane %v7265_v34, 0  ;;  %v7281_v37 = vperm.slane %v7266_v5, 0 }
 0x8a1   : > { %v7308_v22 = vsel %vm570_vm0, %v7231_v59, %v7276_v56  ;;  %v7309_v62 = vsel %vm570_vm0, %v7232_v58, %v7277_v60  ;;  %v7425_v4 = vadd.f32 %v15532_v42, %v7306_v45  ;;  %v7426_v0 = vadd.f32 %v15535_v47, %v7307_v15 }
 0x8a2   : > { %v7427_v9 = vadd.f32 %v15538_v7, %v7308_v22  ;;  %v7428_v46 = vadd.f32 %v15541_v19, %v7309_v62  ;;  %v7233_v36 = vrot.slane %v7037_v33, 4  ;;  %v7234_v1 = vrot.slane %v7037_v33, 5 }
 0x8a3   : > { %v7457_v24 = vmax.f32 %v7425_v4, 0.0  ;;  %v7458_v54 = vmax.f32 %v7426_v0, 0.0  ;;  %v7235_v35 = vrot.slane %v7037_v33, 6  ;;  %v7236_v25 = vrot.slane %v7037_v33, 7  ;;  %v15555_v40 = vpop.f32.mrf.mxu3  ;;  %v15557_v31 = vpop.f32.mrf.mxu2 }
 0x8a4   : > { %v7459_v53 = vmax.f32 %v7427_v9, 0.0  ;;  %v7460_v43 = vmax.f32 %v7428_v46, 0.0  ;;  %v7310_v52 = vsel %vm570_vm0, %v7233_v36, %v7278_v57  ;;  %v7311_v3 = vsel %vm570_vm0, %v7234_v1, %v7279_v38 }
 0x8a5   : > { %7594 = vst [vmem:[#allocation1] ss:$4 sm:$0xff] %v7457_v24  ;;  %v7312_v17 = vsel %vm570_vm0, %v7235_v35, %v7280_v20  ;;  %v7313_v26 = vsel %vm570_vm0, %v7236_v25, %v7281_v37  ;;  %v7433_v14 = vadd.f32 %v15532_v42, %v7310_v52  ;;  %v7434_v28 = vadd.f32 %v15535_v47, %v7311_v3 }
 0x8a6   : > { %7596 = vst [vmem:[#allocation1 + $0x1] ss:$4 sm:$0xff] %v7458_v54  ;;  %v7435_v18 = vadd.f32 %v15538_v7, %v7312_v17  ;;  %v7436_v32 = vadd.f32 %v15541_v19, %v7313_v26  ;;  %v7267_v55 = vrot.slane %v15555_v40, 1  ;;  %v7268_v49 = vrot.slane %v15555_v40, 2 }
 0x8a7   : > { %7598 = vst [vmem:[#allocation1 + $0x2] ss:$4 sm:$0xff] %v7459_v53  ;;  %v7269_v63 = vrot.slane %v15555_v40, 3  ;;  %v7465_v61 = vmax.f32 %v7433_v14, 0.0  ;;  %v7466_v11 = vmax.f32 %v7434_v28, 0.0  ;;  %v7270_v29 = vrot.slane %v15555_v40, 4 }
 0x8a8   : > { %7600 = vst [vmem:[#allocation1 + $0x3] ss:$4 sm:$0xff] %v7460_v43  ;;  %v7467_v50 = vmax.f32 %v7435_v18, 0.0  ;;  %v7468_v23 = vmax.f32 %v7436_v32, 0.0  ;;  %v7282_v6 = vperm.slane %v15555_v40, 0  ;;  %v7271_v12 = vrot.slane %v15555_v40, 5 }
 0x8a9   : > { %v7272_v33 = vrot.slane %v15555_v40, 6  ;;  %v7283_v39 = vperm.slane %v7267_v55, 0  ;;  %v7284_v21 = vperm.slane %v7268_v49, 0  ;;  %v7237_v59 = vrot.slane %v15557_v31, 1 }
 0x8aa   : > { %v7238_v58 = vrot.slane %v15557_v31, 2  ;;  %v7285_v2 = vperm.slane %v7269_v63, 0  ;;  %v7239_v27 = vrot.slane %v15557_v31, 3  ;;  %v7240_v13 = vrot.slane %v15557_v31, 4 }
 0x8ab   : > { %v7241_v51 = vrot.slane %v15557_v31, 5  ;;  %v7242_v16 = vrot.slane %v15557_v31, 6  ;;  %v7223_v30 = vpop.f32.mrf.mxu3  ;;  %v7243_v34 = vrot.slane %v15557_v31, 7  ;;  %v7273_v5 = vrot.slane %v15555_v40, 7  ;;  %v15582_v45 = vpop.f32.mrf.mxu2 }
 0x8ac   : > { %v7286_v56 = vperm.slane %v7270_v29, 0  ;;  %v7314_v60 = vsel %vm570_vm0, %v15557_v31, %v7282_v6  ;;  %v7287_v15 = vperm.slane %v7271_v12, 0  ;;  %v7288_v22 = vperm.slane %v7272_v33, 0 }
 0x8ad   : > { %v7315_v62 = vsel %vm570_vm0, %v7237_v59, %v7283_v39  ;;  %v7316_v57 = vsel %vm570_vm0, %v7238_v58, %v7284_v21  ;;  %v7317_v38 = vsel %vm570_vm0, %v7239_v27, %v7285_v2  ;;  %v7354_v4 = vrot.slane %v7223_v30, 1 }
 0x8ae   : > { %v7355_v0 = vrot.slane %v7223_v30, 2  ;;  %v7356_v20 = vrot.slane %v7223_v30, 3  ;;  %v7441_v37 = vadd.f32 %v15532_v42, %v7314_v60  ;;  %v7324_v9 = vrot.slane %v15582_v45, 1 }
 0x8af   : > { %v15570_v41 = vld.sshfl [vmem:[#allocation1] sm:$0xff pattern:$0x73625140]  ;;  %v7325_v46 = vrot.slane %v15582_v45, 2  ;;  %v7368_v36 = vperm.slane %v7223_v30, 0  ;;  %v7326_v1 = vrot.slane %v15582_v45, 3  ;;  %v7442_v25 = vadd.f32 %v15535_v47, %v7315_v62 }
 0x8b0   : > { %7611 = vst [vmem:[#allocation1] ss:$4 sm:$0xff] %v7465_v61  ;;  %v7369_v24 = vperm.slane %v7354_v4, 0  ;;  %v7370_v54 = vperm.slane %v7355_v0, 0  ;;  %v7371_v35 = vperm.slane %v7356_v20, 0  ;;  %v7443_v53 = vadd.f32 %v15538_v7, %v7316_v57 }
 0x8b1   : > { %7612 = vst [vmem:[#allocation1 + $0x1] ss:$4 sm:$0xff] %v7466_v11  ;;  %v7357_v43 = vrot.slane %v7223_v30, 4  ;;  %v7400_v52 = vsel %vm570_vm0, %v15582_v45, %v7368_v36  ;;  %v7358_v3 = vrot.slane %v7223_v30, 5  ;;  %v7444_v31 = vadd.f32 %v15541_v19, %v7317_v38 }
 0x8b2   : > { %7613 = vst [vmem:[#allocation1 + $0x2] ss:$4 sm:$0xff] %v7467_v50  ;;  %v7401_v17 = vsel %vm570_vm0, %v7324_v9, %v7369_v24  ;;  %v7402_v26 = vsel %vm570_vm0, %v7325_v46, %v7370_v54  ;;  %v7403_v40 = vsel %vm570_vm0, %v7326_v1, %v7371_v35  ;;  %v7359_v14 = vrot.slane %v7223_v30, 6 }
 0x8b3   : > { %7614 = vst [vmem:[#allocation1 + $0x3] ss:$4 sm:$0xff] %v7468_v23  ;;  %v7360_v28 = vrot.slane %v7223_v30, 7  ;;  %v7429_v18 = vadd.f32 %v15532_v42, %v7400_v52  ;;  %v7289_v32 = vperm.slane %v7273_v5, 0  ;;  %v7473_v55 = vmax.f32 %v7441_v37, 0.0  ;;  %v15622_v20 = vpop.f32.mrf.mxu3 }
 0x8b4   : > { %v7430_v49 = vadd.f32 %v15535_v47, %v7401_v17  ;;  %v7431_v63 = vadd.f32 %v15538_v7, %v7402_v26  ;;  %v7318_v11 = vsel %vm570_vm0, %v7240_v13, %v7286_v56  ;;  %v7319_v50 = vsel %vm570_vm0, %v7241_v51, %v7287_v15 }
 0x8b5   : > { %v7474_v23 = vmax.f32 %v7442_v25, 0.0  ;;  %v7432_v29 = vadd.f32 %v15541_v19, %v7403_v40  ;;  %v7475_v6 = vmax.f32 %v7443_v53, 0.0  ;;  %v7372_v12 = vperm.slane %v7357_v43, 0 }
 0x8b6   : > { %v7373_v33 = vperm.slane %v7358_v3, 0  ;;  %v7461_v39 = vmax.f32 %v7429_v18, 0.0  ;;  %v7476_v21 = vmax.f32 %v7444_v31, 0.0  ;;  %v7374_v59 = vperm.slane %v7359_v14, 0 }
 0x8b7   : > { %v7375_v58 = vperm.slane %v7360_v28, 0  ;;  %v7462_v2 = vmax.f32 %v7430_v49, 0.0  ;;  %v7320_v27 = vsel %vm570_vm0, %v7242_v16, %v7288_v22  ;;  %v7327_v13 = vrot.slane %v15582_v45, 4 }
 0x8b8   : > { %v7328_v51 = vrot.slane %v15582_v45, 5  ;;  %v7463_v30 = vmax.f32 %v7431_v63, 0.0  ;;  %v7321_v5 = vsel %vm570_vm0, %v7243_v34, %v7289_v32  ;;  %v7329_v56 = vrot.slane %v15582_v45, 6  ;;  %7603 = vst [vmem:[#allocation1 + $0x20] ss:$4 sm:$0xff] %v7461_v39  ;;  %v15646_v32 = vpop.f32.mrf.mxu2 }
 0x8b9   : > { %v7330_v60 = vrot.slane %v15582_v45, 7  ;;  %v7464_v15 = vmax.f32 %v7432_v29, 0.0  ;;  %v7404_v62 = vsel %vm570_vm0, %v7327_v13, %v7372_v12  ;;  %v7449_v16 = vadd.f32 %v15532_v42, %v7318_v11  ;;  %7605 = vst [vmem:[#allocation1 + $0x21] ss:$4 sm:$0xff] %v7462_v2 }
 0x8ba   : > { %v15602_v61 = vld.sshfl [vmem:[#allocation1] sm:$0xff pattern:$0x73625140]  ;;  %v7405_v57 = vsel %vm570_vm0, %v7328_v51, %v7373_v33  ;;  %v7406_v22 = vsel %vm570_vm0, %v7329_v56, %v7374_v59  ;;  %v7641_v34 = vrot.slane %v15570_v41, 7  ;;  %v7450_v4 = vadd.f32 %v15535_v47, %v7319_v50  ;;  %7607 = vst [vmem:[#allocation1 + $0x22] ss:$4 sm:$0xff] %v7463_v30 }
 0x8bb   : > { %7621 = vst [vmem:[#allocation1] ss:$4 sm:$0xff] %v7473_v55  ;;  %v7407_v38 = vsel %vm570_vm0, %v7330_v60, %v7375_v58  ;;  %v7451_v0 = vadd.f32 %v15538_v7, %v7320_v27  ;;  %v7452_v45 = vadd.f32 %v15541_v19, %v7321_v5  ;;  %v7437_v37 = vadd.f32 %v15532_v42, %v7404_v62 }
 0x8bc   : > { %7622 = vst [vmem:[#allocation1 + $0x1] ss:$4 sm:$0xff] %v7474_v23  ;;  %v7438_v9 = vadd.f32 %v15535_v47, %v7405_v57  ;;  %v15627_v46 = vsel %vm570_vm0, 0.0, %v7641_v34  ;;  %v15630_v36 = vsel %vm570_vm0, %v7641_v34, 0.0  ;;  %v7439_v41 = vadd.f32 %v15538_v7, %v7406_v22 }
 0x8bd   : > { %7623 = vst [vmem:[#allocation1 + $0x2] ss:$4 sm:$0xff] %v7475_v6  ;;  %v7440_v1 = vadd.f32 %v15541_v19, %v7407_v38  ;;  %v7687_v24 = vrot.slane %v15627_v46, 1  ;;  %v7688_v54 = vrot.slane %v15630_v36, 1  ;;  %v7481_v35 = vmax.f32 %v7449_v16, 0.0 }
 0x8be   : > { %7624 = vst [vmem:[#allocation1 + $0x3] ss:$4 sm:$0xff] %v7476_v21  ;;  %v7361_v25 = vrot.slane %v15622_v20, 1  ;;  %v7482_v53 = vmax.f32 %v7450_v4, 0.0  ;;  %v7362_v52 = vrot.slane %v15622_v20, 2  ;;  %v7483_v17 = vmax.f32 %v7451_v0, 0.0 }
 0x8bf   : > { %7609 = vst [vmem:[#allocation1 + $0x23] ss:$4 sm:$0xff] %v7464_v15  ;;  %v15641_v3 = vsel %vm746_vm3, %v7687_v24, %v7688_v54  ;;  %v7484_v26 = vmax.f32 %v7452_v45, 0.0  ;;  %v7469_v40 = vmax.f32 %v7437_v37, 0.0  ;;  %v7363_v31 = vrot.slane %v15622_v20, 3 }
 0x8c0   : > { %7708 = vrot.lane.b32.xlu2 %v15641_v3, %s11915_s21  ;;  %v7470_v14 = vmax.f32 %v7438_v9, 0.0  ;;  %v7471_v28 = vmax.f32 %v7439_v41, 0.0  ;;  %v7472_v18 = vmax.f32 %v7440_v1, 0.0  ;;  %v7643_v55 = vrot.slane %v15602_v61, 7 }
 0x8c1   : > { %v7364_v49 = vrot.slane %v15622_v20, 4  ;;  %v7365_v63 = vrot.slane %v15622_v20, 5  ;;  %v7376_v11 = vperm.slane %v15622_v20, 0  ;;  %v7377_v50 = vperm.slane %v7361_v25, 0 }
 0x8c2   : > { %v7378_v29 = vperm.slane %v7362_v52, 0  ;;  %v7366_v6 = vrot.slane %v15622_v20, 6  ;;  %v7367_v12 = vrot.slane %v15622_v20, 7  ;;  %v7379_v33 = vperm.slane %v7363_v31, 0 }
 0x8c3   : > { %v7331_v39 = vrot.slane %v15646_v32, 1  ;;  %v7332_v61 = vrot.slane %v15646_v32, 2  ;;  %v15657_v59 = vsel %vm570_vm0, 0.0, %v7643_v55  ;;  %v15660_v58 = vsel %vm570_vm0, %v7643_v55, 0.0 }
 0x8c4   : > { %v7333_v2 = vrot.slane %v15646_v32, 3  ;;  %v7408_v27 = vsel %vm570_vm0, %v15646_v32, %v7376_v11  ;;  %v7693_v13 = vrot.slane %v15657_v59, 1  ;;  %v7694_v51 = vrot.slane %v15660_v58, 1 }
 0x8c5   : > { %v15637_v43 = vld.sshfl [vmem:[#allocation1] sm:$0xff pattern:$0x73625140]  ;;  %v7409_v30 = vsel %vm570_vm0, %v7331_v39, %v7377_v50  ;;  %v7410_v5 = vsel %vm570_vm0, %v7332_v61, %v7378_v29  ;;  %v7380_v15 = vperm.slane %v7364_v49, 0  ;;  %v7381_v62 = vperm.slane %v7365_v63, 0 }
 0x8c6   : > { %7631 = vst [vmem:[#allocation1] ss:$4 sm:$0xff] %v7481_v35  ;;  %v7610_v23 = vld.sshfl [vmem:[#allocation1 + $0x20] sm:$0xff pattern:$0x73625140]  ;;  %v7382_v22 = vperm.slane %v7366_v6, 0  ;;  %v7411_v38 = vsel %vm570_vm0, %v7333_v2, %v7379_v33  ;;  %v7445_v34 = vadd.f32 %v15532_v42, %v7408_v27  ;;  %v7446_v0 = vadd.f32 %v15535_v47, %v7409_v30 }
 0x8c7   : > { %7632 = vst [vmem:[#allocation1 + $0x1] ss:$4 sm:$0xff] %v7482_v53  ;;  %v7642_v21 = vrot.slane %v7610_v23, 7  ;;  %v7645_v4 = vrot.slane %v15637_v43, 7  ;;  %v7447_v45 = vadd.f32 %v15538_v7, %v7410_v5  ;;  %v15683_v37 = vsel %vm746_vm3, %v7693_v13, %v7694_v51 }
 0x8c8   : > { %7633 = vst [vmem:[#allocation1 + $0x2] ss:$4 sm:$0xff] %v7483_v17  ;;  %v7383_v9 = vperm.slane %v7367_v12, 0  ;;  %v7334_v41 = vrot.slane %v15646_v32, 4  ;;  %v7335_v1 = vrot.slane %v15646_v32, 5  ;;  %v7336_v54 = vrot.slane %v15646_v32, 6 }
 0x8c9   : > { %7634 = vst [vmem:[#allocation1 + $0x3] ss:$4 sm:$0xff] %v7484_v26  ;;  %v15670_v56 = vsel %vm570_vm0, 0.0, %v7642_v21  ;;  %v7666_v60 = vsel %vm570_vm0, %v7642_v21, 0.0  ;;  %v7448_v35 = vadd.f32 %v15541_v19, %v7411_v38  ;;  %v7730_v43 = vrot.slane %v15630_v36, 2 }
 0x8ca   : > { %7616 = vst [vmem:[#allocation1 + $0x20] ss:$4 sm:$0xff] %v7469_v40  ;;  %v7690_v57 = vrot.slane %v15670_v56, 1  ;;  %v7691_v16 = vrot.slane %v7666_v60, 1  ;;  %v7732_v25 = vrot.slane %v15670_v56, 2  ;;  %v7733_v53 = vrot.slane %v7666_v60, 2 }
 0x8cb   : > { %7617 = vst [vmem:[#allocation1 + $0x21] ss:$4 sm:$0xff] %v7470_v14  ;;  %v7477_v52 = vmax.f32 %v7445_v34, 0.0  ;;  %v15695_v17 = vsel %vm570_vm0, 0.0, %v7645_v4  ;;  %v15698_v26 = vsel %vm570_vm0, %v7645_v4, 0.0  ;;  %v7478_v31 = vmax.f32 %v7446_v0, 0.0 }
 0x8cc   : > { %7618 = vst [vmem:[#allocation1 + $0x22] ss:$4 sm:$0xff] %v7471_v28  ;;  %v15680_v20 = vsel %vm746_vm3, %v7690_v57, %v7691_v16  ;;  %v7479_v14 = vmax.f32 %v7447_v45, 0.0  ;;  %v7729_v28 = vrot.slane %v15627_v46, 2  ;;  %v7480_v49 = vmax.f32 %v7448_v35, 0.0  ;;  %v11475_v0 = vld [vmem:[%s16632_s11 + $0x30] sm:$0xff] }
 0x8cd   : > { %7619 = vst [vmem:[#allocation1 + $0x23] ss:$4 sm:$0xff] %v7472_v18  ;;  %v11839_v24 = vpack.i.bf16 %v15683_v37, %v15680_v20  ;;  %v15702_v36 = vsel %vm1155_vm4, %v7732_v25, %v7733_v53  ;;  %v7699_v63 = vrot.slane %v15695_v17, 1  ;;  %v7700_v11 = vrot.slane %v15698_v26, 1 }
 0x8ce   : > { %v7337_v50 = vrot.slane %v15646_v32, 7  ;;  %v7412_v23 = vsel %vm570_vm0, %v7334_v41, %v7380_v15  ;;  %v7413_v12 = vsel %vm570_vm0, %v7335_v1, %v7381_v62  ;;  %v15716_v33 = vsel %vm1155_vm4, %v7729_v28, %v7730_v43  ;;  %v11476_v32 = vld [vmem:[%s16632_s11 + $0x38] sm:$0xff] }
 0x8cf   : > { %11840 = vrot.lane.b32.xlu0 %v11839_v24, %s11915_s21  ;;  %v7414_v21 = vsel %vm570_vm0, %v7336_v54, %v7382_v22  ;;  %v11854_v27 = vpack.i.bf16 %v15702_v36, %v15716_v33  ;;  %v7453_v13 = vadd.f32 %v15532_v42, %v7412_v23  ;;  %v15732_v30 = vsel %vm746_vm3, %v7699_v63, %v7700_v11  ;;  %v11474_v24 = vld [vmem:[%s16632_s11 + $0x28] sm:$0xff] }
 0x8d0   : > { %v7635_v18 = vld.sshfl [vmem:[#allocation1] sm:$0xff pattern:$0x73625140]  ;;  %v7415_v2 = vsel %vm570_vm0, %v7337_v50, %v7383_v9  ;;  %8097 = vmatpush.bf16.msra.mxu0 %v11476_v32  ;;  %v7454_v60 = vadd.f32 %v15535_v47, %v7413_v12  ;;  %v7455_v62 = vadd.f32 %v15538_v7, %v7414_v21  ;;  %v11859_v54 = vpack.i.bf16 %v15670_v56, %v15627_v46  ;;  %v11472_v12 = vld [vmem:[%s16632_s11 + $0x18] sm:$0xff] }
 0x8d1   : > { %v7647_v5 = vrot.slane %v7635_v18, 7  ;;  %v7456_v57 = vadd.f32 %v15541_v19, %v7415_v2  ;;  %v7485_v42 = vmax.f32 %v7453_v13, 0.0  ;;  %v7742_v28 = vrot.slane %v15698_v26, 2 }
 0x8d2   : > { %v7486_v38 = vmax.f32 %v7454_v60, 0.0  ;;  %v7487_v47 = vmax.f32 %v7455_v62, 0.0  ;;  %v7735_v11 = vrot.slane %v15657_v59, 2  ;;  %v7736_v50 = vrot.slane %v15660_v58, 2 }
 0x8d3   : > { %v15742_v16 = vsel %vm570_vm0, 0.0, %v7647_v5  ;;  %v7671_v22 = vsel %vm570_vm0, %v7647_v5, 0.0  ;;  %v7488_v7 = vmax.f32 %v7456_v57, 0.0  ;;  %v11471_v57 = vld [vmem:[%s16632_s11 + $0x10] sm:$0xff] }
 0x8d4   : > { %v7620_v40 = vld.sshfl [vmem:[#allocation1 + $0x20] sm:$0xff pattern:$0x73625140]  ;;  %v7705_v45 = vrot.slane %v15742_v16, 1  ;;  %v7706_v9 = vrot.slane %v7671_v22, 1  ;;  %8098 = vmatpush.bf16.msra.mxu0 %v11475_v0  ;;  %v15797_v32 = vsel %vm1155_vm4, %v7735_v11, %v7736_v50  ;;  %v7747_v58 = vrot.slane %v15742_v16, 2 }
 0x8d5   : > { %7626 = vst [vmem:[#allocation1 + $0x20] ss:$4 sm:$0xff] %v7477_v52  ;;  %v7644_v55 = vrot.slane %v7620_v40, 7  ;;  %v7748_v21 = vrot.slane %v7671_v22, 2  ;;  %v11482_v11 = vld [vmem:[%s16632_s11 + $0x68] sm:$0xff] }
 0x8d6   : > { %7627 = vst [vmem:[#allocation1 + $0x21] ss:$4 sm:$0xff] %v7478_v31  ;;  %v15768_v40 = vsel %vm746_vm3, %v7705_v45, %v7706_v9  ;;  %v7741_v31 = vrot.slane %v15695_v17, 2  ;;  %v11492_v45 = vld [vmem:[%s16632_s11 + $0xb8] sm:$0xff]  ;;  %v11494_v50 = vld [vmem:[%s16632_s11 + $0xc8] sm:$0xff] }
 0x8d7   : > { %7628 = vst [vmem:[#allocation1 + $0x22] ss:$4 sm:$0xff] %v7479_v14  ;;  %v15709_v29 = vsel %vm570_vm0, 0.0, %v7644_v55  ;;  %v15712_v6 = vsel %vm570_vm0, %v7644_v55, 0.0  ;;  %11855 = vrot.lane.b32.xlu0 %v11854_v27, %s11915_s21  ;;  %v11484_v9 = vld [vmem:[%s16632_s11 + $0x78] sm:$0xff]  ;;  %8155 = vmatpush.bf16.msrb.mxu2 %v11492_v45 }
 0x8d8   : > { %7629 = vst [vmem:[#allocation1 + $0x23] ss:$4 sm:$0xff] %v7480_v49  ;;  %v7696_v39 = vrot.slane %v15709_v29, 1  ;;  %v7697_v61 = vrot.slane %v15712_v6, 1  ;;  %v11869_v19 = vpack.i.bf16 %v15709_v29, %v15657_v59  ;;  %v7738_v18 = vrot.slane %v15709_v29, 2  ;;  %8099 = vmatpush.bf16.msra.mxu0 %v11474_v24  ;;  %v11473_v49 = vld [vmem:[%s16632_s11 + $0x20] sm:$0xff]  ;;  %8126 = vmatpush.bf16.msrb.mxu1 %v11484_v9 }
 0x8d9   : > { %v7739_v55 = vrot.slane %v15712_v6, 2  ;;  %v15786_v26 = vsel %vm1155_vm4, %v7741_v31, %v7742_v28  ;;  %v11491_v24 = vld [vmem:[%s16632_s11 + $0xb0] sm:$0xff]  ;;  %v11496_v31 = vld [vmem:[%s16632_s11 + $0xd8] sm:$0xff] }
 0x8da   : > { %v15729_v51 = vsel %vm746_vm3, %v7696_v39, %v7697_v61 }
 0x8db   : > { %v11844_v15 = vpack.i.bf16 %v15732_v30, %v15729_v51  ;;  %v15789_v6 = vsel %vm1155_vm4, %v7738_v18, %v7739_v55  ;;  %8156 = vmatpush.bf16.msrb.mxu2 %v11491_v24  ;;  %v11489_v55 = vld [vmem:[%s16632_s11 + $0xa0] sm:$0xff] }
 0x8dc   : > { %8100 = vmatpush.bf16.msra.mxu0 %v11473_v49  ;;  %v11864_v2 = vpack.i.bf16 %v15789_v6, %v15797_v32  ;;  %v11495_v49 = vld [vmem:[%s16632_s11 + $0xd0] sm:$0xff]  ;;  %v7857_v44 = vpack.c.bf16 %v15786_v26, %v15789_v6 }
 0x8dd   : > { %11845 = vrot.lane.b32.xlu1 %v11844_v15, %s11915_s21 }
 0x8df   : > { %v7630_v34 = vld.sshfl [vmem:[#allocation1 + $0x20] sm:$0xff pattern:$0x73625140]  ;;  %11870 = vrot.lane.b32.xlu0 %v11869_v19, %s11915_s21  ;;  %v11500_v19 = vld [vmem:[%s16632_s11 + $0xf8] sm:$0xff] }
 0x8e0   : > { %7636 = vst [vmem:[#allocation1 + $0x20] ss:$4 sm:$0xff] %v7485_v42  ;;  %v7646_v4 = vrot.slane %v7630_v34, 7  ;;  %8101 = vmatpush.bf16.msra.mxu0 %v11472_v12  ;;  %v15814_v42 = vsel %vm1155_vm4, %v7747_v58, %v7748_v21  ;;  %8184 = vmatpush.bf16.msrb.mxu3 %v11500_v19  ;;  %v11493_v12 = vld [vmem:[%s16632_s11 + $0xc0] sm:$0xff]  ;;  %v11486_v58 = vld [vmem:[%s16632_s11 + $0x88] sm:$0xff]  ;;  %v11479_v21 = vld [vmem:[%s16632_s11 + $0x50] sm:$0xff] }
 0x8e1   : > { %7637 = vst [vmem:[#allocation1 + $0x21] ss:$4 sm:$0xff] %v7486_v38  ;;  %v11501_v19 = vld [vmem:[%s16632_s11 + $0x100] sm:$0xff] }
 0x8e2   : > { %7638 = vst [vmem:[#allocation1 + $0x22] ss:$4 sm:$0xff] %v7487_v47  ;;  %v15752_v41 = vsel %vm570_vm0, 0.0, %v7646_v4  ;;  %v7670_v1 = vsel %vm570_vm0, %v7646_v4, 0.0  ;;  %v11470_v47 = vld [vmem:[%s16632_s11 + $0x8] sm:$0xff] }
 0x8e3   : > { %7639 = vst [vmem:[#allocation1 + $0x23] ss:$4 sm:$0xff] %v7488_v7  ;;  %v7702_v35 = vrot.slane %v15752_v41, 1  ;;  %v7703_v25 = vrot.slane %v7670_v1, 1  ;;  %v7744_v53 = vrot.slane %v15752_v41, 2  ;;  %v7745_v43 = vrot.slane %v7670_v1, 2 }
 0x8e4   : > { %8102 = vmatpush.bf16.msra.mxu0 %v11471_v57  ;;  %v11879_v0 = vpack.i.bf16 %v15752_v41, %v15695_v17  ;;  %v11469_v7 = vld [vmem:[%s16632_s11] sm:$0xff]  ;;  %v11499_v1 = vld [vmem:[%s16632_s11 + $0xf0] sm:$0xff] }
 0x8e5   : > { %11860 = vrot.lane.b32.xlu1 %v11859_v54, %s11915_s21  ;;  %v15765_v52 = vsel %vm746_vm3, %v7702_v35, %v7703_v25  ;;  %v15781_v63 = vsel %vm1155_vm4, %v7744_v53, %v7745_v43  ;;  %v11504_v54 = vld [vmem:[%s16632_s11 + $0x118] sm:$0xff]  ;;  %v11483_v35 = vld [vmem:[%s16632_s11 + $0x70] sm:$0xff]  ;;  %8185 = vmatpush.bf16.msrb.mxu3 %v11499_v1  ;;  %v11498_v25 = vld [vmem:[%s16632_s11 + $0xe8] sm:$0xff] }
 0x8e6   : > { %v11849_v14 = vpack.i.bf16 %v15768_v40, %v15765_v52  ;;  %v11874_v39 = vpack.i.bf16 %v15781_v63, %v15786_v26  ;;  %v11490_v53 = vld [vmem:[%s16632_s11 + $0xa8] sm:$0xff]  ;;  %8127 = vmatpush.bf16.msrb.mxu1 %v11483_v35  ;;  %v11497_v43 = vld [vmem:[%s16632_s11 + $0xe0] sm:$0xff] }
 0x8e7   : > { %8157 = vmatpush.bf16.msrb.mxu2 %v11490_v53 }
 0x8e8   : > { %11850 = vrot.lane.b32.xlu2 %v11849_v14, %s11915_s21  ;;  %8103 = vmatpush.bf16.msra.mxu0 %v11470_v47 }
 0x8e9   : > { %8186 = vmatpush.bf16.msrb.mxu3 %v11498_v25 }
 0x8ea   : > { %v7640_v23 = vld.sshfl [vmem:[#allocation1 + $0x20] sm:$0xff pattern:$0x73625140]  ;;  %8128 = vmatpush.bf16.msrb.mxu1 %v11482_v11 }
 0x8eb   : > { %v7648_v61 = vrot.slane %v7640_v23, 7  ;;  %8158 = vmatpush.bf16.msrb.mxu2 %v11489_v55  ;;  %v11481_v23 = vld [vmem:[%s16632_s11 + $0x60] sm:$0xff] }
 0x8ec   : > { %8104 = vmatpush.bf16.msra.mxu0 %v11469_v7 }
 0x8ed   : > { %11875 = vrot.lane.b32.xlu1 %v11874_v39, %s11915_s21  ;;  %v15804_v27 = vsel %vm570_vm0, 0.0, %v7648_v61  ;;  %v7672_v13 = vsel %vm570_vm0, %v7648_v61, 0.0  ;;  %8187 = vmatpush.bf16.msrb.mxu3 %v11497_v43  ;;  %v11503_v39 = vld [vmem:[%s16632_s11 + $0x110] sm:$0xff]  ;;  %v11480_v61 = vld [vmem:[%s16632_s11 + $0x58] sm:$0xff] }
 0x8ee   : > { %v7794_v5 = vrot.slane %v15804_v27, 2  ;;  %v7795_v60 = vrot.slane %v7672_v13, 2  ;;  %v7783_v15 = vrot.slane %v15804_v27, 1  ;;  %v7784_v62 = vrot.slane %v7672_v13, 1  ;;  %8129 = vmatpush.bf16.msrb.mxu1 %v11481_v23  ;;  %v11478_v13 = vld [vmem:[%s16632_s11 + $0x48] sm:$0xff] }
 0x8f0   : > { %11865 = vrot.lane.b32.xlu2 %v11864_v2, %s11915_s21  ;;  %v15817_v22 = vsel %vm1155_vm4, %v7794_v5, %v7795_v60  ;;  %v15820_v38 = vsel %vm746_vm3, %v7783_v15, %v7784_v62  ;;  %8217 = vmatpush.bf16.msrb.mxu0 %v11504_v54  ;;  %v11485_v2 = vld [vmem:[%s16632_s11 + $0x80] sm:$0xff]  ;;  %v11502_v60 = vld [vmem:[%s16632_s11 + $0x108] sm:$0xff]  ;;  %vm16900_vm3 = vcmask 23552  }
 0x8f1   : > { %v11884_v34 = vpack.i.bf16 %v15817_v22, %v15814_v42  ;;  %v11889_v4 = vpack.i.bf16 %v15742_v16, %v15820_v38  ;;  %8188 = vmatpush.bf16.msrb.mxu3 %v11496_v31  ;;  %v11477_v5 = vld [vmem:[%s16632_s11 + $0x40] sm:$0xff]  ;;  %vm16901_vm4 = vmmov %vm16900_vm3 }
 0x8f2   : > { %8130 = vmatpush.bf16.msrb.mxu1 %v11480_v61  ;;  %vm16903_vm8 = vmmov %vm16900_vm3 }
 0x8f3   : > { %11885 = vrot.lane.b32.xlu0 %v11884_v34, %s11915_s21  ;;  %vm16904_vm9 = vmmov %vm16900_vm3 }
 0x8f4   : > { %8218 = vmatpush.bf16.msrb.mxu0 %v11503_v39  ;;  %vm16905_vm10 = vmmov %vm16900_vm3 }
 0x8f5   : > { %11890 = vrot.lane.b32.xlu1 %v11889_v4, %s11915_s21  ;;  %8189 = vmatpush.bf16.msrb.mxu3 %v11495_v49  ;;  %vm16906_vm11 = vmmov %vm16900_vm3 }
 0x8f6   : > { %8131 = vmatpush.bf16.msrb.mxu1 %v11479_v21  ;;  %vm16907_vm12 = vmmov %vm16900_vm3 }
 0x8f7   : > { %vm16908_vm13 = vmmov %vm16900_vm3 }
 0x8f8   : > { %11880 = vrot.lane.b32.xlu2 %v11879_v0, %s11915_s21  ;;  %8219 = vmatpush.bf16.msrb.mxu0 %v11502_v60  ;;  %vm16909_vm14 = vmmov %vm16900_vm3 }
 0x8f9   : > { %8190 = vmatpush.bf16.msrb.mxu3 %v11494_v50 }
 0x8fa   : > { %8132 = vmatpush.bf16.msrb.mxu1 %v11478_v13 }
 0x8fc   : > { %8220 = vmatpush.bf16.msrb.mxu0 %v11501_v19 }
 0x8fd   : > { %8191 = vmatpush.bf16.msrb.mxu3 %v11493_v12 }
 0x8fe   : > { %8133 = vmatpush.bf16.msrb.mxu1 %v11477_v5 }
 0x900   : > { %7772 = vrot.lane.b32.xlu2 %v15804_v27, %s11915_s21 }
 0x91a   : > { %v7709_v14 = vpop.permute.xlu2 %7708 }
 0x91b   : > { %v7825_v28 = vsel %vm3071_vm5, %v15627_v46, %v7709_v14  ;;  %v11488_v46 = vld [vmem:[%s16632_s11 + $0x98] sm:$0xff] }
 0x91c   : > { %v11199_v18 = vpack.c.bf16 %v7825_v28, %v16881_v8  ;;  %8159 = vmatpush.bf16.msrb.mxu2 %v11488_v46 }
 0x91e   : > { %11200 = vmatmul.msk.bf16.vlgmr.msra.gmra.mxu0 %vm14511_vm15, %v11199_v18  ;;  %vm16910_vm15 = vmmov %vm16900_vm3 }
 0x920   : > { %8160 = vmatpush.bf16.msrb.mxu2 %v11487_v10 }
 0x924   : > { %8161 = vmatpush.bf16.msrb.mxu2 %v11486_v58 }
 0x928   : > { %8162 = vmatpush.bf16.msrb.mxu2 %v11485_v2 }
 0x941   : > { %v11841_v15 = vpop.permute.xlu0 %11840 }
 0x942   : > { %v11843_v62 = vunpack.i.h.bf16 %v11841_v15  ;;  %v11842_v57 = vunpack.i.l.bf16 %v11841_v15  ;;  %v11851_v0 = vpop.permute.xlu2 %11850 }
 0x943   : > { %v11853_v23 = vunpack.i.h.bf16 %v11851_v0  ;;  %v11852_v10 = vunpack.i.l.bf16 %v11851_v0 }
 0x944   : > { %v7826_v34 = vsel %vm3071_vm5, %v15670_v56, %v11842_v57  ;;  %v7827_v47 = vsel %vm3071_vm5, %v15657_v59, %v11843_v62 }
 0x945   : > { %v7852_v4 = vpack.c.bf16 %v7827_v47, %v7826_v34  ;;  %v7830_v61 = vsel %vm3071_vm5, %v15752_v41, %v11852_v10  ;;  %v7831_v58 = vsel %vm3071_vm5, %v15742_v16, %v11853_v23  ;;  %v11517_v23 = vld [vmem:[%s16634_s13 + $0x60] sm:$0xff] }
 0x946   : > { %v7860_v21 = vpack.c.bf16 %v7831_v58, %v7830_v61  ;;  %v16042_v61 = vld [vmem:[%s16633_s12] ss:$0 sm:$0xff] }
 0x947   : > { %8110 = vmatmul.bf16.gmra.mxu0 %v7852_v4  ;;  %8192 = vmatmul.bf16.vlgmr.msrb.gmra.mxu3 %v7852_v4 }
 0x949   : > { %v11856_v7 = vpop.permute.xlu0 %11855 }
 0x94a   : > { %v11858_v45 = vunpack.i.h.bf16 %v11856_v7  ;;  %v11857_v9 = vunpack.i.l.bf16 %v11856_v7  ;;  %v11866_v43 = vpop.permute.xlu2 %11865 }
 0x94b   : > { %v11868_v55 = vunpack.i.h.bf16 %v11866_v43 }
 0x94c   : > { %v7841_v24 = vsel %vm3071_vm5, %v15680_v20, %v11858_v45  ;;  %v7840_v56 = vsel %vm3071_vm5, %v15641_v3, %v11857_v9  ;;  %v11867_v20 = vunpack.i.l.bf16 %v11866_v43  ;;  %v11519_v43 = vld [vmem:[%s16634_s13 + $0x70] sm:$0xff] }
 0x94d   : > { %v7851_v59 = vpack.c.bf16 %v7841_v24, %v7840_v56 }
 0x94f   : > { %v11846_v1 = vpop.permute.xlu1 %11845  ;;  %8163 = vmatmul.bf16.vlgmr.msrb.gmra.mxu2 %v7851_v59 }
 0x950   : > { %v11848_v54 = vunpack.i.h.bf16 %v11846_v1  ;;  %v11847_v35 = vunpack.i.l.bf16 %v11846_v1 }
 0x951   : > { %v11871_v46 = vpop.permute.xlu0 %11870 }
 0x952   : > { %v7828_v25 = vsel %vm3071_vm5, %v15709_v29, %v11847_v35  ;;  %v7829_v53 = vsel %vm3071_vm5, %v15695_v17, %v11848_v54  ;;  %v7842_v17 = vsel %vm3071_vm5, %v15683_v37, %v11867_v20  ;;  %v7843_v29 = vsel %vm3071_vm5, %v15729_v51, %v11868_v55  ;;  %v11881_v15 = vpop.permute.xlu2 %11880  ;;  %v11516_v35 = vld [vmem:[%s16634_s13 + $0x58] sm:$0xff]  ;;  %v11514_v55 = vld [vmem:[%s16634_s13 + $0x48] sm:$0xff] }
 0x953   : > { %v7856_v18 = vpack.c.bf16 %v7829_v53, %v7828_v25  ;;  %v7855_v50 = vpack.c.bf16 %v7843_v29, %v7842_v17  ;;  %v11873_v12 = vunpack.i.h.bf16 %v11871_v46  ;;  %v11883_v34 = vunpack.i.h.bf16 %v11881_v15  ;;  %8433 = vmatpush.bf16.msra.mxu3 %v11516_v35  ;;  %v11515_v53 = vld [vmem:[%s16634_s13 + $0x50] sm:$0xff]  ;;  %v11518_v20 = vld [vmem:[%s16634_s13 + $0x68] sm:$0xff]  ;;  %v11505_v17 = vld [vmem:[%s16634_s13] sm:$0xff] }
 0x954   : > { %v11882_v47 = vunpack.i.l.bf16 %v11881_v15 }
 0x955   : > { %v7835_v51 = vsel %vm3071_vm5, %v15797_v32, %v11873_v12 }
 0x956   : > { %v7836_v7 = vsel %vm3071_vm5, %v15789_v6, %v11882_v47  ;;  %v11508_v6 = vld [vmem:[%s16634_s13 + $0x18] sm:$0xff] }
 0x957   : > { %v11861_v31 = vpop.permute.xlu1 %11860  ;;  %8115 = vmatmul.bf16.gmra.mxu0 %v7856_v18  ;;  %8197 = vmatmul.bf16.gmra.mxu3 %v7856_v18 }
 0x958   : > { %v11863_v14 = vunpack.i.h.bf16 %v11861_v31  ;;  %v11862_v28 = vunpack.i.l.bf16 %v11861_v31  ;;  %8327 = vmatpush.bf16.msra.mxu1 %v11508_v6  ;;  %v11510_v31 = vld [vmem:[%s16634_s13 + $0x28] sm:$0xff]  ;;  %8434 = vmatpush.bf16.msra.mxu3 %v11515_v53 }
 0x95a   : > { %v7833_v3 = vsel %vm3071_vm5, %v15716_v33, %v11863_v14  ;;  %v7832_v49 = vsel %vm3071_vm5, %v16888_v48, %v11862_v28  ;;  %v11872_v33 = vunpack.i.l.bf16 %v11871_v46  ;;  %v11506_v28 = vld [vmem:[%s16634_s13 + $0x8] sm:$0xff] }
 0x95b   : > { %v7850_v11 = vpack.c.bf16 %v7833_v3, %v7832_v49  ;;  %v11509_v3 = vld [vmem:[%s16634_s13 + $0x20] sm:$0xff] }
 0x95c   : > { %v7834_v37 = vsel %vm3071_vm5, %v15702_v36, %v11872_v33  ;;  %8435 = vmatpush.bf16.msra.mxu3 %v11514_v55 }
 0x95d   : > { %8134 = vmatmul.bf16.vlgmr.msrb.gmra.mxu1 %v7850_v11  ;;  %v7854_v5 = vpack.c.bf16 %v7835_v51, %v7834_v37 }
 0x95f   : > { %8168 = vmatmul.bf16.gmra.mxu2 %v7855_v50  ;;  %v11876_v39 = vpop.permute.xlu1 %11875  ;;  %v11513_v50 = vld [vmem:[%s16634_s13 + $0x40] sm:$0xff] }
 0x960   : > { %v11878_v2 = vunpack.i.h.bf16 %v11876_v39  ;;  %v11877_v13 = vunpack.i.l.bf16 %v11876_v39  ;;  %8436 = vmatpush.bf16.msra.mxu3 %v11513_v50 }
 0x962   : > { %v7844_v60 = vsel %vm3071_vm5, %v15732_v30, %v11877_v13  ;;  %v7845_v41 = vsel %vm3071_vm5, %v15765_v52, %v11878_v2  ;;  %v7837_v30 = vsel %vm3071_vm5, %v15786_v26, %v11883_v34  ;;  %v7853_v52 = vpack.c.bf16 %v15797_v32, %v15702_v36  ;;  %v7773_v32 = vpop.permute.xlu2 %7772 }
 0x963   : > { %v7859_v62 = vpack.c.bf16 %v7845_v41, %v7844_v60  ;;  %v7858_v1 = vpack.c.bf16 %v7837_v30, %v7836_v7  ;;  %v7839_v59 = vsel %vm3071_vm5, %v15814_v42, %v7773_v32  ;;  %v7865_v26 = vpack.c.bf16 %v16888_v48, %v15817_v22  ;;  %v11511_v48 = vld [vmem:[%s16634_s13 + $0x30] sm:$0xff] }
 0x964   : > { %v11507_v22 = vld [vmem:[%s16634_s13 + $0x10] sm:$0xff] }
 0x965   : > { %v11886_v0 = vpop.permute.xlu0 %11885  ;;  %8328 = vmatpush.bf16.msra.mxu1 %v11507_v22 }
 0x966   : > { %v11888_v45 = vunpack.i.h.bf16 %v11886_v0  ;;  %v11887_v9 = vunpack.i.l.bf16 %v11886_v0 }
 0x967   : > { %8120 = vmatmul.bf16.gmra.mxu0 %v7860_v21  ;;  %8202 = vmatmul.bf16.gmra.mxu3 %v7860_v21  ;;  %v11891_v16 = vpop.permute.xlu1 %11890 }
 0x968   : > { %v11892_v57 = vunpack.i.l.bf16 %v11891_v16  ;;  %v7847_v24 = vsel %vm3071_vm5, %v15820_v38, %v11888_v45  ;;  %v11893_v36 = vunpack.i.h.bf16 %v11891_v16  ;;  %v7861_v38 = vpack.c.bf16 %v15814_v42, %v15781_v63 }
 0x969   : > { %8329 = vmatpush.bf16.msra.mxu1 %v11506_v28 }
 0x96a   : > { %v7848_v4 = vsel %vm3071_vm5, %v15804_v27, %v11892_v57  ;;  %v7846_v27 = vsel %vm3071_vm5, %v15768_v40, %v11887_v9  ;;  %v11512_v40 = vld [vmem:[%s16634_s13 + $0x38] sm:$0xff] }
 0x96b   : > { %v11203_v19 = vpack.c.bf16 %v16881_v8, %v7848_v4  ;;  %v7863_v56 = vpack.c.bf16 %v7847_v24, %v7846_v27  ;;  %v7838_v8 = vsel %vm3071_vm5, %v15781_v63, %v11893_v36  ;;  %8380 = vmatpush.bf16.msra.mxu2 %v11512_v40  ;;  %v11520_v63 = vld [vmem:[%s16634_s13 + $0x78] sm:$0xff] }
 0x96c   : > { %v7862_v54 = vpack.c.bf16 %v7839_v59, %v7838_v8  ;;  %8486 = vmatpush.bf16.msra.mxu0 %v11520_v63 }
 0x96d   : > { %8139 = vmatmul.bf16.gmra.mxu1 %v7854_v5 }
 0x96e   : > { %8330 = vmatpush.bf16.msra.mxu1 %v11505_v17 }
 0x96f   : > { %8173 = vmatmul.bf16.gmra.mxu2 %v7859_v62 }
 0x970   : > { %8381 = vmatpush.bf16.msra.mxu2 %v11511_v48  ;;  %8487 = vmatpush.bf16.msra.mxu0 %v11519_v43 }
 0x974   : > { %8382 = vmatpush.bf16.msra.mxu2 %v11510_v31  ;;  %8488 = vmatpush.bf16.msra.mxu0 %v11518_v20 }
 0x977   : > { %11204 = vmatmul.msk.bf16.gmra.mxu3 %vm14860_vm1, %v11203_v19  ;;  %11205 = vmatmul.msk.bf16.vlgmr.msrb.gmra.mxu0 %vm3071_vm5, %v7853_v52  ;;  %vm16911_vm1 = vmmov %vm16900_vm3 }
 0x978   : > { %8383 = vmatpush.bf16.msra.mxu2 %v11509_v3  ;;  %8489 = vmatpush.bf16.msra.mxu0 %v11517_v23  ;;  %vm16912_vm6 = vmmov %vm16911_vm1 }
 0x979   : > { %vm16913_vm7 = vmmov %vm16911_vm1 }
 0x97a   : > { %vm16914_vm2 = vmmov %vm16911_vm1 }
 0x97d   : > { %8144 = vmatmul.bf16.gmra.mxu1 %v7858_v1 }
 0x97f   : > { %8178 = vmatmul.bf16.gmra.mxu2 %v7863_v56 }
 0x987   : > { %11206 = vmatmul.msk.bf16.gmra.mxu0 %vm3071_vm5, %v7857_v44 }
 0x98d   : > { %8149 = vmatmul.bf16.gmra.mxu1 %v7862_v54 }
 0x997   : > { %11207 = vmatmul.msk.bf16.gmra.mxu0 %vm3071_vm5, %v7861_v38 }
 0x99b   : > { %v8106_v42 = vpop.f32.mrf.mxu0 }
 0x99c   : > { %v8107_v21 = vadd.f32 %v16042_v61, %v8106_v42 }
 0x9a3   : > { %v8108_v25 = vpop.f32.mrf.mxu0 }
 0x9a4   : > { %v8109_v2 = vadd.f32 %v16042_v61, %v8108_v25 }
 0x9a7   : > { %11208 = vmatmul.msk.bf16.gmra.mxu0 %vm3071_vm5, %v7865_v26 }
 0x9c4   : > { %v8111_v14 = vpop.f32.mrf.mxu0 }
 0x9c5   : > { %v8112_v52 = vadd.f32 %v16042_v61, %v8111_v14 }
 0x9ca   : > { %v8193_v10 = vpop.f32.mrf.mxu3 }
 0x9cc   : > { %v8113_v18 = vpop.f32.mrf.mxu0 }
 0x9cd   : > { %v8114_v9 = vadd.f32 %v16042_v61, %v8113_v18 }
 0x9d2   : > { %v8164_v46 = vpop.f32.mrf.mxu2  ;;  %v8195_v37 = vpop.f32.mrf.mxu3 }
 0x9d4   : > { %v8116_v49 = vpop.f32.mrf.mxu0 }
 0x9d5   : > { %v8117_v42 = vadd.f32 %v16042_v61, %v8116_v49 }
 0x9da   : > { %v8135_v11 = vpop.f32.mrf.mxu1  ;;  %v8166_v39 = vpop.f32.mrf.mxu2 }
 0x9db   : > { %v8136_v13 = vadd.f32 %v8135_v11, %v8107_v21  ;;  %v8198_v15 = vpop.f32.mrf.mxu3 }
 0x9dc   : > { %v8118_v29 = vpop.f32.mrf.mxu0 }
 0x9dd   : > { %v8165_v16 = vadd.f32 %v8164_v46, %v8136_v13  ;;  %v8119_v25 = vadd.f32 %v16042_v61, %v8118_v29 }
 0x9df   : > { %v8194_v34 = vadd.f32 %v8193_v10, %v8165_v16 }
 0x9e2   : > { %v8137_v12 = vpop.f32.mrf.mxu1  ;;  %v8169_v60 = vpop.f32.mrf.mxu2 }
 0x9e3   : > { %v8138_v5 = vadd.f32 %v8137_v12, %v8109_v2  ;;  %v8200_v1 = vpop.f32.mrf.mxu3 }
 0x9e4   : > { %v16037_v33 = vpop.f32.mrf.mxu0 }
 0x9e5   : > { %v8167_v62 = vadd.f32 %v8166_v39, %v8138_v5  ;;  %v8122_v23 = vadd.f32 %v16042_v61, %v16037_v33 }
 0x9e7   : > { %v8196_v4 = vadd.f32 %v8195_v37, %v8167_v62 }
 0x9ea   : > { %v8140_v51 = vpop.f32.mrf.mxu1  ;;  %v8171_v30 = vpop.f32.mrf.mxu2 }
 0x9eb   : > { %v8141_v27 = vadd.f32 %v8140_v51, %v8112_v52  ;;  %v8203_v40 = vpop.f32.mrf.mxu3 }
 0x9ec   : > { %v16044_v58 = vpop.f32.mrf.mxu0 }
 0x9ed   : > { %v8170_v8 = vadd.f32 %v8169_v60, %v8141_v27  ;;  %v8124_v51 = vadd.f32 %v16042_v61, %v16044_v58 }
 0x9ef   : > { %v8199_v54 = vadd.f32 %v8198_v15, %v8170_v8 }
 0x9f2   : > { %v8142_v57 = vpop.f32.mrf.mxu1  ;;  %v8174_v59 = vpop.f32.mrf.mxu2 }
 0x9f3   : > { %v8143_v36 = vadd.f32 %v8142_v57, %v8114_v9  ;;  %v8205_v55 = vpop.f32.mrf.mxu3 }
 0x9f4   : > { %v8222_v41 = vpop.f32.mrf.mxu0 }
 0x9f5   : > { %v8223_v47 = vadd.f32 %v8222_v41, %v8194_v34  ;;  %v8172_v44 = vadd.f32 %v8171_v30, %v8143_v36 }
 0x9f7   : > { %v8242_v19 = vmax.f32 %v8223_v47, 0.0  ;;  %v8201_v26 = vadd.f32 %v8200_v1, %v8172_v44 }
 0x9fa   : > { %v8145_v56 = vpop.f32.mrf.mxu1  ;;  %v8176_v31 = vpop.f32.mrf.mxu2 }
 0x9fb   : > { %v8146_v53 = vadd.f32 %v8145_v56, %v8117_v42  ;;  %v8208_v39 = vpop.f32.mrf.mxu3 }
 0x9fc   : > { %v8224_v0 = vpop.f32.mrf.mxu0 }
 0x9fd   : > { %v8225_v7 = vadd.f32 %v8224_v0, %v8196_v4  ;;  %v8175_v18 = vadd.f32 %v8174_v59, %v8146_v53  ;;  %v16075_v0 = vld [vmem:[%s16635_s14] ss:$0 sm:$0xff] }
 0x9fe   : > { %v16080_v52 = vrot.slane %v16075_v0, 2 }
 0x9ff   : > { %v8243_v45 = vmax.f32 %v8225_v7, 0.0  ;;  %v8204_v49 = vadd.f32 %v8203_v40, %v8175_v18 }
 0xa01   : > { %v8283_v24 = vpack.c.bf16 %v8243_v45, %v8242_v19  ;;  %v16083_v19 = vrot.slane %v16075_v0, 4  ;;  %v16086_v45 = vrot.slane %v16075_v0, 6 }
 0xa02   : > { %v8147_v6 = vpop.f32.mrf.mxu1  ;;  %v8179_v29 = vpop.f32.mrf.mxu2 }
 0xa03   : > { %11225 = vmatmul.msk.bf16.vlgmr.msra.gmra.mxu1 %vm3071_vm5, %v8283_v24  ;;  %11245 = vmatmul.msk.bf16.vlgmr.msra.gmra.mxu2 %vm3071_vm5, %v8283_v24  ;;  %v8148_v14 = vadd.f32 %v8147_v6, %v8119_v25  ;;  %v8210_v15 = vpop.f32.mrf.mxu3 }
 0xa04   : > { %11265 = vmatmul.msk.bf16.vlgmr.msra.gmra.mxu3 %vm3071_vm5, %v8283_v24  ;;  %11285 = vmatmul.msk.bf16.vlgmr.msra.gmra.mxu0 %vm3071_vm5, %v8283_v24  ;;  %v8227_v32 = vpop.f32.mrf.mxu0 }
 0xa05   : > { %v8228_v38 = vadd.f32 %v8227_v32, %v8199_v54  ;;  %v8177_v3 = vadd.f32 %v8176_v31, %v8148_v14 }
 0xa07   : > { %v8244_v48 = vmax.f32 %v8228_v38, 0.0  ;;  %v8206_v17 = vadd.f32 %v8205_v55, %v8177_v3 }
 0xa0a   : > { %v8150_v20 = vpop.f32.mrf.mxu1  ;;  %v8181_v60 = vpop.f32.mrf.mxu2 }
 0xa0b   : > { %v8151_v21 = vadd.f32 %v8150_v20, %v8122_v23 }
 0xa0c   : > { %v8229_v35 = vpop.f32.mrf.mxu0 }
 0xa0d   : > { %v8230_v63 = vadd.f32 %v8229_v35, %v8201_v26  ;;  %v8180_v33 = vadd.f32 %v8179_v29, %v8151_v21 }
 0xa0f   : > { %v8245_v22 = vmax.f32 %v8230_v63, 0.0  ;;  %v8209_v16 = vadd.f32 %v8208_v39, %v8180_v33 }
 0xa11   : > { %v8284_v43 = vpack.c.bf16 %v8245_v22, %v8244_v48 }
 0xa12   : > { %v8152_v37 = vpop.f32.mrf.mxu1 }
 0xa13   : > { %11226 = vmatmul.msk.bf16.gmra.mxu1 %vm3071_vm5, %v8284_v43  ;;  %11246 = vmatmul.msk.bf16.gmra.mxu2 %vm3071_vm5, %v8284_v43  ;;  %v8153_v13 = vadd.f32 %v8152_v37, %v8124_v51 }
 0xa14   : > { %11266 = vmatmul.msk.bf16.gmra.mxu3 %vm3071_vm5, %v8284_v43  ;;  %11286 = vmatmul.msk.bf16.gmra.mxu0 %vm3071_vm5, %v8284_v43  ;;  %v8232_v28 = vpop.f32.mrf.mxu0 }
 0xa15   : > { %v8233_v11 = vadd.f32 %v8232_v28, %v8204_v49  ;;  %v8182_v41 = vadd.f32 %v8181_v60, %v8153_v13 }
 0xa17   : > { %v8246_v10 = vmax.f32 %v8233_v11, 0.0  ;;  %v8211_v57 = vadd.f32 %v8210_v15, %v8182_v41 }
 0xa1c   : > { %v8234_v46 = vpop.f32.mrf.mxu0 }
 0xa1d   : > { %v8235_v50 = vadd.f32 %v8234_v46, %v8206_v17 }
 0xa1f   : > { %v8247_v12 = vmax.f32 %v8235_v50, 0.0 }
 0xa21   : > { %v8285_v2 = vpack.c.bf16 %v8247_v12, %v8246_v10 }
 0xa23   : > { %11227 = vmatmul.msk.bf16.gmra.mxu1 %vm3071_vm5, %v8285_v2  ;;  %11247 = vmatmul.msk.bf16.gmra.mxu2 %vm3071_vm5, %v8285_v2 }
 0xa24   : > { %11267 = vmatmul.msk.bf16.gmra.mxu3 %vm3071_vm5, %v8285_v2  ;;  %11287 = vmatmul.msk.bf16.gmra.mxu0 %vm3071_vm5, %v8285_v2  ;;  %v8237_v5 = vpop.f32.mrf.mxu0 }
 0xa25   : > { %v8238_v62 = vadd.f32 %v8237_v5, %v8209_v16 }
 0xa27   : > { %v8248_v34 = vmax.f32 %v8238_v62, 0.0 }
 0xa2c   : > { %v8239_v61 = vpop.f32.mrf.mxu0 }
 0xa2d   : > { %v8240_v58 = vadd.f32 %v8239_v61, %v8211_v57 }
 0xa2f   : > { %v8249_v47 = vmax.f32 %v8240_v58, 0.0 }
 0xa31   : > { %v8286_v4 = vpack.c.bf16 %v8249_v47, %v8248_v34 }
 0xa33   : > { %11228 = vmatmul.msk.bf16.gmra.mxu1 %vm3071_vm5, %v8286_v4  ;;  %11248 = vmatmul.msk.bf16.gmra.mxu2 %vm3071_vm5, %v8286_v4 }
 0xa34   : > { %11268 = vmatmul.msk.bf16.gmra.mxu3 %vm3071_vm5, %v8286_v4  ;;  %11288 = vmatmul.msk.bf16.gmra.mxu0 %vm3071_vm5, %v8286_v4  ;;  %vm16902_vm5 = vmmov %vm16900_vm3 }
 0xa80   : > { %v8332_v7 = vpop.f32.mrf.mxu1 }
 0xa81   : > { %v16077_v30 = vpop.f32.mrf.mxu0  ;;  %v8519_v9 = vrot.slane %v8332_v7, 1  ;;  %v8520_v1 = vrot.slane %v8332_v7, 2  ;;  %v8521_v27 = vrot.slane %v8332_v7, 3  ;;  %v8522_v24 = vrot.slane %v8332_v7, 4 }
 0xa82   : > { %v8523_v56 = vrot.slane %v8332_v7, 5  ;;  %v8524_v36 = vrot.slane %v8332_v7, 6  ;;  %v8525_v32 = vrot.slane %v8332_v7, 7  ;;  %v9015_v8 = vrot.slane %v16077_v30, 1 }
 0xa83   : > { %v9016_v44 = vrot.slane %v16077_v30, 2  ;;  %v9017_v59 = vrot.slane %v16077_v30, 3  ;;  %v9018_v54 = vrot.slane %v16077_v30, 4  ;;  %v9019_v40 = vrot.slane %v16077_v30, 5 }
 0xa84   : > { %v9020_v21 = vrot.slane %v16077_v30, 6  ;;  %v9071_v15 = vperm.slane %v16077_v30, 0  ;;  %v9072_v62 = vperm.slane %v9015_v8, 0 }
 0xa85   : > { %v9076_v8 = vperm.slane %v9019_v40, 0 }
 0xa86   : > { %v8385_v38 = vpop.f32.mrf.mxu2 }
 0xa87   : > { %v8639_v26 = vrot.slane %v8385_v38, 1  ;;  %v8640_v6 = vrot.slane %v8385_v38, 2  ;;  %v8641_v35 = vrot.slane %v8385_v38, 3  ;;  %v8642_v63 = vrot.slane %v8385_v38, 4  ;;  %v8438_v51 = vpop.f32.mrf.mxu3 }
 0xa88   : > { %v8643_v42 = vrot.slane %v8385_v38, 5  ;;  %v8644_v48 = vrot.slane %v8385_v38, 6  ;;  %v8645_v22 = vrot.slane %v8385_v38, 7  ;;  %v8695_v25 = vperm.slane %v8385_v38, 0 }
 0xa89   : > { %v8696_v53 = vperm.slane %v8639_v26, 0  ;;  %v8697_v43 = vperm.slane %v8640_v6, 0  ;;  %v8698_v31 = vperm.slane %v8641_v35, 0  ;;  %v8699_v14 = vperm.slane %v8642_v63, 0 }
 0xa8a   : > { %v8700_v28 = vperm.slane %v8643_v42, 0  ;;  %v8701_v18 = vperm.slane %v8644_v48, 0  ;;  %v8702_v55 = vperm.slane %v8645_v22, 0  ;;  %v8823_v20 = vsel %vm570_vm0, %v8332_v7, %v8695_v25 }
 0xa8b   : > { %v8824_v3 = vsel %vm570_vm0, %v8519_v9, %v8696_v53  ;;  %v8825_v49 = vsel %vm570_vm0, %v8520_v1, %v8697_v43  ;;  %v8826_v11 = vsel %vm570_vm0, %v8521_v27, %v8698_v31  ;;  %v8827_v17 = vsel %vm570_vm0, %v8522_v24, %v8699_v14 }
 0xa8c   : > { %v8828_v29 = vsel %vm570_vm0, %v8523_v56, %v8700_v28  ;;  %v8829_v46 = vsel %vm570_vm0, %v8524_v36, %v8701_v18  ;;  %v8830_v50 = vsel %vm570_vm0, %v8525_v32, %v8702_v55  ;;  %v9272_v23 = vadd.f32 %v16075_v0, %v8823_v20  ;;  %v16133_v18 = vpop.f32.mrf.mxu1 }
 0xa8d   : > { %v9273_v10 = vadd.f32 %v16080_v52, %v8824_v3  ;;  %v9274_v12 = vadd.f32 %v16083_v19, %v8825_v49  ;;  %v9275_v39 = vadd.f32 %v16086_v45, %v8826_v11  ;;  %v9276_v37 = vadd.f32 %v16075_v0, %v8827_v17 }
 0xa8e   : > { %v9277_v2 = vadd.f32 %v16080_v52, %v8828_v29  ;;  %v9278_v13 = vadd.f32 %v16083_v19, %v8829_v46  ;;  %v9400_v5 = vmax.f32 %v9272_v23, 0.0  ;;  %v9279_v33 = vadd.f32 %v16086_v45, %v8830_v50  ;;  %v8387_v17 = vpop.f32.mrf.mxu2 }
 0xa8f   : > { %v9401_v60 = vmax.f32 %v9273_v10, 0.0  ;;  %v9402_v41 = vmax.f32 %v9274_v12, 0.0  ;;  %v9403_v16 = vmax.f32 %v9275_v39, 0.0  ;;  %v9404_v57 = vmax.f32 %v9276_v37, 0.0 }
 0xa90   : > { %9656 = vst [vmem:[#allocation1] ss:$4 sm:$0xff] %v9400_v5  ;;  %v8895_v61 = vrot.slane %v8438_v51, 1  ;;  %v9405_v58 = vmax.f32 %v9277_v2, 0.0  ;;  %v8896_v34 = vrot.slane %v8438_v51, 2  ;;  %v8897_v47 = vrot.slane %v8438_v51, 3 }
 0xa91   : > { %9658 = vst [vmem:[#allocation1 + $0x1] ss:$4 sm:$0xff] %v9401_v60  ;;  %v8898_v4 = vrot.slane %v8438_v51, 4  ;;  %v9073_v7 = vperm.slane %v9016_v44, 0  ;;  %v9406_v9 = vmax.f32 %v9278_v13, 0.0  ;;  %v8899_v1 = vrot.slane %v8438_v51, 5 }
 0xa92   : > { %9660 = vst [vmem:[#allocation1 + $0x2] ss:$4 sm:$0xff] %v9402_v41  ;;  %v8900_v27 = vrot.slane %v8438_v51, 6  ;;  %v9074_v24 = vperm.slane %v9017_v59, 0  ;;  %v9075_v56 = vperm.slane %v9018_v54, 0  ;;  %v9407_v36 = vmax.f32 %v9279_v33, 0.0 }
 0xa93   : > { %9662 = vst [vmem:[#allocation1 + $0x3] ss:$4 sm:$0xff] %v9403_v16  ;;  %v9199_v32 = vsel %vm570_vm0, %v8438_v51, %v9071_v15  ;;  %v9077_v38 = vperm.slane %v9020_v21, 0  ;;  %v9200_v26 = vsel %vm570_vm0, %v8895_v61, %v9072_v62  ;;  %v9021_v6 = vrot.slane %v16077_v30, 7 }
 0xa94   : > { %9664 = vst [vmem:[#allocation1 + $0x20] ss:$4 sm:$0xff] %v9404_v57  ;;  %v9201_v44 = vsel %vm570_vm0, %v8896_v34, %v9073_v7  ;;  %v9202_v35 = vsel %vm570_vm0, %v8897_v47, %v9074_v24  ;;  %v9203_v59 = vsel %vm570_vm0, %v8898_v4, %v9075_v56  ;;  %v9204_v54 = vsel %vm570_vm0, %v8899_v1, %v9076_v8  ;;  %v16147_v47 = vpop.f32.mrf.mxu0 }
 0xa95   : > { %9666 = vst [vmem:[#allocation1 + $0x21] ss:$4 sm:$0xff] %v9405_v58  ;;  %v9205_v63 = vsel %vm570_vm0, %v8900_v27, %v9077_v38  ;;  %v9280_v40 = vadd.f32 %v16075_v0, %v9199_v32  ;;  %v8901_v42 = vrot.slane %v8438_v51, 7  ;;  %v9281_v48 = vadd.f32 %v16080_v52, %v9200_v26 }
 0xa96   : > { %9668 = vst [vmem:[#allocation1 + $0x22] ss:$4 sm:$0xff] %v9406_v9  ;;  %v9282_v30 = vadd.f32 %v16083_v19, %v9201_v44  ;;  %v9283_v22 = vadd.f32 %v16086_v45, %v9202_v35  ;;  %v9284_v25 = vadd.f32 %v16075_v0, %v9203_v59  ;;  %v9078_v53 = vperm.slane %v9021_v6, 0 }
 0xa97   : > { %9670 = vst [vmem:[#allocation1 + $0x23] ss:$4 sm:$0xff] %v9407_v36  ;;  %v9285_v43 = vadd.f32 %v16080_v52, %v9204_v54  ;;  %v9286_v31 = vadd.f32 %v16083_v19, %v9205_v63  ;;  %v9408_v28 = vmax.f32 %v9280_v40, 0.0  ;;  %v9409_v20 = vmax.f32 %v9281_v48, 0.0 }
 0xa98   : > { %v9206_v55 = vsel %vm570_vm0, %v8901_v42, %v9078_v53  ;;  %v9410_v3 = vmax.f32 %v9282_v30, 0.0  ;;  %v9411_v49 = vmax.f32 %v9283_v22, 0.0  ;;  %v9412_v11 = vmax.f32 %v9284_v25, 0.0  ;;  %v8440_v30 = vpop.f32.mrf.mxu3 }
 0xa99   : > { %v9413_v29 = vmax.f32 %v9285_v43, 0.0  ;;  %v9414_v46 = vmax.f32 %v9286_v31, 0.0  ;;  %v8526_v50 = vrot.slane %v16133_v18, 1  ;;  %v8527_v23 = vrot.slane %v16133_v18, 2 }
 0xa9a   : > { %v9671_v14 = vld.sshfl [vmem:[#allocation1] sm:$0xff pattern:$0x73625140]  ;;  %v9287_v12 = vadd.f32 %v16086_v45, %v9206_v55  ;;  %v8528_v39 = vrot.slane %v16133_v18, 3  ;;  %v8646_v37 = vrot.slane %v8387_v17, 1  ;;  %v8647_v51 = vrot.slane %v8387_v17, 2 }
 0xa9b   : > { %9855 = vst.msk [vmem:[%s16126_s24] sm:$0xff] %vm16900_vm3, %v9671_v14  ;;  %v8648_v21 = vrot.slane %v8387_v17, 3  ;;  %v8649_v2 = vrot.slane %v8387_v17, 4  ;;  %v8650_v13 = vrot.slane %v8387_v17, 5  ;;  %v8651_v5 = vrot.slane %v8387_v17, 6  ;;  %vm16915_vm3 = vmmov %vm16911_vm1 }
 0xa9c   : > { %9673 = vst [vmem:[#allocation1] ss:$4 sm:$0xff] %v9408_v28  ;;  %v8652_v33 = vrot.slane %v8387_v17, 7  ;;  %v8703_v60 = vperm.slane %v8387_v17, 0  ;;  %v8704_v41 = vperm.slane %v8646_v37, 0  ;;  %v8705_v16 = vperm.slane %v8647_v51, 0 }
 0xa9d   : > { %9674 = vst [vmem:[#allocation1 + $0x1] ss:$4 sm:$0xff] %v9409_v20  ;;  %v8706_v15 = vperm.slane %v8648_v21, 0  ;;  %v8707_v62 = vperm.slane %v8649_v2, 0  ;;  %v9415_v57 = vmax.f32 %v9287_v12, 0.0  ;;  %v8529_v61 = vrot.slane %v16133_v18, 4 }
 0xa9e   : > { %v9672_v10 = vld.sshfl [vmem:[#allocation1 + $0x20] sm:$0xff pattern:$0x73625140]  ;;  %9675 = vst [vmem:[#allocation1 + $0x2] ss:$4 sm:$0xff] %v9410_v3  ;;  %v8708_v58 = vperm.slane %v8650_v13, 0  ;;  %v8831_v34 = vsel %vm570_vm0, %v16133_v18, %v8703_v60  ;;  %v8832_v7 = vsel %vm570_vm0, %v8526_v50, %v8704_v41  ;;  %v8833_v9 = vsel %vm570_vm0, %v8527_v23, %v8705_v16 }
 0xa9f   : > { %9856 = vst.msk [vmem:[%s16126_s24 + $0x8] sm:$0xff] %vm16901_vm4, %v9672_v10  ;;  %v8709_v4 = vperm.slane %v8651_v5, 0  ;;  %v8834_v1 = vsel %vm570_vm0, %v8528_v39, %v8706_v15  ;;  %v8530_v27 = vrot.slane %v16133_v18, 5  ;;  %v8531_v24 = vrot.slane %v16133_v18, 6  ;;  %vm16916_vm4 = vmmov %vm16911_vm1 }
 0xaa0   : > { %9676 = vst [vmem:[#allocation1 + $0x3] ss:$4 sm:$0xff] %v9411_v49  ;;  %v8710_v56 = vperm.slane %v8652_v33, 0  ;;  %v9288_v36 = vadd.f32 %v16075_v0, %v8831_v34  ;;  %v8532_v32 = vrot.slane %v16133_v18, 7  ;;  %v8835_v8 = vsel %vm570_vm0, %v8529_v61, %v8707_v62 }
 0xaa1   : > { %9677 = vst [vmem:[#allocation1 + $0x20] ss:$4 sm:$0xff] %v9412_v11  ;;  %v9289_v38 = vadd.f32 %v16080_v52, %v8832_v7  ;;  %v9290_v26 = vadd.f32 %v16083_v19, %v8833_v9  ;;  %v9022_v6 = vrot.slane %v16147_v47, 1  ;;  %v9023_v44 = vrot.slane %v16147_v47, 2 }
 0xaa2   : > { %9678 = vst [vmem:[#allocation1 + $0x21] ss:$4 sm:$0xff] %v9413_v29  ;;  %v8836_v35 = vsel %vm570_vm0, %v8530_v27, %v8708_v58  ;;  %v9291_v59 = vadd.f32 %v16086_v45, %v8834_v1  ;;  %v9024_v63 = vrot.slane %v16147_v47, 3  ;;  %v9025_v40 = vrot.slane %v16147_v47, 4  ;;  %v16189_v1 = vpop.f32.mrf.mxu1 }
 0xaa3   : > { %9679 = vst [vmem:[#allocation1 + $0x22] ss:$4 sm:$0xff] %v9414_v46  ;;  %v8837_v42 = vsel %vm570_vm0, %v8531_v24, %v8709_v4  ;;  %v9416_v48 = vmax.f32 %v9288_v36, 0.0  ;;  %v9026_v22 = vrot.slane %v16147_v47, 5  ;;  %v8838_v25 = vsel %vm570_vm0, %v8532_v32, %v8710_v56  ;;  %v8390_v24 = vpop.f32.mrf.mxu2 }
 0xaa4   : > { %9680 = vst [vmem:[#allocation1 + $0x23] ss:$4 sm:$0xff] %v9415_v57  ;;  %v9292_v53 = vadd.f32 %v16075_v0, %v8835_v8  ;;  %v9417_v43 = vmax.f32 %v9289_v38, 0.0  ;;  %v9027_v31 = vrot.slane %v16147_v47, 6  ;;  %v9028_v14 = vrot.slane %v16147_v47, 7 }
 0xaa5   : > { %v9293_v28 = vadd.f32 %v16080_v52, %v8836_v35  ;;  %v9418_v18 = vmax.f32 %v9290_v26, 0.0  ;;  %v9079_v55 = vperm.slane %v16147_v47, 0  ;;  %v9294_v20 = vadd.f32 %v16083_v19, %v8837_v42 }
 0xaa6   : > { %v9419_v3 = vmax.f32 %v9291_v59, 0.0  ;;  %v8902_v49 = vrot.slane %v8440_v30, 1  ;;  %v9295_v17 = vadd.f32 %v16086_v45, %v8838_v25  ;;  %v8903_v29 = vrot.slane %v8440_v30, 2 }
 0xaa7   : > { %v9681_v54 = vld.sshfl [vmem:[#allocation1] sm:$0xff pattern:$0x73625140]  ;;  %v9080_v46 = vperm.slane %v9022_v6, 0  ;;  %v9081_v50 = vperm.slane %v9023_v44, 0  ;;  %v9420_v23 = vmax.f32 %v9292_v53, 0.0  ;;  %v9207_v51 = vsel %vm570_vm0, %v8440_v30, %v9079_v55 }
 0xaa8   : > { %9857 = vst.msk [vmem:[%s16126_s24 + $0x10] sm:$0xff] %vm16902_vm5, %v9681_v54  ;;  %v8904_v10 = vrot.slane %v8440_v30, 3  ;;  %v9082_v12 = vperm.slane %v9024_v63, 0  ;;  %v9421_v39 = vmax.f32 %v9293_v28, 0.0  ;;  %v8905_v37 = vrot.slane %v8440_v30, 4  ;;  %vm16917_vm5 = vmmov %vm16911_vm1 }
 0xaa9   : > { %9683 = vst [vmem:[#allocation1] ss:$4 sm:$0xff] %v9416_v48  ;;  %v9422_v21 = vmax.f32 %v9294_v20, 0.0  ;;  %v8906_v2 = vrot.slane %v8440_v30, 5  ;;  %v8907_v13 = vrot.slane %v8440_v30, 6  ;;  %v9208_v5 = vsel %vm570_vm0, %v8902_v49, %v9080_v46 }
 0xaaa   : > { %9684 = vst [vmem:[#allocation1 + $0x1] ss:$4 sm:$0xff] %v9417_v43  ;;  %v9083_v33 = vperm.slane %v9025_v40, 0  ;;  %v9084_v60 = vperm.slane %v9026_v22, 0  ;;  %v9423_v41 = vmax.f32 %v9295_v17, 0.0  ;;  %v9209_v16 = vsel %vm570_vm0, %v8903_v29, %v9081_v50 }
 0xaab   : > { %v9682_v11 = vld.sshfl [vmem:[#allocation1 + $0x20] sm:$0xff pattern:$0x73625140]  ;;  %9685 = vst [vmem:[#allocation1 + $0x2] ss:$4 sm:$0xff] %v9418_v18  ;;  %v9085_v15 = vperm.slane %v9027_v31, 0  ;;  %v9210_v57 = vsel %vm570_vm0, %v8904_v10, %v9082_v12  ;;  %v9296_v61 = vadd.f32 %v16075_v0, %v9207_v51  ;;  %v9297_v34 = vadd.f32 %v16080_v52, %v9208_v5 }
 0xaac   : > { %9858 = vst.msk [vmem:[%s16126_s24 + $0x18] sm:$0xff] %vm16903_vm8, %v9682_v11  ;;  %v8908_v62 = vrot.slane %v8440_v30, 7  ;;  %v9211_v58 = vsel %vm570_vm0, %v8905_v37, %v9083_v33  ;;  %v9086_v47 = vperm.slane %v9028_v14, 0  ;;  %v9212_v4 = vsel %vm570_vm0, %v8906_v2, %v9084_v60  ;;  %vm16918_vm8 = vmmov %vm16911_vm1 }
 0xaad   : > { %9686 = vst [vmem:[#allocation1 + $0x3] ss:$4 sm:$0xff] %v9419_v3  ;;  %v9213_v7 = vsel %vm570_vm0, %v8907_v13, %v9085_v15  ;;  %v9298_v9 = vadd.f32 %v16083_v19, %v9209_v16  ;;  %v9299_v27 = vadd.f32 %v16086_v45, %v9210_v57  ;;  %v9300_v32 = vadd.f32 %v16075_v0, %v9211_v58 }
 0xaae   : > { %9687 = vst [vmem:[#allocation1 + $0x20] ss:$4 sm:$0xff] %v9420_v23  ;;  %v9214_v36 = vsel %vm570_vm0, %v8908_v62, %v9086_v47  ;;  %v9424_v8 = vmax.f32 %v9296_v61, 0.0  ;;  %v9301_v38 = vadd.f32 %v16080_v52, %v9212_v4  ;;  %v9302_v26 = vadd.f32 %v16083_v19, %v9213_v7  ;;  %v16224_v47 = vpop.f32.mrf.mxu3 }
 0xaaf   : > { %9688 = vst [vmem:[#allocation1 + $0x21] ss:$4 sm:$0xff] %v9421_v39  ;;  %v9425_v6 = vmax.f32 %v9297_v34, 0.0  ;;  %v8533_v44 = vrot.slane %v16189_v1, 1  ;;  %v9426_v35 = vmax.f32 %v9298_v9, 0.0  ;;  %v8653_v59 = vrot.slane %v8390_v24, 1 }
 0xab0   : > { %9689 = vst [vmem:[#allocation1 + $0x22] ss:$4 sm:$0xff] %v9422_v21  ;;  %v8654_v54 = vrot.slane %v8390_v24, 2  ;;  %v8655_v63 = vrot.slane %v8390_v24, 3  ;;  %v9427_v40 = vmax.f32 %v9299_v27, 0.0  ;;  %v8656_v42 = vrot.slane %v8390_v24, 4  ;;  %v16212_v21 = vpop.f32.mrf.mxu0 }
 0xab1   : > { %9690 = vst [vmem:[#allocation1 + $0x23] ss:$4 sm:$0xff] %v9423_v41  ;;  %v8657_v48 = vrot.slane %v8390_v24, 5  ;;  %v8711_v30 = vperm.slane %v8390_v24, 0  ;;  %v9303_v25 = vadd.f32 %v16086_v45, %v9214_v36  ;;  %v8712_v53 = vperm.slane %v8653_v59, 0 }
 0xab2   : > { %v9428_v43 = vmax.f32 %v9300_v32, 0.0  ;;  %v8658_v31 = vrot.slane %v8390_v24, 6  ;;  %v8713_v14 = vperm.slane %v8654_v54, 0  ;;  %v8714_v28 = vperm.slane %v8655_v63, 0 }
 0xab3   : > { %v9429_v18 = vmax.f32 %v9301_v38, 0.0  ;;  %v8534_v55 = vrot.slane %v16189_v1, 2  ;;  %v8659_v20 = vrot.slane %v8390_v24, 7  ;;  %v8839_v3 = vsel %vm570_vm0, %v16189_v1, %v8711_v30 }
 0xab4   : > { %v9691_v56 = vld.sshfl [vmem:[#allocation1] sm:$0xff pattern:$0x73625140]  ;;  %v9430_v49 = vmax.f32 %v9302_v26, 0.0  ;;  %v8535_v11 = vrot.slane %v16189_v1, 3  ;;  %v8715_v17 = vperm.slane %v8656_v42, 0  ;;  %v8840_v29 = vsel %vm570_vm0, %v8533_v44, %v8712_v53 }
 0xab5   : > { %9859 = vst.msk [vmem:[%s16126_s24 + $0x20] sm:$0xff] %vm16904_vm9, %v9691_v56  ;;  %v9431_v46 = vmax.f32 %v9303_v25, 0.0  ;;  %v8716_v50 = vperm.slane %v8657_v48, 0  ;;  %v8841_v23 = vsel %vm570_vm0, %v8534_v55, %v8713_v14  ;;  %v8536_v10 = vrot.slane %v16189_v1, 4  ;;  %vm16919_vm9 = vmmov %vm16911_vm1 }
 0xab6   : > { %9693 = vst [vmem:[#allocation1] ss:$4 sm:$0xff] %v9424_v8  ;;  %v8717_v12 = vperm.slane %v8658_v31, 0  ;;  %v8842_v39 = vsel %vm570_vm0, %v8535_v11, %v8714_v28  ;;  %v9304_v37 = vadd.f32 %v16075_v0, %v8839_v3  ;;  %v8537_v51 = vrot.slane %v16189_v1, 5  ;;  %v16253_v11 = vpop.f32.mrf.mxu2 }
 0xab7   : > { %9694 = vst [vmem:[#allocation1 + $0x1] ss:$4 sm:$0xff] %v9425_v6  ;;  %v8718_v2 = vperm.slane %v8659_v20, 0  ;;  %v9305_v13 = vadd.f32 %v16080_v52, %v8840_v29  ;;  %v8538_v5 = vrot.slane %v16189_v1, 6  ;;  %v8843_v33 = vsel %vm570_vm0, %v8536_v10, %v8715_v17 }
 0xab8   : > { %v9692_v22 = vld.sshfl [vmem:[#allocation1 + $0x20] sm:$0xff pattern:$0x73625140]  ;;  %9695 = vst [vmem:[#allocation1 + $0x2] ss:$4 sm:$0xff] %v9426_v35  ;;  %v9306_v60 = vadd.f32 %v16083_v19, %v8841_v23  ;;  %v8539_v41 = vrot.slane %v16189_v1, 7  ;;  %v8844_v16 = vsel %vm570_vm0, %v8537_v51, %v8716_v50  ;;  %v9307_v15 = vadd.f32 %v16086_v45, %v8842_v39 }
 0xab9   : > { %9860 = vst.msk [vmem:[%s16126_s24 + $0x28] sm:$0xff] %vm16905_vm10, %v9692_v22  ;;  %v9029_v57 = vrot.slane %v16212_v21, 1  ;;  %v9030_v61 = vrot.slane %v16212_v21, 2  ;;  %v8845_v58 = vsel %vm570_vm0, %v8538_v5, %v8717_v12  ;;  %v9432_v34 = vmax.f32 %v9304_v37, 0.0  ;;  %vm16920_vm10 = vmmov %vm16911_vm1 }
 0xaba   : > { %9696 = vst [vmem:[#allocation1 + $0x3] ss:$4 sm:$0xff] %v9427_v40  ;;  %v9031_v4 = vrot.slane %v16212_v21, 3  ;;  %v8846_v7 = vsel %vm570_vm0, %v8539_v41, %v8718_v2  ;;  %v9308_v9 = vadd.f32 %v16075_v0, %v8843_v33  ;;  %v9433_v1 = vmax.f32 %v9305_v13, 0.0 }
 0xabb   : > { %9697 = vst [vmem:[#allocation1 + $0x20] ss:$4 sm:$0xff] %v9428_v43  ;;  %v9032_v27 = vrot.slane %v16212_v21, 4  ;;  %v9033_v24 = vrot.slane %v16212_v21, 5  ;;  %v9309_v56 = vadd.f32 %v16080_v52, %v8844_v16  ;;  %v9434_v36 = vmax.f32 %v9306_v60, 0.0 }
 0xabc   : > { %9698 = vst [vmem:[#allocation1 + $0x21] ss:$4 sm:$0xff] %v9429_v18  ;;  %v9087_v32 = vperm.slane %v16212_v21, 0  ;;  %v9310_v8 = vadd.f32 %v16083_v19, %v8845_v58  ;;  %v9435_v38 = vmax.f32 %v9307_v15, 0.0  ;;  %v8909_v26 = vrot.slane %v16224_v47, 1 }
 0xabd   : > { %9699 = vst [vmem:[#allocation1 + $0x22] ss:$4 sm:$0xff] %v9430_v49  ;;  %v9311_v44 = vadd.f32 %v16086_v45, %v8846_v7  ;;  %v8910_v35 = vrot.slane %v16224_v47, 2  ;;  %v9034_v59 = vrot.slane %v16212_v21, 6  ;;  %v9088_v54 = vperm.slane %v9029_v57, 0 }
 0xabe   : > { %9700 = vst [vmem:[#allocation1 + $0x23] ss:$4 sm:$0xff] %v9431_v46  ;;  %v9436_v63 = vmax.f32 %v9308_v9, 0.0  ;;  %v8911_v40 = vrot.slane %v16224_v47, 3  ;;  %v9035_v42 = vrot.slane %v16212_v21, 7  ;;  %v9089_v48 = vperm.slane %v9030_v61, 0  ;;  %v8339_v61 = vpop.f32.mrf.mxu1 }
 0xabf   : > { %v9437_v30 = vmax.f32 %v9309_v56, 0.0  ;;  %v9215_v22 = vsel %vm570_vm0, %v16224_v47, %v9087_v32  ;;  %v9090_v25 = vperm.slane %v9031_v4, 0  ;;  %v9438_v53 = vmax.f32 %v9310_v8, 0.0 }
 0xac0   : > { %v8912_v43 = vrot.slane %v16224_v47, 4  ;;  %v9216_v31 = vsel %vm570_vm0, %v8909_v26, %v9088_v54  ;;  %v9439_v14 = vmax.f32 %v9311_v44, 0.0  ;;  %v8913_v28 = vrot.slane %v16224_v47, 5 }
 0xac1   : > { %v9701_v62 = vld.sshfl [vmem:[#allocation1] sm:$0xff pattern:$0x73625140]  ;;  %v8914_v18 = vrot.slane %v16224_v47, 6  ;;  %v9217_v55 = vsel %vm570_vm0, %v8910_v35, %v9089_v48  ;;  %v9091_v20 = vperm.slane %v9032_v27, 0  ;;  %v9218_v3 = vsel %vm570_vm0, %v8911_v40, %v9090_v25 }
 0xac2   : > { %9861 = vst.msk [vmem:[%s16126_s24 + $0x30] sm:$0xff] %vm16906_vm11, %v9701_v62  ;;  %v9312_v49 = vadd.f32 %v16075_v0, %v9215_v22  ;;  %v9092_v17 = vperm.slane %v9033_v24, 0  ;;  %v9093_v29 = vperm.slane %v9034_v59, 0  ;;  %v8915_v46 = vrot.slane %v16224_v47, 7  ;;  %vm16921_vm11 = vmmov %vm16911_vm1 }
 0xac3   : > { %9703 = vst [vmem:[#allocation1] ss:$4 sm:$0xff] %v9432_v34  ;;  %v9313_v50 = vadd.f32 %v16080_v52, %v9216_v31  ;;  %v9094_v23 = vperm.slane %v9035_v42, 0  ;;  %v9219_v10 = vsel %vm570_vm0, %v8912_v43, %v9091_v20  ;;  %v9314_v12 = vadd.f32 %v16083_v19, %v9217_v55  ;;  %v16284_v43 = vpop.f32.mrf.mxu0 }
 0xac4   : > { %9704 = vst [vmem:[#allocation1 + $0x1] ss:$4 sm:$0xff] %v9433_v1  ;;  %v9220_v39 = vsel %vm570_vm0, %v8913_v28, %v9092_v17  ;;  %v9221_v37 = vsel %vm570_vm0, %v8914_v18, %v9093_v29  ;;  %v9315_v51 = vadd.f32 %v16086_v45, %v9218_v3  ;;  %v8660_v21 = vrot.slane %v16253_v11, 1 }
 0xac5   : > { %v9702_v6 = vld.sshfl [vmem:[#allocation1 + $0x20] sm:$0xff pattern:$0x73625140]  ;;  %9705 = vst [vmem:[#allocation1 + $0x2] ss:$4 sm:$0xff] %v9434_v36  ;;  %v9440_v13 = vmax.f32 %v9312_v49, 0.0  ;;  %v9222_v33 = vsel %vm570_vm0, %v8915_v46, %v9094_v23  ;;  %v9316_v60 = vadd.f32 %v16075_v0, %v9219_v10  ;;  %v9317_v15 = vadd.f32 %v16080_v52, %v9220_v39  ;;  %v16294_v23 = vpop.f32.mrf.mxu3 }
 0xac6   : > { %9862 = vst.msk [vmem:[%s16126_s24 + $0x38] sm:$0xff] %vm16907_vm12, %v9702_v6  ;;  %v8661_v5 = vrot.slane %v16253_v11, 2  ;;  %v9441_v41 = vmax.f32 %v9313_v50, 0.0  ;;  %v8662_v16 = vrot.slane %v16253_v11, 3  ;;  %v9318_v62 = vadd.f32 %v16083_v19, %v9221_v37  ;;  %vm16922_vm12 = vmmov %vm16911_vm1 }
 0xac7   : > { %9706 = vst [vmem:[#allocation1 + $0x3] ss:$4 sm:$0xff] %v9435_v38  ;;  %v9442_v57 = vmax.f32 %v9314_v12, 0.0  ;;  %v8719_v58 = vperm.slane %v16253_v11, 0  ;;  %v9443_v34 = vmax.f32 %v9315_v51, 0.0  ;;  %v8663_v47 = vrot.slane %v16253_v11, 4 }
 0xac8   : > { %9707 = vst [vmem:[#allocation1 + $0x20] ss:$4 sm:$0xff] %v9436_v63  ;;  %v8664_v4 = vrot.slane %v16253_v11, 5  ;;  %v8720_v7 = vperm.slane %v8660_v21, 0  ;;  %v9319_v1 = vadd.f32 %v16086_v45, %v9222_v33  ;;  %v8721_v27 = vperm.slane %v8661_v5, 0 }
 0xac9   : > { %9708 = vst [vmem:[#allocation1 + $0x21] ss:$4 sm:$0xff] %v9437_v30  ;;  %v9444_v24 = vmax.f32 %v9316_v60, 0.0  ;;  %v8540_v56 = vrot.slane %v8339_v61, 1  ;;  %v8665_v36 = vrot.slane %v16253_v11, 6  ;;  %v8722_v32 = vperm.slane %v8662_v16, 0 }
 0xaca   : > { %9709 = vst [vmem:[#allocation1 + $0x22] ss:$4 sm:$0xff] %v9438_v53  ;;  %v9445_v8 = vmax.f32 %v9317_v15, 0.0  ;;  %v8541_v38 = vrot.slane %v8339_v61, 2  ;;  %v8666_v26 = vrot.slane %v16253_v11, 7  ;;  %v8847_v6 = vsel %vm570_vm0, %v8339_v61, %v8719_v58 }
 0xacb   : > { %9710 = vst [vmem:[#allocation1 + $0x23] ss:$4 sm:$0xff] %v9439_v14  ;;  %v9446_v44 = vmax.f32 %v9318_v62, 0.0  ;;  %v8542_v35 = vrot.slane %v8339_v61, 3  ;;  %v8723_v59 = vperm.slane %v8663_v47, 0  ;;  %v8848_v54 = vsel %vm570_vm0, %v8540_v56, %v8720_v7 }
 0xacc   : > { %v9447_v63 = vmax.f32 %v9319_v1, 0.0  ;;  %v8724_v40 = vperm.slane %v8664_v4, 0  ;;  %v8849_v42 = vsel %vm570_vm0, %v8541_v38, %v8721_v27  ;;  %v8543_v48 = vrot.slane %v8339_v61, 4 }
 0xacd   : > { %v8725_v30 = vperm.slane %v8665_v36, 0  ;;  %v8850_v22 = vsel %vm570_vm0, %v8542_v35, %v8722_v32  ;;  %v9320_v25 = vadd.f32 %v16075_v0, %v8847_v6  ;;  %v8544_v53 = vrot.slane %v8339_v61, 5  ;;  %v16323_v35 = vpop.f32.mrf.mxu2 }
 0xace   : > { %v9711_v2 = vld.sshfl [vmem:[#allocation1] sm:$0xff pattern:$0x73625140]  ;;  %v8726_v31 = vperm.slane %v8666_v26, 0  ;;  %v9321_v14 = vadd.f32 %v16080_v52, %v8848_v54  ;;  %v8545_v28 = vrot.slane %v8339_v61, 6  ;;  %v8851_v18 = vsel %vm570_vm0, %v8543_v48, %v8723_v59 }
 0xacf   : > { %9863 = vst.msk [vmem:[%s16126_s24 + $0x40] sm:$0xff] %vm16908_vm13, %v9711_v2  ;;  %v9322_v55 = vadd.f32 %v16083_v19, %v8849_v42  ;;  %v8546_v20 = vrot.slane %v8339_v61, 7  ;;  %v8852_v3 = vsel %vm570_vm0, %v8544_v53, %v8724_v40  ;;  %v9323_v49 = vadd.f32 %v16086_v45, %v8850_v22  ;;  %vm16923_vm13 = vmmov %vm16911_vm1 }
 0xad0   : > { %9713 = vst [vmem:[#allocation1] ss:$4 sm:$0xff] %v9440_v13  ;;  %v9036_v17 = vrot.slane %v16284_v43, 1  ;;  %v9037_v29 = vrot.slane %v16284_v43, 2  ;;  %v8853_v46 = vsel %vm570_vm0, %v8545_v28, %v8725_v30  ;;  %v9448_v50 = vmax.f32 %v9320_v25, 0.0 }
 0xad1   : > { %9714 = vst [vmem:[#allocation1 + $0x1] ss:$4 sm:$0xff] %v9441_v41  ;;  %v9038_v10 = vrot.slane %v16284_v43, 3  ;;  %v8854_v12 = vsel %vm570_vm0, %v8546_v20, %v8726_v31  ;;  %v9324_v39 = vadd.f32 %v16075_v0, %v8851_v18  ;;  %v9449_v37 = vmax.f32 %v9321_v14, 0.0 }
 0xad2   : > { %v9712_v9 = vld.sshfl [vmem:[#allocation1 + $0x20] sm:$0xff pattern:$0x73625140]  ;;  %9715 = vst [vmem:[#allocation1 + $0x2] ss:$4 sm:$0xff] %v9442_v57  ;;  %v9039_v51 = vrot.slane %v16284_v43, 4  ;;  %v9325_v2 = vadd.f32 %v16080_v52, %v8852_v3  ;;  %v9326_v33 = vadd.f32 %v16083_v19, %v8853_v46  ;;  %v9327_v15 = vadd.f32 %v16086_v45, %v8854_v12 }
 0xad3   : > { %9864 = vst.msk [vmem:[%s16126_s24 + $0x48] sm:$0xff] %vm16909_vm14, %v9712_v9  ;;  %v9040_v21 = vrot.slane %v16284_v43, 5  ;;  %v9450_v13 = vmax.f32 %v9322_v55, 0.0  ;;  %v9095_v5 = vperm.slane %v16284_v43, 0  ;;  %v9451_v60 = vmax.f32 %v9323_v49, 0.0  ;;  %vm16924_vm14 = vmmov %vm16911_vm1 }
 0xad4   : > { %9716 = vst [vmem:[#allocation1 + $0x3] ss:$4 sm:$0xff] %v9443_v34  ;;  %v8916_v41 = vrot.slane %v16294_v23, 1  ;;  %v8917_v62 = vrot.slane %v16294_v23, 2  ;;  %v9041_v57 = vrot.slane %v16284_v43, 6  ;;  %v9096_v61 = vperm.slane %v9036_v17, 0 }
 0xad5   : > { %9717 = vst [vmem:[#allocation1 + $0x20] ss:$4 sm:$0xff] %v9444_v24  ;;  %v9452_v58 = vmax.f32 %v9324_v39, 0.0  ;;  %v8918_v34 = vrot.slane %v16294_v23, 3  ;;  %v9042_v47 = vrot.slane %v16284_v43, 7  ;;  %v9097_v4 = vperm.slane %v9037_v29, 0  ;;  %v8342_v29 = vpop.f32.mrf.mxu1 }
 0xad6   : > { %9718 = vst [vmem:[#allocation1 + $0x21] ss:$4 sm:$0xff] %v9445_v8  ;;  %v9453_v7 = vmax.f32 %v9325_v2, 0.0  ;;  %v9223_v9 = vsel %vm570_vm0, %v16294_v23, %v9095_v5  ;;  %v9098_v1 = vperm.slane %v9038_v10, 0  ;;  %v9454_v27 = vmax.f32 %v9326_v33, 0.0 }
 0xad7   : > { %9719 = vst [vmem:[#allocation1 + $0x22] ss:$4 sm:$0xff] %v9446_v44  ;;  %v8919_v24 = vrot.slane %v16294_v23, 4  ;;  %v9224_v56 = vsel %vm570_vm0, %v8916_v41, %v9096_v61  ;;  %v9455_v36 = vmax.f32 %v9327_v15, 0.0  ;;  %v8920_v32 = vrot.slane %v16294_v23, 5 }
 0xad8   : > { %9720 = vst [vmem:[#allocation1 + $0x23] ss:$4 sm:$0xff] %v9447_v63  ;;  %v8921_v8 = vrot.slane %v16294_v23, 6  ;;  %v9225_v38 = vsel %vm570_vm0, %v8917_v62, %v9097_v4  ;;  %v9099_v26 = vperm.slane %v9039_v51, 0  ;;  %v9226_v6 = vsel %vm570_vm0, %v8918_v34, %v9098_v1 }
 0xad9   : > { %v9328_v44 = vadd.f32 %v16075_v0, %v9223_v9  ;;  %v9100_v59 = vperm.slane %v9040_v21, 0  ;;  %v9101_v54 = vperm.slane %v9041_v57, 0  ;;  %v8922_v63 = vrot.slane %v16294_v23, 7 }
 0xada   : > { %v9329_v40 = vadd.f32 %v16080_v52, %v9224_v56  ;;  %v9102_v42 = vperm.slane %v9042_v47, 0  ;;  %v9227_v48 = vsel %vm570_vm0, %v8919_v24, %v9099_v26  ;;  %v9330_v30 = vadd.f32 %v16083_v19, %v9225_v38  ;;  %v16354_v24 = vpop.f32.mrf.mxu0 }
 0xadb   : > { %v9721_v11 = vld.sshfl [vmem:[#allocation1] sm:$0xff pattern:$0x73625140]  ;;  %v9228_v22 = vsel %vm570_vm0, %v8920_v32, %v9100_v59  ;;  %v9229_v25 = vsel %vm570_vm0, %v8921_v8, %v9101_v54  ;;  %v9331_v53 = vadd.f32 %v16086_v45, %v9226_v6  ;;  %v8667_v43 = vrot.slane %v16323_v35, 1 }
 0xadc   : > { %9865 = vst.msk [vmem:[%s16126_s24 + $0x50] sm:$0xff] %vm16910_vm15, %v9721_v11  ;;  %v9456_v14 = vmax.f32 %v9328_v44, 0.0  ;;  %v8668_v28 = vrot.slane %v16323_v35, 2  ;;  %v9230_v18 = vsel %vm570_vm0, %v8922_v63, %v9102_v42  ;;  %v9332_v55 = vadd.f32 %v16075_v0, %v9227_v48  ;;  %vm16925_vm15 = vmmov %vm16911_vm1 }
 0xadd   : > { %9723 = vst [vmem:[#allocation1] ss:$4 sm:$0xff] %v9448_v50  ;;  %v9457_v20 = vmax.f32 %v9329_v40, 0.0  ;;  %v8669_v3 = vrot.slane %v16323_v35, 3  ;;  %v9333_v49 = vadd.f32 %v16080_v52, %v9228_v22  ;;  %v9334_v11 = vadd.f32 %v16083_v19, %v9229_v25  ;;  %v16364_v40 = vpop.f32.mrf.mxu3 }
 0xade   : > { %9724 = vst [vmem:[#allocation1 + $0x1] ss:$4 sm:$0xff] %v9449_v37  ;;  %v9458_v17 = vmax.f32 %v9330_v30, 0.0  ;;  %v8727_v46 = vperm.slane %v16323_v35, 0  ;;  %v9459_v50 = vmax.f32 %v9331_v53, 0.0  ;;  %v8670_v23 = vrot.slane %v16323_v35, 4 }
 0xadf   : > { %v9722_v16 = vld.sshfl [vmem:[#allocation1 + $0x20] sm:$0xff pattern:$0x73625140]  ;;  %9725 = vst [vmem:[#allocation1 + $0x2] ss:$4 sm:$0xff] %v9450_v13  ;;  %v8671_v10 = vrot.slane %v16323_v35, 5  ;;  %v9335_v37 = vadd.f32 %v16086_v45, %v9230_v18 }
 0xae0   : > { %9866 = vst.msk [vmem:[%s16126_s24 + $0x58] sm:$0xff] %vm16911_vm1, %v9722_v16  ;;  %v8728_v12 = vperm.slane %v8667_v43, 0  ;;  %v8729_v51 = vperm.slane %v8668_v28, 0  ;;  %v9460_v21 = vmax.f32 %v9332_v55, 0.0  ;;  %v8547_v2 = vrot.slane %v8342_v29, 1 }
 0xae1   : > { %9726 = vst [vmem:[#allocation1 + $0x3] ss:$4 sm:$0xff] %v9451_v60  ;;  %v8672_v13 = vrot.slane %v16323_v35, 6  ;;  %v8730_v5 = vperm.slane %v8669_v3, 0  ;;  %v9461_v33 = vmax.f32 %v9333_v49, 0.0  ;;  %v8548_v60 = vrot.slane %v8342_v29, 2 }
 0xae2   : > { %9727 = vst [vmem:[#allocation1 + $0x20] ss:$4 sm:$0xff] %v9452_v58  ;;  %v8673_v41 = vrot.slane %v16323_v35, 7  ;;  %v8855_v16 = vsel %vm570_vm0, %v8342_v29, %v8727_v46  ;;  %v9462_v15 = vmax.f32 %v9334_v11, 0.0  ;;  %v8549_v62 = vrot.slane %v8342_v29, 3 }
 0xae3   : > { %9728 = vst [vmem:[#allocation1 + $0x21] ss:$4 sm:$0xff] %v9453_v7  ;;  %v8731_v57 = vperm.slane %v8670_v23, 0  ;;  %v8856_v61 = vsel %vm570_vm0, %v8547_v2, %v8728_v12  ;;  %v9463_v58 = vmax.f32 %v9335_v37, 0.0  ;;  %v8732_v34 = vperm.slane %v8671_v10, 0 }
 0xae4   : > { %9729 = vst [vmem:[#allocation1 + $0x22] ss:$4 sm:$0xff] %v9454_v27  ;;  %v8857_v47 = vsel %vm570_vm0, %v8548_v60, %v8729_v51  ;;  %v8550_v4 = vrot.slane %v8342_v29, 4  ;;  %v8733_v7 = vperm.slane %v8672_v13, 0  ;;  %v8858_v9 = vsel %vm570_vm0, %v8549_v62, %v8730_v5  ;;  %v16373_v30 = vld [vmem:[%s16635_s14] ss:$0 sm:$0xff]  ;;  %v16398_v62 = vpop.f32.mrf.mxu2 }
 0xae5   : > { %9730 = vst [vmem:[#allocation1 + $0x23] ss:$4 sm:$0xff] %v9455_v36  ;;  %v9336_v1 = vadd.f32 %v16075_v0, %v8855_v16  ;;  %v8551_v27 = vrot.slane %v8342_v29, 5  ;;  %v8734_v56 = vperm.slane %v8673_v41, 0  ;;  %v9337_v36 = vadd.f32 %v16080_v52, %v8856_v61 }
 0xae6   : > { %v8552_v32 = vrot.slane %v8342_v29, 6  ;;  %v8859_v8 = vsel %vm570_vm0, %v8550_v4, %v8731_v57  ;;  %v9338_v38 = vadd.f32 %v16083_v19, %v8857_v47  ;;  %v8553_v26 = vrot.slane %v8342_v29, 7 }
 0xae7   : > { %v8860_v6 = vsel %vm570_vm0, %v8551_v27, %v8732_v34  ;;  %v9339_v44 = vadd.f32 %v16086_v45, %v8858_v9  ;;  %v9043_v0 = vrot.slane %v16354_v24, 1  ;;  %v9044_v59 = vrot.slane %v16354_v24, 2 }
 0xae8   : > { %v9731_v31 = vld.sshfl [vmem:[#allocation1] sm:$0xff pattern:$0x73625140]  ;;  %v8861_v54 = vsel %vm570_vm0, %v8552_v32, %v8733_v7  ;;  %v9464_v63 = vmax.f32 %v9336_v1, 0.0  ;;  %v9045_v42 = vrot.slane %v16354_v24, 3  ;;  %v8862_v48 = vsel %vm570_vm0, %v8553_v26, %v8734_v56 }
 0xae9   : > { %9867 = vst.msk [vmem:[%s16126_s24 + $0x60] sm:$0xff] %vm16912_vm6, %v9731_v31  ;;  %v9340_v22 = vadd.f32 %v16373_v30, %v8859_v8  ;;  %v9465_v25 = vmax.f32 %v9337_v36, 0.0  ;;  %v9046_v53 = vrot.slane %v16354_v24, 4  ;;  %v9047_v43 = vrot.slane %v16354_v24, 5  ;;  %vm16926_vm6 = vmmov %vm16911_vm1 }
 0xaea   : > { %9733 = vst [vmem:[#allocation1] ss:$4 sm:$0xff] %v9456_v14  ;;  %v9341_v31 = vadd.f32 %v16080_v52, %v8860_v6  ;;  %v9466_v14 = vmax.f32 %v9338_v38, 0.0  ;;  %v9103_v28 = vperm.slane %v16354_v24, 0  ;;  %v9342_v18 = vadd.f32 %v16083_v19, %v8861_v54 }
 0xaeb   : > { %9734 = vst [vmem:[#allocation1 + $0x1] ss:$4 sm:$0xff] %v9457_v20  ;;  %v9467_v55 = vmax.f32 %v9339_v44, 0.0  ;;  %v8923_v20 = vrot.slane %v16364_v40, 1  ;;  %v9343_v49 = vadd.f32 %v16086_v45, %v8862_v48  ;;  %v8924_v11 = vrot.slane %v16364_v40, 2 }
 0xaec   : > { %v9732_v39 = vld.sshfl [vmem:[#allocation1 + $0x20] sm:$0xff pattern:$0x73625140]  ;;  %9735 = vst [vmem:[#allocation1 + $0x2] ss:$4 sm:$0xff] %v9458_v17  ;;  %v9048_v17 = vrot.slane %v16354_v24, 6 }
 0xaed   : > { %9868 = vst.msk [vmem:[%s16126_s24 + $0x68] sm:$0xff] %vm16913_vm7, %v9732_v39  ;;  %v9104_v29 = vperm.slane %v9043_v0, 0  ;;  %v9468_v46 = vmax.f32 %v9340_v22, 0.0  ;;  %v9049_v23 = vrot.slane %v16354_v24, 7  ;;  %v9105_v10 = vperm.slane %v9044_v59, 0  ;;  %v8344_v59 = vpop.f32.mrf.mxu1  ;;  %vm16927_vm7 = vmmov %vm16911_vm1 }
 0xaee   : > { %9736 = vst [vmem:[#allocation1 + $0x3] ss:$4 sm:$0xff] %v9459_v50  ;;  %v8925_v50 = vrot.slane %v16364_v40, 3  ;;  %v9469_v12 = vmax.f32 %v9341_v31, 0.0  ;;  %v9231_v39 = vsel %vm570_vm0, %v16364_v40, %v9103_v28  ;;  %v9106_v37 = vperm.slane %v9045_v42, 0 }
 0xaef   : > { %9737 = vst [vmem:[#allocation1 + $0x20] ss:$4 sm:$0xff] %v9460_v21  ;;  %v9470_v51 = vmax.f32 %v9342_v18, 0.0  ;;  %v8926_v21 = vrot.slane %v16364_v40, 4  ;;  %v9232_v2 = vsel %vm570_vm0, %v8923_v20, %v9104_v29  ;;  %v9471_v13 = vmax.f32 %v9343_v49, 0.0 }
 0xaf0   : > { %9738 = vst [vmem:[#allocation1 + $0x21] ss:$4 sm:$0xff] %v9461_v33  ;;  %v8927_v5 = vrot.slane %v16364_v40, 5  ;;  %v8928_v33 = vrot.slane %v16364_v40, 6  ;;  %v9233_v60 = vsel %vm570_vm0, %v8924_v11, %v9105_v10  ;;  %v9107_v41 = vperm.slane %v9046_v53, 0 }
 0xaf1   : > { %9739 = vst [vmem:[#allocation1 + $0x22] ss:$4 sm:$0xff] %v9462_v15  ;;  %v9234_v16 = vsel %vm570_vm0, %v8925_v50, %v9106_v37  ;;  %v9344_v15 = vadd.f32 %v16373_v30, %v9231_v39  ;;  %v9108_v57 = vperm.slane %v9047_v43, 0  ;;  %v9109_v61 = vperm.slane %v9048_v17, 0 }
 0xaf2   : > { %9740 = vst [vmem:[#allocation1 + $0x23] ss:$4 sm:$0xff] %v9463_v58  ;;  %v8929_v58 = vrot.slane %v16364_v40, 7  ;;  %v9345_v34 = vadd.f32 %v16080_v52, %v9232_v2  ;;  %v9110_v47 = vperm.slane %v9049_v23, 0  ;;  %v9235_v4 = vsel %vm570_vm0, %v8926_v21, %v9107_v41  ;;  %v16429_v21 = vpop.f32.mrf.mxu0 }
 0xaf3   : > { %v9346_v7 = vadd.f32 %v16083_v19, %v9233_v60  ;;  %v9236_v9 = vsel %vm570_vm0, %v8927_v5, %v9108_v57  ;;  %v9237_v1 = vsel %vm570_vm0, %v8928_v33, %v9109_v61  ;;  %v9347_v27 = vadd.f32 %v16086_v45, %v9234_v16 }
 0xaf4   : > { %v8674_v24 = vrot.slane %v16398_v62, 1  ;;  %v9472_v36 = vmax.f32 %v9344_v15, 0.0  ;;  %v8675_v32 = vrot.slane %v16398_v62, 2  ;;  %v9238_v8 = vsel %vm570_vm0, %v8929_v58, %v9110_v47  ;;  %v16439_v47 = vpop.f32.mrf.mxu3 }
 0xaf5   : > { %v9741_v35 = vld.sshfl [vmem:[#allocation1] sm:$0xff pattern:$0x73625140]  ;;  %v9348_v38 = vadd.f32 %v16373_v30, %v9235_v4  ;;  %v9473_v26 = vmax.f32 %v9345_v34, 0.0  ;;  %v8676_v6 = vrot.slane %v16398_v62, 3  ;;  %v9349_v44 = vadd.f32 %v16080_v52, %v9236_v9 }
 0xaf6   : > { %9869 = vst.msk [vmem:[%s16126_s24 + $0x70] sm:$0xff] %vm16914_vm2, %v9741_v35  ;;  %v9350_v35 = vadd.f32 %v16083_v19, %v9237_v1  ;;  %v9474_v0 = vmax.f32 %v9346_v7, 0.0  ;;  %v8735_v54 = vperm.slane %v16398_v62, 0  ;;  %v8677_v40 = vrot.slane %v16398_v62, 4  ;;  %vm16928_vm2 = vmmov %vm16911_vm1 }
 0xaf7   : > { %9743 = vst [vmem:[#allocation1] ss:$4 sm:$0xff] %v9464_v63  ;;  %v9475_v63 = vmax.f32 %v9347_v27, 0.0  ;;  %v8678_v42 = vrot.slane %v16398_v62, 5  ;;  %v8736_v48 = vperm.slane %v8674_v24, 0  ;;  %v8737_v53 = vperm.slane %v8675_v32, 0 }
 0xaf8   : > { %9744 = vst [vmem:[#allocation1 + $0x1] ss:$4 sm:$0xff] %v9465_v25  ;;  %v9351_v25 = vadd.f32 %v16086_v45, %v9238_v8  ;;  %v9476_v43 = vmax.f32 %v9348_v38, 0.0  ;;  %v8554_v31 = vrot.slane %v8344_v59, 1  ;;  %v8738_v28 = vperm.slane %v8676_v6, 0 }
 0xaf9   : > { %v9742_v3 = vld.sshfl [vmem:[#allocation1 + $0x20] sm:$0xff pattern:$0x73625140]  ;;  %9745 = vst [vmem:[#allocation1 + $0x2] ss:$4 sm:$0xff] %v9466_v14  ;;  %v8679_v14 = vrot.slane %v16398_v62, 6 }
 0xafa   : > { %9870 = vst.msk [vmem:[%s16126_s24 + $0x78] sm:$0xff] %vm16915_vm3, %v9742_v3  ;;  %v9477_v18 = vmax.f32 %v9349_v44, 0.0  ;;  %v8680_v20 = vrot.slane %v16398_v62, 7  ;;  %v8863_v3 = vsel %vm570_vm0, %v8344_v59, %v8735_v54  ;;  %v9478_v49 = vmax.f32 %v9350_v35, 0.0 }
 0xafb   : > { %9746 = vst [vmem:[#allocation1 + $0x3] ss:$4 sm:$0xff] %v9467_v55  ;;  %v8555_v55 = vrot.slane %v8344_v59, 2  ;;  %v8556_v11 = vrot.slane %v8344_v59, 3  ;;  %v8739_v17 = vperm.slane %v8677_v40, 0  ;;  %v8864_v29 = vsel %vm570_vm0, %v8554_v31, %v8736_v48 }
 0xafc   : > { %9747 = vst [vmem:[#allocation1 + $0x20] ss:$4 sm:$0xff] %v9468_v46  ;;  %v9479_v46 = vmax.f32 %v9351_v25, 0.0  ;;  %v8740_v50 = vperm.slane %v8678_v42, 0  ;;  %v8557_v10 = vrot.slane %v8344_v59, 4  ;;  %v9352_v37 = vadd.f32 %v16373_v30, %v8863_v3 }
 0xafd   : > { %9748 = vst [vmem:[#allocation1 + $0x21] ss:$4 sm:$0xff] %v9469_v12  ;;  %v8865_v23 = vsel %vm570_vm0, %v8555_v55, %v8737_v53  ;;  %v8741_v12 = vperm.slane %v8679_v14, 0  ;;  %v8866_v39 = vsel %vm570_vm0, %v8556_v11, %v8738_v28  ;;  %v8742_v2 = vperm.slane %v8680_v20, 0  ;;  %v16468_v11 = vpop.f32.mrf.mxu2 }
 0xafe   : > { %9749 = vst [vmem:[#allocation1 + $0x22] ss:$4 sm:$0xff] %v9470_v51  ;;  %v8558_v51 = vrot.slane %v8344_v59, 5  ;;  %v8559_v5 = vrot.slane %v8344_v59, 6  ;;  %v8867_v33 = vsel %vm570_vm0, %v8557_v10, %v8739_v17  ;;  %v9354_v60 = vadd.f32 %v16083_v19, %v8865_v23 }
 0xaff   : > { %9750 = vst [vmem:[#allocation1 + $0x23] ss:$4 sm:$0xff] %v9471_v13  ;;  %v9353_v13 = vadd.f32 %v16080_v52, %v8864_v29  ;;  %v8560_v41 = vrot.slane %v8344_v59, 7  ;;  %v9355_v15 = vadd.f32 %v16086_v45, %v8866_v39  ;;  %v9050_v57 = vrot.slane %v16429_v21, 1 }
 0xb00   : > { %v8868_v16 = vsel %vm570_vm0, %v8558_v51, %v8740_v50  ;;  %v9051_v61 = vrot.slane %v16429_v21, 2  ;;  %v8869_v58 = vsel %vm570_vm0, %v8559_v5, %v8741_v12  ;;  %v9480_v34 = vmax.f32 %v9352_v37, 0.0 }
 0xb01   : > { %v9052_v4 = vrot.slane %v16429_v21, 3  ;;  %v8870_v7 = vsel %vm570_vm0, %v8560_v41, %v8742_v2  ;;  %v9356_v9 = vadd.f32 %v16373_v30, %v8867_v33  ;;  %v9481_v1 = vmax.f32 %v9353_v13, 0.0 }
 0xb02   : > { %v9751_v56 = vld.sshfl [vmem:[#allocation1] sm:$0xff pattern:$0x73625140]  ;;  %v9053_v27 = vrot.slane %v16429_v21, 4  ;;  %v9054_v24 = vrot.slane %v16429_v21, 5  ;;  %v9111_v32 = vperm.slane %v16429_v21, 0  ;;  %v9358_v8 = vadd.f32 %v16083_v19, %v8869_v58 }
 0xb03   : > { %9871 = vst.msk [vmem:[%s16126_s24 + $0x80] sm:$0xff] %vm16916_vm4, %v9751_v56  ;;  %v9357_v56 = vadd.f32 %v16080_v52, %v8868_v16  ;;  %v9483_v38 = vmax.f32 %v9355_v15, 0.0  ;;  %v9359_v44 = vadd.f32 %v16086_v45, %v8870_v7  ;;  %v8931_v35 = vrot.slane %v16439_v47, 2 }
 0xb04   : > { %9753 = vst [vmem:[#allocation1] ss:$4 sm:$0xff] %v9472_v36  ;;  %v9482_v36 = vmax.f32 %v9354_v60, 0.0  ;;  %v9112_v59 = vperm.slane %v9050_v57, 0  ;;  %v9484_v54 = vmax.f32 %v9356_v9, 0.0  ;;  %v9056_v40 = vrot.slane %v16429_v21, 7 }
 0xb05   : > { %9754 = vst [vmem:[#allocation1 + $0x1] ss:$4 sm:$0xff] %v9473_v26  ;;  %v8930_v26 = vrot.slane %v16439_v47, 1  ;;  %v9113_v42 = vperm.slane %v9051_v61, 0  ;;  %v9485_v48 = vmax.f32 %v9357_v56, 0.0  ;;  %v9114_v25 = vperm.slane %v9052_v4, 0  ;;  %v8347_v61 = vpop.f32.mrf.mxu1 }
 0xb06   : > { %v9752_v22 = vld.sshfl [vmem:[#allocation1 + $0x20] sm:$0xff pattern:$0x73625140]  ;;  %9755 = vst [vmem:[#allocation1 + $0x2] ss:$4 sm:$0xff] %v9474_v0  ;;  %v9055_v0 = vrot.slane %v16429_v21, 6 }
 0xb07   : > { %9872 = vst.msk [vmem:[%s16126_s24 + $0x88] sm:$0xff] %vm16917_vm5, %v9752_v22  ;;  %v9239_v22 = vsel %vm570_vm0, %v16439_v47, %v9111_v32  ;;  %v9486_v53 = vmax.f32 %v9358_v8, 0.0  ;;  %v9240_v31 = vsel %vm570_vm0, %v8930_v26, %v9112_v59  ;;  %v9487_v14 = vmax.f32 %v9359_v44, 0.0 }
 0xb08   : > { %9756 = vst [vmem:[#allocation1 + $0x3] ss:$4 sm:$0xff] %v9475_v63  ;;  %v8932_v63 = vrot.slane %v16439_v47, 3  ;;  %v8934_v28 = vrot.slane %v16439_v47, 5  ;;  %v9241_v55 = vsel %vm570_vm0, %v8931_v35, %v9113_v42  ;;  %v9115_v20 = vperm.slane %v9053_v27, 0 }
 0xb09   : > { %9757 = vst [vmem:[#allocation1 + $0x20] ss:$4 sm:$0xff] %v9476_v43  ;;  %v8933_v43 = vrot.slane %v16439_v47, 4  ;;  %v9116_v17 = vperm.slane %v9054_v24, 0  ;;  %v9117_v29 = vperm.slane %v9055_v0, 0  ;;  %v9361_v50 = vadd.f32 %v16080_v52, %v9240_v31 }
 0xb0a   : > { %9758 = vst [vmem:[#allocation1 + $0x21] ss:$4 sm:$0xff] %v9477_v18  ;;  %v8935_v18 = vrot.slane %v16439_v47, 6  ;;  %v9242_v3 = vsel %vm570_vm0, %v8932_v63, %v9114_v25  ;;  %v9118_v23 = vperm.slane %v9056_v40, 0  ;;  %v9362_v12 = vadd.f32 %v16083_v19, %v9241_v55 }
 0xb0b   : > { %9759 = vst [vmem:[#allocation1 + $0x22] ss:$4 sm:$0xff] %v9478_v49  ;;  %v9360_v49 = vadd.f32 %v16373_v30, %v9239_v22  ;;  %v9243_v10 = vsel %vm570_vm0, %v8933_v43, %v9115_v20  ;;  %v9244_v39 = vsel %vm570_vm0, %v8934_v28, %v9116_v17  ;;  %v9363_v51 = vadd.f32 %v16086_v45, %v9242_v3  ;;  %v16499_v43 = vpop.f32.mrf.mxu0 }
 0xb0c   : > { %9760 = vst [vmem:[#allocation1 + $0x23] ss:$4 sm:$0xff] %v9479_v46  ;;  %v8936_v46 = vrot.slane %v16439_v47, 7  ;;  %v9245_v37 = vsel %vm570_vm0, %v8935_v18, %v9117_v29  ;;  %v8681_v21 = vrot.slane %v16468_v11, 1  ;;  %v8682_v5 = vrot.slane %v16468_v11, 2 }
 0xb0d   : > { %v9488_v13 = vmax.f32 %v9360_v49, 0.0  ;;  %v9364_v60 = vadd.f32 %v16373_v30, %v9243_v10  ;;  %v9489_v41 = vmax.f32 %v9361_v50, 0.0  ;;  %v8683_v16 = vrot.slane %v16468_v11, 3 }
 0xb0e   : > { %v9246_v33 = vsel %vm570_vm0, %v8936_v46, %v9118_v23  ;;  %v9365_v15 = vadd.f32 %v16080_v52, %v9244_v39  ;;  %v9490_v57 = vmax.f32 %v9362_v12, 0.0  ;;  %v8743_v58 = vperm.slane %v16468_v11, 0  ;;  %v16509_v23 = vpop.f32.mrf.mxu3 }
 0xb0f   : > { %v9761_v62 = vld.sshfl [vmem:[#allocation1] sm:$0xff pattern:$0x73625140]  ;;  %v8684_v47 = vrot.slane %v16468_v11, 4  ;;  %v8685_v4 = vrot.slane %v16468_v11, 5  ;;  %v8744_v7 = vperm.slane %v8681_v21, 0 }
 0xb10   : > { %9873 = vst.msk [vmem:[%s16126_s24 + $0x90] sm:$0xff] %vm16918_vm8, %v9761_v62  ;;  %v9366_v62 = vadd.f32 %v16083_v19, %v9245_v37  ;;  %v8745_v27 = vperm.slane %v8682_v5, 0  ;;  %v9492_v24 = vmax.f32 %v9364_v60, 0.0  ;;  %v8561_v56 = vrot.slane %v8347_v61, 1 }
 0xb11   : > { %9763 = vst [vmem:[#allocation1] ss:$4 sm:$0xff] %v9480_v34  ;;  %v9491_v34 = vmax.f32 %v9363_v51, 0.0  ;;  %v8746_v32 = vperm.slane %v8683_v16, 0  ;;  %v9493_v8 = vmax.f32 %v9365_v15, 0.0  ;;  %v8687_v26 = vrot.slane %v16468_v11, 7 }
 0xb12   : > { %9764 = vst [vmem:[#allocation1 + $0x1] ss:$4 sm:$0xff] %v9481_v1  ;;  %v9367_v1 = vadd.f32 %v16086_v45, %v9246_v33  ;;  %v9494_v44 = vmax.f32 %v9366_v62, 0.0  ;;  %v8563_v35 = vrot.slane %v8347_v61, 3  ;;  %v8747_v0 = vperm.slane %v8684_v47, 0 }
 0xb13   : > { %v9762_v6 = vld.sshfl [vmem:[#allocation1 + $0x20] sm:$0xff pattern:$0x73625140]  ;;  %9765 = vst [vmem:[#allocation1 + $0x2] ss:$4 sm:$0xff] %v9482_v36  ;;  %v8686_v36 = vrot.slane %v16468_v11, 6  ;;  %v8872_v59 = vsel %vm570_vm0, %v8561_v56, %v8744_v7 }
 0xb14   : > { %9874 = vst.msk [vmem:[%s16126_s24 + $0x98] sm:$0xff] %vm16919_vm9, %v9762_v6  ;;  %v8871_v6 = vsel %vm570_vm0, %v8347_v61, %v8743_v58  ;;  %v8748_v63 = vperm.slane %v8685_v4, 0  ;;  %v8564_v42 = vrot.slane %v8347_v61, 4  ;;  %v8874_v22 = vsel %vm570_vm0, %v8563_v35, %v8746_v32  ;;  %v16538_v35 = vpop.f32.mrf.mxu2 }
 0xb15   : > { %9766 = vst [vmem:[#allocation1 + $0x3] ss:$4 sm:$0xff] %v9483_v38  ;;  %v8562_v38 = vrot.slane %v8347_v61, 2  ;;  %v9368_v25 = vadd.f32 %v16373_v30, %v8871_v6  ;;  %v8750_v31 = vperm.slane %v8687_v26, 0  ;;  %v8566_v28 = vrot.slane %v8347_v61, 6 }
 0xb16   : > { %9767 = vst [vmem:[#allocation1 + $0x20] ss:$4 sm:$0xff] %v9484_v54  ;;  %v9495_v54 = vmax.f32 %v9367_v1, 0.0  ;;  %v8875_v18 = vsel %vm570_vm0, %v8564_v42, %v8747_v0  ;;  %v8567_v20 = vrot.slane %v8347_v61, 7  ;;  %v9371_v49 = vadd.f32 %v16086_v45, %v8874_v22 }
 0xb17   : > { %9768 = vst [vmem:[#allocation1 + $0x21] ss:$4 sm:$0xff] %v9485_v48  ;;  %v8873_v40 = vsel %vm570_vm0, %v8562_v38, %v8745_v27  ;;  %v8749_v48 = vperm.slane %v8686_v36, 0  ;;  %v9057_v17 = vrot.slane %v16499_v43, 1  ;;  %v9058_v29 = vrot.slane %v16499_v43, 2 }
 0xb18   : > { %9769 = vst [vmem:[#allocation1 + $0x22] ss:$4 sm:$0xff] %v9486_v53  ;;  %v8565_v53 = vrot.slane %v8347_v61, 5  ;;  %v9370_v55 = vadd.f32 %v16083_v19, %v8873_v40  ;;  %v9496_v50 = vmax.f32 %v9368_v25, 0.0  ;;  %v9059_v10 = vrot.slane %v16499_v43, 3 }
 0xb19   : > { %9770 = vst [vmem:[#allocation1 + $0x23] ss:$4 sm:$0xff] %v9487_v14  ;;  %v9369_v14 = vadd.f32 %v16080_v52, %v8872_v59  ;;  %v8877_v46 = vsel %vm570_vm0, %v8566_v28, %v8749_v48  ;;  %v8878_v12 = vsel %vm570_vm0, %v8567_v20, %v8750_v31  ;;  %v9372_v39 = vadd.f32 %v16373_v30, %v8875_v18 }
 0xb1a   : > { %v8876_v3 = vsel %vm570_vm0, %v8565_v53, %v8748_v63  ;;  %v9060_v51 = vrot.slane %v16499_v43, 4  ;;  %v9061_v21 = vrot.slane %v16499_v43, 5  ;;  %v9119_v5 = vperm.slane %v16499_v43, 0 }
 0xb1b   : > { %v9497_v37 = vmax.f32 %v9369_v14, 0.0  ;;  %v9374_v33 = vadd.f32 %v16083_v19, %v8877_v46  ;;  %v9499_v60 = vmax.f32 %v9371_v49, 0.0  ;;  %v9375_v15 = vadd.f32 %v16086_v45, %v8878_v12 }
 0xb1c   : > { %v9771_v2 = vld.sshfl [vmem:[#allocation1] sm:$0xff pattern:$0x73625140]  ;;  %v8938_v62 = vrot.slane %v16509_v23, 2  ;;  %v9120_v61 = vperm.slane %v9057_v17, 0  ;;  %v9500_v58 = vmax.f32 %v9372_v39, 0.0 }
 0xb1d   : > { %9875 = vst.msk [vmem:[%s16126_s24 + $0xa0] sm:$0xff] %vm16920_vm10, %v9771_v2  ;;  %v9373_v2 = vadd.f32 %v16080_v52, %v8876_v3  ;;  %v9063_v47 = vrot.slane %v16499_v43, 7  ;;  %v9121_v4 = vperm.slane %v9058_v29, 0  ;;  %v9122_v1 = vperm.slane %v9059_v10, 0  ;;  %v8349_v29 = vpop.f32.mrf.mxu1 }
 0xb1e   : > { %9773 = vst [vmem:[#allocation1] ss:$4 sm:$0xff] %v9488_v13  ;;  %v9498_v13 = vmax.f32 %v9370_v55, 0.0  ;;  %v9502_v27 = vmax.f32 %v9374_v33, 0.0  ;;  %v9503_v36 = vmax.f32 %v9375_v15, 0.0  ;;  %v8941_v32 = vrot.slane %v16509_v23, 5 }
 0xb1f   : > { %9774 = vst [vmem:[#allocation1 + $0x1] ss:$4 sm:$0xff] %v9489_v41  ;;  %v8937_v41 = vrot.slane %v16509_v23, 1  ;;  %v9501_v7 = vmax.f32 %v9373_v2, 0.0  ;;  %v9249_v38 = vsel %vm570_vm0, %v8938_v62, %v9121_v4  ;;  %v9123_v26 = vperm.slane %v9060_v51, 0 }
 0xb20   : > { %v9772_v9 = vld.sshfl [vmem:[#allocation1 + $0x20] sm:$0xff pattern:$0x73625140]  ;;  %9775 = vst [vmem:[#allocation1 + $0x2] ss:$4 sm:$0xff] %v9490_v57  ;;  %v9062_v57 = vrot.slane %v16499_v43, 6  ;;  %v9378_v48 = vadd.f32 %v16083_v19, %v9249_v38 }
 0xb21   : > { %9876 = vst.msk [vmem:[%s16126_s24 + $0xa8] sm:$0xff] %vm16921_vm11, %v9772_v9  ;;  %v9247_v9 = vsel %vm570_vm0, %v16509_v23, %v9119_v5  ;;  %v9248_v56 = vsel %vm570_vm0, %v8937_v41, %v9120_v61  ;;  %v9124_v0 = vperm.slane %v9061_v21, 0  ;;  %v9126_v40 = vperm.slane %v9063_v47, 0 }
 0xb22   : > { %9776 = vst [vmem:[#allocation1 + $0x3] ss:$4 sm:$0xff] %v9491_v34  ;;  %v8939_v34 = vrot.slane %v16509_v23, 3  ;;  %v9125_v59 = vperm.slane %v9062_v57, 0  ;;  %v9377_v63 = vadd.f32 %v16080_v52, %v9248_v56  ;;  %v8688_v43 = vrot.slane %v16538_v35, 1 }
 0xb23   : > { %9777 = vst [vmem:[#allocation1 + $0x20] ss:$4 sm:$0xff] %v9492_v24  ;;  %v8940_v24 = vrot.slane %v16509_v23, 4  ;;  %v9252_v22 = vsel %vm570_vm0, %v8941_v32, %v9124_v0  ;;  %v8689_v28 = vrot.slane %v16538_v35, 2  ;;  %v8690_v3 = vrot.slane %v16538_v35, 3 }
 0xb24   : > { %9778 = vst [vmem:[#allocation1 + $0x21] ss:$4 sm:$0xff] %v9493_v8  ;;  %v8942_v8 = vrot.slane %v16509_v23, 6  ;;  %v9250_v6 = vsel %vm570_vm0, %v8939_v34, %v9122_v1  ;;  %v9505_v20 = vmax.f32 %v9377_v63, 0.0  ;;  %v9381_v49 = vadd.f32 %v16080_v52, %v9252_v22  ;;  %v8455_v63 = vpop.f32.mrf.mxu3 }
 0xb25   : > { %9779 = vst [vmem:[#allocation1 + $0x22] ss:$4 sm:$0xff] %v9494_v44  ;;  %v9376_v44 = vadd.f32 %v16373_v30, %v9247_v9  ;;  %v9251_v42 = vsel %vm570_vm0, %v8940_v24, %v9123_v26  ;;  %v9379_v53 = vadd.f32 %v16086_v45, %v9250_v6  ;;  %v9506_v17 = vmax.f32 %v9378_v48, 0.0  ;;  %v16569_v24 = vpop.f32.mrf.mxu0 }
 0xb26   : > { %9780 = vst [vmem:[#allocation1 + $0x23] ss:$4 sm:$0xff] %v9495_v54  ;;  %v8943_v54 = vrot.slane %v16509_v23, 7  ;;  %v9253_v25 = vsel %vm570_vm0, %v8942_v8, %v9125_v59  ;;  %v9380_v55 = vadd.f32 %v16373_v30, %v9251_v42  ;;  %v8751_v46 = vperm.slane %v16538_v35, 0 }
 0xb27   : > { %v9504_v14 = vmax.f32 %v9376_v44, 0.0  ;;  %v8691_v23 = vrot.slane %v16538_v35, 4  ;;  %v8692_v10 = vrot.slane %v16538_v35, 5  ;;  %v8752_v12 = vperm.slane %v8688_v43, 0 }
 0xb28   : > { %v9254_v18 = vsel %vm570_vm0, %v8943_v54, %v9126_v40  ;;  %v8753_v51 = vperm.slane %v8689_v28, 0  ;;  %v9508_v21 = vmax.f32 %v9380_v55, 0.0  ;;  %v8568_v2 = vrot.slane %v8349_v29, 1 }
 0xb29   : > { %v9781_v11 = vld.sshfl [vmem:[#allocation1] sm:$0xff pattern:$0x73625140]  ;;  %v8754_v5 = vperm.slane %v8690_v3, 0  ;;  %v9509_v33 = vmax.f32 %v9381_v49, 0.0  ;;  %v8694_v41 = vrot.slane %v16538_v35, 7 }
 0xb2a   : > { %9877 = vst.msk [vmem:[%s16126_s24 + $0xb0] sm:$0xff] %vm16922_vm12, %v9781_v11  ;;  %v9382_v11 = vadd.f32 %v16083_v19, %v9253_v25  ;;  %v8570_v62 = vrot.slane %v8349_v29, 3  ;;  %v8755_v57 = vperm.slane %v8691_v23, 0  ;;  %v8880_v61 = vsel %vm570_vm0, %v8568_v2, %v8752_v12 }
 0xb2b   : > { %9783 = vst [vmem:[#allocation1] ss:$4 sm:$0xff] %v9496_v50  ;;  %v9507_v50 = vmax.f32 %v9379_v53, 0.0  ;;  %v8756_v34 = vperm.slane %v8692_v10, 0  ;;  %v8571_v4 = vrot.slane %v8349_v29, 4  ;;  %v8758_v56 = vperm.slane %v8694_v41, 0 }
 0xb2c   : > { %9784 = vst [vmem:[#allocation1 + $0x1] ss:$4 sm:$0xff] %v9497_v37  ;;  %v9383_v37 = vadd.f32 %v16086_v45, %v9254_v18  ;;  %v9510_v15 = vmax.f32 %v9382_v11, 0.0  ;;  %v8882_v9 = vsel %vm570_vm0, %v8570_v62, %v8754_v5  ;;  %v8573_v32 = vrot.slane %v8349_v29, 6 }
 0xb2d   : > { %v9782_v16 = vld.sshfl [vmem:[#allocation1 + $0x20] sm:$0xff pattern:$0x73625140]  ;;  %9785 = vst [vmem:[#allocation1 + $0x2] ss:$4 sm:$0xff] %v9498_v13  ;;  %v8693_v13 = vrot.slane %v16538_v35, 6  ;;  %v8883_v8 = vsel %vm570_vm0, %v8571_v4, %v8755_v57  ;;  %v9387_v44 = vadd.f32 %v16086_v45, %v8882_v9 }
 0xb2e   : > { %9878 = vst.msk [vmem:[%s16126_s24 + $0xb8] sm:$0xff] %vm16923_vm13, %v9782_v16  ;;  %v8879_v16 = vsel %vm570_vm0, %v8349_v29, %v8751_v46  ;;  %v8574_v26 = vrot.slane %v8349_v29, 7  ;;  %v9064_v0 = vrot.slane %v16569_v24, 1  ;;  %v9065_v40 = vrot.slane %v16569_v24, 2 }
 0xb2f   : > { %9786 = vst [vmem:[#allocation1 + $0x3] ss:$4 sm:$0xff] %v9499_v60  ;;  %v8569_v60 = vrot.slane %v8349_v29, 2  ;;  %v9384_v1 = vadd.f32 %v16373_v30, %v8879_v16  ;;  %v9388_v48 = vadd.f32 %v16373_v30, %v8883_v8  ;;  %v9066_v25 = vrot.slane %v16569_v24, 3 }
 0xb30   : > { %9787 = vst [vmem:[#allocation1 + $0x20] ss:$4 sm:$0xff] %v9500_v58  ;;  %v9511_v58 = vmax.f32 %v9383_v37, 0.0  ;;  %v8886_v42 = vsel %vm570_vm0, %v8574_v26, %v8758_v56  ;;  %v9067_v53 = vrot.slane %v16569_v24, 4  ;;  %v9515_v18 = vmax.f32 %v9387_v44, 0.0 }
 0xb31   : > { %9788 = vst [vmem:[#allocation1 + $0x21] ss:$4 sm:$0xff] %v9501_v7  ;;  %v8881_v47 = vsel %vm570_vm0, %v8569_v60, %v8753_v51  ;;  %v8757_v7 = vperm.slane %v8693_v13, 0  ;;  %v9512_v54 = vmax.f32 %v9384_v1, 0.0  ;;  %v8944_v55 = vrot.slane %v8455_v63, 1 }
 0xb32   : > { %9789 = vst [vmem:[#allocation1 + $0x22] ss:$4 sm:$0xff] %v9502_v27  ;;  %v8572_v27 = vrot.slane %v8349_v29, 5  ;;  %v9386_v38 = vadd.f32 %v16083_v19, %v8881_v47  ;;  %v9391_v3 = vadd.f32 %v16086_v45, %v8886_v42  ;;  %v8945_v49 = vrot.slane %v8455_v63, 2 }
 0xb33   : > { %9790 = vst [vmem:[#allocation1 + $0x23] ss:$4 sm:$0xff] %v9503_v36  ;;  %v9385_v36 = vadd.f32 %v16080_v52, %v8880_v61  ;;  %v8885_v59 = vsel %vm570_vm0, %v8573_v32, %v8757_v7  ;;  %v9068_v11 = vrot.slane %v16569_v24, 5  ;;  %v9128_v29 = vperm.slane %v9064_v0, 0 }
 0xb34   : > { %v8884_v6 = vsel %vm570_vm0, %v8572_v27, %v8756_v34  ;;  %v9390_v28 = vadd.f32 %v16083_v19, %v8885_v59  ;;  %v9516_v46 = vmax.f32 %v9388_v48, 0.0  ;;  %v8946_v10 = vrot.slane %v8455_v63, 3 }
 0xb35   : > { %v9513_v22 = vmax.f32 %v9385_v36, 0.0  ;;  %v9389_v43 = vadd.f32 %v16080_v52, %v8884_v6  ;;  %v8947_v51 = vrot.slane %v8455_v63, 4  ;;  %v9130_v2 = vperm.slane %v9066_v25, 0 }
 0xb36   : > { %v9791_v31 = vld.sshfl [vmem:[#allocation1] sm:$0xff pattern:$0x73625140]  ;;  %v9518_v37 = vmax.f32 %v9390_v28, 0.0  ;;  %v9519_v13 = vmax.f32 %v9391_v3, 0.0  ;;  %v8948_v5 = vrot.slane %v8455_v63, 5 }
 0xb37   : > { %9879 = vst.msk [vmem:[%s16126_s24 + $0xc0] sm:$0xff] %vm16924_vm14, %v9791_v31  ;;  %v9514_v31 = vmax.f32 %v9386_v38, 0.0  ;;  %v9517_v23 = vmax.f32 %v9389_v43, 0.0  ;;  %v9131_v60 = vperm.slane %v9067_v53, 0  ;;  %v8949_v41 = vrot.slane %v8455_v63, 6 }
 0xb38   : > { %9793 = vst [vmem:[#allocation1] ss:$4 sm:$0xff] %v9504_v14  ;;  %v9127_v14 = vperm.slane %v16569_v24, 0  ;;  %v8950_v62 = vrot.slane %v8455_v63, 7  ;;  %v9258_v57 = vsel %vm570_vm0, %v8946_v10, %v9130_v2 }
 0xb39   : > { %9794 = vst [vmem:[#allocation1 + $0x1] ss:$4 sm:$0xff] %v9505_v20  ;;  %v9259_v34 = vsel %vm570_vm0, %v8947_v51, %v9131_v60  ;;  %v9395_v27 = vadd.f32 %v16086_v45, %v9258_v57 }
 0xb3a   : > { %v9792_v39 = vld.sshfl [vmem:[#allocation1 + $0x20] sm:$0xff pattern:$0x73625140]  ;;  %9795 = vst [vmem:[#allocation1 + $0x2] ss:$4 sm:$0xff] %v9506_v17  ;;  %v9069_v17 = vrot.slane %v16569_v24, 6  ;;  %v9255_v12 = vsel %vm570_vm0, %v8455_v63, %v9127_v14  ;;  %v9396_v36 = vadd.f32 %v16373_v30, %v9259_v34 }
 0xb3b   : > { %9880 = vst.msk [vmem:[%s16126_s24 + $0xc8] sm:$0xff] %vm16925_vm15, %v9792_v39  ;;  %v9070_v39 = vrot.slane %v16569_v24, 7  ;;  %v9392_v16 = vadd.f32 %v16373_v30, %v9255_v12 }
 0xb3c   : > { %9796 = vst [vmem:[#allocation1 + $0x3] ss:$4 sm:$0xff] %v9507_v50  ;;  %v9129_v50 = vperm.slane %v9065_v40, 0  ;;  %v9524_v0 = vmax.f32 %v9396_v36, 0.0 }
 0xb3d   : > { %9797 = vst [vmem:[#allocation1 + $0x20] ss:$4 sm:$0xff] %v9508_v21  ;;  %v9256_v21 = vsel %vm570_vm0, %v8944_v55, %v9128_v29  ;;  %v9134_v4 = vperm.slane %v9070_v39, 0  ;;  %v9520_v24 = vmax.f32 %v9392_v16, 0.0 }
 0xb3e   : > { %9798 = vst [vmem:[#allocation1 + $0x21] ss:$4 sm:$0xff] %v9509_v33  ;;  %v9257_v33 = vsel %vm570_vm0, %v8945_v49, %v9129_v50  ;;  %v9393_v61 = vadd.f32 %v16080_v52, %v9256_v21 }
 0xb3f   : > { %9799 = vst [vmem:[#allocation1 + $0x22] ss:$4 sm:$0xff] %v9510_v15  ;;  %v9132_v15 = vperm.slane %v9068_v11, 0  ;;  %v9394_v47 = vadd.f32 %v16083_v19, %v9257_v33  ;;  %v9262_v56 = vsel %vm570_vm0, %v8950_v62, %v9134_v4 }
 0xb40   : > { %9800 = vst [vmem:[#allocation1 + $0x23] ss:$4 sm:$0xff] %v9511_v58  ;;  %v9133_v58 = vperm.slane %v9069_v17, 0  ;;  %v9521_v32 = vmax.f32 %v9393_v61, 0.0  ;;  %v9399_v44 = vadd.f32 %v16086_v45, %v9262_v56 }
 0xb41   : > { %v9260_v7 = vsel %vm570_vm0, %v8948_v5, %v9132_v15  ;;  %v9522_v38 = vmax.f32 %v9394_v47, 0.0 }
 0xb42   : > { %v9261_v1 = vsel %vm570_vm0, %v8949_v41, %v9133_v58  ;;  %v9397_v8 = vadd.f32 %v16080_v52, %v9260_v7  ;;  %v9527_v52 = vmax.f32 %v9399_v44, 0.0  ;;  %vm16929_vm0 = vmmov %vm16911_vm1 }
 0xb43   : > { %v9801_v35 = vld.sshfl [vmem:[#allocation1] sm:$0xff pattern:$0x73625140]  ;;  %v9398_v26 = vadd.f32 %v16083_v19, %v9261_v1  ;;  %vm16930_vm3 = vmmov %vm16929_vm0 }
 0xb44   : > { %9881 = vst.msk [vmem:[%s16126_s24 + $0xd0] sm:$0xff] %vm16911_vm1, %v9801_v35  ;;  %v9523_v35 = vmax.f32 %v9395_v27, 0.0  ;;  %v9525_v59 = vmax.f32 %v9397_v8, 0.0 }
 0xb45   : > { %9803 = vst [vmem:[#allocation1] ss:$4 sm:$0xff] %v9512_v54  ;;  %v9526_v30 = vmax.f32 %v9398_v26, 0.0 }
 0xb46   : > { %9804 = vst [vmem:[#allocation1 + $0x1] ss:$4 sm:$0xff] %v9513_v22 }
 0xb47   : > { %v9802_v20 = vld.sshfl [vmem:[#allocation1 + $0x20] sm:$0xff pattern:$0x73625140]  ;;  %9805 = vst [vmem:[#allocation1 + $0x2] ss:$4 sm:$0xff] %v9514_v31 }
 0xb48   : > { %9882 = vst.msk [vmem:[%s16126_s24 + $0xd8] sm:$0xff] %vm16926_vm6, %v9802_v20 }
 0xb49   : > { %9806 = vst [vmem:[#allocation1 + $0x3] ss:$4 sm:$0xff] %v9515_v18 }
 0xb4a   : > { %9807 = vst [vmem:[#allocation1 + $0x20] ss:$4 sm:$0xff] %v9516_v46 }
 0xb4b   : > { %9808 = vst [vmem:[#allocation1 + $0x21] ss:$4 sm:$0xff] %v9517_v23 }
 0xb4c   : > { %9809 = vst [vmem:[#allocation1 + $0x22] ss:$4 sm:$0xff] %v9518_v37 }
 0xb4d   : > { %9810 = vst [vmem:[#allocation1 + $0x23] ss:$4 sm:$0xff] %v9519_v13 }
 0xb50   : > { %v9811_v9 = vld.sshfl [vmem:[#allocation1] sm:$0xff pattern:$0x73625140] }
 0xb51   : > { %9883 = vst.msk [vmem:[%s16126_s24 + $0xe0] sm:$0xff] %vm16927_vm7, %v9811_v9 }
 0xb52   : > { %9813 = vst [vmem:[#allocation1] ss:$4 sm:$0xff] %v9520_v24 }
 0xb53   : > { %9814 = vst [vmem:[#allocation1 + $0x1] ss:$4 sm:$0xff] %v9521_v32 }
 0xb54   : > { %v9812_v6 = vld.sshfl [vmem:[#allocation1 + $0x20] sm:$0xff pattern:$0x73625140]  ;;  %9815 = vst [vmem:[#allocation1 + $0x2] ss:$4 sm:$0xff] %v9522_v38 }
 0xb55   : > { %9884 = vst.msk [vmem:[%s16126_s24 + $0xe8] sm:$0xff] %vm16928_vm2, %v9812_v6 }
 0xb56   : > { %9816 = vst [vmem:[#allocation1 + $0x3] ss:$4 sm:$0xff] %v9523_v35 }
 0xb57   : > { %9817 = vst [vmem:[#allocation1 + $0x20] ss:$4 sm:$0xff] %v9524_v0 }
 0xb58   : > { %9818 = vst [vmem:[#allocation1 + $0x21] ss:$4 sm:$0xff] %v9525_v59 }
 0xb59   : > { %9819 = vst [vmem:[#allocation1 + $0x22] ss:$4 sm:$0xff] %v9526_v30 }
 0xb5a   : > { %9820 = vst [vmem:[#allocation1 + $0x23] ss:$4 sm:$0xff] %v9527_v52 }
 0xb5d   : > { %v9821_v19 = vld.sshfl [vmem:[#allocation1] sm:$0xff pattern:$0x73625140] }
 0xb5e   : > { %9885 = vst.msk [vmem:[%s16126_s24 + $0xf0] sm:$0xff] %vm16929_vm0, %v9821_v19 }
 0xb61   : > { %v9822_v54 = vld.sshfl [vmem:[#allocation1 + $0x20] sm:$0xff pattern:$0x73625140] }
 0xb62   : > { %9886 = vst.msk [vmem:[%s16126_s24 + $0xf8] sm:$0xff] %vm16930_vm3, %v9822_v54 }
 0xb63 PF: > { %s25_s18 = sadd.s32 1, %s11910_s18  }
 0xb64   : > { %p22_p4 = scmp.ge.s32.totalorder %s25_s18, 4  }
 0xb66   :  { %24 = sbr.rel (!%p22_p4) target bundleno = 1 (0x1), region = 124 }

</bundles_post_ra>
